<compile_context>
chip_gen: v7x
topology: tpu7x:2x2x1
jax: 0.10.0
libtpu: 0.0.40
codegen_flags: <defaults>
</compile_context>

<pallas_src>
import functools

import jax
import jax.numpy as jnp
from jax.experimental import pallas as pl
from jax.experimental.pallas import tpu as pltpu

EPS = 1e-5


# --------------------------- trace-time helpers ---------------------------- #

def _im2col_3x3(x_nhwc, stride):
    """3x3 / pad-1 im2col (wrapper side, used for the group's input conv only).

    (B, H, W, C) -> (B*Ho*Wo, 9*C); columns are tap-major (kh, kw) with the C
    channels contiguous within each tap (matches `_w3x3` weight packing)."""
    B, H, W, C = x_nhwc.shape
    Ho, Wo = H // stride, W // stride
    xp = jnp.pad(x_nhwc, ((0, 0), (1, 1), (1, 1), (0, 0)))
    taps = []
    for kh in range(3):
        for kw in range(3):
            taps.append(xp[:, kh:kh + (Ho - 1) * stride + 1:stride,
                            kw:kw + (Wo - 1) * stride + 1:stride, :])
    return jnp.concatenate(taps, axis=-1).reshape(B * Ho * Wo, 9 * C)


def _w3x3(w):
    """torch conv weight (Cout, Cin, 3, 3) -> (9*Cin, Cout), tap-major rows."""
    co, ci = w.shape[0], w.shape[1]
    return jnp.transpose(w, (2, 3, 1, 0)).reshape(9 * ci, co)


def _bn_fold(bn):
    """Eval-mode BN -> per-channel (scale, shift), each (C,) float32."""
    scale = bn["weight"] / jnp.sqrt(bn["running_var"] + EPS)
    shift = bn["bias"] - bn["running_mean"] * scale
    return scale.astype(jnp.float32), shift.astype(jnp.float32)


# ------------------------------ Pallas kernel ------------------------------ #

def _make_block_group_kernel(n_blocks, has_down, Bt, Ho, Wo, Cin, Cout):
    """Fused kernel: n_blocks residual blocks on Bt images, all in VMEM."""
    Mo = Ho * Wo
    M = Bt * Mo
    K = 9 * Cout

    def kernel(*refs):
        p0_ref = refs[0]                       # (M, 9*Cin) bf16 input patches
        w_first_ref = refs[1]                  # (9*Cin, Cout) bf16
        i = 2
        w_down_ref = None
        if has_down:
            w_down_ref = refs[i]               # (Cin, Cout) bf16
            i += 1
        w_rest_ref = refs[i]                   # (2*n_blocks-1, 9*Cout, Cout) bf16
        scale_ref = refs[i + 1]                # (n_bn, 1, Cout) f32
        shift_ref = refs[i + 2]                # (n_bn, 1, Cout) f32
        o_ref = refs[i + 3]                    # (M, Cout) f32
        pad_ref = refs[i + 4]                  # (Bt, Ho+2, Wo+2, Cout) bf16 scratch

        # Zero the 1-pixel halo once; the interior is overwritten before each use.
        pad_ref[...] = jnp.zeros_like(pad_ref)

        def bn(idx, z):                        # fused BN epilogue (f32)
            return z * scale_ref[idx] + shift_ref[idx]

        def conv3x3(y_f32, w_bf16):
            """Stride-1 3x3 conv on an (M, Cout) activation: pad in VMEM, read the
            9 shifted windows, ONE MXU dot against tap-stacked weights (K=9*Cout)."""
            pad_ref[:, 1:Ho + 1, 1:Wo + 1, :] = (
                y_f32.astype(jnp.bfloat16).reshape(Bt, Ho, Wo, Cout))
            taps = [pad_ref[:, kh:kh + Ho, kw:kw + Wo, :]
                    for kh in range(3) for kw in range(3)]
            patches = jnp.concatenate(taps, axis=-1).reshape(M, K)
            return jnp.dot(patches, w_bf16, preferred_element_type=jnp.float32)

        # ---- block 0 (stride folded into the wrapper-side im2col) ----
        h = jnp.dot(p0_ref[...], w_first_ref[...],
                    preferred_element_type=jnp.float32)
        h = jnp.maximum(bn(0, h), 0.0)                     # conv1 + bn1 + relu
        m = bn(1, conv3x3(h, w_rest_ref[0]))               # conv2 + bn2
        x_center = p0_ref[:, 4 * Cin:5 * Cin]              # x at (strided) centres
        if has_down:                                       # 1x1 stride-s conv + bn
            sc = bn(2 * n_blocks,
                    jnp.dot(x_center, w_down_ref[...],
                            preferred_element_type=jnp.float32))
        else:                                              # identity (Cin == Cout)
            sc = x_center.astype(jnp.float32)
        y = jnp.maximum(m + sc, 0.0)

        # ---- blocks 1 .. n-1 (stride 1, Cout -> Cout, identity shortcut) ----
        wi = 1
        for b in range(1, n_blocks):
            h = jnp.maximum(bn(2 * b, conv3x3(y, w_rest_ref[wi])), 0.0)
            wi += 1
            m = bn(2 * b + 1, conv3x3(h, w_rest_ref[wi]))
            wi += 1
            y = jnp.maximum(m + y, 0.0)

        o_ref[...] = y.astype(o_ref.dtype)

    return kernel


# ------------------------------ forward wrapper ----------------------------- #

def block_group_forward(params, x_nchw, *, first_stride, batch_tile=None):
    blocks = params["blocks"]
    n_blocks = len(blocks)
    B, Cin, H, W = x_nchw.shape
    Cout = blocks[0]["conv1_w"].shape[0]
    s = first_stride
    has_down = s > 1
    if not has_down:
        assert Cin == Cout, "stride-1 BlockGroup requires in_feats == out_feats"
    assert H % s == 0 and W % s == 0
    Ho, Wo = H // s, W // s
    Mo = Ho * Wo
    n_bn = 2 * n_blocks + (1 if has_down else 0)

    # Batch folding: the whole (small) batch goes into one grid step so the
    # matmul M dimension is Bt*Ho*Wo.  For large B, tile the batch instead.
    Bt = B if batch_tile is None else batch_tile
    assert B % Bt == 0

    # Wrapper-side im2col of the group input only (handles the stride cleanly);
    # everything downstream stays in VMEM.  bf16 halves the input DMA bytes.
    x_nhwc = jnp.transpose(x_nchw, (0, 2, 3, 1))
    patches0 = _im2col_3x3(x_nhwc, s).astype(jnp.bfloat16)     # (B*Mo, 9*Cin)

    # Packed constants (bf16 weights, f32 BN scale/shift).
    w_first = _w3x3(blocks[0]["conv1_w"]).astype(jnp.bfloat16)  # (9*Cin, Cout)
    w_rest = [_w3x3(blocks[0]["conv2_w"])]
    for blk in blocks[1:]:
        w_rest.append(_w3x3(blk["conv1_w"]))
        w_rest.append(_w3x3(blk["conv2_w"]))
    w_rest = jnp.stack(w_rest).astype(jnp.bfloat16)             # (2n-1, 9*Cout, Cout)

    scales, shifts = [], []
    for blk in blocks:
        for name in ("bn1", "bn2"):
            sc, sh = _bn_fold(blk[name])
            scales.append(sc)
            shifts.append(sh)
    if has_down:
        sc, sh = _bn_fold(blocks[0]["bnd"])
        scales.append(sc)
        shifts.append(sh)
    scale = jnp.stack(scales).reshape(n_bn, 1, Cout)
    shift = jnp.stack(shifts).reshape(n_bn, 1, Cout)

    def const_spec(a):
        # Constant across the grid -> same block index every step (loaded once).
        return pl.BlockSpec(a.shape, lambda g, _nd=a.ndim: (0,) * _nd)

    inputs = [patches0, w_first]
    in_specs = [pl.BlockSpec((Bt * Mo, 9 * Cin), lambda g: (g, 0)),
                const_spec(w_first)]
    if has_down:
        w_down = jnp.transpose(blocks[0]["convd_w"][:, :, 0, 0]).astype(jnp.bfloat16)
        inputs.append(w_down)
        in_specs.append(const_spec(w_down))
    inputs += [w_rest, scale, shift]
    in_specs += [const_spec(w_rest), const_spec(scale), const_spec(shift)]

    # Rough VMEM working-set estimate (double-buffered I/O blocks + constants +
    # pad scratch + live intermediates) -- keep well under the scoped limit on
    # every generation (v7x physical VMEM is 64 MiB).
    vmem_est = (2 * Bt * Mo * 9 * Cin * 2
                + 2 * sum(int(a.size) * a.dtype.itemsize for a in inputs[1:])
                + 2 * Bt * Mo * Cout * 4
                + Bt * (Ho + 2) * (Wo + 2) * Cout * 2
                + Bt * Mo * (9 * Cout * 2 + 6 * Cout * 4))
    assert vmem_est < (16 << 20), "working set too large; add spatial/batch tiling"

    out2d = pl.pallas_call(
        _make_block_group_kernel(n_blocks, has_down, Bt, Ho, Wo, Cin, Cout),
        out_shape=jax.ShapeDtypeStruct((B * Mo, Cout), jnp.float32),
        grid=(B // Bt,),
        in_specs=in_specs,
        out_specs=pl.BlockSpec((Bt * Mo, Cout), lambda g: (g, 0)),
        scratch_shapes=[pltpu.VMEM((Bt, Ho + 2, Wo + 2, Cout), jnp.bfloat16)],
        compiler_params=pltpu.CompilerParams(
            dimension_semantics=("parallel",)),
    )(*inputs)

    return jnp.transpose(out2d.reshape(B, Ho, Wo, Cout), (0, 3, 1, 2))


# ------------------------- params / pure-JAX reference ---------------------- #

def init_block_group_params(key, n_blocks, in_feats, out_feats, first_stride):
    def conv_init(k, co, ci, kh, kw):
        bound = (1.0 / (ci * kh * kw)) ** 0.5
        return jax.random.uniform(k, (co, ci, kh, kw), jnp.float32, -bound, bound)

    def bn_init(k, c):
        k1, k2, k3, k4 = jax.random.split(k, 4)
        return {
            "weight": jax.random.uniform(k1, (c,), jnp.float32, 0.5, 1.5),
            "bias": jax.random.uniform(k2, (c,), jnp.float32, -0.3, 0.3),
            "running_mean": jax.random.uniform(k3, (c,), jnp.float32, -0.5, 0.5),
            "running_var": jax.random.uniform(k4, (c,), jnp.float32, 0.5, 1.5),
        }

    blocks = []
    keys = jax.random.split(key, n_blocks)
    for bi in range(n_blocks):
        ci = in_feats if bi == 0 else out_feats
        ks = jax.random.split(keys[bi], 6)
        blk = {
            "conv1_w": conv_init(ks[0], out_feats, ci, 3, 3),
            "bn1": bn_init(ks[1], out_feats),
            "conv2_w": conv_init(ks[2], out_feats, out_feats, 3, 3),
            "bn2": bn_init(ks[3], out_feats),
        }
        if bi == 0 and first_stride > 1:
            blk["convd_w"] = conv_init(ks[4], out_feats, ci, 1, 1)
            blk["bnd"] = bn_init(ks[5], out_feats)
        blocks.append(blk)
    return {"blocks": blocks}


def _conv_ref(x, w, stride, pad):
    return jax.lax.conv_general_dilated(
        x, w, window_strides=(stride, stride),
        padding=((pad, pad), (pad, pad)),
        dimension_numbers=("NCHW", "OIHW", "NCHW"),
        precision=jax.lax.Precision.HIGHEST)


def _bn_ref(x, bn):
    scale = bn["weight"] / jnp.sqrt(bn["running_var"] + EPS)
    shift = bn["bias"] - bn["running_mean"] * scale
    return x * scale[None, :, None, None] + shift[None, :, None, None]


def block_group_reference(params, x, *, first_stride):
    for bi, blk in enumerate(params["blocks"]):
        stride = first_stride if bi == 0 else 1
        h = jax.nn.relu(_bn_ref(_conv_ref(x, blk["conv1_w"], stride, 1), blk["bn1"]))
        m = _bn_ref(_conv_ref(h, blk["conv2_w"], 1, 1), blk["bn2"])
        if bi == 0 and first_stride > 1:
            sc = _bn_ref(_conv_ref(x, blk["convd_w"], stride, 0), blk["bnd"])
        else:
            sc = x
        x = jax.nn.relu(m + sc)
    return x


# ----------------------------------- main ----------------------------------- #

if __name__ == "__main__":
    key = jax.random.PRNGKey(0)
    kp1, kx1, kp2, kx2 = jax.random.split(key, 4)

    # Test 1: downsampling group (2 blocks, 4 -> 8 channels, stride 2, 16x16).
    params1 = init_block_group_params(kp1, 2, 4, 8, 2)
    x1 = jax.random.normal(kx1, (2, 4, 16, 16), jnp.float32)
    fwd1 = jax.jit(functools.partial(block_group_forward, first_stride=2))
    out1 = fwd1(params1, x1)
    jax.block_until_ready(out1)
    assert out1.shape == (2, 8, 8, 8) and out1.dtype == jnp.float32
    ref1 = block_group_reference(params1, x1, first_stride=2)
    err1 = float(jnp.max(jnp.abs(out1 - ref1)))
    # bf16 MXU inputs with f32 accumulation vs. a Precision.HIGHEST reference.
    assert jnp.allclose(out1, ref1, atol=5e-2, rtol=5e-2), f"stride-2 max_err={err1}"

    # Test 2: stride-1 group (1 block, 8 -> 8 channels, identity shortcut, 8x8).
    params2 = init_block_group_params(kp2, 1, 8, 8, 1)
    x2 = jax.random.normal(kx2, (2, 8, 8, 8), jnp.float32)
    fwd2 = jax.jit(functools.partial(block_group_forward, first_stride=1))
    out2 = fwd2(params2, x2)
    jax.block_until_ready(out2)
    assert out2.shape == (2, 8, 8, 8) and out2.dtype == jnp.float32
    ref2 = block_group_reference(params2, x2, first_stride=1)
    err2 = float(jnp.max(jnp.abs(out2 - ref2)))
    assert jnp.allclose(out2, ref2, atol=5e-2, rtol=5e-2), f"stride-1 max_err={err2}"

    print("KERNEL_OK")
</pallas_src>

<mosaic_0001>
module attributes {stable_mosaic.version = 11 : i64} {
  func.func @kernel(%arg0: i32, %arg1: memref<128x36xbf16, #tpu.memory_space<vmem>>, %arg2: memref<36x8xbf16, #tpu.memory_space<vmem>>, %arg3: memref<4x8xbf16, #tpu.memory_space<vmem>>, %arg4: memref<3x72x8xbf16, #tpu.memory_space<vmem>>, %arg5: memref<5x1x8xf32, #tpu.memory_space<vmem>>, %arg6: memref<5x1x8xf32, #tpu.memory_space<vmem>>, %arg7: memref<128x8xf32, #tpu.memory_space<vmem>>, %arg8: memref<2x10x10x8xbf16, #tpu.memory_space<vmem>>) attributes {dimension_semantics = [#tpu.dimension_semantics<parallel>], iteration_bounds = array<i64: 1>, scalar_prefetch = 0 : i64, scratch_operands = 1 : i64, tpu.core_type = #tpu.core_type<tc>, window_params = [{transform_indices = @transform_0, window_bounds = array<i64: 128, 36>}, {pipeline_mode = #tpu.pipeline_mode<synchronous>, transform_indices = @transform_1, window_bounds = array<i64: 36, 8>}, {pipeline_mode = #tpu.pipeline_mode<synchronous>, transform_indices = @transform_2, window_bounds = array<i64: 4, 8>}, {pipeline_mode = #tpu.pipeline_mode<synchronous>, transform_indices = @transform_3, window_bounds = array<i64: 3, 72, 8>}, {pipeline_mode = #tpu.pipeline_mode<synchronous>, transform_indices = @transform_4, window_bounds = array<i64: 5, 1, 8>}, {pipeline_mode = #tpu.pipeline_mode<synchronous>, transform_indices = @transform_5, window_bounds = array<i64: 5, 1, 8>}, {transform_indices = @transform_6, window_bounds = array<i64: 128, 8>}]} {
    %cst = arith.constant 0.000000e+00 : bf16
    %0 = vector.broadcast %cst : bf16 to vector<2x10x10x8xbf16>
    %c0 = arith.constant 0 : index
    %c0_0 = arith.constant 0 : index
    %c0_1 = arith.constant 0 : index
    %c0_2 = arith.constant 0 : index
    %1 = vector.load %arg8[%c0, %c0_0, %c0_1, %c0_2] : memref<2x10x10x8xbf16, #tpu.memory_space<vmem>>, vector<2x10x10x8xbf16>
    tpu.vector_store %arg8[%c0, %c0_0, %c0_1, %c0_2], %0 {strides = array<i32>} : memref<2x10x10x8xbf16, #tpu.memory_space<vmem>>, vector<2x10x10x8xbf16>,
    %c0_3 = arith.constant 0 : index
    %c0_4 = arith.constant 0 : index
    %2 = vector.load %arg1[%c0_3, %c0_4] : memref<128x36xbf16, #tpu.memory_space<vmem>>, vector<128x36xbf16>
    %c0_5 = arith.constant 0 : index
    %c0_6 = arith.constant 0 : index
    %3 = vector.load %arg2[%c0_5, %c0_6] : memref<36x8xbf16, #tpu.memory_space<vmem>>, vector<36x8xbf16>
    %cst_7 = arith.constant dense<0.000000e+00> : vector<128x8xf32>
    %4 = tpu.matmul %2, %3, %cst_7 {dimension_numbers = #tpu.dot_dimension_numbers<[1], [0], [0], [1], [0, 0, 1, 1], [], []>} : vector<128x36xbf16>, vector<36x8xbf16>, vector<128x8xf32> -> vector<128x8xf32>
    %c0_8 = arith.constant 0 : index
    %c0_9 = arith.constant 0 : index
    %c0_10 = arith.constant 0 : index
    %5 = vector.load %arg5[%c0_8, %c0_9, %c0_10] : memref<5x1x8xf32, #tpu.memory_space<vmem>>, vector<1x1x8xf32>
    %6 = vector.shape_cast %5 : vector<1x1x8xf32> to vector<1x8xf32>
    %7 = vector.broadcast %6 : vector<1x8xf32> to vector<128x8xf32>
    %8 = arith.mulf %4, %7 : vector<128x8xf32>
    %c0_11 = arith.constant 0 : index
    %c0_12 = arith.constant 0 : index
    %c0_13 = arith.constant 0 : index
    %9 = vector.load %arg6[%c0_11, %c0_12, %c0_13] : memref<5x1x8xf32, #tpu.memory_space<vmem>>, vector<1x1x8xf32>
    %10 = vector.shape_cast %9 : vector<1x1x8xf32> to vector<1x8xf32>
    %11 = vector.broadcast %10 : vector<1x8xf32> to vector<128x8xf32>
    %12 = arith.addf %8, %11 : vector<128x8xf32>
    %cst_14 = arith.constant 0.000000e+00 : f32
    %13 = vector.broadcast %cst_14 : f32 to vector<128x8xf32>
    %14 = arith.maximumf %12, %13 : vector<128x8xf32>
    %c0_15 = arith.constant 0 : index
    %c0_16 = arith.constant 0 : index
    %c0_17 = arith.constant 0 : index
    %15 = vector.load %arg4[%c0_15, %c0_16, %c0_17] : memref<3x72x8xbf16, #tpu.memory_space<vmem>>, vector<1x72x8xbf16>
    %16 = vector.shape_cast %15 : vector<1x72x8xbf16> to vector<72x8xbf16>
    %17 = arith.truncf %14 : vector<128x8xf32> to vector<128x8xbf16>
    %18 = vector.shape_cast %17 : vector<128x8xbf16> to vector<2x8x8x8xbf16>
    %c0_18 = arith.constant 0 : index
    %c1 = arith.constant 1 : index
    %c1_19 = arith.constant 1 : index
    %c0_20 = arith.constant 0 : index
    %19 = vector.load %arg8[%c0_18, %c1, %c1_19, %c0_20] : memref<2x10x10x8xbf16, #tpu.memory_space<vmem>>, vector<2x8x8x8xbf16>
    tpu.vector_store %arg8[%c0_18, %c1, %c1_19, %c0_20], %18 {strides = array<i32>} : memref<2x10x10x8xbf16, #tpu.memory_space<vmem>>, vector<2x8x8x8xbf16>,
    %c0_21 = arith.constant 0 : index
    %c0_22 = arith.constant 0 : index
    %c0_23 = arith.constant 0 : index
    %c0_24 = arith.constant 0 : index
    %20 = vector.load %arg8[%c0_21, %c0_22, %c0_23, %c0_24] : memref<2x10x10x8xbf16, #tpu.memory_space<vmem>>, vector<2x8x8x8xbf16>
    %c0_25 = arith.constant 0 : index
    %c0_26 = arith.constant 0 : index
    %c1_27 = arith.constant 1 : index
    %c0_28 = arith.constant 0 : index
    %21 = vector.load %arg8[%c0_25, %c0_26, %c1_27, %c0_28] : memref<2x10x10x8xbf16, #tpu.memory_space<vmem>>, vector<2x8x8x8xbf16>
    %c0_29 = arith.constant 0 : index
    %c0_30 = arith.constant 0 : index
    %c2 = arith.constant 2 : index
    %c0_31 = arith.constant 0 : index
    %22 = vector.load %arg8[%c0_29, %c0_30, %c2, %c0_31] : memref<2x10x10x8xbf16, #tpu.memory_space<vmem>>, vector<2x8x8x8xbf16>
    %c0_32 = arith.constant 0 : index
    %c1_33 = arith.constant 1 : index
    %c0_34 = arith.constant 0 : index
    %c0_35 = arith.constant 0 : index
    %23 = vector.load %arg8[%c0_32, %c1_33, %c0_34, %c0_35] : memref<2x10x10x8xbf16, #tpu.memory_space<vmem>>, vector<2x8x8x8xbf16>
    %c0_36 = arith.constant 0 : index
    %c1_37 = arith.constant 1 : index
    %c1_38 = arith.constant 1 : index
    %c0_39 = arith.constant 0 : index
    %24 = vector.load %arg8[%c0_36, %c1_37, %c1_38, %c0_39] : memref<2x10x10x8xbf16, #tpu.memory_space<vmem>>, vector<2x8x8x8xbf16>
    %c0_40 = arith.constant 0 : index
    %c1_41 = arith.constant 1 : index
    %c2_42 = arith.constant 2 : index
    %c0_43 = arith.constant 0 : index
    %25 = vector.load %arg8[%c0_40, %c1_41, %c2_42, %c0_43] : memref<2x10x10x8xbf16, #tpu.memory_space<vmem>>, vector<2x8x8x8xbf16>
    %c0_44 = arith.constant 0 : index
    %c2_45 = arith.constant 2 : index
    %c0_46 = arith.constant 0 : index
    %c0_47 = arith.constant 0 : index
    %26 = vector.load %arg8[%c0_44, %c2_45, %c0_46, %c0_47] : memref<2x10x10x8xbf16, #tpu.memory_space<vmem>>, vector<2x8x8x8xbf16>
    %c0_48 = arith.constant 0 : index
    %c2_49 = arith.constant 2 : index
    %c1_50 = arith.constant 1 : index
    %c0_51 = arith.constant 0 : index
    %27 = vector.load %arg8[%c0_48, %c2_49, %c1_50, %c0_51] : memref<2x10x10x8xbf16, #tpu.memory_space<vmem>>, vector<2x8x8x8xbf16>
    %c0_52 = arith.constant 0 : index
    %c2_53 = arith.constant 2 : index
    %c2_54 = arith.constant 2 : index
    %c0_55 = arith.constant 0 : index
    %28 = vector.load %arg8[%c0_52, %c2_53, %c2_54, %c0_55] : memref<2x10x10x8xbf16, #tpu.memory_space<vmem>>, vector<2x8x8x8xbf16>
    %29 = tpu.concatenate %20, %21, %22, %23, %24, %25, %26, %27, %28 in 3 : vector<2x8x8x8xbf16>, vector<2x8x8x8xbf16>, vector<2x8x8x8xbf16>, vector<2x8x8x8xbf16>, vector<2x8x8x8xbf16>, vector<2x8x8x8xbf16>, vector<2x8x8x8xbf16>, vector<2x8x8x8xbf16>, vector<2x8x8x8xbf16> -> vector<2x8x8x72xbf16>
    %30 = vector.shape_cast %29 : vector<2x8x8x72xbf16> to vector<128x72xbf16>
    %cst_56 = arith.constant dense<0.000000e+00> : vector<128x8xf32>
    %31 = tpu.matmul %30, %16, %cst_56 {dimension_numbers = #tpu.dot_dimension_numbers<[1], [0], [0], [1], [0, 0, 1, 1], [], []>} : vector<128x72xbf16>, vector<72x8xbf16>, vector<128x8xf32> -> vector<128x8xf32>
    %c1_57 = arith.constant 1 : index
    %c0_58 = arith.constant 0 : index
    %c0_59 = arith.constant 0 : index
    %32 = vector.load %arg5[%c1_57, %c0_58, %c0_59] : memref<5x1x8xf32, #tpu.memory_space<vmem>>, vector<1x1x8xf32>
    %33 = vector.shape_cast %32 : vector<1x1x8xf32> to vector<1x8xf32>
    %34 = vector.broadcast %33 : vector<1x8xf32> to vector<128x8xf32>
    %35 = arith.mulf %31, %34 : vector<128x8xf32>
    %c1_60 = arith.constant 1 : index
    %c0_61 = arith.constant 0 : index
    %c0_62 = arith.constant 0 : index
    %36 = vector.load %arg6[%c1_60, %c0_61, %c0_62] : memref<5x1x8xf32, #tpu.memory_space<vmem>>, vector<1x1x8xf32>
    %37 = vector.shape_cast %36 : vector<1x1x8xf32> to vector<1x8xf32>
    %38 = vector.broadcast %37 : vector<1x8xf32> to vector<128x8xf32>
    %39 = arith.addf %35, %38 : vector<128x8xf32>
    %c0_63 = arith.constant 0 : index
    %c16 = arith.constant 16 : index
    %40 = vector.load %arg1[%c0_63, %c16] : memref<128x36xbf16, #tpu.memory_space<vmem>>, vector<128x4xbf16>
    %c0_64 = arith.constant 0 : index
    %c0_65 = arith.constant 0 : index
    %41 = vector.load %arg3[%c0_64, %c0_65] : memref<4x8xbf16, #tpu.memory_space<vmem>>, vector<4x8xbf16>
    %cst_66 = arith.constant dense<0.000000e+00> : vector<128x8xf32>
    %42 = tpu.matmul %40, %41, %cst_66 {dimension_numbers = #tpu.dot_dimension_numbers<[1], [0], [0], [1], [0, 0, 1, 1], [], []>} : vector<128x4xbf16>, vector<4x8xbf16>, vector<128x8xf32> -> vector<128x8xf32>
    %c4 = arith.constant 4 : index
    %c0_67 = arith.constant 0 : index
    %c0_68 = arith.constant 0 : index
    %43 = vector.load %arg5[%c4, %c0_67, %c0_68] : memref<5x1x8xf32, #tpu.memory_space<vmem>>, vector<1x1x8xf32>
    %44 = vector.shape_cast %43 : vector<1x1x8xf32> to vector<1x8xf32>
    %45 = vector.broadcast %44 : vector<1x8xf32> to vector<128x8xf32>
    %46 = arith.mulf %42, %45 : vector<128x8xf32>
    %c4_69 = arith.constant 4 : index
    %c0_70 = arith.constant 0 : index
    %c0_71 = arith.constant 0 : index
    %47 = vector.load %arg6[%c4_69, %c0_70, %c0_71] : memref<5x1x8xf32, #tpu.memory_space<vmem>>, vector<1x1x8xf32>
    %48 = vector.shape_cast %47 : vector<1x1x8xf32> to vector<1x8xf32>
    %49 = vector.broadcast %48 : vector<1x8xf32> to vector<128x8xf32>
    %50 = arith.addf %46, %49 : vector<128x8xf32>
    %51 = arith.addf %39, %50 : vector<128x8xf32>
    %cst_72 = arith.constant 0.000000e+00 : f32
    %52 = vector.broadcast %cst_72 : f32 to vector<128x8xf32>
    %53 = arith.maximumf %51, %52 : vector<128x8xf32>
    %c1_73 = arith.constant 1 : index
    %c0_74 = arith.constant 0 : index
    %c0_75 = arith.constant 0 : index
    %54 = vector.load %arg4[%c1_73, %c0_74, %c0_75] : memref<3x72x8xbf16, #tpu.memory_space<vmem>>, vector<1x72x8xbf16>
    %55 = vector.shape_cast %54 : vector<1x72x8xbf16> to vector<72x8xbf16>
    %56 = arith.truncf %53 : vector<128x8xf32> to vector<128x8xbf16>
    %57 = vector.shape_cast %56 : vector<128x8xbf16> to vector<2x8x8x8xbf16>
    %c0_76 = arith.constant 0 : index
    %c1_77 = arith.constant 1 : index
    %c1_78 = arith.constant 1 : index
    %c0_79 = arith.constant 0 : index
    %58 = vector.load %arg8[%c0_76, %c1_77, %c1_78, %c0_79] : memref<2x10x10x8xbf16, #tpu.memory_space<vmem>>, vector<2x8x8x8xbf16>
    tpu.vector_store %arg8[%c0_76, %c1_77, %c1_78, %c0_79], %57 {strides = array<i32>} : memref<2x10x10x8xbf16, #tpu.memory_space<vmem>>, vector<2x8x8x8xbf16>,
    %c0_80 = arith.constant 0 : index
    %c0_81 = arith.constant 0 : index
    %c0_82 = arith.constant 0 : index
    %c0_83 = arith.constant 0 : index
    %59 = vector.load %arg8[%c0_80, %c0_81, %c0_82, %c0_83] : memref<2x10x10x8xbf16, #tpu.memory_space<vmem>>, vector<2x8x8x8xbf16>
    %c0_84 = arith.constant 0 : index
    %c0_85 = arith.constant 0 : index
    %c1_86 = arith.constant 1 : index
    %c0_87 = arith.constant 0 : index
    %60 = vector.load %arg8[%c0_84, %c0_85, %c1_86, %c0_87] : memref<2x10x10x8xbf16, #tpu.memory_space<vmem>>, vector<2x8x8x8xbf16>
    %c0_88 = arith.constant 0 : index
    %c0_89 = arith.constant 0 : index
    %c2_90 = arith.constant 2 : index
    %c0_91 = arith.constant 0 : index
    %61 = vector.load %arg8[%c0_88, %c0_89, %c2_90, %c0_91] : memref<2x10x10x8xbf16, #tpu.memory_space<vmem>>, vector<2x8x8x8xbf16>
    %c0_92 = arith.constant 0 : index
    %c1_93 = arith.constant 1 : index
    %c0_94 = arith.constant 0 : index
    %c0_95 = arith.constant 0 : index
    %62 = vector.load %arg8[%c0_92, %c1_93, %c0_94, %c0_95] : memref<2x10x10x8xbf16, #tpu.memory_space<vmem>>, vector<2x8x8x8xbf16>
    %c0_96 = arith.constant 0 : index
    %c1_97 = arith.constant 1 : index
    %c1_98 = arith.constant 1 : index
    %c0_99 = arith.constant 0 : index
    %63 = vector.load %arg8[%c0_96, %c1_97, %c1_98, %c0_99] : memref<2x10x10x8xbf16, #tpu.memory_space<vmem>>, vector<2x8x8x8xbf16>
    %c0_100 = arith.constant 0 : index
    %c1_101 = arith.constant 1 : index
    %c2_102 = arith.constant 2 : index
    %c0_103 = arith.constant 0 : index
    %64 = vector.load %arg8[%c0_100, %c1_101, %c2_102, %c0_103] : memref<2x10x10x8xbf16, #tpu.memory_space<vmem>>, vector<2x8x8x8xbf16>
    %c0_104 = arith.constant 0 : index
    %c2_105 = arith.constant 2 : index
    %c0_106 = arith.constant 0 : index
    %c0_107 = arith.constant 0 : index
    %65 = vector.load %arg8[%c0_104, %c2_105, %c0_106, %c0_107] : memref<2x10x10x8xbf16, #tpu.memory_space<vmem>>, vector<2x8x8x8xbf16>
    %c0_108 = arith.constant 0 : index
    %c2_109 = arith.constant 2 : index
    %c1_110 = arith.constant 1 : index
    %c0_111 = arith.constant 0 : index
    %66 = vector.load %arg8[%c0_108, %c2_109, %c1_110, %c0_111] : memref<2x10x10x8xbf16, #tpu.memory_space<vmem>>, vector<2x8x8x8xbf16>
    %c0_112 = arith.constant 0 : index
    %c2_113 = arith.constant 2 : index
    %c2_114 = arith.constant 2 : index
    %c0_115 = arith.constant 0 : index
    %67 = vector.load %arg8[%c0_112, %c2_113, %c2_114, %c0_115] : memref<2x10x10x8xbf16, #tpu.memory_space<vmem>>, vector<2x8x8x8xbf16>
    %68 = tpu.concatenate %59, %60, %61, %62, %63, %64, %65, %66, %67 in 3 : vector<2x8x8x8xbf16>, vector<2x8x8x8xbf16>, vector<2x8x8x8xbf16>, vector<2x8x8x8xbf16>, vector<2x8x8x8xbf16>, vector<2x8x8x8xbf16>, vector<2x8x8x8xbf16>, vector<2x8x8x8xbf16>, vector<2x8x8x8xbf16> -> vector<2x8x8x72xbf16>
    %69 = vector.shape_cast %68 : vector<2x8x8x72xbf16> to vector<128x72xbf16>
    %cst_116 = arith.constant dense<0.000000e+00> : vector<128x8xf32>
    %70 = tpu.matmul %69, %55, %cst_116 {dimension_numbers = #tpu.dot_dimension_numbers<[1], [0], [0], [1], [0, 0, 1, 1], [], []>} : vector<128x72xbf16>, vector<72x8xbf16>, vector<128x8xf32> -> vector<128x8xf32>
    %c2_117 = arith.constant 2 : index
    %c0_118 = arith.constant 0 : index
    %c0_119 = arith.constant 0 : index
    %71 = vector.load %arg5[%c2_117, %c0_118, %c0_119] : memref<5x1x8xf32, #tpu.memory_space<vmem>>, vector<1x1x8xf32>
    %72 = vector.shape_cast %71 : vector<1x1x8xf32> to vector<1x8xf32>
    %73 = vector.broadcast %72 : vector<1x8xf32> to vector<128x8xf32>
    %74 = arith.mulf %70, %73 : vector<128x8xf32>
    %c2_120 = arith.constant 2 : index
    %c0_121 = arith.constant 0 : index
    %c0_122 = arith.constant 0 : index
    %75 = vector.load %arg6[%c2_120, %c0_121, %c0_122] : memref<5x1x8xf32, #tpu.memory_space<vmem>>, vector<1x1x8xf32>
    %76 = vector.shape_cast %75 : vector<1x1x8xf32> to vector<1x8xf32>
    %77 = vector.broadcast %76 : vector<1x8xf32> to vector<128x8xf32>
    %78 = arith.addf %74, %77 : vector<128x8xf32>
    %cst_123 = arith.constant 0.000000e+00 : f32
    %79 = vector.broadcast %cst_123 : f32 to vector<128x8xf32>
    %80 = arith.maximumf %78, %79 : vector<128x8xf32>
    %c2_124 = arith.constant 2 : index
    %c0_125 = arith.constant 0 : index
    %c0_126 = arith.constant 0 : index
    %81 = vector.load %arg4[%c2_124, %c0_125, %c0_126] : memref<3x72x8xbf16, #tpu.memory_space<vmem>>, vector<1x72x8xbf16>
    %82 = vector.shape_cast %81 : vector<1x72x8xbf16> to vector<72x8xbf16>
    %83 = arith.truncf %80 : vector<128x8xf32> to vector<128x8xbf16>
    %84 = vector.shape_cast %83 : vector<128x8xbf16> to vector<2x8x8x8xbf16>
    %c0_127 = arith.constant 0 : index
    %c1_128 = arith.constant 1 : index
    %c1_129 = arith.constant 1 : index
    %c0_130 = arith.constant 0 : index
    %85 = vector.load %arg8[%c0_127, %c1_128, %c1_129, %c0_130] : memref<2x10x10x8xbf16, #tpu.memory_space<vmem>>, vector<2x8x8x8xbf16>
    tpu.vector_store %arg8[%c0_127, %c1_128, %c1_129, %c0_130], %84 {strides = array<i32>} : memref<2x10x10x8xbf16, #tpu.memory_space<vmem>>, vector<2x8x8x8xbf16>,
    %c0_131 = arith.constant 0 : index
    %c0_132 = arith.constant 0 : index
    %c0_133 = arith.constant 0 : index
    %c0_134 = arith.constant 0 : index
    %86 = vector.load %arg8[%c0_131, %c0_132, %c0_133, %c0_134] : memref<2x10x10x8xbf16, #tpu.memory_space<vmem>>, vector<2x8x8x8xbf16>
    %c0_135 = arith.constant 0 : index
    %c0_136 = arith.constant 0 : index
    %c1_137 = arith.constant 1 : index
    %c0_138 = arith.constant 0 : index
    %87 = vector.load %arg8[%c0_135, %c0_136, %c1_137, %c0_138] : memref<2x10x10x8xbf16, #tpu.memory_space<vmem>>, vector<2x8x8x8xbf16>
    %c0_139 = arith.constant 0 : index
    %c0_140 = arith.constant 0 : index
    %c2_141 = arith.constant 2 : index
    %c0_142 = arith.constant 0 : index
    %88 = vector.load %arg8[%c0_139, %c0_140, %c2_141, %c0_142] : memref<2x10x10x8xbf16, #tpu.memory_space<vmem>>, vector<2x8x8x8xbf16>
    %c0_143 = arith.constant 0 : index
    %c1_144 = arith.constant 1 : index
    %c0_145 = arith.constant 0 : index
    %c0_146 = arith.constant 0 : index
    %89 = vector.load %arg8[%c0_143, %c1_144, %c0_145, %c0_146] : memref<2x10x10x8xbf16, #tpu.memory_space<vmem>>, vector<2x8x8x8xbf16>
    %c0_147 = arith.constant 0 : index
    %c1_148 = arith.constant 1 : index
    %c1_149 = arith.constant 1 : index
    %c0_150 = arith.constant 0 : index
    %90 = vector.load %arg8[%c0_147, %c1_148, %c1_149, %c0_150] : memref<2x10x10x8xbf16, #tpu.memory_space<vmem>>, vector<2x8x8x8xbf16>
    %c0_151 = arith.constant 0 : index
    %c1_152 = arith.constant 1 : index
    %c2_153 = arith.constant 2 : index
    %c0_154 = arith.constant 0 : index
    %91 = vector.load %arg8[%c0_151, %c1_152, %c2_153, %c0_154] : memref<2x10x10x8xbf16, #tpu.memory_space<vmem>>, vector<2x8x8x8xbf16>
    %c0_155 = arith.constant 0 : index
    %c2_156 = arith.constant 2 : index
    %c0_157 = arith.constant 0 : index
    %c0_158 = arith.constant 0 : index
    %92 = vector.load %arg8[%c0_155, %c2_156, %c0_157, %c0_158] : memref<2x10x10x8xbf16, #tpu.memory_space<vmem>>, vector<2x8x8x8xbf16>
    %c0_159 = arith.constant 0 : index
    %c2_160 = arith.constant 2 : index
    %c1_161 = arith.constant 1 : index
    %c0_162 = arith.constant 0 : index
    %93 = vector.load %arg8[%c0_159, %c2_160, %c1_161, %c0_162] : memref<2x10x10x8xbf16, #tpu.memory_space<vmem>>, vector<2x8x8x8xbf16>
    %c0_163 = arith.constant 0 : index
    %c2_164 = arith.constant 2 : index
    %c2_165 = arith.constant 2 : index
    %c0_166 = arith.constant 0 : index
    %94 = vector.load %arg8[%c0_163, %c2_164, %c2_165, %c0_166] : memref<2x10x10x8xbf16, #tpu.memory_space<vmem>>, vector<2x8x8x8xbf16>
    %95 = tpu.concatenate %86, %87, %88, %89, %90, %91, %92, %93, %94 in 3 : vector<2x8x8x8xbf16>, vector<2x8x8x8xbf16>, vector<2x8x8x8xbf16>, vector<2x8x8x8xbf16>, vector<2x8x8x8xbf16>, vector<2x8x8x8xbf16>, vector<2x8x8x8xbf16>, vector<2x8x8x8xbf16>, vector<2x8x8x8xbf16> -> vector<2x8x8x72xbf16>
    %96 = vector.shape_cast %95 : vector<2x8x8x72xbf16> to vector<128x72xbf16>
    %cst_167 = arith.constant dense<0.000000e+00> : vector<128x8xf32>
    %97 = tpu.matmul %96, %82, %cst_167 {dimension_numbers = #tpu.dot_dimension_numbers<[1], [0], [0], [1], [0, 0, 1, 1], [], []>} : vector<128x72xbf16>, vector<72x8xbf16>, vector<128x8xf32> -> vector<128x8xf32>
    %c3 = arith.constant 3 : index
    %c0_168 = arith.constant 0 : index
    %c0_169 = arith.constant 0 : index
    %98 = vector.load %arg5[%c3, %c0_168, %c0_169] : memref<5x1x8xf32, #tpu.memory_space<vmem>>, vector<1x1x8xf32>
    %99 = vector.shape_cast %98 : vector<1x1x8xf32> to vector<1x8xf32>
    %100 = vector.broadcast %99 : vector<1x8xf32> to vector<128x8xf32>
    %101 = arith.mulf %97, %100 : vector<128x8xf32>
    %c3_170 = arith.constant 3 : index
    %c0_171 = arith.constant 0 : index
    %c0_172 = arith.constant 0 : index
    %102 = vector.load %arg6[%c3_170, %c0_171, %c0_172] : memref<5x1x8xf32, #tpu.memory_space<vmem>>, vector<1x1x8xf32>
    %103 = vector.shape_cast %102 : vector<1x1x8xf32> to vector<1x8xf32>
    %104 = vector.broadcast %103 : vector<1x8xf32> to vector<128x8xf32>
    %105 = arith.addf %101, %104 : vector<128x8xf32>
    %106 = arith.addf %105, %53 : vector<128x8xf32>
    %cst_173 = arith.constant 0.000000e+00 : f32
    %107 = vector.broadcast %cst_173 : f32 to vector<128x8xf32>
    %108 = arith.maximumf %106, %107 : vector<128x8xf32>
    %c0_174 = arith.constant 0 : index
    %c0_175 = arith.constant 0 : index
    %109 = vector.load %arg7[%c0_174, %c0_175] : memref<128x8xf32, #tpu.memory_space<vmem>>, vector<128x8xf32>
    tpu.vector_store %arg7[%c0_174, %c0_175], %108 {strides = array<i32>} : memref<128x8xf32, #tpu.memory_space<vmem>>, vector<128x8xf32>,
    return
  }
  func.func @transform_0(%arg0: i32) -> (i32, i32) {
    %c0_i32 = arith.constant 0 : i32
    %c0_i32_0 = arith.constant 0 : i32
    return %arg0, %c0_i32 : i32, i32
  }
  func.func @transform_1(%arg0: i32) -> (i32, i32) {
    %c0_i32 = arith.constant 0 : i32
    %c0_i32_0 = arith.constant 0 : i32
    %c0_i32_1 = arith.constant 0 : i32
    return %c0_i32, %c0_i32_0 : i32, i32
  }
  func.func @transform_2(%arg0: i32) -> (i32, i32) {
    %c0_i32 = arith.constant 0 : i32
    %c0_i32_0 = arith.constant 0 : i32
    %c0_i32_1 = arith.constant 0 : i32
    return %c0_i32, %c0_i32_0 : i32, i32
  }
  func.func @transform_3(%arg0: i32) -> (i32, i32, i32) {
    %c0_i32 = arith.constant 0 : i32
    %c0_i32_0 = arith.constant 0 : i32
    %c0_i32_1 = arith.constant 0 : i32
    %c0_i32_2 = arith.constant 0 : i32
    return %c0_i32, %c0_i32_0, %c0_i32_1 : i32, i32, i32
  }
  func.func @transform_4(%arg0: i32) -> (i32, i32, i32) {
    %c0_i32 = arith.constant 0 : i32
    %c0_i32_0 = arith.constant 0 : i32
    %c0_i32_1 = arith.constant 0 : i32
    %c0_i32_2 = arith.constant 0 : i32
    return %c0_i32, %c0_i32_0, %c0_i32_1 : i32, i32, i32
  }
  func.func @transform_5(%arg0: i32) -> (i32, i32, i32) {
    %c0_i32 = arith.constant 0 : i32
    %c0_i32_0 = arith.constant 0 : i32
    %c0_i32_1 = arith.constant 0 : i32
    %c0_i32_2 = arith.constant 0 : i32
    return %c0_i32, %c0_i32_0, %c0_i32_1 : i32, i32, i32
  }
  func.func @transform_6(%arg0: i32) -> (i32, i32) {
    %c0_i32 = arith.constant 0 : i32
    %c0_i32_0 = arith.constant 0 : i32
    return %arg0, %c0_i32 : i32, i32
  }
}

</mosaic_0001>

<bundles_post_ra>
// kernel: block_group_forward.1
= control target key start
LH: loop header
LB: loop body
LE: loop exit
PB: predicated region body
PF: predicated region fallthrough
CT: control target
= control target key end

     0   :  { %vm24_vm0 = vcmask 60416   ;;  %v8030_v1 = vmov 0   ;;  %vm26_vm1 = vcmask 57344   ;;  %vm142_vm2 = vcmask 293888   ;;  %s8031_s14 = smov 112   ;;  %s8032_s19 = smov 16   ;;  %s11427_s1 = inlined_call_operand.vmem [shape: bf16[36,8], index: 1, kind: input, shape index: {}]   ;;  %s11428_s0 = inlined_call_operand.vmem [shape: bf16[128,36], index: 0, kind: input, shape index: {}]   ;;  %s11429_s2 = inlined_call_operand.vmem [shape: bf16[4,8], index: 2, kind: input, shape index: {}]   ;;  %s11430_s4 = inlined_call_operand.vmem [shape: f32[5,1,8], index: 4, kind: input, shape index: {}]   ;;  %s11431_s5 = inlined_call_operand.vmem [shape: f32[5,1,8], index: 5, kind: input, shape index: {}]   ;;  %s11432_s3 = inlined_call_operand.vmem [shape: bf16[3,72,8], index: 3, kind: input, shape index: {}]   ;;  %s11433_s6 = inlined_call_operand.vmem [shape: f32[128,8], index: 6, kind: output, shape index: {}]  }
   0x1   :  { %v7579_v0 = vld [vmem:[%s11427_s1] sm:$0xff]   ;;  %25 = vst.msk [vmem:[#allocation2] sm:$0xf] %vm24_vm0, %v8030_v1  ;;  %28 = vst.msk [vmem:[#allocation2 + $0x8] sm:$0xf] %vm24_vm0, %v8030_v1  ;;  %v7580_v2 = vld [vmem:[%s11427_s1 + $0x8] sm:$0xff]  }
   0x2   :  { %30 = vst.msk [vmem:[#allocation2 + $0x10] sm:$0xf] %vm24_vm0, %v8030_v1  ;;  %32 = vst.msk [vmem:[#allocation2 + $0x18] sm:$0xf] %vm24_vm0, %v8030_v1  ;;  %7439 = vmatprep.subr.bf16.mxu0 %v7579_v0  ;;  %7557 = vmatprep.subr.bf16.mxu1 %v7579_v0  ;;  %v7582_v4 = vld [vmem:[%s11428_s0] sm:$0xff]   ;;  %v7583_v5 = vld [vmem:[%s11428_s0 + $0x10] sm:$0xff]  }
   0x3   :  { %34 = vst.msk [vmem:[#allocation2 + $0x20] sm:$0xf] %vm24_vm0, %v8030_v1  ;;  %36 = vst.msk [vmem:[#allocation2 + $0x28] sm:$0xf] %vm24_vm0, %v8030_v1  ;;  %7440 = vmatpush3.bf16.msra.mxu0 %v7579_v0  ;;  %7560 = vmatpush3.bf16.msra.mxu1 %v7579_v0  ;;  %vm167_vm3 = vcmask 1041408   ;;  %v7584_v7 = vld [vmem:[%s11428_s0 + $0x8] sm:$0xff]  }
   0x4   :  { %38 = vst.msk [vmem:[#allocation2 + $0x30] sm:$0xf] %vm24_vm0, %v8030_v1  ;;  %40 = vst.msk [vmem:[#allocation2 + $0x38] sm:$0xf] %vm24_vm0, %v8030_v1  ;;  %7441 = vmatprep.subr.bf16.mxu0 %v7580_v2  ;;  %7558 = vmatprep.subr.bf16.mxu1 %v7580_v2  ;;  %v7585_v8 = vld [vmem:[%s11428_s0 + $0x18] sm:$0xff]   ;;  %v7586_v9 = vld [vmem:[%s11428_s0 + $0x20] sm:$0xff]  }
   0x5   :  { %42 = vst.msk [vmem:[#allocation2 + $0x40] sm:$0xf] %vm24_vm0, %v8030_v1  ;;  %44 = vst.msk [vmem:[#allocation2 + $0x48] sm:$0xf] %vm24_vm0, %v8030_v1  ;;  %7445 = vmatprep.mubr.msk.bf16.mxu0 %vm142_vm2, %v7582_v4  ;;  %7449 = vmatprep.mubr.msk.bf16.mxu1 %vm142_vm2, %v7583_v5  ;;  %v7590_v10 = vld [vmem:[%s11428_s0] sm:$0xff]   ;;  %v7593_v16 = vld [vmem:[%s11428_s0 + $0x8] sm:$0xff]  }
   0x6   :  { %46 = vst.msk [vmem:[#allocation2 + $0x50] sm:$0xf] %vm24_vm0, %v8030_v1  ;;  %48 = vst.msk [vmem:[#allocation2 + $0x58] sm:$0xf] %vm24_vm0, %v8030_v1  ;;  %2429 = vrot.lane.b32.xlu0 %v7590_v10, %s8031_s14  ;;  %2431 = vrot.lane.b32.xlu1 %v7593_v16, %s8031_s14  ;;  %v7587_v30 = vld [vmem:[%s11428_s0 + $0x28] sm:$0xff]   ;;  %v7588_v34 = vld [vmem:[%s11428_s0 + $0x30] sm:$0xff]  }
   0x7   :  { %50 = vst.msk [vmem:[#allocation2 + $0x60] sm:$0xf] %vm24_vm0, %v8030_v1  ;;  %52 = vst.msk [vmem:[#allocation2 + $0x68] sm:$0xf] %vm24_vm0, %v8030_v1  ;;  %7442 = vmatpush3.bf16.msra.mxu0 %v7580_v2  ;;  %7561 = vmatpush3.bf16.msra.mxu1 %v7580_v2  ;;  %s8033_s22 = smov 48   ;;  %s8034_s23 = smov 64  }
   0x8   :  { %54 = vst.msk [vmem:[#allocation2 + $0x70] sm:$0xf] %vm24_vm0, %v8030_v1  ;;  %56 = vst.msk [vmem:[#allocation2 + $0x78] sm:$0xf] %vm24_vm0, %v8030_v1  ;;  %v650_v11 = vld [vmem:[#allocation2] sm:$0xf] }
   0x9   :  { %58 = vst.msk [vmem:[#allocation2 + $0x80] sm:$0xf] %vm24_vm0, %v8030_v1  ;;  %60 = vst.msk [vmem:[#allocation2 + $0x88] sm:$0xf] %vm24_vm0, %v8030_v1  ;;  %v682_v13 = vld [vmem:[#allocation2] sm:$0xe] }
   0xa   :  { %62 = vst.msk [vmem:[#allocation2 + $0x90] sm:$0xf] %vm24_vm0, %v8030_v1  ;;  %64 = vst.msk [vmem:[#allocation2 + $0x98] sm:$0xf] %vm24_vm0, %v8030_v1  ;;  %s8035_s24 = smov 8   ;;  %v7589_v45 = vld [vmem:[%s11428_s0 + $0x38] sm:$0xff]  }
   0xb   :  { %27 = vst.msk [vmem:[#allocation2 + $0x4] sm:$0x1] %vm26_vm1, %v8030_v1  ;;  %29 = vst.msk [vmem:[#allocation2 + $0xc] sm:$0x1] %vm26_vm1, %v8030_v1  ;;  %s8036_s27 = smov 56   ;;  %v7599_v46 = vld [vmem:[%s11428_s0 + $0x10] sm:$0xff]  }
   0xc   :  { %31 = vst.msk [vmem:[#allocation2 + $0x14] sm:$0x1] %vm26_vm1, %v8030_v1  ;;  %33 = vst.msk [vmem:[#allocation2 + $0x1c] sm:$0x1] %vm26_vm1, %v8030_v1  ;;  %v754_v20 = vld [vmem:[#allocation2 + $0x48] sm:$0xf] }
   0xd   :  { %35 = vst.msk [vmem:[#allocation2 + $0x24] sm:$0x1] %vm26_vm1, %v8030_v1  ;;  %37 = vst.msk [vmem:[#allocation2 + $0x2c] sm:$0x1] %vm26_vm1, %v8030_v1  ;;  %v658_v17 = vld [vmem:[#allocation2 + $0x50] sm:$0xf]  ;;  %v6890_v24 = vcombine.low %v754_v20, %v754_v20 }
   0xe   :  { %39 = vst.msk [vmem:[#allocation2 + $0x34] sm:$0x1] %vm26_vm1, %v8030_v1  ;;  %41 = vst.msk [vmem:[#allocation2 + $0x3c] sm:$0x1] %vm26_vm1, %v8030_v1  ;;  %v690_v19 = vld [vmem:[#allocation2 + $0x50] sm:$0xe] }
   0xf   :  { %43 = vst.msk [vmem:[#allocation2 + $0x44] sm:$0x1] %vm26_vm1, %v8030_v1  ;;  %45 = vst.msk [vmem:[#allocation2 + $0x4c] sm:$0x1] %vm26_vm1, %v8030_v1  ;;  %v786_v26 = vld [vmem:[#allocation2 + $0x48] sm:$0xe]  ;;  %1545 = vrot.lane.b32.xlu1 %v6890_v24, %s8033_s22 }
  0x10   :  { %47 = vst.msk [vmem:[#allocation2 + $0x54] sm:$0x1] %vm26_vm1, %v8030_v1  ;;  %49 = vst.msk [vmem:[#allocation2 + $0x5c] sm:$0x1] %vm26_vm1, %v8030_v1  ;;  %v7600_v47 = vld [vmem:[%s11428_s0 + $0x18] sm:$0xff]   ;;  %v7601_v48 = vld [vmem:[%s11428_s0 + $0x20] sm:$0xff]  }
  0x11   :  { %51 = vst.msk [vmem:[#allocation2 + $0x64] sm:$0x1] %vm26_vm1, %v8030_v1  ;;  %53 = vst.msk [vmem:[#allocation2 + $0x6c] sm:$0x1] %vm26_vm1, %v8030_v1  ;;  %v7602_v49 = vld [vmem:[%s11428_s0 + $0x28] sm:$0xff]   ;;  %vm2445_vm4 = vcmask 31744  }
  0x12   :  { %55 = vst.msk [vmem:[#allocation2 + $0x74] sm:$0x1] %vm26_vm1, %v8030_v1  ;;  %57 = vst.msk [vmem:[#allocation2 + $0x7c] sm:$0x1] %vm26_vm1, %v8030_v1  ;;  %v666_v12 = vld [vmem:[#allocation2 + $0x4] sm:$0x1] }
  0x13   :  { %59 = vst.msk [vmem:[#allocation2 + $0x84] sm:$0x1] %vm26_vm1, %v8030_v1  ;;  %61 = vst.msk [vmem:[#allocation2 + $0x8c] sm:$0x1] %vm26_vm1, %v8030_v1  ;;  %v6803_v14 = vcombine.low %v650_v11, %v666_v12  ;;  %v6819_v15 = vcombine.low %v682_v13, %v666_v12  ;;  %v762_v50 = vld [vmem:[#allocation2 + $0x98] sm:$0xf] }
  0x14   :  { %63 = vst.msk [vmem:[#allocation2 + $0x94] sm:$0x1] %vm26_vm1, %v8030_v1  ;;  %65 = vst.msk [vmem:[#allocation2 + $0x9c] sm:$0x1] %vm26_vm1, %v8030_v1  ;;  %v6898_v53 = vcombine.low %v762_v50, %v762_v50  ;;  %v2388_v61 = vld [vmem:[%s11429_s2] sm:$0x3] }
  0x15   :  { %v7581_v3 = vld [vmem:[%s11427_s1 + $0x10] ss:$0 sps:$4 sm:$0x33]   ;;  %v1067_v21 = vrot.slane %v6819_v15, 1  ;;  %v878_v27 = vshll.u32 %v6803_v14, 16  ;;  %v876_v32 = vshrl.u32 %v6803_v14, 16 }
  0x16   :  { %7563 = vmatprep.subr.msk.bf16.mxu0 %vm167_vm3, %v7581_v3  ;;  %7564 = vmatprep.subr.msk.bf16.mxu1 %vm167_vm3, %v7581_v3  ;;  %v169_v6 = vsel %vm167_vm3, %v7581_v3, 0  ;;  %v770_v25 = vld [vmem:[#allocation2 + $0x4c] sm:$0x1]  ;;  %v2471_v62 = vsel %vm167_vm3, %v2388_v61, 0  ;;  %vm549_vm5 = vsmask.f32 7938 }
  0x17   :  { %7444 = vmatpush3.bf16.msra.mxu0 %v169_v6  ;;  %7562 = vmatpush3.bf16.msra.mxu1 %v169_v6  ;;  %v674_v18 = vld [vmem:[#allocation2 + $0x54] sm:$0x1]  ;;  %v6906_v28 = vcombine.low %v754_v20, %v770_v25  ;;  %v6922_v29 = vcombine.low %v786_v26, %v770_v25  ;;  %v880_v35 = vrot.slane %v878_v27, 1  ;;  %vm555_vm6 = vsmask.f32 256  ;;  %vm8251_vm7 = vmand %vm24_vm0, %vm549_vm5  ;;  %s8037_s17 = smov 24  }
  0x18   :  { %v6811_v22 = vcombine.low %v658_v17, %v674_v18  ;;  %v6827_v23 = vcombine.low %v690_v19, %v674_v18  ;;  %1083 = vrot.lane.b32.xlu0 %v1067_v21, %s8032_s19  ;;  %7566 = vmatprep.subr.msk.bf16.mxu0 %vm167_vm3, %v2388_v61  ;;  %vm8259_vm8 = vmand %vm26_vm1, %vm555_vm6  ;;  %s8038_s18 = smov 40   ;;  %s8039_s20 = smov 32   ;;  %vm2223_vm9 = vcmask 1043456   ;;  %vm1851_vm10 = vcmask 64512  }
  0x19   :  { %v1663_v37 = vshll.u32 %v6906_v28, 16  ;;  %v1810_v38 = vrot.slane %v6922_v29, 1  ;;  %v1661_v39 = vshrl.u32 %v6906_v28, 16  ;;  %v881_v42 = vor.u32 %v880_v35, %v876_v32 }
  0x1a   :  { %7446 = vmatmul.mubr.msk.bf16.vlgmr.msra.gmra.mrb[0].mxu0 %vm142_vm2, %v7584_v7  ;;  %7450 = vmatmul.mubr.msk.bf16.vlgmr.msra.gmra.mrb[0].mxu1 %vm142_vm2, %v7585_v8  ;;  %v1075_v31 = vrot.slane %v6827_v23, 1  ;;  %v934_v33 = vshll.u32 %v6811_v22, 16  ;;  %v932_v36 = vshrl.u32 %v6811_v22, 16  ;;  %v8218_v7 = vld [vmem:[%s11430_s4] ss:$0 sm:$0xff]  ;;  %vm1900_vm11 = vcmask 130048  }
  0x1b   :  { %7453 = vmatprep.mubr.msk.bf16.mxu1 %vm142_vm2, %v7586_v9  ;;  %v1665_v41 = vrot.slane %v1663_v37, 1  ;;  %1833 = vrot.lane.b32.xlu1 %v1810_v38, %s8034_s23  ;;  %v778_v51 = vld [vmem:[#allocation2 + $0x9c] sm:$0x1]  ;;  %v8223_v9 = vld [vmem:[%s11431_s5] ss:$0 sm:$0xff]  ;;  %vm1933_vm12 = vcmask 195584  }
  0x1c   :  { %v936_v40 = vrot.slane %v934_v33, 1  ;;  %1099 = vrot.lane.b32.xlu0 %v1075_v31, %s8032_s19  ;;  %v6914_v52 = vcombine.low %v762_v50, %v778_v51  ;;  %7488 = vmatpush3.bf16.msra.mxu0 %v2471_v62  ;;  %vm1966_vm13 = vcmask 261120   ;;  %vm1999_vm14 = vcmask 326656  }
  0x1d   :  { %v1666_v43 = vor.u32 %v1665_v41, %v1661_v39  ;;  %vm2032_vm15 = vcmask 392192   ;;  %vm2065_vm0 = vcmask 457728   ;;  %vm2098_vm1 = vcmask 523264  }
  0x1e   :  { %v937_v44 = vor.u32 %v936_v40, %v932_v36  ;;  %v1717_v54 = vshrl.u32 %v6914_v52, 16  ;;  %v1719_v55 = vshll.u32 %v6914_v52, 16 }
  0x1f   :  { %1737 = vrot.lane.b32.xlu1 %v1666_v43, %s8036_s27 }
  0x20   :  { %987 = vrot.lane.b32.xlu0 %v881_v42, %s8035_s24  ;;  %v1721_v56 = vrot.slane %v1719_v55, 1  ;;  %v590_v55 = vld [vmem:[#allocation2 + $0x38] sm:$0xf] }
  0x22   :  { %7454 = vmatmul.mubr.msk.bf16.gmra.mrb[4].mxu1 %vm142_vm2, %v7587_v30  ;;  %v1722_v57 = vor.u32 %v1721_v56, %v1717_v54  ;;  %v569_v54 = vld [vmem:[#allocation2 + $0x1c] sm:$0x1] }
  0x23   :  { %7457 = vmatprep.mubr.msk.bf16.mxu1 %vm142_vm2, %v7588_v34  ;;  %2435 = vrot.lane.b32.xlu1 %v7600_v47, %s8031_s14 }
  0x24   :  { %1003 = vrot.lane.b32.xlu0 %v937_v44, %s8035_s24 }
  0x27   :  { %2439 = vrot.lane.b32.xlu1 %v7602_v49, %s8031_s14 }
  0x28   :  { %2433 = vrot.lane.b32.xlu0 %v7599_v46, %s8031_s14 }
  0x2a   :  { %7458 = vmatmul.mubr.msk.bf16.gmra.mrb[8].mxu1 %vm142_vm2, %v7589_v45  ;;  %vm2198_vm2 = vcmask 588800  }
  0x2b   :  { %1561 = vrot.lane.b32.xlu1 %v6898_v53, %s8033_s22  ;;  %v566_v53 = vld [vmem:[#allocation2 + $0x18] sm:$0xf] }
  0x2c   :  { %2437 = vrot.lane.b32.xlu0 %v7601_v48, %s8031_s14 }
  0x2f   :  { %1753 = vrot.lane.b32.xlu1 %v1722_v57, %s8036_s27 }
  0x78   :  { %v2430_v58 = vpop.permute.xlu0 %2429  ;;  %v2432_v60 = vpop.permute.xlu1 %2431 }
  0x79   :  { %7489 = vmatprep.mubr.msk.bf16.mxu0 %vm2445_vm4, %v2430_v58 }
  0x7a   :  { %7490 = vmatmul.mubr.msk.bf16.vlgmr.msra.gmra.mrb[4].mxu0 %vm2445_vm4, %v2432_v60 }
  0x81   :  { %v8201_v0 = vpop.permute.xlu1 %1545 }
  0x82   :  { %11474 = vst [vmem:[#allocation4_spill] sm:$0xff] %v8201_v0 }
  0x8a   :  { %v8192_v59 = vpop.permute.xlu0 %1083 }
  0x8d   :  { %v8207_v2 = vpop.permute.xlu1 %1833 }
  0x8e   :  { %v8199_v63 = vpop.permute.xlu0 %1099  ;;  %11475 = vst [vmem:[#allocation5_spill] sm:$0xff] %v8207_v2 }
  0x8f   :  { %11473 = vst [vmem:[#allocation3_spill] sm:$0xff] %v8199_v63 }
  0x91   :  { %v8211_v5 = vpop.permute.xlu1 %1737 }
  0x92   :  { %v8205_v1 = vpop.permute.xlu0 %987  ;;  %11477 = vst [vmem:[#allocation7_spill] sm:$0xff] %v8211_v5 }
  0x95   :  { %v2436_v6 = vpop.permute.xlu1 %2435 }
  0x96   :  { %v8209_v3 = vpop.permute.xlu0 %1003 }
  0x97   :  { %11476 = vst [vmem:[#allocation6_spill] sm:$0xff] %v8209_v3 }
  0x99   :  { %v2440_v34 = vpop.permute.xlu1 %2439 }
  0x9a   :  { %v2434_v4 = vpop.permute.xlu0 %2433 }
  0x9b   :  { %7493 = vmatprep.mubr.msk.bf16.mxu0 %vm2445_vm4, %v2434_v4  ;;  %v11478_v4 = vmov 0 }
  0x9c   :  { %7494 = vmatmul.mubr.msk.bf16.gmra.mrb[8].mxu0 %vm2445_vm4, %v2436_v6  ;;  %v11479_v4 = vsel %vm8251_vm7, 4294967295, %v11478_v4 }
  0x9d   :  { %11480 = vst [vmem:[#allocation8_spill] sm:$0xff] %v11479_v4 }
  0x9e   :  { %v2438_v33 = vpop.permute.xlu0 %2437 }
  0x9f   :  { %7497 = vmatprep.mubr.msk.bf16.mxu0 %vm2445_vm4, %v2438_v33 }
  0xa4   :  { %7498 = vmatmul.mubr.msk.bf16.gmra.mrb[12].mxu0 %vm2445_vm4, %v2440_v34 }
  0xed   :  { %v7447_v8 = vpop.f32.mrb[0].mxu0  ;;  %v7451_v10 = vpop.f32.mrb[0].mxu1 }
  0xee   :  { %v277_v11 = vmul.f32 %v7447_v8, %v8218_v7  ;;  %v281_v12 = vmul.f32 %v7451_v10, %v8218_v7  ;;  %v205_v13 = vpop.f32.mrb[1].mxu0  ;;  %v221_v14 = vpop.f32.mrb[1].mxu1  ;;  %v593_v8 = vld [vmem:[#allocation2 + $0x3c] sm:$0x1] }
  0xef   :  { %v275_v15 = vmul.f32 %v8218_v7, %v205_v13  ;;  %v279_v16 = vmul.f32 %v8218_v7, %v221_v14  ;;  %v7448_v17 = vpop.f32.mrb[2].mxu0  ;;  %v7452_v18 = vpop.f32.mrb[2].mxu1  ;;  %v11481_v13 = vmov 0 }
  0xf0   :  { %v300_v19 = vadd.f32 %v8223_v9, %v277_v11  ;;  %v304_v20 = vadd.f32 %v8223_v9, %v281_v12  ;;  %v278_v21 = vmul.f32 %v7448_v17, %v8218_v7  ;;  %v282_v22 = vmul.f32 %v7452_v18, %v8218_v7  ;;  %v208_v23 = vpop.f32.mrb[3].mxu0  ;;  %v224_v24 = vpop.f32.mrb[3].mxu1 }
  0xf1   :  { %v298_v25 = vadd.f32 %v8223_v9, %v275_v15  ;;  %v302_v26 = vadd.f32 %v8223_v9, %v279_v16  ;;  %v276_v27 = vmul.f32 %v8218_v7, %v208_v23  ;;  %v280_v28 = vmul.f32 %v8218_v7, %v224_v24  ;;  %v551_v15 = vld [vmem:[#allocation2 + $0x8] sm:$0xf]  ;;  %v557_v16 = vld [vmem:[#allocation2 + $0xc] sm:$0x1] }
  0xf2   :  { %v316_v29 = vmax.f32 %v300_v19, 0.0  ;;  %v320_v30 = vmax.f32 %v304_v20, 0.0  ;;  %v301_v31 = vadd.f32 %v8223_v9, %v278_v21  ;;  %v305_v32 = vadd.f32 %v8223_v9, %v282_v22  ;;  %v578_v24 = vld [vmem:[#allocation2 + $0x28] sm:$0xf] }
  0xf3   :  { %v314_v35 = vmax.f32 %v298_v25, 0.0  ;;  %v318_v36 = vmax.f32 %v302_v26, 0.0  ;;  %v299_v37 = vadd.f32 %v8223_v9, %v276_v27  ;;  %v303_v38 = vadd.f32 %v8223_v9, %v280_v28  ;;  %v581_v25 = vld [vmem:[#allocation2 + $0x2c] sm:$0x1] }
  0xf4   :  { %v7334_v39 = vpack.c.bf16 %v316_v29, %v316_v29  ;;  %v7338_v40 = vpack.c.bf16 %v320_v30, %v320_v30  ;;  %v317_v41 = vmax.f32 %v301_v31, 0.0  ;;  %v321_v42 = vmax.f32 %v305_v32, 0.0 }
  0xf5   :  { %v7332_v43 = vpack.c.bf16 %v314_v35, %v314_v35  ;;  %v7336_v44 = vpack.c.bf16 %v318_v36, %v318_v36  ;;  %v315_v45 = vmax.f32 %v299_v37, 0.0  ;;  %v319_v46 = vmax.f32 %v303_v38, 0.0  ;;  %v8243_v47 = vpop.f32.mrb[4].mxu1 }
  0xf6   :  { %v404_v48 = vshrl.u32 %v7334_v39, 16  ;;  %v407_v49 = vshll.u32 %v7334_v39, 16  ;;  %v436_v50 = vshrl.u32 %v7338_v40, 16  ;;  %v439_v51 = vshll.u32 %v7338_v40, 16  ;;  %v8245_v52 = vpop.f32.mrb[5].mxu1 }
  0xf7   :  { %v388_v56 = vshrl.u32 %v7332_v43, 16  ;;  %v391_v57 = vshll.u32 %v7332_v43, 16  ;;  %v420_v58 = vshrl.u32 %v7336_v44, 16  ;;  %v423_v60 = vshll.u32 %v7336_v44, 16  ;;  %v8247_v61 = vpop.f32.mrb[6].mxu1 }
  0xf8   :  { %v406_v62 = vrot.slane %v404_v48, 7  ;;  %v438_v6 = vrot.slane %v436_v50, 7  ;;  %v7335_v10 = vpack.c.bf16 %v317_v41, %v317_v41  ;;  %v7339_v11 = vpack.c.bf16 %v321_v42, %v321_v42  ;;  %v8255_v12 = vpop.f32.mrb[7].mxu1  ;;  %v572_v41 = vld [vmem:[#allocation2 + $0x20] sm:$0xf] }
  0xf9   :  { %v11482_v13 = vsel %vm8259_vm8, 4294967295, %v11481_v13  ;;  %v390_v14 = vrot.slane %v388_v56, 7  ;;  %v422_v17 = vrot.slane %v420_v58, 7  ;;  %v7333_v18 = vpack.c.bf16 %v315_v45, %v315_v45  ;;  %v575_v42 = vld [vmem:[#allocation2 + $0x24] sm:$0x1] }
  0xfa   :  { %11483 = vst [vmem:[#allocation9_spill] sm:$0xff] %v11482_v13  ;;  %v7337_v19 = vpack.c.bf16 %v319_v46, %v319_v46  ;;  %v409_v20 = vor.u32 %v407_v49, %v406_v62  ;;  %v410_v21 = vrot.slane %v406_v62, 4  ;;  %v441_v22 = vor.u32 %v439_v51, %v438_v6  ;;  %v596_v43 = vld [vmem:[#allocation2 + $0x40] sm:$0xf]  ;;  %v599_v44 = vld [vmem:[#allocation2 + $0x44] sm:$0x1] }
  0xfb   :  { %v442_v23 = vrot.slane %v438_v6, 4  ;;  %v393_v26 = vor.u32 %v391_v57, %v390_v14  ;;  %v394_v27 = vrot.slane %v390_v14, 4  ;;  %v425_v28 = vor.u32 %v423_v60, %v422_v17  ;;  %v563_v56 = vld [vmem:[#allocation2 + $0x14] sm:$0x1] }
  0xfc   :  { %v426_v29 = vrot.slane %v422_v17, 4  ;;  %v567_v30 = vsel %vm8251_vm7, %v409_v20, %v566_v53  ;;  %v570_v31 = vsel %vm8259_vm8, %v410_v21, %v569_v54  ;;  %v591_v32 = vsel %vm8251_vm7, %v441_v22, %v590_v55  ;;  %v560_v53 = vld [vmem:[#allocation2 + $0x10] sm:$0xf]  ;;  %v587_v14 = vld [vmem:[#allocation2 + $0x34] sm:$0x1] }
  0xfd   :  { %v594_v33 = vsel %vm8259_vm8, %v442_v23, %v593_v8  ;;  %568 = vst [vmem:[#allocation2 + $0x18] sm:$0xf] %v567_v30  ;;  %571 = vst [vmem:[#allocation2 + $0x1c] sm:$0x1] %v570_v31  ;;  %v552_v34 = vsel %vm8251_vm7, %v393_v26, %v551_v15  ;;  %v558_v35 = vsel %vm8259_vm8, %v394_v27, %v557_v16  ;;  %v412_v38 = vshrl.u32 %v7335_v10, 16 }
  0xfe   :  { %592 = vst [vmem:[#allocation2 + $0x38] sm:$0xf] %v591_v32  ;;  %595 = vst [vmem:[#allocation2 + $0x3c] sm:$0x1] %v594_v33  ;;  %v579_v36 = vsel %vm8251_vm7, %v425_v28, %v578_v24  ;;  %v582_v37 = vsel %vm8259_vm8, %v426_v29, %v581_v25  ;;  %v444_v39 = vshrl.u32 %v7339_v11, 16  ;;  %v447_v40 = vshll.u32 %v7339_v11, 16 }
  0xff   :  { %553 = vst [vmem:[#allocation2 + $0x8] sm:$0xf] %v552_v34  ;;  %559 = vst [vmem:[#allocation2 + $0xc] sm:$0x1] %v558_v35  ;;  %v396_v45 = vshrl.u32 %v7333_v18, 16  ;;  %v428_v46 = vshrl.u32 %v7337_v19, 16  ;;  %v285_v58 = vmul.f32 %v8243_v47, %v8218_v7 }
 0x100   :  { %580 = vst [vmem:[#allocation2 + $0x28] sm:$0xf] %v579_v36  ;;  %583 = vst [vmem:[#allocation2 + $0x2c] sm:$0x1] %v582_v37  ;;  %v431_v48 = vshll.u32 %v7337_v19, 16  ;;  %v414_v49 = vrot.slane %v412_v38, 7  ;;  %v283_v38 = vmul.f32 %v8218_v7, %v8245_v52 }
 0x101   :  { %v415_v50 = vshll.u32 %v7335_v10, 16  ;;  %v446_v51 = vrot.slane %v444_v39, 7  ;;  %v398_v54 = vrot.slane %v396_v45, 7  ;;  %v399_v55 = vshll.u32 %v7333_v18, 16  ;;  %v584_v11 = vld [vmem:[#allocation2 + $0x30] sm:$0xf] }
 0x102   :  { %v430_v57 = vrot.slane %v428_v46, 7  ;;  %v418_v62 = vrot.slane %v414_v49, 4  ;;  %v308_v30 = vadd.f32 %v8223_v9, %v285_v58  ;;  %v306_v52 = vadd.f32 %v8223_v9, %v283_v38 }
 0x103   :  { %v417_v60 = vor.u32 %v415_v50, %v414_v49  ;;  %v449_v6 = vor.u32 %v447_v40, %v446_v51  ;;  %v450_v8 = vrot.slane %v446_v51, 4  ;;  %v401_v15 = vor.u32 %v399_v55, %v398_v54 }
 0x104   :  { %v402_v16 = vrot.slane %v398_v54, 4  ;;  %v433_v17 = vor.u32 %v431_v48, %v430_v57  ;;  %v434_v19 = vrot.slane %v430_v57, 4  ;;  %v576_v18 = vsel %vm8259_vm8, %v418_v62, %v575_v42  ;;  %v8289_v21 = vld [vmem:[#allocation2 + $0x18] sm:$0xf]  ;;  %v8318_v36 = vld [vmem:[#allocation2 + $0x1c] sm:$0x1] }
 0x105   :  { %v573_v10 = vsel %vm8251_vm7, %v417_v60, %v572_v41  ;;  %v597_v20 = vsel %vm8251_vm7, %v449_v6, %v596_v43  ;;  %v600_v47 = vsel %vm8259_vm8, %v450_v8, %v599_v44  ;;  %v8291_v22 = vld [vmem:[#allocation2 + $0x18] sm:$0xf]  ;;  %577 = vst [vmem:[#allocation2 + $0x24] sm:$0x1] %v576_v18  ;;  %v561_v23 = vsel %vm8251_vm7, %v401_v15, %v560_v53  ;;  %v8333_v45 = vld [vmem:[#allocation2 + $0x1c] sm:$0x1] }
 0x106   :  { %574 = vst [vmem:[#allocation2 + $0x20] sm:$0xf] %v573_v10  ;;  %598 = vst [vmem:[#allocation2 + $0x40] sm:$0xf] %v597_v20  ;;  %v564_v24 = vsel %vm8259_vm8, %v402_v16, %v563_v56  ;;  %v585_v25 = vsel %vm8251_vm7, %v433_v17, %v584_v11  ;;  %v588_v26 = vsel %vm8259_vm8, %v434_v19, %v587_v14  ;;  %v8305_v29 = vld [vmem:[#allocation2 + $0x8] sm:$0xf] }
 0x107   :  { %601 = vst [vmem:[#allocation2 + $0x44] sm:$0x1] %v600_v47  ;;  %562 = vst [vmem:[#allocation2 + $0x10] sm:$0xf] %v561_v23  ;;  %v6884_v27 = vcombine.low %v8289_v21, %v8289_v21  ;;  %v6837_v28 = vcombine.low %v8291_v22, %v8291_v22  ;;  %v8310_v31 = vld [vmem:[#allocation2 + $0x38] sm:$0xf]  ;;  %v6835_v33 = vcombine.low %v8305_v29, %v8305_v29 }
 0x108   :  { %565 = vst [vmem:[#allocation2 + $0x14] sm:$0x1] %v564_v24  ;;  %586 = vst [vmem:[#allocation2 + $0x30] sm:$0xf] %v585_v25  ;;  %v6841_v32 = vcombine.low %v8310_v31, %v8310_v31  ;;  %v324_v34 = vmax.f32 %v308_v30, 0.0  ;;  %v322_v58 = vmax.f32 %v306_v52, 0.0  ;;  %v286_v47 = vmul.f32 %v8247_v61, %v8218_v7 }
 0x109   :  { %589 = vst [vmem:[#allocation2 + $0x34] sm:$0x1] %v588_v26  ;;  %1533 = vrot.lane.b32.xlu1 %v6884_v27, %s8033_s22  ;;  %1167 = vrot.lane.b32.xlu0 %v6837_v28, %s8037_s17  ;;  %v8316_v35 = vld [vmem:[#allocation2 + $0x28] sm:$0xf]  ;;  %v732_v37 = vld [vmem:[#allocation2 + $0x18] sm:$0xe]  ;;  %v284_v25 = vmul.f32 %v8218_v7, %v8255_v12 }
 0x10a   :  { %v8324_v39 = vld [vmem:[#allocation2 + $0x38] sm:$0xf]  ;;  %v7342_v40 = vpack.c.bf16 %v324_v34, %v324_v34  ;;  %v6839_v42 = vcombine.low %v8316_v35, %v8316_v35  ;;  %v6869_v43 = vcombine.low %v732_v37, %v8318_v36  ;;  %v8331_v44 = vld [vmem:[#allocation2 + $0x28] sm:$0xf]  ;;  %v617_v57 = vld [vmem:[#allocation2 + $0x6c] sm:$0x1]  ;;  %v7340_v15 = vpack.c.bf16 %v322_v58, %v322_v58 }
 0x10b   :  { %v6888_v41 = vcombine.low %v8324_v39, %v8324_v39  ;;  %v685_v46 = vld [vmem:[#allocation2 + $0x18] sm:$0xe]  ;;  %v6886_v49 = vcombine.low %v8331_v44, %v8331_v44  ;;  %v614_v56 = vld [vmem:[#allocation2 + $0x68] sm:$0xf]  ;;  %v8347_v14 = vld [vmem:[#allocation2 + $0x1c] sm:$0x1]  ;;  %v309_v12 = vadd.f32 %v8223_v9, %v286_v47 }
 0x10c   :  { %v468_v48 = vshrl.u32 %v7342_v40, 16  ;;  %v1437_v50 = vrot.slane %v6869_v43, 1  ;;  %v6822_v51 = vcombine.low %v685_v46, %v8333_v45  ;;  %v471_v53 = vshll.u32 %v7342_v40, 16  ;;  %v736_v11 = vld [vmem:[#allocation2 + $0x38] sm:$0xe] }
 0x10d   :  { %1175 = vrot.lane.b32.xlu1 %v6841_v32, %s8037_s17  ;;  %1163 = vrot.lane.b32.xlu0 %v6835_v33, %s8037_s17  ;;  %v8341_v54 = vld [vmem:[#allocation2 + $0x20] sm:$0xf]  ;;  %v780_v19 = vld [vmem:[#allocation2 + $0x18] sm:$0xe]  ;;  %v452_v20 = vshrl.u32 %v7340_v15, 16  ;;  %v455_v24 = vshll.u32 %v7340_v15, 16 }
 0x10e   :  { %v470_v55 = vrot.slane %v468_v48, 7  ;;  %v1070_v6 = vrot.slane %v6822_v51, 1  ;;  %v6885_v8 = vcombine.low %v8341_v54, %v8341_v54  ;;  %v8349_v16 = vld [vmem:[#allocation2 + $0x40] sm:$0xf]  ;;  %v8361_v23 = vld [vmem:[#allocation2 + $0x3c] sm:$0x1]  ;;  %v6916_v30 = vcombine.low %v780_v19, %v8347_v14 }
 0x10f   :  { %v8351_v17 = vld [vmem:[#allocation2 + $0x20] sm:$0xf]  ;;  %v6842_v26 = vcombine.low %v8349_v16, %v8349_v16  ;;  %v6873_v28 = vcombine.low %v736_v11, %v8361_v23  ;;  %v689_v32 = vld [vmem:[#allocation2 + $0x38] sm:$0xe]  ;;  %v454_v33 = vrot.slane %v452_v20, 7 }
 0x110   :  { %v473_v60 = vor.u32 %v471_v53, %v470_v55  ;;  %v474_v62 = vrot.slane %v470_v55, 4  ;;  %v6838_v27 = vcombine.low %v8351_v17, %v8351_v17  ;;  %v602_v61 = vld [vmem:[#allocation2 + $0x58] sm:$0xf]  ;;  %v605_v34 = vld [vmem:[#allocation2 + $0x5c] sm:$0x1]  ;;  %v1804_v46 = vrot.slane %v6916_v30, 1 }
 0x111   :  { %1541 = vrot.lane.b32.xlu1 %v6888_v41, %s8033_s22  ;;  %1171 = vrot.lane.b32.xlu0 %v6839_v42, %s8037_s17  ;;  %v8374_v37 = vld [vmem:[#allocation2 + $0x3c] sm:$0x1]  ;;  %v8376_v38 = vld [vmem:[#allocation2 + $0xc] sm:$0x1]  ;;  %v457_v40 = vor.u32 %v455_v24, %v454_v33  ;;  %v458_v41 = vrot.slane %v454_v33, 4  ;;  %v307_v42 = vadd.f32 %v8223_v9, %v284_v25  ;;  %v1441_v43 = vrot.slane %v6873_v28, 1 }
 0x112   :  { %v615_v10 = vsel %vm8251_vm7, %v473_v60, %v614_v56  ;;  %v618_v18 = vsel %vm8259_vm8, %v474_v62, %v617_v57  ;;  %v6826_v52 = vcombine.low %v689_v32, %v8374_v37  ;;  %v730_v48 = vld [vmem:[#allocation2 + $0x8] sm:$0xe]  ;;  %v784_v51 = vld [vmem:[#allocation2 + $0x38] sm:$0xe]  ;;  %v325_v56 = vmax.f32 %v309_v12, 0.0 }
 0x113   :  { %616 = vst [vmem:[#allocation2 + $0x68] sm:$0xf] %v615_v10  ;;  %619 = vst [vmem:[#allocation2 + $0x6c] sm:$0x1] %v618_v18  ;;  %v603_v53 = vsel %vm8251_vm7, %v457_v40, %v602_v61  ;;  %v606_v55 = vsel %vm8259_vm8, %v458_v41, %v605_v34  ;;  %v6867_v58 = vcombine.low %v730_v48, %v8376_v38  ;;  %v8393_v60 = vld [vmem:[#allocation2 + $0x3c] sm:$0x1] }
 0x114   :  { %604 = vst [vmem:[#allocation2 + $0x58] sm:$0xf] %v603_v53  ;;  %607 = vst [vmem:[#allocation2 + $0x5c] sm:$0x1] %v606_v55  ;;  %v323_v62 = vmax.f32 %v307_v42, 0.0  ;;  %v6920_v11 = vcombine.low %v784_v51, %v8393_v60  ;;  %v7343_v15 = vpack.c.bf16 %v325_v56, %v325_v56 }
 0x115   :  { %1537 = vrot.lane.b32.xlu1 %v6886_v49, %s8033_s22  ;;  %1455 = vrot.lane.b32.xlu0 %v1437_v50, %s8038_s18  ;;  %v8380_v49 = vpop.f32.mrb[8].mxu1  ;;  %v8382_v50 = vld [vmem:[#allocation2 + $0x40] sm:$0xf]  ;;  %v8398_v19 = vld [vmem:[#allocation2 + $0xc] sm:$0x1]  ;;  %v1435_v30 = vrot.slane %v6867_v58, 1 }
 0x116   :  { %v8390_v57 = vpop.f32.mrb[9].mxu1  ;;  %v683_v10 = vld [vmem:[#allocation2 + $0x8] sm:$0xe]  ;;  %v7341_v18 = vpack.c.bf16 %v323_v62, %v323_v62  ;;  %v476_v20 = vshrl.u32 %v7343_v15, 16  ;;  %v479_v47 = vshll.u32 %v7343_v15, 16  ;;  %v1808_v32 = vrot.slane %v6920_v11, 1 }
 0x117   :  { %v8402_v24 = vpop.f32.mrb[10].mxu1  ;;  %v620_v25 = vld [vmem:[#allocation2 + $0x70] sm:$0xf]  ;;  %v6820_v33 = vcombine.low %v683_v10, %v8398_v19  ;;  %v8407_v12 = vld [vmem:[#allocation2 + $0x2c] sm:$0x1] }
 0x118   :  { %v463_v28 = vshll.u32 %v7341_v18, 16  ;;  %v8405_v61 = vld [vmem:[#allocation2 + $0x10] sm:$0xf]  ;;  %v478_v34 = vrot.slane %v476_v20, 7  ;;  %v734_v40 = vld [vmem:[#allocation2 + $0x28] sm:$0xe] }
 0x119   :  { %1089 = vrot.lane.b32.xlu1 %v1070_v6, %s8032_s19  ;;  %1535 = vrot.lane.b32.xlu0 %v6885_v8, %s8033_s22  ;;  %v6889_v6 = vcombine.low %v8382_v50, %v8382_v50  ;;  %v1074_v8 = vrot.slane %v6826_v52, 1  ;;  %v8409_v42 = vpop.f32.mrb[11].mxu1  ;;  %v608_v52 = vld [vmem:[#allocation2 + $0x60] sm:$0xf]  ;;  %v611_v48 = vld [vmem:[#allocation2 + $0x64] sm:$0x1]  ;;  %v6883_v51 = vcombine.low %v8405_v61, %v8405_v61  ;;  %v6871_v58 = vcombine.low %v734_v40, %v8407_v12 }
 0x11a   :  { %v1068_v56 = vrot.slane %v6820_v33, 1  ;;  %v8422_v11 = vld [vmem:[#allocation2 + $0x2c] sm:$0x1]  ;;  %v782_v15 = vld [vmem:[#allocation2 + $0x28] sm:$0xe] }
 0x11b   :  { %v8430_v20 = vld [vmem:[#allocation2 + $0x24] sm:$0x1]  ;;  %v688_v63 = vld [vmem:[#allocation2 + $0x30] sm:$0xe]  ;;  %v8496_v2 = vld [vmem:[#allocation2 + $0x34] sm:$0x1] }
 0x11d   :  { %1177 = vrot.lane.b32.xlu0 %v6842_v26, %s8037_s17  ;;  %1169 = vrot.lane.b32.xlu1 %v6838_v27, %s8037_s17  ;;  %v623_v26 = vld [vmem:[#allocation2 + $0x74] sm:$0x1]  ;;  %v460_v27 = vshrl.u32 %v7341_v18, 16 }
 0x11f   :  { %v462_v41 = vrot.slane %v460_v27, 7  ;;  %v6918_v27 = vcombine.low %v782_v15, %v8422_v11 }
 0x121   :  { %1463 = vrot.lane.b32.xlu0 %v1441_v43, %s8038_s18  ;;  %1821 = vrot.lane.b32.xlu1 %v1804_v46, %s8034_s23  ;;  %v481_v43 = vor.u32 %v479_v47, %v478_v34  ;;  %v482_v46 = vrot.slane %v478_v34, 4  ;;  %v465_v53 = vor.u32 %v463_v28, %v462_v41  ;;  %v466_v55 = vrot.slane %v462_v41, 4  ;;  %v781_v47 = vld [vmem:[#allocation2 + $0x20] sm:$0xe]  ;;  %v8435_v28 = vld [vmem:[#allocation2 + $0x2c] sm:$0x1] }
 0x122   :  { %v6917_v33 = vcombine.low %v781_v47, %v8430_v20  ;;  %v1806_v41 = vrot.slane %v6918_v27, 1  ;;  %v8462_v47 = vld [vmem:[#allocation2 + $0x44] sm:$0x1]  ;;  %v684_v27 = vld [vmem:[#allocation2 + $0x10] sm:$0xe] }
 0x123   :  { %v621_v62 = vsel %vm8251_vm7, %v481_v43, %v620_v25  ;;  %v609_v10 = vsel %vm8251_vm7, %v465_v53, %v608_v52  ;;  %v612_v18 = vsel %vm8259_vm8, %v466_v55, %v611_v48  ;;  %v1439_v25 = vrot.slane %v6871_v58, 1  ;;  %v8445_v43 = vld [vmem:[#allocation2 + $0x24] sm:$0x1]  ;;  %v785_v55 = vld [vmem:[#allocation2 + $0x40] sm:$0xe] }
 0x124   :  { %622 = vst [vmem:[#allocation2 + $0x70] sm:$0xf] %v621_v62  ;;  %610 = vst [vmem:[#allocation2 + $0x60] sm:$0xf] %v609_v10  ;;  %v1805_v52 = vrot.slane %v6917_v33, 1 }
 0x125   :  { %1543 = vrot.lane.b32.xlu0 %v6889_v6, %s8033_s22  ;;  %1097 = vrot.lane.b32.xlu1 %v1074_v8, %s8032_s19  ;;  %v624_v6 = vsel %vm8259_vm8, %v482_v46, %v623_v26  ;;  %v8420_v8 = vld [vmem:[#allocation2 + $0x10] sm:$0xf]  ;;  %613 = vst [vmem:[#allocation2 + $0x64] sm:$0x1] %v612_v18  ;;  %v686_v46 = vld [vmem:[#allocation2 + $0x20] sm:$0xe] }
 0x126   :  { %625 = vst [vmem:[#allocation2 + $0x74] sm:$0x1] %v624_v6  ;;  %v6836_v26 = vcombine.low %v8420_v8, %v8420_v8  ;;  %v6823_v53 = vcombine.low %v686_v46, %v8445_v43  ;;  %v733_v58 = vld [vmem:[#allocation2 + $0x20] sm:$0xe]  ;;  %v8454_v62 = vld [vmem:[#allocation2 + $0x30] sm:$0xf] }
 0x127   :  { %v6840_v18 = vcombine.low %v8454_v62, %v8454_v62  ;;  %v731_v33 = vld [vmem:[#allocation2 + $0x10] sm:$0xe]  ;;  %v8471_v46 = vld [vmem:[#allocation2 + $0x14] sm:$0x1] }
 0x128   :  { %v1071_v10 = vrot.slane %v6823_v53, 1  ;;  %v779_v53 = vld [vmem:[#allocation2 + $0x10] sm:$0xe] }
 0x129   :  { %1451 = vrot.lane.b32.xlu0 %v1435_v30, %s8038_s18  ;;  %1829 = vrot.lane.b32.xlu1 %v1808_v32, %s8034_s23  ;;  %v687_v30 = vld [vmem:[#allocation2 + $0x28] sm:$0xe]  ;;  %v8437_v32 = vld [vmem:[#allocation2 + $0x30] sm:$0xf] }
 0x12a   :  { %v6824_v34 = vcombine.low %v687_v30, %v8435_v28  ;;  %v6887_v40 = vcombine.low %v8437_v32, %v8437_v32  ;;  %v8468_v30 = vld [vmem:[#allocation2 + $0x14] sm:$0x1] }
 0x12c   :  { %v1072_v48 = vrot.slane %v6824_v34, 1 }
 0x12d   :  { %1085 = vrot.lane.b32.xlu1 %v1068_v56, %s8032_s19  ;;  %1531 = vrot.lane.b32.xlu0 %v6883_v51, %s8033_s22  ;;  %v8449_v51 = vld [vmem:[#allocation2 + $0x44] sm:$0x1] }
 0x12e   :  { %v8452_v56 = vld [vmem:[#allocation2 + $0x24] sm:$0x1]  ;;  %v6921_v6 = vcombine.low %v785_v55, %v8449_v51  ;;  %v8474_v55 = vld [vmem:[#allocation2 + $0x34] sm:$0x1] }
 0x12f   :  { %v6870_v15 = vcombine.low %v733_v58, %v8452_v56  ;;  %v735_v58 = vld [vmem:[#allocation2 + $0x30] sm:$0xe] }
 0x130   :  { %v1809_v34 = vrot.slane %v6921_v6, 1  ;;  %v289_v6 = vmul.f32 %v8380_v49, %v8218_v7  ;;  %v6872_v3 = vcombine.low %v735_v58, %v8474_v55  ;;  %v783_v49 = vld [vmem:[#allocation2 + $0x30] sm:$0xe] }
 0x131   :  { %1459 = vrot.lane.b32.xlu0 %v1439_v25, %s8038_s18  ;;  %1165 = vrot.lane.b32.xlu1 %v6836_v26, %s8037_s17  ;;  %v737_v25 = vld [vmem:[#allocation2 + $0x40] sm:$0xe]  ;;  %v8464_v26 = vld [vmem:[#allocation2 + $0x14] sm:$0x1] }
 0x135   :  { %1539 = vrot.lane.b32.xlu0 %v6887_v40, %s8033_s22  ;;  %1825 = vrot.lane.b32.xlu1 %v1806_v41, %s8034_s23  ;;  %v1438_v40 = vrot.slane %v6870_v15, 1  ;;  %v6874_v41 = vcombine.low %v737_v25, %v8462_v47  ;;  %v6868_v15 = vcombine.low %v731_v33, %v8468_v30 }
 0x139   :  { %1823 = vrot.lane.b32.xlu0 %v1805_v52, %s8034_s23  ;;  %1093 = vrot.lane.b32.xlu1 %v1072_v48, %s8032_s19  ;;  %v653_v52 = vld [vmem:[#allocation2 + $0x18] sm:$0xf]  ;;  %v6821_v48 = vcombine.low %v684_v27, %v8464_v26  ;;  %v8492_v27 = vcombine.low %v8291_v22, %v8318_v36  ;;  %v8505_v22 = vcombine.low %v8310_v31, %v8361_v23 }
 0x13a   :  { %v8488_v25 = vcombine.low %v653_v52, %v8333_v45  ;;  %v287_v52 = vmul.f32 %v8218_v7, %v8390_v57  ;;  %v8509_v36 = vcombine.low %v8324_v39, %v8393_v60  ;;  %v6919_v57 = vcombine.low %v783_v49, %v8496_v2  ;;  %v657_v49 = vld [vmem:[#allocation2 + $0x38] sm:$0xf] }
 0x13b   :  { %v1440_v60 = vrot.slane %v6872_v3, 1 }
 0x13c   :  { %v310_v23 = vadd.f32 %v8223_v9, %v287_v52  ;;  %v651_v52 = vld [vmem:[#allocation2 + $0x8] sm:$0xf] }
 0x13d   :  { %1091 = vrot.lane.b32.xlu0 %v1071_v10, %s8032_s19  ;;  %1173 = vrot.lane.b32.xlu1 %v6840_v18, %s8037_s17  ;;  %v8478_v10 = vcombine.low %v8289_v21, %v8347_v14  ;;  %v8480_v18 = vld [vmem:[#allocation2 + $0x34] sm:$0x1]  ;;  %v1442_v21 = vrot.slane %v6874_v41, 1  ;;  %v6915_v14 = vcombine.low %v779_v53, %v8471_v46  ;;  %v8513_v41 = vcombine.low %v8305_v29, %v8376_v38 }
 0x13e   :  { %v6825_v33 = vcombine.low %v688_v63, %v8480_v18  ;;  %v899_v63 = vshll.u32 %v8488_v25, 16  ;;  %v1436_v53 = vrot.slane %v6868_v15, 1  ;;  %v326_v38 = vmax.f32 %v310_v23, 0.0 }
 0x13f   :  { %v1621_v45 = vshll.u32 %v8478_v10, 16  ;;  %v1803_v39 = vrot.slane %v6915_v14, 1  ;;  %v1807_v15 = vrot.slane %v6919_v57, 1  ;;  %v1260_v14 = vshll.u32 %v8492_v27, 16  ;;  %v641_v57 = vld [vmem:[#allocation2 + $0x8c] sm:$0x1] }
 0x140   :  { %v901_v3 = vrot.slane %v899_v63, 1  ;;  %v8535_v23 = vcombine.low %v657_v49, %v8374_v37  ;;  %v638_v63 = vld [vmem:[#allocation2 + $0x88] sm:$0xf]  ;;  %v1288_v37 = vshll.u32 %v8505_v22, 16  ;;  %v629_v49 = vld [vmem:[#allocation2 + $0x7c] sm:$0x1] }
 0x141   :  { %1831 = vrot.lane.b32.xlu0 %v1809_v34, %s8034_s23  ;;  %1457 = vrot.lane.b32.xlu1 %v1438_v40, %s8038_s18  ;;  %v312_v34 = vadd.f32 %v8223_v9, %v289_v6  ;;  %v1069_v40 = vrot.slane %v6821_v48, 1  ;;  %v1073_v6 = vrot.slane %v6825_v33, 1  ;;  %v8521_v29 = vrot.slane %v1621_v45, 1 }
 0x142   :  { %v7344_v33 = vpack.c.bf16 %v326_v38, %v326_v38 }
 0x143   :  { %v328_v48 = vmax.f32 %v312_v34, 0.0  ;;  %v897_v34 = vshrl.u32 %v8488_v25, 16 }
 0x145   :  { %1465 = vrot.lane.b32.xlu1 %v1442_v21, %s8038_s18  ;;  %1087 = vrot.lane.b32.xlu0 %v1069_v40, %s8032_s19  ;;  %v7346_v58 = vpack.c.bf16 %v328_v48, %v328_v48  ;;  %v290_v21 = vmul.f32 %v8402_v24, %v8218_v7  ;;  %v1258_v40 = vshrl.u32 %v8492_v27, 16  ;;  %v288_v48 = vmul.f32 %v8218_v7, %v8409_v42 }
 0x146   :  { %v484_v27 = vshrl.u32 %v7344_v33, 16  ;;  %v1262_v7 = vrot.slane %v1260_v14, 1  ;;  %v8546_v42 = vcombine.low %v651_v52, %v8398_v19  ;;  %v1649_v19 = vshll.u32 %v8509_v36, 16 }
 0x147   :  { %v500_v5 = vshrl.u32 %v7346_v58, 16  ;;  %v503_v31 = vshll.u32 %v7346_v58, 16  ;;  %v313_v25 = vadd.f32 %v8223_v9, %v290_v21  ;;  %v626_v21 = vld [vmem:[#allocation2 + $0x78] sm:$0xf] }
 0x149   :  { %1453 = vrot.lane.b32.xlu1 %v1436_v53, %s8038_s18  ;;  %1819 = vrot.lane.b32.xlu0 %v1803_v39, %s8034_s23  ;;  %v502_v24 = vrot.slane %v500_v5, 7  ;;  %v8539_v53 = vcombine.low %v8331_v44, %v8422_v11  ;;  %v487_v39 = vshll.u32 %v7344_v33, 16  ;;  %v329_v45 = vmax.f32 %v313_v25, 0.0 }
 0x14a   :  { %v311_v5 = vadd.f32 %v8223_v9, %v288_v48  ;;  %v486_v44 = vrot.slane %v484_v27, 7 }
 0x14b   :  { %v505_v58 = vor.u32 %v503_v31, %v502_v24  ;;  %v506_v38 = vrot.slane %v502_v24, 4  ;;  %v7347_v9 = vpack.c.bf16 %v329_v45, %v329_v45  ;;  %v885_v45 = vshll.u32 %v8546_v42, 16 }
 0x14c   :  { %v327_v33 = vmax.f32 %v311_v5, 0.0  ;;  %v489_v14 = vor.u32 %v487_v39, %v486_v44  ;;  %v490_v24 = vrot.slane %v486_v44, 4  ;;  %v1290_v44 = vrot.slane %v1288_v37, 1 }
 0x14d   :  { %1461 = vrot.lane.b32.xlu1 %v1440_v60, %s8038_s18  ;;  %1095 = vrot.lane.b32.xlu0 %v1073_v6, %s8032_s19  ;;  %v639_v11 = vsel %vm8251_vm7, %v505_v58, %v638_v63  ;;  %v642_v31 = vsel %vm8259_vm8, %v506_v38, %v641_v57  ;;  %v902_v60 = vor.u32 %v901_v3, %v897_v34  ;;  %v927_v6 = vshll.u32 %v8535_v23, 16 }
 0x14e   :  { %640 = vst [vmem:[#allocation2 + $0x88] sm:$0xf] %v639_v11  ;;  %643 = vst [vmem:[#allocation2 + $0x8c] sm:$0x1] %v642_v31  ;;  %v508_v52 = vshrl.u32 %v7347_v9, 16  ;;  %v511_v25 = vshll.u32 %v7347_v9, 16  ;;  %v7345_v48 = vpack.c.bf16 %v327_v33, %v327_v33  ;;  %v627_v34 = vsel %vm8251_vm7, %v489_v14, %v626_v21 }
 0x14f   :  { %v1647_v63 = vshrl.u32 %v8509_v36, 16  ;;  %v630_v3 = vsel %vm8259_vm8, %v490_v24, %v629_v49  ;;  %v925_v57 = vshrl.u32 %v8535_v23, 16  ;;  %628 = vst [vmem:[#allocation2 + $0x78] sm:$0xf] %v627_v34  ;;  %v11484_v38 = vshrl.u32 %v8478_v10, 16 }
 0x150   :  { %631 = vst [vmem:[#allocation2 + $0x7c] sm:$0x1] %v630_v3  ;;  %v510_v27 = vrot.slane %v508_v52, 7  ;;  %v492_v39 = vshrl.u32 %v7345_v48, 16  ;;  %v495_v58 = vshll.u32 %v7345_v48, 16  ;;  %v1263_v36 = vor.u32 %v1262_v7, %v1258_v40 }
 0x151   :  { %993 = vrot.lane.b32.xlu1 %v902_v60, %s8035_s24  ;;  %1827 = vrot.lane.b32.xlu0 %v1807_v15, %s8034_s23  ;;  %v1624_v15 = vor.u32 %v8521_v29, %v11484_v38  ;;  %v929_v5 = vrot.slane %v927_v6, 1  ;;  %v644_v11 = vld [vmem:[#allocation2 + $0x90] sm:$0xf]  ;;  %v647_v31 = vld [vmem:[#allocation2 + $0x94] sm:$0x1]  ;;  %v1651_v21 = vrot.slane %v1649_v19, 1  ;;  %v6901_v29 = vcombine.low %v8341_v54, %v8430_v20 }
 0x152   :  { %v8566_v9 = vld [vmem:[#allocation2 + $0x28] sm:$0xf]  ;;  %v513_v49 = vor.u32 %v511_v25, %v510_v27  ;;  %v514_v33 = vrot.slane %v510_v27, 4  ;;  %v494_v23 = vrot.slane %v492_v39, 7  ;;  %v887_v60 = vrot.slane %v885_v45, 1 }
 0x153   :  { %v1635_v10 = vshll.u32 %v8539_v53, 16  ;;  %v632_v40 = vld [vmem:[#allocation2 + $0x80] sm:$0xf]  ;;  %v635_v7 = vld [vmem:[#allocation2 + $0x84] sm:$0x1]  ;;  %v930_v19 = vor.u32 %v929_v5, %v925_v57  ;;  %v11485_v52 = vshrl.u32 %v8505_v22, 16  ;;  %v6808_v45 = vcombine.low %v8566_v9, %v8435_v28 }
 0x154   :  { %v645_v37 = vsel %vm8251_vm7, %v513_v49, %v644_v11  ;;  %v648_v6 = vsel %vm8259_vm8, %v514_v33, %v647_v31  ;;  %v497_v14 = vor.u32 %v495_v58, %v494_v23  ;;  %v498_v24 = vrot.slane %v494_v23, 4  ;;  %v8583_v20 = vld [vmem:[#allocation2 + $0x20] sm:$0xf] }
 0x155   :  { %1725 = vrot.lane.b32.xlu1 %v1624_v15, %s8036_s27  ;;  %1359 = vrot.lane.b32.xlu0 %v1263_v36, %s8039_s20  ;;  %v1291_v25 = vor.u32 %v1290_v44, %v11485_v52  ;;  %v1246_v48 = vshll.u32 %v8513_v41, 16  ;;  %646 = vst [vmem:[#allocation2 + $0x90] sm:$0xf] %v645_v37  ;;  %649 = vst [vmem:[#allocation2 + $0x94] sm:$0x1] %v648_v6  ;;  %v883_v54 = vshrl.u32 %v8546_v42, 16 }
 0x156   :  { %v633_v34 = vsel %vm8251_vm7, %v497_v14, %v632_v40  ;;  %v636_v3 = vsel %vm8259_vm8, %v498_v24, %v635_v7  ;;  %v6855_v22 = vcombine.low %v8316_v35, %v8407_v12  ;;  %v1652_v28 = vor.u32 %v1651_v21, %v1647_v63  ;;  %v742_v0 = vld [vmem:[#allocation2 + $0x78] sm:$0xe] }
 0x157   :  { %634 = vst [vmem:[#allocation2 + $0x80] sm:$0xf] %v633_v34  ;;  %637 = vst [vmem:[#allocation2 + $0x84] sm:$0x1] %v636_v3  ;;  %v888_v57 = vor.u32 %v887_v60, %v883_v54  ;;  %v1633_v42 = vshrl.u32 %v8539_v53, 16  ;;  %v1637_v27 = vrot.slane %v1635_v10, 1  ;;  %v6807_v15 = vcombine.low %v8583_v20, %v8445_v43 }
 0x158   :  { %v1248_v39 = vrot.slane %v1246_v48, 1  ;;  %v913_v58 = vshll.u32 %v6808_v45, 16  ;;  %v1628_v38 = vshll.u32 %v6901_v29, 16  ;;  %v1244_v36 = vshrl.u32 %v8513_v41, 16  ;;  %v8609_v10 = vld [vmem:[#allocation2 + $0x30] sm:$0xf] }
 0x159   :  { %1001 = vrot.lane.b32.xlu1 %v930_v19, %s8035_s24  ;;  %1367 = vrot.lane.b32.xlu0 %v1291_v25, %s8039_s20  ;;  %v6854_v35 = vcombine.low %v8351_v17, %v8452_v56  ;;  %v1638_v12 = vor.u32 %v1637_v27, %v1633_v42  ;;  %v911_v63 = vshrl.u32 %v6808_v45, 16  ;;  %v1274_v5 = vshll.u32 %v6855_v22, 16  ;;  %v8622_v3 = vld [vmem:[#allocation2 + $0x10] sm:$0xf]  ;;  %v8632_v42 = vpop.permute.xlu1 %1561 }
 0x15a   :  { %v6905_v53 = vcombine.low %v8382_v50, %v8449_v51  ;;  %v1249_v44 = vor.u32 %v1248_v39, %v1244_v36  ;;  %v915_v11 = vrot.slane %v913_v58, 1  ;;  %v1630_v31 = vrot.slane %v1628_v38, 1  ;;  %11486 = vst [vmem:[#allocation10_spill] sm:$0xff] %v8632_v42  ;;  %v8640_v38 = vld [vmem:[#allocation2 + $0x68] sm:$0xf] }
 0x15b   :  { %v906_v21 = vshll.u32 %v6807_v15, 16  ;;  %v1626_v43 = vshrl.u32 %v6901_v29, 16  ;;  %v6858_v41 = vcombine.low %v8349_v16, %v8462_v47  ;;  %v1272_v49 = vshrl.u32 %v6855_v22, 16  ;;  %v7715_v16 = vld [vmem:[%s11432_s3] sm:$0xff]  }
 0x15c   :  { %v1276_v17 = vrot.slane %v1274_v5, 1  ;;  %v1267_v56 = vshll.u32 %v6854_v35, 16  ;;  %v6899_v33 = vcombine.low %v8405_v61, %v8471_v46  ;;  %v916_v23 = vor.u32 %v915_v11, %v911_v63  ;;  %7461 = vmatprep.subr.bf16.mxu1 %v7715_v16 }
 0x15d   :  { %1733 = vrot.lane.b32.xlu1 %v1652_v28, %s8036_s27  ;;  %989 = vrot.lane.b32.xlu0 %v888_v57, %s8035_s24  ;;  %v1631_v50 = vor.u32 %v1630_v31, %v1626_v43  ;;  %v908_v51 = vrot.slane %v906_v21, 1  ;;  %v1656_v60 = vshll.u32 %v6905_v53, 16  ;;  %v904_v29 = vshrl.u32 %v6807_v15, 16 }
 0x15e   :  { %v1277_v47 = vor.u32 %v1276_v17, %v1272_v49  ;;  %v1269_v40 = vrot.slane %v1267_v56, 1  ;;  %v1295_v7 = vshll.u32 %v6858_v41, 16  ;;  %v1614_v46 = vshll.u32 %v6899_v33, 16  ;;  %7462 = vmatpush3.bf16.msra.mxu1 %v7715_v16  ;;  %v8670_v16 = vld [vmem:[#allocation2 + $0x58] sm:$0xf] }
 0x15f   :  { %v909_v37 = vor.u32 %v908_v51, %v904_v29  ;;  %v1658_v61 = vrot.slane %v1656_v60, 1  ;;  %v6809_v6 = vcombine.low %v8609_v10, %v8480_v18  ;;  %v1265_v14 = vshrl.u32 %v6854_v35, 16  ;;  %v7718_v18 = vld [vmem:[%s11432_s3 + $0x8] sm:$0xff]  }
 0x160   :  { %v1654_v24 = vshrl.u32 %v6905_v53, 16  ;;  %v1297_v19 = vrot.slane %v1295_v7, 1  ;;  %v6856_v52 = vcombine.low %v8454_v62, %v8474_v55  ;;  %v1616_v45 = vrot.slane %v1614_v46, 1  ;;  %7463 = vmatprep.subr.bf16.mxu1 %v7718_v18  ;;  %v7721_v62 = vld [vmem:[%s11432_s3 + $0x10] sm:$0xff]   ;;  %v693_v51 = vld [vmem:[#allocation2 + $0x68] sm:$0xe] }
 0x161   :  { %1729 = vrot.lane.b32.xlu1 %v1638_v12, %s8036_s27  ;;  %1355 = vrot.lane.b32.xlu0 %v1249_v44, %s8039_s20  ;;  %v1270_v25 = vor.u32 %v1269_v40, %v1265_v14  ;;  %v920_v54 = vshll.u32 %v6809_v6, 16  ;;  %v1293_v34 = vshrl.u32 %v6858_v41, 16  ;;  %v1612_v22 = vshrl.u32 %v6899_v33, 16  ;;  %v788_v14 = vld [vmem:[#allocation2 + $0x68] sm:$0xe] }
 0x162   :  { %v1659_v48 = vor.u32 %v1658_v61, %v1654_v24  ;;  %v1281_v57 = vshll.u32 %v6856_v52, 16  ;;  %v6903_v39 = vcombine.low %v8437_v32, %v8496_v2  ;;  %v6805_v58 = vcombine.low %v8622_v3, %v8464_v26  ;;  %7464 = vmatpush3.bf16.msra.mxu1 %v7718_v18  ;;  %v8646_v32 = vld [vmem:[#allocation2 + $0x68] sm:$0xf]  ;;  %v8650_v26 = vpop.permute.xlu1 %1753  ;;  %v8680_v24 = vld [vmem:[#allocation2 + $0x70] sm:$0xf] }
 0x163   :  { %v1298_v28 = vor.u32 %v1297_v19, %v1293_v34  ;;  %v1617_v55 = vor.u32 %v1616_v45, %v1612_v22  ;;  %v922_v27 = vrot.slane %v920_v54, 1  ;;  %7465 = vmatprep.subr.bf16.mxu1 %v7721_v62  ;;  %v918_v15 = vshrl.u32 %v6809_v6, 16  ;;  %11487 = vst [vmem:[#allocation11_spill] sm:$0xff] %v8650_v26  ;;  %v740_v6 = vld [vmem:[#allocation2 + $0x68] sm:$0xe] }
 0x164   :  { %v6845_v36 = vcombine.low %v8640_v38, %v8640_v38  ;;  %v1283_v35 = vrot.slane %v1281_v57, 1  ;;  %v1642_v63 = vshll.u32 %v6903_v39, 16  ;;  %v892_v5 = vshll.u32 %v6805_v58, 16  ;;  %v8682_v19 = vld [vmem:[#allocation2 + $0x6c] sm:$0x1] }
 0x165   :  { %997 = vrot.lane.b32.xlu1 %v916_v23, %s8035_s24  ;;  %1727 = vrot.lane.b32.xlu0 %v1631_v50, %s8036_s27  ;;  %v923_v12 = vor.u32 %v922_v27, %v918_v15  ;;  %v6852_v2 = vcombine.low %v8420_v8, %v8468_v30  ;;  %v1279_v53 = vshrl.u32 %v6856_v52, 16  ;;  %v6892_v44 = vcombine.low %v8646_v32, %v8646_v32  ;;  %v7726_v8 = vld [vmem:[%s11432_s3 + $0x18] sm:$0xff]   ;;  %v7728_v30 = vld [vmem:[%s11432_s3 + $0x20] ss:$0 sps:$4 sm:$0xff]   ;;  %v772_v52 = vld [vmem:[#allocation2 + $0x6c] sm:$0x1] }
 0x166   :  { %7466 = vmatpush3.bf16.msra.mxu1 %v7721_v62  ;;  %v1644_v31 = vrot.slane %v1642_v63, 1  ;;  %v894_v21 = vrot.slane %v892_v5, 1  ;;  %v1640_v41 = vshrl.u32 %v6903_v39, 16  ;;  %v890_v49 = vshrl.u32 %v6805_v58, 16  ;;  %v691_v22 = vld [vmem:[#allocation2 + $0x58] sm:$0xe] }
 0x167   :  { %v1284_v11 = vor.u32 %v1283_v35, %v1279_v53  ;;  %v1253_v43 = vshll.u32 %v6852_v2, 16  ;;  %7467 = vmatprep.subr.bf16.mxu1 %v7726_v8  ;;  %v2225_v60 = vsel %vm2223_vm9, %v7728_v30, 0  ;;  %v1251_v29 = vshrl.u32 %v6852_v2, 16  ;;  %v738_v58 = vld [vmem:[#allocation2 + $0x58] sm:$0xe] }
 0x168   :  { %v1645_v33 = vor.u32 %v1644_v31, %v1640_v41  ;;  %v895_v23 = vor.u32 %v894_v21, %v890_v49  ;;  %v6846_v45 = vcombine.low %v8680_v24, %v8680_v24  ;;  %v6877_v34 = vcombine.low %v740_v6, %v8682_v19  ;;  %v8699_v15 = vld [vmem:[#allocation2 + $0x70] sm:$0xf]  ;;  %v8713_v31 = vld [vmem:[#allocation2 + $0x74] sm:$0x1] }
 0x169   :  { %1363 = vrot.lane.b32.xlu1 %v1277_v47, %s8039_s20  ;;  %995 = vrot.lane.b32.xlu0 %v909_v37, %s8035_s24  ;;  %v1255_v50 = vrot.slane %v1253_v43, 1  ;;  %v677_v47 = vld [vmem:[#allocation2 + $0x6c] sm:$0x1]  ;;  %v6843_v37 = vcombine.low %v8670_v16, %v8670_v16  ;;  %v6924_v18 = vcombine.low %v788_v14, %v772_v52  ;;  %v6893_v63 = vcombine.low %v8699_v15, %v8699_v15  ;;  %v741_v53 = vld [vmem:[#allocation2 + $0x70] sm:$0xe] }
 0x16a   :  { %7468 = vmatpush3.bf16.msra.mxu1 %v7726_v8  ;;  %v6830_v46 = vcombine.low %v693_v51, %v677_v47  ;;  %v6878_v41 = vcombine.low %v741_v53, %v8713_v31  ;;  %v789_v49 = vld [vmem:[#allocation2 + $0x70] sm:$0xe]  ;;  %v773_v51 = vld [vmem:[#allocation2 + $0x74] sm:$0x1]  ;;  %v692_v53 = vld [vmem:[#allocation2 + $0x60] sm:$0xe] }
 0x16b   :  { %7565 = vmatprep.subr.msk.bf16.mxu1 %vm2223_vm9, %v7728_v30  ;;  %v1256_v61 = vor.u32 %v1255_v50, %v1251_v29  ;;  %v1812_v27 = vrot.slane %v6924_v18, 1  ;;  %v8725_v50 = vld [vmem:[#allocation2 + $0x60] sm:$0xf]  ;;  %v6925_v29 = vcombine.low %v789_v49, %v773_v51  ;;  %v694_v14 = vld [vmem:[#allocation2 + $0x70] sm:$0xe] }
 0x16c   :  { %v1078_v54 = vrot.slane %v6830_v46, 1  ;;  %v1446_v6 = vrot.slane %v6878_v41, 1  ;;  %v678_v18 = vld [vmem:[#allocation2 + $0x74] sm:$0x1]  ;;  %v787_v41 = vld [vmem:[#allocation2 + $0x60] sm:$0xe] }
 0x16d   :  { %1361 = vrot.lane.b32.xlu1 %v1270_v25, %s8039_s20  ;;  %1735 = vrot.lane.b32.xlu0 %v1659_v48, %s8036_s27 }
 0x16e   :  { %7470 = vmatpush3.bf16.msra.mxu1 %v2225_v60  ;;  %v6891_v60 = vcombine.low %v8725_v50, %v8725_v50 }
 0x171   :  { %1369 = vrot.lane.b32.xlu1 %v1298_v28, %s8039_s20  ;;  %1723 = vrot.lane.b32.xlu0 %v1617_v55, %s8036_s27  ;;  %v675_v28 = vld [vmem:[#allocation2 + $0x5c] sm:$0x1]  ;;  %v1445_v55 = vrot.slane %v6877_v34, 1  ;;  %v8737_v34 = vld [vmem:[#allocation2 + $0x58] sm:$0xf] }
 0x172   :  { %v6828_v39 = vcombine.low %v691_v22, %v675_v28  ;;  %11496 = vst [vmem:[#allocation20_spill] sm:$0xff] %v8737_v34  ;;  %v1813_v22 = vrot.slane %v6925_v29, 1 }
 0x174   :  { %v1076_v5 = vrot.slane %v6828_v39, 1 }
 0x175   :  { %1183 = vrot.lane.b32.xlu1 %v6845_v36, %s8037_s17  ;;  %999 = vrot.lane.b32.xlu0 %v923_v12, %s8035_s24  ;;  %v722_v36 = vld [vmem:[#allocation2 + $0x5c] sm:$0x1] }
 0x176   :  { %v6875_v2 = vcombine.low %v738_v58, %v722_v36 }
 0x178   :  { %v1443_v8 = vrot.slane %v6875_v2, 1 }
 0x179   :  { %1549 = vrot.lane.b32.xlu1 %v6892_v44, %s8033_s22  ;;  %1365 = vrot.lane.b32.xlu0 %v1284_v11, %s8039_s20  ;;  %v8707_v44 = vld [vmem:[#allocation2 + $0x68] sm:$0xf]  ;;  %v8711_v11 = vld [vmem:[#allocation2 + $0x60] sm:$0xf] }
 0x17a   :  { %11493 = vst [vmem:[#allocation17_spill] sm:$0xff] %v8707_v44  ;;  %v6844_v30 = vcombine.low %v8711_v11, %v8711_v11 }
 0x17b   :  { %v8662_v17 = vpop.permute.xlu1 %1533  ;;  %v8664_v56 = vpop.permute.xlu0 %1167 }
 0x17c   :  { %11488 = vst [vmem:[#allocation12_spill] sm:$0xff] %v8662_v17  ;;  %11489 = vst [vmem:[#allocation13_spill] sm:$0xff] %v8664_v56  ;;  %v791_v56 = vld [vmem:[#allocation2 + $0x80] sm:$0xe] }
 0x17d   :  { %1731 = vrot.lane.b32.xlu0 %v1645_v33, %s8036_s27  ;;  %991 = vrot.lane.b32.xlu1 %v895_v23, %s8035_s24  ;;  %v6814_v33 = vcombine.low %v8707_v44, %v677_v47  ;;  %v739_v23 = vld [vmem:[#allocation2 + $0x60] sm:$0xe]  ;;  %v8847_v44 = vld [vmem:[#allocation2 + $0x7c] sm:$0x1] }
 0x17f   :  { %v8672_v40 = vpop.permute.xlu1 %1175  ;;  %v8674_v7 = vpop.permute.xlu0 %1163 }
 0x181   :  { %1179 = vrot.lane.b32.xlu0 %v6843_v37, %s8037_s17  ;;  %1357 = vrot.lane.b32.xlu1 %v1256_v61, %s8039_s20  ;;  %v8729_v37 = vld [vmem:[#allocation2 + $0x64] sm:$0x1] }
 0x182   :  { %v6876_v47 = vcombine.low %v739_v23, %v8729_v37 }
 0x183   :  { %v8684_v25 = vpop.permute.xlu1 %1541  ;;  %v8686_v48 = vpop.permute.xlu0 %1171 }
 0x185   :  { %1185 = vrot.lane.b32.xlu0 %v6846_v45, %s8037_s17  ;;  %1105 = vrot.lane.b32.xlu1 %v1078_v54, %s8032_s19  ;;  %v955_v45 = vshll.u32 %v6814_v33, 16  ;;  %v6908_v54 = vcombine.low %v8646_v32, %v772_v52  ;;  %v676_v52 = vld [vmem:[#allocation2 + $0x64] sm:$0x1] }
 0x187   :  { %v8693_v57 = vpop.permute.xlu1 %1537  ;;  %v8695_v62 = vpop.permute.xlu0 %1455  ;;  %v957_v2 = vrot.slane %v955_v45, 1  ;;  %v1677_v32 = vshll.u32 %v6908_v54, 16  ;;  %v1675_v29 = vshrl.u32 %v6908_v54, 16 }
 0x188   :  { %11490 = vst [vmem:[#allocation14_spill] sm:$0xff] %v8693_v57  ;;  %11491 = vst [vmem:[#allocation15_spill] sm:$0xff] %v8695_v62 }
 0x189   :  { %1471 = vrot.lane.b32.xlu0 %v1445_v55, %s8038_s18  ;;  %1837 = vrot.lane.b32.xlu1 %v1812_v27, %s8034_s23  ;;  %v6831_v55 = vcombine.low %v694_v14, %v678_v18  ;;  %v6812_v27 = vcombine.low %v8737_v34, %v675_v28  ;;  %v6861_v28 = vcombine.low %v8640_v38, %v8682_v19  ;;  %v8755_v14 = vld [vmem:[#allocation2 + $0x64] sm:$0x1] }
 0x18a   :  { %v6923_v45 = vcombine.low %v787_v41, %v8755_v14  ;;  %v6909_v19 = vcombine.low %v8699_v15, %v773_v51 }
 0x18b   :  { %v8701_v35 = vpop.permute.xlu1 %1089  ;;  %v8703_v12 = vpop.permute.xlu0 %1535  ;;  %v941_v49 = vshll.u32 %v6812_v27, 16  ;;  %v1316_v38 = vshll.u32 %v6861_v28, 16 }
 0x18c   :  { %11492 = vst [vmem:[#allocation16_spill] sm:$0xff] %v8703_v12  ;;  %v1684_v51 = vshll.u32 %v6909_v19, 16 }
 0x18d   :  { %1551 = vrot.lane.b32.xlu0 %v6893_v63, %s8033_s22  ;;  %1101 = vrot.lane.b32.xlu1 %v1076_v5, %s8032_s19  ;;  %v1444_v63 = vrot.slane %v6876_v47, 1  ;;  %v953_v5 = vshrl.u32 %v6814_v33, 16  ;;  %v6859_v47 = vcombine.low %v8670_v16, %v722_v36  ;;  %v6862_v36 = vcombine.low %v8680_v24, %v8713_v31  ;;  %v8776_v31 = vld [vmem:[#allocation2 + $0x60] sm:$0xf] }
 0x18e   :  { %v1318_v15 = vrot.slane %v1316_v38, 1  ;;  %11501 = vst [vmem:[#allocation25_spill] sm:$0xff] %v8776_v31 }
 0x18f   :  { %v8715_v21 = vpop.permute.xlu0 %1177  ;;  %v8717_v43 = vpop.permute.xlu1 %1169  ;;  %v958_v33 = vor.u32 %v957_v2, %v953_v5  ;;  %v1302_v16 = vshll.u32 %v6859_v47, 16 }
 0x191   :  { %1467 = vrot.lane.b32.xlu0 %v1443_v8, %s8038_s18  ;;  %1181 = vrot.lane.b32.xlu1 %v6844_v30, %s8037_s17  ;;  %v1079_v8 = vrot.slane %v6831_v55, 1  ;;  %v6829_v30 = vcombine.low %v692_v53, %v676_v52  ;;  %v943_v55 = vrot.slane %v941_v49, 1  ;;  %v8767_v53 = vld [vmem:[#allocation2 + $0x70] sm:$0xf] }
 0x192   :  { %11499 = vst [vmem:[#allocation23_spill] sm:$0xff] %v8767_v53  ;;  %v6815_v24 = vcombine.low %v8767_v53, %v678_v18 }
 0x193   :  { %v8731_v61 = vpop.permute.xlu0 %1463  ;;  %v8733_v46 = vpop.permute.xlu1 %1821  ;;  %v1077_v54 = vrot.slane %v6829_v30, 1  ;;  %v1300_v30 = vshrl.u32 %v6859_v47, 16 }
 0x194   :  { %11494 = vst [vmem:[#allocation18_spill] sm:$0xff] %v8731_v61  ;;  %11495 = vst [vmem:[#allocation19_spill] sm:$0xff] %v8733_v46 }
 0x195   :  { %1547 = vrot.lane.b32.xlu0 %v6891_v60, %s8033_s22  ;;  %1473 = vrot.lane.b32.xlu1 %v1446_v6, %s8038_s18  ;;  %v1679_v6 = vrot.slane %v1677_v32, 1 }
 0x197   :  { %v8742_v39 = vpop.permute.xlu0 %1543  ;;  %v8744_v58 = vpop.permute.xlu1 %1097  ;;  %v1680_v2 = vor.u32 %v1679_v6, %v1675_v29  ;;  %v1323_v29 = vshll.u32 %v6862_v36, 16 }
 0x198   :  { %11497 = vst [vmem:[#allocation21_spill] sm:$0xff] %v8742_v39  ;;  %v745_v39 = vld [vmem:[#allocation2 + $0x90] sm:$0xe] }
 0x199   :  { %1839 = vrot.lane.b32.xlu0 %v1813_v22, %s8034_s23  ;;  %1469 = vrot.lane.b32.xlu1 %v1444_v63, %s8038_s18  ;;  %v939_v22 = vshrl.u32 %v6812_v27, 16  ;;  %v1811_v27 = vrot.slane %v6923_v45, 1  ;;  %v1682_v45 = vshrl.u32 %v6909_v19, 16  ;;  %v1325_v47 = vrot.slane %v1323_v29, 1  ;;  %v8799_v29 = vld [vmem:[#allocation2 + $0x88] sm:$0xf] }
 0x19b   :  { %v8750_v23 = vpop.permute.xlu0 %1451  ;;  %v8752_v60 = vpop.permute.xlu1 %1829  ;;  %v944_v32 = vor.u32 %v943_v55, %v939_v22  ;;  %v1321_v22 = vshrl.u32 %v6862_v36, 16 }
 0x19c   :  { %11498 = vst [vmem:[#allocation22_spill] sm:$0xff] %v8752_v60 }
 0x19d   :  { %1107 = vrot.lane.b32.xlu0 %v1079_v8, %s8032_s19  ;;  %1009 = vrot.lane.b32.xlu1 %v958_v33, %s8035_s24  ;;  %v1314_v8 = vshrl.u32 %v6861_v28, 16  ;;  %v1304_v33 = vrot.slane %v1302_v16, 1  ;;  %v1686_v28 = vrot.slane %v1684_v51, 1  ;;  %v6813_v16 = vcombine.low %v8776_v31, %v676_v52 }
 0x19f   :  { %v8761_v63 = vpop.permute.xlu1 %1085  ;;  %v8763_v5 = vpop.permute.xlu0 %1531  ;;  %v1319_v6 = vor.u32 %v1318_v15, %v1314_v8  ;;  %v1687_v18 = vor.u32 %v1686_v28, %v1682_v45  ;;  %v1326_v8 = vor.u32 %v1325_v47, %v1321_v22  ;;  %v948_v51 = vshll.u32 %v6813_v16, 16 }
 0x1a0   :  { %v6896_v47 = vcombine.low %v8799_v29, %v8799_v29 }
 0x1a1   :  { %1103 = vrot.lane.b32.xlu0 %v1077_v54, %s8032_s19  ;;  %1741 = vrot.lane.b32.xlu1 %v1680_v2, %s8036_s27  ;;  %v1305_v54 = vor.u32 %v1304_v33, %v1300_v30  ;;  %v962_v2 = vshll.u32 %v6815_v24, 16  ;;  %v6860_v30 = vcombine.low %v8711_v11, %v8729_v37  ;;  %v946_v33 = vshrl.u32 %v6813_v16, 16 }
 0x1a2   :  { %v950_v22 = vrot.slane %v948_v51, 1  ;;  %v6907_v11 = vcombine.low %v8725_v50, %v8755_v14 }
 0x1a3   :  { %v8771_v41 = vpop.permute.xlu0 %1459  ;;  %v8773_v49 = vpop.permute.xlu1 %1165  ;;  %v964_v15 = vrot.slane %v962_v2, 1  ;;  %v8815_v2 = vld [vmem:[#allocation2 + $0x8c] sm:$0x1]  ;;  %v1307_v51 = vshrl.u32 %v6860_v30, 16 }
 0x1a4   :  { %11500 = vst [vmem:[#allocation24_spill] sm:$0xff] %v8773_v49  ;;  %v951_v14 = vor.u32 %v950_v22, %v946_v33 }
 0x1a5   :  { %1835 = vrot.lane.b32.xlu0 %v1811_v27, %s8034_s23  ;;  %1005 = vrot.lane.b32.xlu1 %v944_v32, %s8035_s24  ;;  %v960_v27 = vshrl.u32 %v6815_v24, 16  ;;  %v8787_v32 = vld [vmem:[#allocation2 + $0x88] sm:$0xf]  ;;  %v8801_v24 = vpop.f32.mrb[4].mxu0 }
 0x1a6   :  { %v6849_v52 = vcombine.low %v8787_v32, %v8787_v32  ;;  %11504 = vst [vmem:[#allocation28_spill] sm:$0xff] %v8801_v24  ;;  %v8809_v37 = vpop.f32.mrb[5].mxu0 }
 0x1a7   :  { %v8780_v55 = vpop.permute.xlu0 %1539  ;;  %v8782_v38 = vpop.permute.xlu1 %1825  ;;  %v965_v28 = vor.u32 %v964_v15, %v960_v27  ;;  %11505 = vst [vmem:[#allocation29_spill] sm:$0xff] %v8809_v37  ;;  %v697_v27 = vld [vmem:[#allocation2 + $0x88] sm:$0xe] }
 0x1a8   :  { %11502 = vst [vmem:[#allocation26_spill] sm:$0xff] %v8782_v38  ;;  %v8817_v16 = vpop.f32.mrb[6].mxu0  ;;  %v6834_v4 = vcombine.low %v697_v27, %v8815_v2  ;;  %v790_v27 = vld [vmem:[#allocation2 + $0x78] sm:$0xe]  ;;  %v8888_v38 = vld [vmem:[#allocation2 + $0x88] sm:$0xf] }
 0x1a9   :  { %1375 = vrot.lane.b32.xlu0 %v1319_v6, %s8039_s20  ;;  %1371 = vrot.lane.b32.xlu1 %v1305_v54, %s8039_s20  ;;  %v1309_v54 = vshll.u32 %v6860_v30, 16  ;;  %11506 = vst [vmem:[#allocation30_spill] sm:$0xff] %v8817_v16  ;;  %v8832_v16 = vld [vmem:[#allocation2 + $0x8c] sm:$0x1]  ;;  %v1668_v30 = vshrl.u32 %v6907_v11, 16  ;;  %11519 = vst [vmem:[#allocation43_spill] sm:$0xff] %v8888_v38 }
 0x1ab   :  { %v8789_v19 = vpop.permute.xlu0 %1823  ;;  %v8791_v36 = vpop.permute.xlu1 %1093 }
 0x1ac   :  { %11503 = vst [vmem:[#allocation27_spill] sm:$0xff] %v8789_v19 }
 0x1ad   :  { %1743 = vrot.lane.b32.xlu0 %v1687_v18, %s8036_s27  ;;  %1377 = vrot.lane.b32.xlu1 %v1326_v8, %s8039_s20  ;;  %v8819_v18 = vld [vmem:[#allocation2 + $0x78] sm:$0xf]  ;;  %v8821_v8 = vpop.f32.mrb[7].mxu0 }
 0x1ae   :  { %11507 = vst [vmem:[#allocation31_spill] sm:$0xff] %v8821_v8  ;;  %v6894_v13 = vcombine.low %v8819_v18, %v8819_v18  ;;  %v792_v8 = vld [vmem:[#allocation2 + $0x88] sm:$0xe] }
 0x1af   :  { %v8803_v6 = vpop.permute.xlu0 %1091  ;;  %v8805_v45 = vpop.permute.xlu1 %1173 }
 0x1b1   :  { %1011 = vrot.lane.b32.xlu0 %v965_v28, %s8035_s24  ;;  %1191 = vrot.lane.b32.xlu1 %v6849_v52, %s8037_s17  ;;  %v1311_v28 = vrot.slane %v1309_v54, 1  ;;  %v1670_v52 = vshll.u32 %v6907_v11, 16  ;;  %v1082_v54 = vrot.slane %v6834_v4, 1  ;;  %v6926_v11 = vcombine.low %v790_v27, %v8847_v44  ;;  %v8870_v27 = vld [vmem:[#allocation2 + $0x8c] sm:$0x1] }
 0x1b3   :  { %v8823_v15 = vpop.permute.xlu0 %1831  ;;  %v8825_v50 = vpop.permute.xlu1 %1457  ;;  %v1312_v33 = vor.u32 %v1311_v28, %v1307_v51  ;;  %v1672_v22 = vrot.slane %v1670_v52, 1 }
 0x1b4   :  { %11508 = vst [vmem:[#allocation32_spill] sm:$0xff] %v8823_v15 }
 0x1b5   :  { %1007 = vrot.lane.b32.xlu0 %v951_v14, %s8035_s24  ;;  %1557 = vrot.lane.b32.xlu1 %v6896_v47, %s8033_s22  ;;  %v6928_v47 = vcombine.low %v792_v8, %v8832_v16  ;;  %v8841_v14 = vld [vmem:[#allocation2 + $0x78] sm:$0xf]  ;;  %v1673_v53 = vor.u32 %v1672_v22, %v1668_v30  ;;  %v8854_v8 = vpop.f32.mrb[8].mxu0 }
 0x1b6   :  { %11512 = vst [vmem:[#allocation36_spill] sm:$0xff] %v8854_v8  ;;  %v8856_v51 = vpop.f32.mrb[9].mxu0  ;;  %v695_v30 = vld [vmem:[#allocation2 + $0x78] sm:$0xe] }
 0x1b7   :  { %v8834_v37 = vpop.permute.xlu1 %1465  ;;  %v8836_v24 = vpop.permute.xlu0 %1087  ;;  %v1816_v4 = vrot.slane %v6928_v47, 1  ;;  %11513 = vst [vmem:[#allocation37_spill] sm:$0xff] %v8856_v51  ;;  %v8868_v47 = vld [vmem:[#allocation2 + $0x90] sm:$0xf]  ;;  %v8872_v51 = vld [vmem:[#allocation2 + $0x7c] sm:$0x1] }
 0x1b8   :  { %11509 = vst [vmem:[#allocation33_spill] sm:$0xff] %v8834_v37  ;;  %v8862_v22 = vpop.f32.mrb[10].mxu0  ;;  %v6912_v37 = vcombine.low %v8799_v29, %v8832_v16 }
 0x1b9   :  { %1373 = vrot.lane.b32.xlu0 %v1312_v33, %s8039_s20  ;;  %1553 = vrot.lane.b32.xlu1 %v6894_v13, %s8033_s22  ;;  %v6847_v13 = vcombine.low %v8841_v14, %v8841_v14  ;;  %v744_v33 = vld [vmem:[#allocation2 + $0x88] sm:$0xe]  ;;  %11514 = vst [vmem:[#allocation38_spill] sm:$0xff] %v8862_v22  ;;  %v6850_v22 = vcombine.low %v8868_v47, %v8868_v47 }
 0x1bb   :  { %v8843_v26 = vpop.permute.xlu1 %1453  ;;  %v8845_v42 = vpop.permute.xlu0 %1819 }
 0x1bc   :  { %11510 = vst [vmem:[#allocation34_spill] sm:$0xff] %v8843_v26  ;;  %11511 = vst [vmem:[#allocation35_spill] sm:$0xff] %v8845_v42  ;;  %v6818_v42 = vcombine.low %v8888_v38, %v8815_v2  ;;  %v793_v38 = vld [vmem:[#allocation2 + $0x90] sm:$0xe] }
 0x1bd   :  { %1739 = vrot.lane.b32.xlu0 %v1673_v53, %s8036_s27  ;;  %1113 = vrot.lane.b32.xlu1 %v1082_v54, %s8032_s19  ;;  %v1814_v53 = vrot.slane %v6926_v11, 1  ;;  %v8866_v54 = vpop.f32.mrb[11].mxu0 }
 0x1be   :  { %11515 = vst [vmem:[#allocation39_spill] sm:$0xff] %v8866_v54  ;;  %v8890_v46 = vpop.f32.mrb[12].mxu0  ;;  %v983_v26 = vshll.u32 %v6818_v42, 16 }
 0x1bf   :  { %v8858_v28 = vpop.permute.xlu1 %1461  ;;  %v8860_v52 = vpop.permute.xlu0 %1095  ;;  %11520 = vst [vmem:[#allocation44_spill] sm:$0xff] %v8890_v46 }
 0x1c0   :  { %v985_v62 = vrot.slane %v983_v26, 1 }
 0x1c1   :  { %1187 = vrot.lane.b32.xlu0 %v6847_v13, %s8037_s17  ;;  %1845 = vrot.lane.b32.xlu1 %v1816_v4, %s8034_s23  ;;  %v6881_v13 = vcombine.low %v744_v33, %v8870_v27  ;;  %v6832_v4 = vcombine.low %v695_v30, %v8872_v51  ;;  %v8894_v33 = vld [vmem:[#allocation2 + $0x90] sm:$0xf]  ;;  %v8896_v30 = vld [vmem:[#allocation2 + $0x7c] sm:$0x1] }
 0x1c2   :  { %v6879_v60 = vcombine.low %v742_v0, %v8896_v30 }
 0x1c3   :  { %v8874_v8 = vpop.permute.xlu1 %993  ;;  %v8876_v31 = vpop.permute.xlu0 %1827  ;;  %v1449_v34 = vrot.slane %v6881_v13, 1  ;;  %v1080_v15 = vrot.slane %v6832_v4, 1  ;;  %v8902_v13 = vld [vmem:[#allocation2 + $0x80] sm:$0xf]  ;;  %v8904_v4 = vld [vmem:[#allocation2 + $0x94] sm:$0x1] }
 0x1c4   :  { %11516 = vst [vmem:[#allocation40_spill] sm:$0xff] %v8876_v31 }
 0x1c5   :  { %1193 = vrot.lane.b32.xlu0 %v6850_v22, %s8037_s17  ;;  %1841 = vrot.lane.b32.xlu1 %v1814_v53, %s8034_s23  ;;  %v8898_v22 = vpop.f32.mrb[13].mxu0  ;;  %v6897_v53 = vcombine.low %v8894_v33, %v8894_v33 }
 0x1c6   :  { %11521 = vst [vmem:[#allocation45_spill] sm:$0xff] %v8898_v22  ;;  %v8906_v31 = vpop.f32.mrb[14].mxu0  ;;  %v6882_v22 = vcombine.low %v745_v39, %v8904_v4  ;;  %v1447_v39 = vrot.slane %v6879_v60, 1 }
 0x1c7   :  { %v8884_v11 = vpop.permute.xlu1 %1725  ;;  %v8886_v54 = vpop.permute.xlu0 %1359  ;;  %11522 = vst [vmem:[#allocation46_spill] sm:$0xff] %v8906_v31  ;;  %v8922_v31 = vld [vmem:[#allocation2 + $0x84] sm:$0x1] }
 0x1c8   :  { %11517 = vst [vmem:[#allocation41_spill] sm:$0xff] %v8884_v11  ;;  %11518 = vst [vmem:[#allocation42_spill] sm:$0xff] %v8886_v54  ;;  %v743_v11 = vld [vmem:[#allocation2 + $0x80] sm:$0xe]  ;;  %v8918_v19 = vpop.f32.mrb[15].mxu0  ;;  %v1450_v61 = vrot.slane %v6882_v22, 1 }
 0x1c9   :  { %1479 = vrot.lane.b32.xlu0 %v1449_v34, %s8038_s18  ;;  %1109 = vrot.lane.b32.xlu1 %v1080_v15, %s8032_s19  ;;  %v6848_v15 = vcombine.low %v8902_v13, %v8902_v13  ;;  %11524 = vst [vmem:[#allocation48_spill] sm:$0xff] %v8918_v19  ;;  %v6880_v2 = vcombine.low %v743_v11, %v8922_v31  ;;  %v1705_v19 = vshll.u32 %v6912_v37, 16  ;;  %v981_v11 = vshrl.u32 %v6818_v42, 16  ;;  %v680_v54 = vld [vmem:[#allocation2 + $0x84] sm:$0x1] }
 0x1cb   :  { %v8908_v46 = vpop.permute.xlu1 %1001  ;;  %v8910_v34 = vpop.permute.xlu0 %1367  ;;  %v1448_v22 = vrot.slane %v6880_v2, 1  ;;  %v1707_v57 = vrot.slane %v1705_v19, 1  ;;  %v986_v49 = vor.u32 %v985_v62, %v981_v11 }
 0x1cc   :  { %11523 = vst [vmem:[#allocation47_spill] sm:$0xff] %v8910_v34  ;;  %v1703_v34 = vshrl.u32 %v6912_v37, 16 }
 0x1cd   :  { %1559 = vrot.lane.b32.xlu0 %v6897_v53, %s8033_s22  ;;  %1189 = vrot.lane.b32.xlu1 %v6848_v15, %s8037_s17  ;;  %v8933_v53 = vld [vmem:[#allocation2 + $0x80] sm:$0xf]  ;;  %v777_v15 = vld [vmem:[#allocation2 + $0x94] sm:$0x1] }
 0x1ce   :  { %v6895_v29 = vcombine.low %v8933_v53, %v8933_v53  ;;  %v6929_v16 = vcombine.low %v793_v38, %v777_v15  ;;  %v6865_v38 = vcombine.low %v8787_v32, %v8870_v27  ;;  %v6913_v11 = vcombine.low %v8894_v33, %v777_v15 }
 0x1cf   :  { %v8926_v17 = vpop.permute.xlu1 %1733  ;;  %v8928_v0 = vpop.permute.xlu0 %989 }
 0x1d0   :  { %11525 = vst [vmem:[#allocation49_spill] sm:$0xff] %v8926_v17  ;;  %v696_v17 = vld [vmem:[#allocation2 + $0x80] sm:$0xe]  ;;  %v1817_v26 = vrot.slane %v6929_v16, 1 }
 0x1d1   :  { %1475 = vrot.lane.b32.xlu0 %v1447_v39, %s8038_s18  ;;  %1481 = vrot.lane.b32.xlu1 %v1450_v61, %s8038_s18  ;;  %v6910_v39 = vcombine.low %v8819_v18, %v8847_v44  ;;  %v8943_v61 = vld [vmem:[#allocation2 + $0x78] sm:$0xf] }
 0x1d2   :  { %11527 = vst [vmem:[#allocation51_spill] sm:$0xff] %v8943_v61  ;;  %v6816_v18 = vcombine.low %v8943_v61, %v8872_v51  ;;  %v6863_v51 = vcombine.low %v8841_v14, %v8896_v30  ;;  %v8960_v61 = vld [vmem:[#allocation2 + $0x80] sm:$0xf] }
 0x1d3   :  { %v8937_v12 = vpop.permute.xlu1 %1729  ;;  %v8939_v60 = vpop.permute.xlu0 %1355  ;;  %v1691_v44 = vshll.u32 %v6910_v39, 16  ;;  %v1689_v19 = vshrl.u32 %v6910_v39, 16  ;;  %v6866_v39 = vcombine.low %v8868_v47, %v8904_v4  ;;  %v8977_v47 = vcombine.low %v8902_v13, %v8922_v31 }
 0x1d4   :  { %11526 = vst [vmem:[#allocation50_spill] sm:$0xff] %v8937_v12  ;;  %v6833_v12 = vcombine.low %v696_v17, %v680_v54  ;;  %v1708_v17 = vor.u32 %v1707_v57, %v1703_v34  ;;  %v969_v62 = vshll.u32 %v6816_v18, 16  ;;  %v1342_v57 = vshrl.u32 %v6865_v38, 16 }
 0x1d5   :  { %1555 = vrot.lane.b32.xlu0 %v6895_v29, %s8033_s22  ;;  %1477 = vrot.lane.b32.xlu1 %v1448_v22, %s8038_s18  ;;  %v775_v29 = vld [vmem:[#allocation2 + $0x84] sm:$0x1]  ;;  %v1344_v22 = vshll.u32 %v6865_v38, 16  ;;  %v1693_v16 = vrot.slane %v1691_v44, 1  ;;  %v6817_v34 = vcombine.low %v8960_v61, %v680_v54  ;;  %v1330_v44 = vshll.u32 %v6863_v51, 16 }
 0x1d6   :  { %v1081_v32 = vrot.slane %v6833_v12, 1  ;;  %v6927_v37 = vcombine.low %v791_v56, %v775_v29  ;;  %v971_v30 = vrot.slane %v969_v62, 1  ;;  %v1328_v4 = vshrl.u32 %v6863_v51, 16  ;;  %v7998_v51 = vld [vmem:[#allocation2 + $0x18] sm:$0xf] }
 0x1d7   :  { %v998_v2 = vpop.permute.xlu1 %997  ;;  %v8949_v42 = vpop.permute.xlu0 %1727  ;;  %v1346_v56 = vrot.slane %v1344_v22, 1  ;;  %v1694_v14 = vor.u32 %v1693_v16, %v1689_v19  ;;  %v976_v22 = vshll.u32 %v6817_v34, 16  ;;  %v974_v13 = vshrl.u32 %v6817_v34, 16 }
 0x1d8   :  { %11528 = vst [vmem:[#allocation52_spill] sm:$0xff] %v8949_v42  ;;  %v1815_v12 = vrot.slane %v6927_v37, 1  ;;  %v8980_v37 = vcombine.low %v8933_v53, %v775_v29  ;;  %v1869_v53 = vsel %vm1851_vm10, %v8566_v9, %v998_v2 }
 0x1d9   :  { %1847 = vrot.lane.b32.xlu0 %v1817_v26, %s8034_s23  ;;  %1017 = vrot.lane.b32.xlu1 %v986_v49, %s8035_s24  ;;  %v967_v49 = vshrl.u32 %v6816_v18, 16  ;;  %v1712_v26 = vshll.u32 %v6913_v11, 16  ;;  %v1347_v54 = vor.u32 %v1346_v56, %v1342_v57  ;;  %v1710_v18 = vshrl.u32 %v6913_v11, 16 }
 0x1da   :  { %v1332_v11 = vrot.slane %v1330_v44, 1  ;;  %v1863_v56 = vsel %vm1851_vm10, %v7998_v51, %v8874_v8  ;;  %v1698_v34 = vshll.u32 %v8980_v37, 16 }
 0x1db   :  { %v8955_v27 = vpop.permute.xlu1 %1363  ;;  %v996_v42 = vpop.permute.xlu0 %995  ;;  %v972_v62 = vor.u32 %v971_v30, %v967_v49  ;;  %v1714_v57 = vrot.slane %v1712_v26, 1  ;;  %v794_v49 = vld [vmem:[#allocation2 + $0x98] sm:$0xe]  ;;  %v1912_v30 = vsel %vm1900_vm11, %v1869_v53, %v8791_v36 }
 0x1dc   :  { %v1700_v36 = vrot.slane %v1698_v34, 1 }
 0x1dd   :  { %1111 = vrot.lane.b32.xlu0 %v1081_v32, %s8032_s19  ;;  %1749 = vrot.lane.b32.xlu1 %v1708_v17, %s8036_s27  ;;  %v7997_v32 = vld [vmem:[#allocation2] sm:$0xf]  ;;  %v1351_v17 = vshll.u32 %v6866_v39, 16  ;;  %v1715_v2 = vor.u32 %v1714_v57, %v1710_v18 }
 0x1de   :  { %v1854_v38 = vsel %vm1851_vm10, %v7997_v32, %v8205_v1  ;;  %v1866_v1 = vsel %vm1851_vm10, %v8583_v20, %v996_v42  ;;  %v1349_v20 = vshrl.u32 %v6866_v39, 16  ;;  %v1337_v42 = vshll.u32 %v8977_v47, 16  ;;  %v7999_v32 = vld [vmem:[#allocation2 + $0x9c] sm:$0x1] }
 0x1df   :  { %v8967_v33 = vpop.permute.xlu1 %1361  ;;  %v8969_v15 = vpop.permute.xlu0 %1735  ;;  %v1902_v31 = vsel %vm1900_vm11, %v1854_v38, %v8192_v59  ;;  %v1910_v29 = vsel %vm1900_vm11, %v1866_v1, %v8803_v6  ;;  %v1353_v59 = vrot.slane %v1351_v17, 1  ;;  %v1908_v39 = vsel %vm1900_vm11, %v1863_v56, %v8701_v35 }
 0x1e0   :  { %v1335_v6 = vshrl.u32 %v8977_v47, 16  ;;  %v1943_v26 = vsel %vm1933_vm12, %v1910_v29, %v8686_v48  ;;  %v1339_v44 = vrot.slane %v1337_v42, 1  ;;  %v6930_v38 = vcombine.low %v794_v49, %v7999_v32  ;;  %v11530_v42 = vld [vmem:[#allocation24_spill] sm:$0xff]  ;;  %v11531_v29 = vld [vmem:[#allocation14_spill] sm:$0xff]  ;;  %v11532_v49 = vld [vmem:[#allocation47_spill] sm:$0xff] }
 0x1e1   :  { %1843 = vrot.lane.b32.xlu0 %v1815_v12, %s8034_s23  ;;  %1745 = vrot.lane.b32.xlu1 %v1694_v14, %s8036_s27  ;;  %v978_v12 = vrot.slane %v976_v22, 1  ;;  %v1333_v14 = vor.u32 %v1332_v11, %v1328_v4  ;;  %v1354_v4 = vor.u32 %v1353_v59, %v1349_v20  ;;  %v1935_v47 = vsel %vm1933_vm12, %v1902_v31, %v8674_v7  ;;  %v8000_v22 = vld [vmem:[#allocation2 + $0x38] sm:$0xf]  ;;  %v11536_v32 = vld [vmem:[#allocation16_spill] sm:$0xff] }
 0x1e2   :  { %v1875_v48 = vsel %vm1851_vm10, %v8000_v22, %v8908_v46  ;;  %v1941_v17 = vsel %vm1933_vm12, %v1908_v39, %v8717_v43  ;;  %v1968_v7 = vsel %vm1966_vm13, %v1935_v47, %v8939_v60  ;;  %v1976_v46 = vsel %vm1966_vm13, %v1943_v26, %v8955_v27  ;;  %v11534_v39 = vld [vmem:[#allocation49_spill] sm:$0xff]  ;;  %v11540_v22 = vld [vmem:[#allocation52_spill] sm:$0xff] }
 0x1e3   :  { %v8984_v19 = vpop.permute.xlu1 %1369  ;;  %v8986_v16 = vpop.permute.xlu0 %1723  ;;  %v979_v18 = vor.u32 %v978_v12, %v974_v13  ;;  %v1974_v43 = vsel %vm1966_vm13, %v1941_v17, %v8967_v33  ;;  %v2001_v33 = vsel %vm1999_vm14, %v1968_v7, %v8750_v23  ;;  %v1340_v56 = vor.u32 %v1339_v44, %v1335_v6  ;;  %v11535_v6 = vld [vmem:[#allocation15_spill] sm:$0xff]  ;;  %v11541_v17 = vld [vmem:[#allocation12_spill] sm:$0xff] }
 0x1e4   :  { %v2007_v53 = vsel %vm1999_vm14, %v1974_v43, %v8825_v50  ;;  %v11529_v50 = vld [vmem:[#allocation13_spill] sm:$0xff] }
 0x1e5   :  { %1383 = vrot.lane.b32.xlu0 %v1347_v54, %s8039_s20  ;;  %1013 = vrot.lane.b32.xlu1 %v972_v62, %s8035_s24  ;;  %v1696_v54 = vshrl.u32 %v8980_v37, 16  ;;  %v1945_v37 = vsel %vm1933_vm12, %v1912_v30, %v8805_v45  ;;  %v1818_v45 = vrot.slane %v6930_v38, 1  ;;  %v2040_v12 = vsel %vm2032_vm15, %v2007_v53, %v11531_v29 }
 0x1e7   :  { %v9000_v8 = vpop.permute.xlu1 %1183  ;;  %v1000_v9 = vpop.permute.xlu0 %999  ;;  %v1701_v20 = vor.u32 %v1700_v36, %v1696_v54  ;;  %v11537_v54 = vld [vmem:[#allocation34_spill] sm:$0xff] }
 0x1e8   :  { %v1872_v35 = vsel %vm1851_vm10, %v8609_v10, %v1000_v9  ;;  %v8001_v10 = vld [vmem:[#allocation2 + $0x8] sm:$0xf]  ;;  %v11533_v9 = vld [vmem:[#allocation42_spill] sm:$0xff] }
 0x1e9   :  { %1751 = vrot.lane.b32.xlu0 %v1715_v2, %s8036_s27  ;;  %1379 = vrot.lane.b32.xlu1 %v1333_v14, %s8039_s20  ;;  %v1857_v57 = vsel %vm1851_vm10, %v8001_v10, %v8928_v0  ;;  %v1914_v31 = vsel %vm1900_vm11, %v1872_v35, %v8860_v52  ;;  %v1916_v0 = vsel %vm1900_vm11, %v1875_v48, %v8744_v58  ;;  %v11539_v36 = vld [vmem:[#allocation18_spill] sm:$0xff] }
 0x1ea   :  { %v1904_v27 = vsel %vm1900_vm11, %v1857_v57, %v8761_v63  ;;  %v2009_v52 = vsel %vm1999_vm14, %v1976_v46, %v8771_v41  ;;  %v1947_v58 = vsel %vm1933_vm12, %v1914_v31, %v8672_v40  ;;  %v1949_v23 = vsel %vm1933_vm12, %v1916_v0, %v8715_v21  ;;  %v7730_v40 = vld [vmem:[%s11428_s0 + $0x38] sm:$0xff]   ;;  %v11543_v57 = vld [vmem:[#allocation27_spill] sm:$0xff] }
 0x1eb   :  { %v9020_v1 = vpop.permute.xlu1 %1549  ;;  %v1366_v62 = vpop.permute.xlu0 %1365  ;;  %v2042_v21 = vsel %vm2032_vm15, %v2009_v52, %v8780_v55  ;;  %v1982_v59 = vsel %vm1966_vm13, %v1949_v23, %v8984_v19  ;;  %v1980_v34 = vsel %vm1966_vm13, %v1947_v58, %v11532_v49  ;;  %v11554_v49 = vld [vmem:[#allocation5_spill] sm:$0xff] }
 0x1ec   :  { %v1978_v11 = vsel %vm1966_vm13, %v1945_v37, %v1366_v62  ;;  %v2013_v47 = vsel %vm1999_vm14, %v1980_v34, %v11539_v36  ;;  %v11542_v62 = vld [vmem:[#allocation33_spill] sm:$0xff] }
 0x1ed   :  { %1015 = vrot.lane.b32.xlu0 %v979_v18, %s8035_s24  ;;  %1385 = vrot.lane.b32.xlu1 %v1354_v4, %s8039_s20  ;;  %v2011_v60 = vsel %vm1999_vm14, %v1978_v11, %v8858_v28  ;;  %v11538_v18 = vld [vmem:[#allocation50_spill] sm:$0xff]  ;;  %v2015_v10 = vsel %vm1999_vm14, %v1982_v59, %v11542_v62  ;;  %v11544_v11 = vld [vmem:[#allocation41_spill] sm:$0xff]  ;;  %v11557_v62 = vld [vmem:[#allocation3_spill] sm:$0xff] }
 0x1ee   :  { %v2044_v63 = vsel %vm2032_vm15, %v2011_v60, %v8684_v25  ;;  %v2073_v4 = vsel %vm2065_vm0, %v2040_v12, %v11538_v18  ;;  %v11546_v60 = vld [vmem:[#allocation22_spill] sm:$0xff]  ;;  %v11553_v12 = vld [vmem:[#allocation32_spill] sm:$0xff] }
 0x1ef   :  { %v1732_v13 = vpop.permute.xlu0 %1731  ;;  %v992_v51 = vpop.permute.xlu1 %991  ;;  %v2077_v30 = vsel %vm2065_vm0, %v2044_v63, %v11534_v39  ;;  %v11551_v63 = vld [vmem:[#allocation4_spill] sm:$0xff] }
 0x1f0   :  { %v1860_v28 = vsel %vm1851_vm10, %v8622_v3, %v992_v51  ;;  %v2034_v3 = vsel %vm2032_vm15, %v2001_v33, %v8763_v5  ;;  %v2075_v44 = vsel %vm2065_vm0, %v2042_v21, %v1732_v13  ;;  %v11547_v33 = vld [vmem:[#allocation40_spill] sm:$0xff]  ;;  %v11548_v13 = vld [vmem:[#allocation19_spill] sm:$0xff] }
 0x1f1   :  { %v1906_v41 = vsel %vm1900_vm11, %v1860_v28, %v8836_v24  ;;  %1381 = vrot.lane.b32.xlu0 %v1340_v56, %s8039_s20  ;;  %1849 = vrot.lane.b32.xlu1 %v1818_v45, %s8034_s23  ;;  %v1937_v24 = vsel %vm1933_vm12, %v1904_v27, %v11530_v42  ;;  %v2067_v14 = vsel %vm2065_vm0, %v2034_v3, %v8986_v16  ;;  %v7729_v16 = vld [vmem:[%s11428_s0 + $0x30] sm:$0xff]   ;;  %v11545_v45 = vld [vmem:[#allocation35_spill] sm:$0xff]  ;;  %v11549_v56 = vld [vmem:[#allocation26_spill] sm:$0xff] }
 0x1f2   :  { %v1939_v25 = vsel %vm1933_vm12, %v1906_v41, %v11529_v50  ;;  %v2100_v0 = vsel %vm2098_vm1, %v2067_v14, %v11545_v45  ;;  %v2110_v27 = vsel %vm2098_vm1, %v2077_v30, %v11546_v60  ;;  %v2108_v52 = vsel %vm2098_vm1, %v2075_v44, %v11547_v33  ;;  %v11550_v28 = vld [vmem:[#allocation21_spill] sm:$0xff] }
 0x1f3   :  { %v1972_v5 = vsel %vm1966_vm13, %v1939_v25, %v11533_v9  ;;  %v9080_v2 = vpop.permute.xlu0 %1179  ;;  %v1358_v55 = vpop.permute.xlu1 %1357  ;;  %v2106_v53 = vsel %vm2098_vm1, %v2073_v4, %v11549_v56  ;;  %v2048_v41 = vsel %vm2032_vm15, %v2015_v10, %v11551_v63  ;;  %v11552_v25 = vld [vmem:[#allocation7_spill] sm:$0xff] }
 0x1f4   :  { %v2005_v26 = vsel %vm1999_vm14, %v1972_v5, %v11535_v6  ;;  %v1970_v19 = vsel %vm1966_vm13, %v1937_v24, %v1358_v55  ;;  %v2081_v42 = vsel %vm2065_vm0, %v2048_v41, %v11552_v25 }
 0x1f5   :  { %v2038_v38 = vsel %vm2032_vm15, %v2005_v26, %v11536_v32  ;;  %v2003_v35 = vsel %vm1999_vm14, %v1970_v19, %v11537_v54  ;;  %1747 = vrot.lane.b32.xlu0 %v1701_v20, %s8036_s27  ;;  %2443 = vrot.lane.b32.xlu1 %v7730_v40, %s8031_s14  ;;  %v2046_v20 = vsel %vm2032_vm15, %v2013_v47, %v11550_v28  ;;  %v8002_v47 = vld [vmem:[#allocation2 + $0x50] sm:$0xf] }
 0x1f6   :  { %v2071_v48 = vsel %vm2065_vm0, %v2038_v38, %v11540_v22  ;;  %v2036_v37 = vsel %vm2032_vm15, %v2003_v35, %v11541_v17  ;;  %v6933_v40 = vcombine.low %v2108_v52, %v2110_v27  ;;  %v2079_v50 = vsel %vm2065_vm0, %v2046_v20, %v8969_v15  ;;  %v11555_v22 = vld [vmem:[#allocation6_spill] sm:$0xff]  ;;  %v11556_v17 = vld [vmem:[#allocation20_spill] sm:$0xff] }
 0x1f7   :  { %v2104_v7 = vsel %vm2098_vm1, %v2071_v48, %v11543_v57  ;;  %v2069_v46 = vsel %vm2065_vm0, %v2036_v37, %v11544_v11  ;;  %v9113_v43 = vpop.permute.xlu0 %1185  ;;  %v9115_v31 = vpop.permute.xlu1 %1105  ;;  %v2112_v59 = vsel %vm2098_vm1, %v2079_v50, %v11553_v12  ;;  %v2114_v34 = vsel %vm2098_vm1, %v2081_v42, %v11554_v49 }
 0x1f8   :  { %v2102_v51 = vsel %vm2098_vm1, %v2069_v46, %v11548_v13  ;;  %v6932_v23 = vcombine.low %v2104_v7, %v2106_v53  ;;  %v6934_v9 = vcombine.low %v2112_v59, %v2114_v34  ;;  %v1878_v48 = vsel %vm1851_vm10, %v8002_v47, %v11555_v22  ;;  %v11558_v59 = vld [vmem:[#allocation25_spill] sm:$0xff] }
 0x1f9   :  { %2441 = vrot.lane.b32.xlu0 %v7729_v16, %s8031_s14  ;;  %v6931_v58 = vcombine.low %v2100_v0, %v2102_v51  ;;  %v1918_v10 = vsel %vm1900_vm11, %v1878_v48, %v11557_v62 }
 0x1fa   :  { %v1951_v11 = vsel %vm1933_vm12, %v1918_v10, %v9080_v2 }
 0x1fb   :  { %v9132_v3 = vpop.permute.xlu0 %1471  ;;  %7471 = vmatprep.mubr.msk.bf16.mxu1 %vm2198_vm2, %v6931_v58  ;;  %v1838_v21 = vpop.permute.xlu1 %1837 }
 0x1fc   :  { %7472 = vmatmul.mubr.msk.bf16.vlgmr.msra.gmra.mrb[12].mxu1 %vm2198_vm2, %v6932_v23 }
 0x1fd   :  { %7475 = vmatprep.mubr.msk.bf16.mxu1 %vm2198_vm2, %v6933_v40 }
 0x1ff   :  { %v9141_v24 = vpop.permute.xlu0 %1551  ;;  %v1102_v29 = vpop.permute.xlu1 %1101 }
 0x203   :  { %v1468_v5 = vpop.permute.xlu0 %1467  ;;  %v1182_v55 = vpop.permute.xlu1 %1181 }
 0x204   :  { %7476 = vmatmul.mubr.msk.bf16.gmra.mrb[16].mxu1 %vm2198_vm2, %v6934_v9 }
 0x207   :  { %v1548_v15 = vpop.permute.xlu0 %1547  ;;  %v9148_v14 = vpop.permute.xlu1 %1473 }
 0x20b   :  { %v9150_v39 = vpop.permute.xlu0 %1839  ;;  %v1470_v30 = vpop.permute.xlu1 %1469 }
 0x20f   :  { %v9152_v6 = vpop.permute.xlu0 %1107  ;;  %v1010_v26 = vpop.permute.xlu1 %1009 }
 0x213   :  { %v1104_v19 = vpop.permute.xlu0 %1103  ;;  %v1742_v44 = vpop.permute.xlu1 %1741 }
 0x217   :  { %v1836_v32 = vpop.permute.xlu0 %1835  ;;  %v1006_v38 = vpop.permute.xlu1 %1005 }
 0x218   :  { %v1881_v37 = vsel %vm1851_vm10, %v11556_v17, %v1006_v38 }
 0x219   :  { %v1920_v46 = vsel %vm1900_vm11, %v1881_v37, %v1102_v29 }
 0x21a   :  { %v1953_v60 = vsel %vm1933_vm12, %v1920_v46, %v1182_v55 }
 0x21b   :  { %v1376_v54 = vpop.permute.xlu0 %1375  ;;  %v1372_v35 = vpop.permute.xlu1 %1371 }
 0x21c   :  { %v1984_v45 = vsel %vm1966_vm13, %v1951_v11, %v1372_v35 }
 0x21d   :  { %v2017_v33 = vsel %vm1999_vm14, %v1984_v45, %v1468_v5 }
 0x21e   :  { %v2050_v2 = vsel %vm2032_vm15, %v2017_v33, %v1548_v15  ;;  %v11562_v33 = vld [vmem:[#allocation51_spill] sm:$0xff] }
 0x21f   :  { %v1744_v16 = vpop.permute.xlu0 %1743  ;;  %v1378_v18 = vpop.permute.xlu1 %1377 }
 0x223   :  { %v9154_v4 = vpop.permute.xlu0 %1011  ;;  %v9156_v36 = vpop.permute.xlu1 %1191 }
 0x227   :  { %v1008_v57 = vpop.permute.xlu0 %1007  ;;  %v9164_v7 = vpop.permute.xlu1 %1557 }
 0x228   :  { %v1884_v49 = vsel %vm1851_vm10, %v11558_v59, %v1008_v57  ;;  %v11563_v59 = vld [vmem:[#allocation10_spill] sm:$0xff] }
 0x229   :  { %v1922_v34 = vsel %vm1900_vm11, %v1884_v49, %v1104_v19 }
 0x22a   :  { %v1955_v5 = vsel %vm1933_vm12, %v1922_v34, %v9000_v8  ;;  %v3066_v34 = vld [vmem:[#allocation2 + $0x48] sm:$0xf] }
 0x22b   :  { %v1374_v0 = vpop.permute.xlu0 %1373  ;;  %v1554_v27 = vpop.permute.xlu1 %1553 }
 0x22c   :  { %v1986_v52 = vsel %vm1966_vm13, %v1953_v60, %v1374_v0  ;;  %v11561_v0 = vld [vmem:[#allocation23_spill] sm:$0xff] }
 0x22d   :  { %v2019_v13 = vsel %vm1999_vm14, %v1986_v52, %v1470_v30  ;;  %v11559_v30 = vld [vmem:[#allocation17_spill] sm:$0xff]  ;;  %v1890_v60 = vsel %vm1851_vm10, %v11561_v0, %v9154_v4 }
 0x22e   :  { %v2052_v51 = vsel %vm2032_vm15, %v2019_v13, %v9020_v1  ;;  %v1926_v52 = vsel %vm1900_vm11, %v1890_v60, %v9152_v6 }
 0x22f   :  { %v1740_v56 = vpop.permute.xlu0 %1739  ;;  %v2085_v53 = vsel %vm2065_vm0, %v2052_v51, %v1742_v44  ;;  %v1114_v58 = vpop.permute.xlu1 %1113  ;;  %v1887_v44 = vsel %vm1851_vm10, %v11559_v30, %v1010_v26 }
 0x230   :  { %v2083_v28 = vsel %vm2065_vm0, %v2050_v2, %v1740_v56  ;;  %v2118_v20 = vsel %vm2098_vm1, %v2085_v53, %v1838_v21  ;;  %v1924_v38 = vsel %vm1900_vm11, %v1887_v44, %v9115_v31 }
 0x231   :  { %v2116_v23 = vsel %vm2098_vm1, %v2083_v28, %v1836_v32  ;;  %v1988_v32 = vsel %vm1966_vm13, %v1955_v5, %v1376_v54  ;;  %v1957_v22 = vsel %vm1933_vm12, %v1924_v38, %v9113_v43 }
 0x232   :  { %v6935_v63 = vcombine.low %v2116_v23, %v2118_v20  ;;  %v2021_v19 = vsel %vm1999_vm14, %v1988_v32, %v9132_v3  ;;  %v1990_v8 = vsel %vm1966_vm13, %v1957_v22, %v1378_v18 }
 0x233   :  { %v1188_v41 = vpop.permute.xlu0 %1187  ;;  %v9181_v40 = vpop.permute.xlu1 %1845  ;;  %v2054_v26 = vsel %vm2032_vm15, %v2021_v19, %v9141_v24  ;;  %v2023_v54 = vsel %vm1999_vm14, %v1990_v8, %v9148_v14  ;;  %v11560_v24 = vld [vmem:[#allocation43_spill] sm:$0xff] }
 0x234   :  { %7479 = vmatprep.mubr.msk.bf16.mxu1 %vm2198_vm2, %v6935_v63  ;;  %v2087_v31 = vsel %vm2065_vm0, %v2054_v26, %v1744_v16  ;;  %v2056_v37 = vsel %vm2032_vm15, %v2023_v54, %v1554_v27  ;;  %v1959_v2 = vsel %vm1933_vm12, %v1926_v52, %v1188_v41 }
 0x235   :  { %v2120_v43 = vsel %vm2098_vm1, %v2087_v31, %v9150_v39 }
 0x237   :  { %v1194_v50 = vpop.permute.xlu0 %1193  ;;  %v1842_v1 = vpop.permute.xlu1 %1841 }
 0x23b   :  { %v1480_v25 = vpop.permute.xlu0 %1479  ;;  %v1110_v42 = vpop.permute.xlu1 %1109 }
 0x23f   :  { %v1560_v29 = vpop.permute.xlu0 %1559  ;;  %v1190_v12 = vpop.permute.xlu1 %1189 }
 0x243   :  { %v1476_v21 = vpop.permute.xlu0 %1475  ;;  %v1482_v9 = vpop.permute.xlu1 %1481 }
 0x247   :  { %v1556_v55 = vpop.permute.xlu0 %1555  ;;  %v1478_v15 = vpop.permute.xlu1 %1477 }
 0x24b   :  { %v1848_v35 = vpop.permute.xlu0 %1847  ;;  %v1018_v47 = vpop.permute.xlu1 %1017 }
 0x24c   :  { %v1899_v14 = vsel %vm1851_vm10, %v11560_v24, %v1018_v47 }
 0x24d   :  { %v1932_v27 = vsel %vm1900_vm11, %v1899_v14, %v1114_v58 }
 0x24e   :  { %v1965_v51 = vsel %vm1933_vm12, %v1932_v27, %v1194_v50 }
 0x24f   :  { %v1112_v48 = vpop.permute.xlu0 %1111  ;;  %v1750_v17 = vpop.permute.xlu1 %1749 }
 0x253   :  { %v1844_v62 = vpop.permute.xlu0 %1843  ;;  %v1746_v10 = vpop.permute.xlu1 %1745 }
 0x254   :  { %v2089_v3 = vsel %vm2065_vm0, %v2056_v37, %v1746_v10  ;;  %v2995_v10 = vld [vmem:[#allocation2] sm:$0xe] }
 0x255   :  { %v2122_v18 = vsel %vm2098_vm1, %v2089_v3, %v1842_v1  ;;  %v3098_v3 = vld [vmem:[#allocation2 + $0x48] sm:$0xe] }
 0x256   :  { %v6936_v57 = vcombine.low %v2120_v43, %v2122_v18  ;;  %v2971_v43 = vld [vmem:[#allocation2 + $0x50] sm:$0xf] }
 0x257   :  { %v1384_v11 = vpop.permute.xlu0 %1383  ;;  %v1014_v46 = vpop.permute.xlu1 %1013 }
 0x258   :  { %7480 = vmatmul.mubr.msk.bf16.gmra.mrb[20].mxu1 %vm2198_vm2, %v6936_v57  ;;  %v1893_v39 = vsel %vm1851_vm10, %v11562_v33, %v1014_v46  ;;  %v3074_v46 = vld [vmem:[#allocation2 + $0x98] sm:$0xf] }
 0x259   :  { %v1928_v53 = vsel %vm1900_vm11, %v1893_v39, %v1110_v42 }
 0x25a   :  { %v1961_v41 = vsel %vm1933_vm12, %v1928_v53, %v1190_v12 }
 0x25b   :  { %v1752_v16 = vpop.permute.xlu0 %1751  ;;  %v1380_v45 = vpop.permute.xlu1 %1379 }
 0x25c   :  { %v1992_v58 = vsel %vm1966_vm13, %v1959_v2, %v1380_v45  ;;  %v3090_v45 = vld [vmem:[#allocation2 + $0x9c] sm:$0x1] }
 0x25d   :  { %v2025_v1 = vsel %vm1999_vm14, %v1992_v58, %v1476_v21  ;;  %v11564_v21 = vld [vmem:[#allocation11_spill] sm:$0xff]  ;;  %v7112_v60 = vcombine.low %v3074_v46, %v3090_v45 }
 0x25f   :  { %v1016_v13 = vpop.permute.xlu0 %1015  ;;  %v1386_v56 = vpop.permute.xlu1 %1385  ;;  %v4029_v58 = vshrl.u32 %v7112_v60, 16 }
 0x260   :  { %v1896_v28 = vsel %vm1851_vm10, %v8960_v61, %v1016_v13  ;;  %v1998_v4 = vsel %vm1966_vm13, %v1965_v51, %v1386_v56  ;;  %v4031_v13 = vshll.u32 %v7112_v60, 16 }
 0x261   :  { %v1930_v20 = vsel %vm1900_vm11, %v1896_v28, %v1112_v48  ;;  %v2031_v23 = vsel %vm1999_vm14, %v1998_v4, %v1482_v9  ;;  %v7096_v28 = vcombine.low %v3074_v46, %v3074_v46  ;;  %v3003_v4 = vld [vmem:[#allocation2 + $0x50] sm:$0xe] }
 0x262   :  { %v1963_v6 = vsel %vm1933_vm12, %v1930_v20, %v9156_v36  ;;  %v2064_v49 = vsel %vm2032_vm15, %v2031_v23, %v11563_v59  ;;  %v7088_v36 = vcombine.low %v3066_v34, %v3066_v34  ;;  %v4033_v20 = vrot.slane %v4031_v13, 1  ;;  %v11566_v59 = vld [vmem:[#allocation29_spill] sm:$0xff] }
 0x263   :  { %v1996_v63 = vsel %vm1966_vm13, %v1963_v6, %v1384_v11  ;;  %v1382_v50 = vpop.permute.xlu0 %1381  ;;  %v1850_v44 = vpop.permute.xlu1 %1849  ;;  %v2097_v32 = vsel %vm2065_vm0, %v2064_v49, %v11564_v21  ;;  %v2987_v11 = vld [vmem:[#allocation2 + $0x54] sm:$0x1]  ;;  %v11568_v21 = vld [vmem:[#allocation31_spill] sm:$0xff] }
 0x264   :  { %v1994_v61 = vsel %vm1966_vm13, %v1961_v41, %v1382_v50  ;;  %v2029_v42 = vsel %vm1999_vm14, %v1996_v63, %v1480_v25  ;;  %v2058_v25 = vsel %vm2032_vm15, %v2025_v1, %v1556_v55  ;;  %3857 = vrot.lane.b32.xlu1 %v7088_v36, %s8033_s22  ;;  %v2130_v22 = vsel %vm2098_vm1, %v2097_v32, %v1850_v44  ;;  %v3082_v55 = vld [vmem:[#allocation2 + $0x4c] sm:$0x1]  ;;  %v9269_v41 = vld [vmem:[%s11430_s4 + $0x4] ss:$0 sm:$0xff]  ;;  %v9274_v1 = vld [vmem:[%s11430_s4 + $0x1] ss:$0 sm:$0xff] }
 0x265   :  { %v2027_v9 = vsel %vm1999_vm14, %v1994_v61, %v1478_v15  ;;  %v2062_v5 = vsel %vm2032_vm15, %v2029_v42, %v1560_v29  ;;  %v7120_v57 = vcombine.low %v3098_v3, %v3082_v55  ;;  %v7025_v6 = vcombine.low %v3003_v4, %v2987_v11  ;;  %v11565_v61 = vld [vmem:[#allocation28_spill] sm:$0xff]  ;;  %v11567_v36 = vld [vmem:[#allocation30_spill] sm:$0xff] }
 0x266   :  { %v2060_v30 = vsel %vm2032_vm15, %v2027_v9, %v9164_v7  ;;  %v2095_v12 = vsel %vm2065_vm0, %v2062_v5, %v1752_v16  ;;  %v7009_v16 = vcombine.low %v2971_v43, %v2987_v11  ;;  %v4034_v63 = vor.u32 %v4033_v20, %v4029_v58  ;;  %v9288_v5 = vld [vmem:[%s11431_s5 + $0x1] ss:$0 sm:$0xff] }
 0x267   :  { %v1748_v38 = vpop.permute.xlu0 %1747  ;;  %v2093_v47 = vsel %vm2065_vm0, %v2060_v30, %v1750_v17  ;;  %v2128_v15 = vsel %vm2098_vm1, %v2095_v12, %v1848_v35  ;;  %v2444_v48 = vpop.permute.xlu1 %2443  ;;  %v7104_v35 = vcombine.low %v3066_v34, %v3082_v55  ;;  %v2963_v17 = vld [vmem:[#allocation2] sm:$0xf]  ;;  %v4122_v52 = vrot.slane %v7120_v57, 1  ;;  %v9283_v34 = vld [vmem:[%s11431_s5 + $0x4] ss:$0 sm:$0xff] }
 0x268   :  { %v2091_v29 = vsel %vm2065_vm0, %v2058_v25, %v1748_v38  ;;  %v2126_v7 = vsel %vm2098_vm1, %v2093_v47, %v9181_v40  ;;  %v6938_v26 = vcombine.low %v2128_v15, %v2130_v22  ;;  %v2979_v40 = vld [vmem:[#allocation2 + $0x4] sm:$0x1]  ;;  %v3246_v39 = vshll.u32 %v7009_v16, 16  ;;  %v11569_v22 = vld [vmem:[#allocation36_spill] sm:$0xff] }
 0x269   :  { %v2124_v19 = vsel %vm2098_vm1, %v2091_v29, %v1844_v62  ;;  %v3973_v31 = vshrl.u32 %v7104_v35, 16  ;;  %v3975_v37 = vshll.u32 %v7104_v35, 16  ;;  %v7001_v62 = vcombine.low %v2963_v17, %v2979_v40 }
 0x26a   :  { %v6937_v8 = vcombine.low %v2124_v19, %v2126_v7  ;;  %v7017_v33 = vcombine.low %v2995_v10, %v2979_v40  ;;  %v3244_v2 = vshrl.u32 %v7009_v16, 16  ;;  %v3248_v53 = vrot.slane %v3246_v39, 1 }
 0x26b   :  { %v2442_v54 = vpop.permute.xlu0 %2441  ;;  %v3977_v18 = vrot.slane %v3975_v37, 1  ;;  %v3188_v24 = vshrl.u32 %v7001_v62, 16  ;;  %v3190_v14 = vshll.u32 %v7001_v62, 16  ;;  %v3387_v50 = vrot.slane %v7025_v6, 1 }
 0x26c   :  { %7483 = vmatprep.mubr.msk.bf16.mxu1 %vm2198_vm2, %v6937_v8  ;;  %7501 = vmatprep.mubr.msk.bf16.mxu0 %vm2445_vm4, %v2442_v54  ;;  %v3379_v56 = vrot.slane %v7017_v33, 1  ;;  %v3249_v23 = vor.u32 %v3248_v53, %v3244_v2  ;;  %v2580_v42 = vmul.f32 %v11565_v61, %v9269_v41  ;;  %v2578_v49 = vmul.f32 %v9269_v41, %v11566_v59 }
 0x26d   :  { %7484 = vmatmul.mubr.msk.bf16.gmra.mrb[24].mxu1 %vm2198_vm2, %v6938_v26  ;;  %7502 = vmatmul.mubr.msk.bf16.gmra.mrb[16].mxu0 %vm2445_vm4, %v2444_v48  ;;  %v3978_v0 = vor.u32 %v3977_v18, %v3973_v31  ;;  %v3192_v27 = vrot.slane %v3190_v14, 1  ;;  %v2581_v30 = vmul.f32 %v11567_v36, %v9269_v41  ;;  %v2579_v32 = vmul.f32 %v9269_v41, %v11568_v21  ;;  %v11570_v48 = vld [vmem:[#allocation37_spill] sm:$0xff] }
 0x26e   :  { %v2604_v47 = vadd.f32 %v9283_v34, %v2580_v42  ;;  %v2602_v15 = vadd.f32 %v9283_v34, %v2578_v49  ;;  %v2584_v8 = vmul.f32 %v11569_v22, %v9269_v41  ;;  %v2582_v26 = vmul.f32 %v9269_v41, %v11570_v48  ;;  %v2870_v48 = vld [vmem:[#allocation2 + $0xc] sm:$0x1] }
 0x26f   :  { %4049 = vrot.lane.b32.xlu1 %v3978_v0, %s8036_s27  ;;  %v3193_v51 = vor.u32 %v3192_v27, %v3188_v24  ;;  %v2605_v35 = vadd.f32 %v9283_v34, %v2581_v30  ;;  %v2603_v31 = vadd.f32 %v9283_v34, %v2579_v32  ;;  %v11573_v24 = vld [vmem:[#allocation38_spill] sm:$0xff]  ;;  %v11575_v27 = vld [vmem:[#allocation39_spill] sm:$0xff] }
 0x270   :  { %v2608_v43 = vadd.f32 %v9283_v34, %v2584_v8  ;;  %v2606_v18 = vadd.f32 %v9283_v34, %v2582_v26  ;;  %v9318_v14 = vmul.f32 %v11573_v24, %v9269_v41  ;;  %v9327_v33 = vmul.f32 %v9269_v41, %v11575_v27 }
 0x271   :  { %3299 = vrot.lane.b32.xlu0 %v3193_v51, %s8035_s24 }
 0x273   :  { %4145 = vrot.lane.b32.xlu1 %v4122_v52, %s8034_s23 }
 0x275   :  { %3395 = vrot.lane.b32.xlu0 %v3379_v56, %s8032_s19 }
 0x277   :  { %3873 = vrot.lane.b32.xlu1 %v7096_v28, %s8033_s22 }
 0x279   :  { %3315 = vrot.lane.b32.xlu0 %v3249_v23, %s8035_s24 }
 0x27b   :  { %4065 = vrot.lane.b32.xlu1 %v4034_v63, %s8036_s27 }
 0x27d   :  { %3411 = vrot.lane.b32.xlu0 %v3387_v50, %s8032_s19 }
 0x2cf   :  { %v7473_v9 = vpop.f32.mrb[12].mxu1 }
 0x2d0   :  { %v2334_v12 = vmul.f32 %v7473_v9, %v9274_v1  ;;  %v2261_v44 = vpop.f32.mrb[13].mxu1 }
 0x2d1   :  { %v2332_v38 = vmul.f32 %v9274_v1, %v2261_v44  ;;  %v7474_v25 = vpop.f32.mrb[14].mxu1  ;;  %v2879_v44 = vld [vmem:[#allocation2 + $0x18] sm:$0xf] }
 0x2d2   :  { %v2358_v29 = vadd.f32 %v9288_v5, %v2334_v12  ;;  %v2335_v7 = vmul.f32 %v7474_v25, %v9274_v1  ;;  %v2264_v19 = vpop.f32.mrb[15].mxu1 }
 0x2d3   :  { %v2356_v54 = vadd.f32 %v9288_v5, %v2332_v38  ;;  %v2333_v55 = vmul.f32 %v9274_v1, %v2264_v19  ;;  %v2882_v38 = vld [vmem:[#allocation2 + $0x1c] sm:$0x1] }
 0x2d4   :  { %v2620_v17 = vadd.f32 %v2604_v47, %v2358_v29  ;;  %v2359_v40 = vadd.f32 %v9288_v5, %v2335_v7 }
 0x2d5   :  { %v2618_v37 = vadd.f32 %v2602_v15, %v2356_v54  ;;  %v2357_v62 = vadd.f32 %v9288_v5, %v2333_v55  ;;  %v8003_v55 = vld [vmem:[#allocation2 + $0x8] sm:$0xf] }
 0x2d6   :  { %v9310_v10 = vmax.f32 %v2620_v17, 0.0  ;;  %v2621_v3 = vadd.f32 %v2605_v35, %v2359_v40  ;;  %v2885_v40 = vld [vmem:[#allocation2 + $0x20] sm:$0xf] }
 0x2d7   :  { %v9314_v57 = vmax.f32 %v2618_v37, 0.0  ;;  %v2619_v11 = vadd.f32 %v2603_v31, %v2357_v62  ;;  %v7477_v46 = vpop.f32.mrb[16].mxu1  ;;  %v2888_v31 = vld [vmem:[#allocation2 + $0x24] sm:$0x1] }
 0x2d8   :  { %11571 = vst [vmem:[#allocation13_spill] sm:$0xff] %v9310_v10  ;;  %v7350_v16 = vpack.c.bf16 %v9310_v10, %v9310_v10  ;;  %v9322_v45 = vmax.f32 %v2621_v3, 0.0  ;;  %v2338_v0 = vmul.f32 %v7477_v46, %v9274_v1  ;;  %v2277_v60 = vpop.f32.mrb[17].mxu1 }
 0x2d9   :  { %11572 = vst [vmem:[#allocation24_spill] sm:$0xff] %v9314_v57  ;;  %v7348_v39 = vpack.c.bf16 %v9314_v57, %v9314_v57  ;;  %v9331_v52 = vmax.f32 %v2619_v11, 0.0  ;;  %v2336_v13 = vmul.f32 %v9274_v1, %v2277_v60  ;;  %v7478_v51 = vpop.f32.mrb[18].mxu1  ;;  %v2876_v11 = vld [vmem:[#allocation2 + $0x14] sm:$0x1] }
 0x2da   :  { %11574 = vst [vmem:[#allocation14_spill] sm:$0xff] %v9322_v45  ;;  %v2725_v56 = vshrl.u32 %v7350_v16, 16  ;;  %v2728_v2 = vshll.u32 %v7350_v16, 16  ;;  %v7351_v53 = vpack.c.bf16 %v9322_v45, %v9322_v45  ;;  %v2362_v28 = vadd.f32 %v9288_v5, %v2338_v0  ;;  %v2280_v4 = vpop.f32.mrb[19].mxu1 }
 0x2db   :  { %11576 = vst [vmem:[#allocation47_spill] sm:$0xff] %v9331_v52  ;;  %v2709_v58 = vshrl.u32 %v7348_v39, 16  ;;  %v2712_v20 = vshll.u32 %v7348_v39, 16  ;;  %v7349_v23 = vpack.c.bf16 %v9331_v52, %v9331_v52  ;;  %v2360_v6 = vadd.f32 %v9288_v5, %v2336_v13 }
 0x2dc   :  { %v2727_v63 = vrot.slane %v2725_v56, 7  ;;  %v2733_v50 = vshrl.u32 %v7351_v53, 16  ;;  %v2736_v61 = vshll.u32 %v7351_v53, 16  ;;  %v2624_v42 = vadd.f32 %v2608_v43, %v2362_v28 }
 0x2dd   :  { %v2711_v59 = vrot.slane %v2709_v58, 7  ;;  %v2717_v49 = vshrl.u32 %v7349_v23, 16  ;;  %v2720_v9 = vshll.u32 %v7349_v23, 16  ;;  %v2622_v36 = vadd.f32 %v2606_v18, %v2360_v6  ;;  %v2873_v18 = vld [vmem:[#allocation2 + $0x10] sm:$0xf] }
 0x2de   :  { %v2730_v30 = vor.u32 %v2728_v2, %v2727_v63  ;;  %v2731_v12 = vrot.slane %v2727_v63, 4  ;;  %v2735_v21 = vrot.slane %v2733_v50, 7  ;;  %v9340_v32 = vmax.f32 %v2624_v42, 0.0  ;;  %v2903_v6 = vld [vmem:[#allocation2 + $0x38] sm:$0xf] }
 0x2df   :  { %v2714_v25 = vor.u32 %v2712_v20, %v2711_v59  ;;  %v2715_v47 = vrot.slane %v2711_v59, 4  ;;  %v2719_v15 = vrot.slane %v2717_v49, 7  ;;  %v9342_v29 = vmax.f32 %v2622_v36, 0.0  ;;  %v2891_v63 = vld [vmem:[#allocation2 + $0x28] sm:$0xf] }
 0x2e0   :  { %11577 = vst [vmem:[#allocation42_spill] sm:$0xff] %v9340_v32  ;;  %v2880_v19 = vsel %vm8251_vm7, %v2730_v30, %v2879_v44  ;;  %v2883_v8 = vsel %vm8259_vm8, %v2731_v12, %v2882_v38  ;;  %v2738_v26 = vor.u32 %v2736_v61, %v2735_v21  ;;  %v2739_v54 = vrot.slane %v2735_v21, 4  ;;  %v2894_v50 = vld [vmem:[#allocation2 + $0x2c] sm:$0x1] }
 0x2e1   :  { %11578 = vst [vmem:[#allocation49_spill] sm:$0xff] %v9342_v29  ;;  %2881 = vst [vmem:[#allocation2 + $0x18] sm:$0xf] %v2880_v19  ;;  %v2868_v35 = vsel %vm8251_vm7, %v2714_v25, %v8003_v55  ;;  %v2871_v17 = vsel %vm8259_vm8, %v2715_v47, %v2870_v48  ;;  %v2722_v37 = vor.u32 %v2720_v9, %v2719_v15  ;;  %v2723_v62 = vrot.slane %v2719_v15, 4 }
 0x2e2   :  { %2884 = vst [vmem:[#allocation2 + $0x1c] sm:$0x1] %v2883_v8  ;;  %2869 = vst [vmem:[#allocation2 + $0x8] sm:$0xf] %v2868_v35  ;;  %v2886_v3 = vsel %vm8251_vm7, %v2738_v26, %v2885_v40  ;;  %v2889_v43 = vsel %vm8259_vm8, %v2739_v54, %v2888_v31  ;;  %v7354_v46 = vpack.c.bf16 %v9340_v32, %v9340_v32 }
 0x2e3   :  { %2872 = vst [vmem:[#allocation2 + $0xc] sm:$0x1] %v2871_v17  ;;  %v7352_v24 = vpack.c.bf16 %v9342_v29, %v9342_v29  ;;  %2887 = vst [vmem:[#allocation2 + $0x20] sm:$0xf] %v2886_v3  ;;  %v2874_v16 = vsel %vm8251_vm7, %v2722_v37, %v2873_v18  ;;  %v2877_v0 = vsel %vm8259_vm8, %v2723_v62, %v2876_v11 }
 0x2e4   :  { %2890 = vst [vmem:[#allocation2 + $0x24] sm:$0x1] %v2889_v43  ;;  %v2339_v60 = vmul.f32 %v7478_v51, %v9274_v1  ;;  %v2337_v27 = vmul.f32 %v9274_v1, %v2280_v4  ;;  %2875 = vst [vmem:[#allocation2 + $0x10] sm:$0xf] %v2874_v16  ;;  %v2757_v39 = vshrl.u32 %v7354_v46, 16  ;;  %v2609_v56 = vadd.f32 %v9283_v34, %v9318_v14 }
 0x2e5   :  { %2878 = vst [vmem:[#allocation2 + $0x14] sm:$0x1] %v2877_v0  ;;  %v2741_v13 = vshrl.u32 %v7352_v24, 16  ;;  %v2607_v2 = vadd.f32 %v9283_v34, %v9327_v33  ;;  %v2760_v20 = vshll.u32 %v7354_v46, 16  ;;  %v2744_v51 = vshll.u32 %v7352_v24, 16 }
 0x2e6   :  { %v2363_v53 = vadd.f32 %v9288_v5, %v2339_v60  ;;  %v2361_v28 = vadd.f32 %v9288_v5, %v2337_v27  ;;  %v2759_v58 = vrot.slane %v2757_v39, 7  ;;  %v2906_v4 = vld [vmem:[#allocation2 + $0x3c] sm:$0x1]  ;;  %v2909_v60 = vld [vmem:[#allocation2 + $0x40] sm:$0xf] }
 0x2e7   :  { %v2743_v23 = vrot.slane %v2741_v13, 7  ;;  %v2912_v27 = vld [vmem:[#allocation2 + $0x44] sm:$0x1] }
 0x2e8   :  { %v2625_v61 = vadd.f32 %v2609_v56, %v2363_v53  ;;  %v2623_v42 = vadd.f32 %v2607_v2, %v2361_v28  ;;  %v2762_v59 = vor.u32 %v2760_v20, %v2759_v58  ;;  %v2763_v49 = vrot.slane %v2759_v58, 4  ;;  %v9372_v36 = vld [vmem:[#allocation2 + $0x18] sm:$0xf]  ;;  %v2897_v28 = vld [vmem:[#allocation2 + $0x30] sm:$0xf] }
 0x2e9   :  { %v2746_v14 = vor.u32 %v2744_v51, %v2743_v23  ;;  %v2747_v9 = vrot.slane %v2743_v23, 4  ;;  %v9374_v33 = vld [vmem:[#allocation2 + $0x18] sm:$0xf]  ;;  %v7082_v44 = vcombine.low %v9372_v36, %v9372_v36  ;;  %v9384_v38 = vld [vmem:[#allocation2 + $0x1c] sm:$0x1] }
 0x2ea   :  { %v9376_v30 = vmax.f32 %v2625_v61, 0.0  ;;  %v9378_v12 = vmax.f32 %v2623_v42, 0.0  ;;  %v7035_v21 = vcombine.low %v9374_v33, %v9374_v33  ;;  %v2998_v25 = vld [vmem:[#allocation2 + $0x18] sm:$0xe]  ;;  %v2904_v47 = vsel %vm8251_vm7, %v2762_v59, %v2903_v6  ;;  %v9394_v48 = vld [vmem:[#allocation2 + $0x8] sm:$0xf] }
 0x2eb   :  { %v2907_v15 = vsel %vm8259_vm8, %v2763_v49, %v2906_v4  ;;  %v2892_v19 = vsel %vm8251_vm7, %v2746_v14, %v2891_v63  ;;  %v2895_v8 = vsel %vm8259_vm8, %v2747_v9, %v2894_v50  ;;  %v9396_v26 = vld [vmem:[#allocation2 + $0x1c] sm:$0x1]  ;;  %v3045_v54 = vld [vmem:[#allocation2 + $0x18] sm:$0xe]  ;;  %2905 = vst [vmem:[#allocation2 + $0x38] sm:$0xf] %v2904_v47  ;;  %3845 = vrot.lane.b32.xlu1 %v7082_v44, %s8033_s22 }
 0x2ec   :  { %11581 = vst [vmem:[#allocation15_spill] sm:$0xff] %v9376_v30  ;;  %11582 = vst [vmem:[#allocation16_spill] sm:$0xff] %v9378_v12  ;;  %v7355_v55 = vpack.c.bf16 %v9376_v30, %v9376_v30  ;;  %v7353_v35 = vpack.c.bf16 %v9378_v12, %v9378_v12  ;;  %3479 = vrot.lane.b32.xlu0 %v7035_v21, %s8037_s17  ;;  %v7020_v17 = vcombine.low %v2998_v25, %v9384_v38  ;;  %v9408_v43 = vld [vmem:[#allocation2 + $0x20] sm:$0xf]  ;;  %v9410_v18 = vld [vmem:[#allocation2 + $0x1c] sm:$0x1] }
 0x2ed   :  { %2908 = vst [vmem:[#allocation2 + $0x3c] sm:$0x1] %v2907_v15  ;;  %2893 = vst [vmem:[#allocation2 + $0x28] sm:$0xf] %v2892_v19  ;;  %v7067_v40 = vcombine.low %v3045_v54, %v9396_v26  ;;  %v7033_v62 = vcombine.low %v9394_v48, %v9394_v48  ;;  %v3092_v0 = vld [vmem:[#allocation2 + $0x18] sm:$0xe]  ;;  %v7036_v20 = vcombine.low %v9408_v43, %v9408_v43 }
 0x2ee   :  { %2896 = vst [vmem:[#allocation2 + $0x2c] sm:$0x1] %v2895_v8  ;;  %v2765_v31 = vshrl.u32 %v7355_v55, 16  ;;  %v2749_v37 = vshrl.u32 %v7353_v35, 16  ;;  %v3382_v3 = vrot.slane %v7020_v17, 1  ;;  %v2768_v46 = vshll.u32 %v7355_v55, 16 }
 0x2ef   :  { %v2752_v16 = vshll.u32 %v7353_v35, 16  ;;  %v3749_v39 = vrot.slane %v7067_v40, 1  ;;  %v2900_v58 = vld [vmem:[#allocation2 + $0x34] sm:$0x1]  ;;  %v9416_v23 = vld [vmem:[#allocation2 + $0x20] sm:$0xf]  ;;  %v7114_v51 = vcombine.low %v3092_v0, %v9410_v18 }
 0x2f0   :  { %v2767_v11 = vrot.slane %v2765_v31, 7  ;;  %v2751_v24 = vrot.slane %v2749_v37, 7  ;;  %3475 = vrot.lane.b32.xlu0 %v7033_v62, %s8037_s17  ;;  %3401 = vrot.lane.b32.xlu1 %v3382_v3, %s8032_s19  ;;  %v9419_v6 = vld [vmem:[#allocation2 + $0xc] sm:$0x1]  ;;  %v3043_v4 = vld [vmem:[#allocation2 + $0x8] sm:$0xe]  ;;  %v7083_v14 = vcombine.low %v9416_v23, %v9416_v23 }
 0x2f1   :  { %v2980_v59 = vld [vmem:[#allocation2 + $0xc] sm:$0x1]  ;;  %v2996_v49 = vld [vmem:[#allocation2 + $0x8] sm:$0xe]  ;;  %v7065_v9 = vcombine.low %v3043_v4, %v9419_v6  ;;  %v4116_v44 = vrot.slane %v7114_v51, 1  ;;  %v7051_v51 = vcombine.low %v9374_v33, %v9396_v26 }
 0x2f2   :  { %v2770_v13 = vor.u32 %v2768_v46, %v2767_v11  ;;  %v2771_v56 = vrot.slane %v2767_v11, 4  ;;  %v2754_v2 = vor.u32 %v2752_v16, %v2751_v24  ;;  %v2755_v53 = vrot.slane %v2751_v24, 4  ;;  %v9436_v47 = vld [vmem:[#allocation2 + $0x10] sm:$0xf]  ;;  %v3077_v8 = vld [vmem:[#allocation2 + $0x24] sm:$0x1] }
 0x2f3   :  { %v7018_v21 = vcombine.low %v2996_v49, %v2980_v59  ;;  %v3747_v25 = vrot.slane %v7065_v9, 1  ;;  %v9438_v15 = vld [vmem:[#allocation2 + $0x10] sm:$0xf]  ;;  %v3093_v54 = vld [vmem:[#allocation2 + $0x20] sm:$0xe]  ;;  %v7081_v40 = vcombine.low %v9436_v47, %v9436_v47  ;;  %v7049_v9 = vcombine.low %v9394_v48, %v9419_v6 }
 0x2f4   :  { %v2910_v63 = vsel %vm8251_vm7, %v2770_v13, %v2909_v60  ;;  %v2913_v50 = vsel %vm8259_vm8, %v2771_v56, %v2912_v27  ;;  %v2898_v61 = vsel %vm8251_vm7, %v2754_v2, %v2897_v28  ;;  %v2901_v42 = vsel %vm8259_vm8, %v2755_v53, %v2900_v58  ;;  %3767 = vrot.lane.b32.xlu0 %v3749_v39, %s8038_s18  ;;  %v3030_v55 = vld [vmem:[#allocation2 + $0x24] sm:$0x1]  ;;  %v3046_v35 = vld [vmem:[#allocation2 + $0x20] sm:$0xe]  ;;  %v2966_v17 = vld [vmem:[#allocation2 + $0x18] sm:$0xf] }
 0x2f5   :  { %2911 = vst [vmem:[#allocation2 + $0x40] sm:$0xf] %v2910_v63  ;;  %2914 = vst [vmem:[#allocation2 + $0x44] sm:$0x1] %v2913_v50  ;;  %3481 = vrot.lane.b32.xlu1 %v7036_v20, %s8037_s17  ;;  %v3380_v19 = vrot.slane %v7018_v21, 1  ;;  %v7115_v31 = vcombine.low %v3093_v54, %v3077_v8  ;;  %v7034_v37 = vcombine.low %v9438_v15, %v9438_v15  ;;  %v3558_v54 = vshll.u32 %v7049_v9, 16 }
 0x2f6   :  { %2899 = vst [vmem:[#allocation2 + $0x30] sm:$0xf] %v2898_v61  ;;  %2902 = vst [vmem:[#allocation2 + $0x34] sm:$0x1] %v2901_v42  ;;  %v7068_v62 = vcombine.low %v3046_v35, %v3030_v55  ;;  %v2983_v3 = vld [vmem:[#allocation2 + $0x24] sm:$0x1]  ;;  %v7004_v46 = vcombine.low %v2966_v17, %v9384_v38  ;;  %v7098_v53 = vcombine.low %v9372_v36, %v9410_v18 }
 0x2f7   :  { %v2999_v11 = vld [vmem:[#allocation2 + $0x20] sm:$0xe]  ;;  %v3028_v24 = vld [vmem:[#allocation2 + $0x14] sm:$0x1]  ;;  %v3044_v16 = vld [vmem:[#allocation2 + $0x10] sm:$0xe]  ;;  %v7052_v26 = vcombine.low %v9408_v43, %v3030_v55  ;;  %v7099_v35 = vcombine.low %v9416_v23, %v3077_v8 }
 0x2f8   :  { %3847 = vrot.lane.b32.xlu0 %v7083_v14, %s8033_s22  ;;  %v4117_v0 = vrot.slane %v7115_v31, 1  ;;  %v7021_v60 = vcombine.low %v2999_v11, %v2983_v3  ;;  %v3750_v27 = vrot.slane %v7068_v62, 1  ;;  %v7066_v39 = vcombine.low %v3044_v16, %v3028_v24  ;;  %v9449_v56 = vld [vmem:[#allocation2 + $0x14] sm:$0x1]  ;;  %v2997_v2 = vld [vmem:[#allocation2 + $0x10] sm:$0xe] }
 0x2f9   :  { %4133 = vrot.lane.b32.xlu1 %v4116_v44, %s8034_s23  ;;  %v3211_v13 = vshll.u32 %v7004_v46, 16  ;;  %v2964_v38 = vld [vmem:[#allocation2 + $0x8] sm:$0xf]  ;;  %v7019_v58 = vcombine.low %v2997_v2, %v9449_v56  ;;  %v9456_v20 = vld [vmem:[#allocation2 + $0x14] sm:$0x1]  ;;  %v3933_v50 = vshll.u32 %v7098_v53, 16 }
 0x2fa   :  { %v3383_v28 = vrot.slane %v7021_v60, 1  ;;  %v3748_v4 = vrot.slane %v7066_v39, 1  ;;  %v3091_v61 = vld [vmem:[#allocation2 + $0x10] sm:$0xe]  ;;  %v7002_v42 = vcombine.low %v2964_v38, %v2980_v59  ;;  %v3209_v36 = vshrl.u32 %v7004_v46, 16 }
 0x2fb   :  { %v3213_v63 = vrot.slane %v3211_v13, 1  ;;  %v3381_v18 = vrot.slane %v7019_v58, 1  ;;  %v7113_v49 = vcombine.low %v3091_v61, %v9456_v20  ;;  %v3572_v14 = vshll.u32 %v7051_v51, 16 }
 0x2fc   :  { %3763 = vrot.lane.b32.xlu0 %v3747_v25, %s8038_s18  ;;  %v3935_v21 = vrot.slane %v3933_v50, 1  ;;  %v3197_v33 = vshll.u32 %v7002_v42, 16  ;;  %v3931_v59 = vshrl.u32 %v7098_v53, 16  ;;  %v3579_v31 = vshll.u32 %v7052_v26, 16  ;;  %v2965_v53 = vld [vmem:[#allocation2 + $0x10] sm:$0xf] }
 0x2fd   :  { %3397 = vrot.lane.b32.xlu1 %v3380_v19, %s8032_s19  ;;  %v3214_v44 = vor.u32 %v3213_v63, %v3209_v36  ;;  %v4115_v25 = vrot.slane %v7113_v49, 1  ;;  %v3574_v19 = vrot.slane %v3572_v14, 1  ;;  %v3570_v48 = vshrl.u32 %v7051_v51, 16  ;;  %v9490_v49 = vld [vmem:[#allocation2 + $0x3c] sm:$0x1] }
 0x2fe   :  { %v3936_v17 = vor.u32 %v3935_v21, %v3931_v59  ;;  %v3195_v43 = vshrl.u32 %v7002_v42, 16  ;;  %v3560_v55 = vrot.slane %v3558_v54, 1  ;;  %v3940_v62 = vshll.u32 %v7099_v35, 16  ;;  %v3002_v14 = vld [vmem:[#allocation2 + $0x38] sm:$0xe]  ;;  %v7834_v54 = vld [vmem:[%s11432_s3 + $0x24] sm:$0xff]  }
 0x2ff   :  { %v3575_v6 = vor.u32 %v3574_v19, %v3570_v48  ;;  %v3581_v16 = vrot.slane %v3579_v31, 1  ;;  %v3556_v23 = vshrl.u32 %v7049_v9, 16  ;;  %v3577_v8 = vshrl.u32 %v7052_v26, 16  ;;  %v9499_v26 = vld [vmem:[#allocation2 + $0x3c] sm:$0x1]  ;;  %7505 = vmatprep.subr.bf16.mxu1 %v7834_v54 }
 0x300   :  { %3843 = vrot.lane.b32.xlu0 %v7081_v40, %s8033_s22  ;;  %v3199_v40 = vrot.slane %v3197_v33, 1  ;;  %v3938_v38 = vshrl.u32 %v7099_v35, 16  ;;  %v7097_v42 = vcombine.low %v9436_v47, %v9456_v20  ;;  %v7024_v20 = vcombine.low %v3002_v14, %v9490_v49  ;;  %v3096_v59 = vld [vmem:[#allocation2 + $0x38] sm:$0xe]  ;;  %v3094_v31 = vld [vmem:[#allocation2 + $0x28] sm:$0xe]  ;;  %7506 = vmatpush3.bf16.msra.mxu1 %v7834_v54 }
 0x301   :  { %3477 = vrot.lane.b32.xlu1 %v7034_v37, %s8037_s17  ;;  %v2967_v37 = vld [vmem:[#allocation2 + $0x20] sm:$0xf]  ;;  %v3561_v60 = vor.u32 %v3560_v55, %v3556_v23  ;;  %v3582_v13 = vor.u32 %v3581_v16, %v3577_v8  ;;  %v3049_v19 = vld [vmem:[#allocation2 + $0x38] sm:$0xe]  ;;  %v3000_v16 = vld [vmem:[#allocation2 + $0x28] sm:$0xe] }
 0x302   :  { %v7005_v11 = vcombine.low %v2967_v37, %v2983_v3  ;;  %v3200_v46 = vor.u32 %v3199_v40, %v3195_v43  ;;  %v9475_v3 = vld [vmem:[#allocation2 + $0x38] sm:$0xf]  ;;  %v3926_v21 = vshll.u32 %v7097_v42, 16  ;;  %v9507_v40 = vld [vmem:[#allocation2 + $0x2c] sm:$0x1]  ;;  %v11584_v43 = vld [vmem:[#allocation45_spill] sm:$0xff] }
 0x303   :  { %v7086_v58 = vcombine.low %v9475_v3, %v9475_v3  ;;  %v11583_v37 = vld [vmem:[#allocation44_spill] sm:$0xff]  ;;  %v11585_v55 = vld [vmem:[#allocation46_spill] sm:$0xff]  ;;  %v3924_v8 = vshrl.u32 %v7097_v42, 16  ;;  %v3050_v42 = vld [vmem:[#allocation2 + $0x40] sm:$0xe] }
 0x304   :  { %4135 = vrot.lane.b32.xlu0 %v4117_v0, %s8034_s23  ;;  %v7050_v0 = vcombine.low %v9438_v15, %v3028_v24  ;;  %v3218_v39 = vshll.u32 %v7005_v11, 16  ;;  %v2588_v48 = vmul.f32 %v11583_v37, %v9269_v41  ;;  %v3097_v14 = vld [vmem:[#allocation2 + $0x40] sm:$0xe]  ;;  %v2970_v37 = vld [vmem:[#allocation2 + $0x38] sm:$0xf] }
 0x305   :  { %3769 = vrot.lane.b32.xlu1 %v3750_v27, %s8038_s18  ;;  %v3942_v27 = vrot.slane %v3940_v62, 1  ;;  %v2589_v62 = vmul.f32 %v11585_v55, %v9269_v41 }
 0x306   :  { %v3565_v2 = vshll.u32 %v7050_v0, 16  ;;  %v3220_v24 = vrot.slane %v3218_v39, 1  ;;  %v3563_v63 = vshrl.u32 %v7050_v0, 16  ;;  %v11586_v0 = vld [vmem:[#allocation48_spill] sm:$0xff] }
 0x307   :  { %v3943_v15 = vor.u32 %v3942_v27, %v3938_v38  ;;  %v2587_v23 = vmul.f32 %v9269_v41, %v11586_v0  ;;  %v7118_v27 = vcombine.low %v3096_v59, %v9499_v26  ;;  %v9524_v39 = vld [vmem:[#allocation2 + $0x28] sm:$0xf]  ;;  %v3048_v59 = vld [vmem:[#allocation2 + $0x30] sm:$0xe] }
 0x308   :  { %3403 = vrot.lane.b32.xlu0 %v3383_v28, %s8032_s19  ;;  %v7003_v28 = vcombine.low %v2965_v53, %v9449_v56  ;;  %v3567_v51 = vrot.slane %v3565_v2, 1  ;;  %v9488_v56 = vld [vmem:[#allocation2 + $0x28] sm:$0xf]  ;;  %v7116_v2 = vcombine.low %v3094_v31, %v9507_v40  ;;  %v9528_v53 = vld [vmem:[#allocation2 + $0x2c] sm:$0x1] }
 0x309   :  { %3765 = vrot.lane.b32.xlu1 %v3748_v4, %s8038_s18  ;;  %v3216_v4 = vshrl.u32 %v7005_v11, 16  ;;  %v7084_v47 = vcombine.low %v9488_v56, %v9488_v56  ;;  %v3386_v11 = vrot.slane %v7024_v20, 1  ;;  %v3047_v38 = vld [vmem:[#allocation2 + $0x28] sm:$0xe]  ;;  %v3001_v0 = vld [vmem:[#allocation2 + $0x30] sm:$0xe] }
 0x30a   :  { %v3204_v61 = vshll.u32 %v7003_v28, 16  ;;  %v3568_v36 = vor.u32 %v3567_v51, %v3563_v63  ;;  %v3202_v33 = vshrl.u32 %v7003_v28, 16  ;;  %v9535_v51 = vld [vmem:[#allocation2 + $0x44] sm:$0x1]  ;;  %v7069_v20 = vcombine.low %v3047_v38, %v9528_v53 }
 0x30b   :  { %v3221_v50 = vor.u32 %v3220_v24, %v3216_v4  ;;  %v9530_v24 = vld [vmem:[#allocation2 + $0x40] sm:$0xf]  ;;  %v2612_v4 = vadd.f32 %v9283_v34, %v2588_v48  ;;  %v7839_v48 = vld [vmem:[%s11432_s3 + $0x2c] sm:$0xff]  }
 0x30c   :  { %3399 = vrot.lane.b32.xlu0 %v3381_v18, %s8032_s19  ;;  %v9485_v18 = vld [vmem:[#allocation2 + $0x38] sm:$0xf]  ;;  %v7087_v31 = vcombine.low %v9530_v24, %v9530_v24  ;;  %7507 = vmatprep.subr.bf16.mxu1 %v7839_v48 }
 0x30d   :  { %3305 = vrot.lane.b32.xlu1 %v3214_v44, %s8035_s24  ;;  %v7039_v9 = vcombine.low %v9485_v18, %v9485_v18  ;;  %v3206_v44 = vrot.slane %v3204_v61, 1  ;;  %7508 = vmatpush3.bf16.msra.mxu1 %v7839_v48 }
 0x30f   :  { %v3207_v35 = vor.u32 %v3206_v44, %v3202_v33  ;;  %v9549_v33 = vld [vmem:[#allocation2 + $0x34] sm:$0x1] }
 0x310   :  { %4131 = vrot.lane.b32.xlu0 %v4115_v25, %s8034_s23  ;;  %v9502_v25 = vld [vmem:[#allocation2 + $0x3c] sm:$0x1]  ;;  %v7070_v38 = vcombine.low %v3048_v59, %v9549_v33 }
 0x311   :  { %4037 = vrot.lane.b32.xlu1 %v3936_v17, %s8036_s27  ;;  %v3928_v17 = vrot.slane %v3926_v21, 1  ;;  %v7037_v21 = vcombine.low %v9524_v39, %v9524_v39 }
 0x314   :  { %3671 = vrot.lane.b32.xlu0 %v3575_v6, %s8039_s20  ;;  %v2586_v6 = vmul.f32 %v9269_v41, %v11584_v43 }
 0x315   :  { %3301 = vrot.lane.b32.xlu1 %v3200_v46, %s8035_s24  ;;  %v9515_v46 = vld [vmem:[#allocation2 + $0x2c] sm:$0x1] }
 0x316   :  { %v7022_v28 = vcombine.low %v3000_v16, %v9515_v46  ;;  %v2610_v63 = vadd.f32 %v9283_v34, %v2586_v6  ;;  %v9562_v16 = vld [vmem:[#allocation2 + $0x34] sm:$0x1] }
 0x317   :  { %v7023_v59 = vcombine.low %v3001_v0, %v9562_v16  ;;  %v9603_v0 = vrot.slane %v7070_v38, 1  ;;  %v9621_v38 = vcombine.low %v9485_v18, %v9502_v25  ;;  %v9638_v18 = vcombine.low %v9524_v39, %v9528_v53  ;;  %v2915_v53 = vld [vmem:[#allocation2 + $0x58] sm:$0xf] }
 0x318   :  { %3667 = vrot.lane.b32.xlu0 %v3561_v60, %s8039_s20  ;;  %v9520_v60 = vld [vmem:[#allocation2 + $0x40] sm:$0xf]  ;;  %v3384_v55 = vrot.slane %v7022_v28, 1 }
 0x319   :  { %3673 = vrot.lane.b32.xlu1 %v3582_v13, %s8039_s20  ;;  %v7071_v13 = vcombine.low %v3049_v19, %v9502_v25  ;;  %v7040_v61 = vcombine.low %v9520_v60, %v9520_v60 }
 0x31c   :  { %4039 = vrot.lane.b32.xlu0 %v3943_v15, %s8036_s27  ;;  %v3929_v15 = vor.u32 %v3928_v17, %v3924_v8  ;;  %v4118_v17 = vrot.slane %v7116_v2, 1 }
 0x31d   :  { %3853 = vrot.lane.b32.xlu1 %v7086_v58, %s8033_s22  ;;  %v9533_v58 = vld [vmem:[#allocation2 + $0x30] sm:$0xf] }
 0x320   :  { %3307 = vrot.lane.b32.xlu0 %v3221_v50, %s8035_s24  ;;  %v2613_v50 = vadd.f32 %v9283_v34, %v2589_v62 }
 0x321   :  { %3669 = vrot.lane.b32.xlu1 %v3568_v36, %s8039_s20  ;;  %v9542_v36 = vld [vmem:[#allocation2 + $0x44] sm:$0x1] }
 0x322   :  { %v7119_v2 = vcombine.low %v3097_v14, %v9542_v36 }
 0x324   :  { %3487 = vrot.lane.b32.xlu0 %v7039_v9, %s8037_s17  ;;  %v2611_v9 = vadd.f32 %v9283_v34, %v2587_v23 }
 0x325   :  { %3849 = vrot.lane.b32.xlu1 %v7084_v47, %s8033_s22  ;;  %v4120_v47 = vrot.slane %v7118_v27, 1 }
 0x328   :  { %3303 = vrot.lane.b32.xlu0 %v3207_v35, %s8035_s24  ;;  %v3753_v35 = vrot.slane %v7071_v13, 1  ;;  %v9566_v13 = vld [vmem:[#allocation2 + $0x30] sm:$0xf] }
 0x329   :  { %3409 = vrot.lane.b32.xlu1 %v3386_v11, %s8032_s19  ;;  %v7072_v11 = vcombine.low %v3050_v42, %v9535_v51  ;;  %v9576_v42 = vcombine.low %v2970_v37, %v9490_v49 }
 0x32b   :  { %v7481_v44 = vpop.f32.mrb[20].mxu1  ;;  %v9590_v37 = vrot.slane %v7072_v11, 1  ;;  %v3239_v11 = vshll.u32 %v9576_v42, 16 }
 0x32c   :  { %4035 = vrot.lane.b32.xlu0 %v3929_v15, %s8036_s27  ;;  %v2342_v19 = vmul.f32 %v7481_v44, %v9274_v1  ;;  %v2293_v54 = vpop.f32.mrb[21].mxu1  ;;  %v9578_v44 = vld [vmem:[#allocation2 + $0x34] sm:$0x1] }
 0x32d   :  { %3489 = vrot.lane.b32.xlu1 %v7040_v61, %s8037_s17  ;;  %v2340_v43 = vmul.f32 %v9274_v1, %v2293_v54  ;;  %v7482_v6 = vpop.f32.mrb[22].mxu1  ;;  %v9573_v61 = vrot.slane %v7069_v20, 1 }
 0x32e   :  { %v2366_v23 = vadd.f32 %v9288_v5, %v2342_v19  ;;  %v2343_v8 = vmul.f32 %v7482_v6, %v9274_v1  ;;  %v2296_v27 = vpop.f32.mrb[23].mxu1  ;;  %v3095_v19 = vld [vmem:[#allocation2 + $0x30] sm:$0xe]  ;;  %v9594_v6 = vrot.slane %v7119_v2, 1 }
 0x32f   :  { %v2364_v15 = vadd.f32 %v9288_v5, %v2340_v43  ;;  %v2341_v28 = vmul.f32 %v9274_v1, %v2296_v27  ;;  %v9585_v43 = vcombine.low %v9475_v3, %v9499_v26  ;;  %v7842_v3 = vld [vmem:[%s11432_s3 + $0x34] sm:$0xff]  }
 0x330   :  { %3483 = vrot.lane.b32.xlu0 %v7037_v21, %s8037_s17  ;;  %v2628_v54 = vadd.f32 %v2612_v4, %v2366_v23  ;;  %v2367_v14 = vadd.f32 %v9288_v5, %v2343_v8  ;;  %v9611_v8 = vrot.slane %v7023_v59, 1  ;;  %7509 = vmatprep.subr.bf16.mxu1 %v7842_v3  ;;  %v9634_v59 = vrot.slane %v3239_v11, 1 }
 0x331   :  { %4141 = vrot.lane.b32.xlu1 %v4120_v47, %s8034_s23  ;;  %v2626_v21 = vadd.f32 %v2610_v63, %v2364_v15  ;;  %v2365_v20 = vadd.f32 %v9288_v5, %v2341_v28  ;;  %v7117_v47 = vcombine.low %v3095_v19, %v9578_v44  ;;  %v3961_v27 = vshll.u32 %v9585_v43, 16  ;;  %7510 = vmatpush3.bf16.msra.mxu1 %v7842_v3 }
 0x332   :  { %v9592_v48 = vmax.f32 %v2628_v54, 0.0  ;;  %v2629_v4 = vadd.f32 %v2613_v50, %v2367_v14  ;;  %v9629_v19 = vcombine.low %v9488_v56, %v9507_v40  ;;  %v7847_v56 = vld [vmem:[%s11432_s3 + $0x3c] sm:$0xff]   ;;  %v2927_v40 = vld [vmem:[#allocation2 + $0x68] sm:$0xf]  ;;  %v3600_v11 = vshll.u32 %v9621_v38, 16 }
 0x333   :  { %v9600_v26 = vmax.f32 %v2626_v21, 0.0  ;;  %v2627_v63 = vadd.f32 %v2611_v9, %v2365_v20  ;;  %v9625_v28 = vrot.slane %v7117_v47, 1  ;;  %v2930_v47 = vld [vmem:[#allocation2 + $0x6c] sm:$0x1]  ;;  %7511 = vmatprep.subr.bf16.mxu1 %v7847_v56 }
 0x334   :  { %11587 = vst [vmem:[#allocation34_spill] sm:$0xff] %v9592_v48  ;;  %3775 = vrot.lane.b32.xlu0 %v3753_v35, %s8038_s18  ;;  %v7358_v50 = vpack.c.bf16 %v9592_v48, %v9592_v48  ;;  %v9608_v23 = vmax.f32 %v2629_v4, 0.0  ;;  %v3963_v4 = vrot.slane %v3961_v27, 1 }
 0x335   :  { %11588 = vst [vmem:[#allocation50_spill] sm:$0xff] %v9600_v26  ;;  %4137 = vrot.lane.b32.xlu1 %v4118_v17, %s8034_s23  ;;  %v7356_v9 = vpack.c.bf16 %v9600_v26, %v9600_v26  ;;  %v9616_v35 = vmax.f32 %v2627_v63, 0.0  ;;  %7512 = vmatpush3.bf16.msra.mxu1 %v7847_v56 }
 0x336   :  { %11589 = vst [vmem:[#allocation18_spill] sm:$0xff] %v9608_v23  ;;  %v2789_v15 = vshrl.u32 %v7358_v50, 16  ;;  %v7359_v17 = vpack.c.bf16 %v9608_v23, %v9608_v23  ;;  %v2792_v21 = vshll.u32 %v7358_v50, 16 }
 0x337   :  { %11590 = vst [vmem:[#allocation52_spill] sm:$0xff] %v9616_v35  ;;  %v2773_v54 = vshrl.u32 %v7356_v9, 16  ;;  %v7357_v14 = vpack.c.bf16 %v9616_v35, %v9616_v35  ;;  %v2968_v35 = vld [vmem:[#allocation2 + $0x28] sm:$0xf] }
 0x338   :  { %3855 = vrot.lane.b32.xlu0 %v7087_v31, %s8033_s22  ;;  %v2791_v25 = vrot.slane %v2789_v15, 7  ;;  %v2797_v20 = vshrl.u32 %v7359_v17, 16  ;;  %v2776_v31 = vshll.u32 %v7356_v9, 16  ;;  %v2800_v50 = vshll.u32 %v7359_v17, 16  ;;  %v2933_v17 = vld [vmem:[#allocation2 + $0x70] sm:$0xf] }
 0x339   :  { %3405 = vrot.lane.b32.xlu1 %v3384_v55, %s8032_s19  ;;  %v2775_v3 = vrot.slane %v2773_v54, 7  ;;  %v2781_v63 = vshrl.u32 %v7357_v14, 16  ;;  %v2784_v62 = vshll.u32 %v7357_v14, 16  ;;  %v2936_v14 = vld [vmem:[#allocation2 + $0x74] sm:$0x1] }
 0x33a   :  { %v2794_v2 = vor.u32 %v2792_v21, %v2791_v25  ;;  %v2795_v39 = vrot.slane %v2791_v25, 4  ;;  %v2799_v15 = vrot.slane %v2797_v20, 7  ;;  %v2918_v25 = vld [vmem:[#allocation2 + $0x5c] sm:$0x1] }
 0x33b   :  { %v2778_v49 = vor.u32 %v2776_v31, %v2775_v3  ;;  %v2779_v55 = vrot.slane %v2775_v3, 4  ;;  %v2783_v27 = vrot.slane %v2781_v63, 7  ;;  %v11591_v3 = vcombine.low %v9533_v58, %v9533_v58 }
 0x33c   :  { %3771 = vrot.lane.b32.xlu0 %v9573_v61, %s8038_s18  ;;  %v2928_v9 = vsel %vm8251_vm7, %v2794_v2, %v2927_v40  ;;  %v2931_v54 = vsel %vm8259_vm8, %v2795_v39, %v2930_v47  ;;  %v2802_v21 = vor.u32 %v2800_v50, %v2799_v15  ;;  %v2803_v20 = vrot.slane %v2799_v15, 4  ;;  %v2921_v47 = vld [vmem:[#allocation2 + $0x60] sm:$0xf]  ;;  %v2924_v39 = vld [vmem:[#allocation2 + $0x64] sm:$0x1] }
 0x33d   :  { %3485 = vrot.lane.b32.xlu1 %v11591_v3, %s8037_s17  ;;  %2929 = vst [vmem:[#allocation2 + $0x68] sm:$0xf] %v2928_v9  ;;  %2932 = vst [vmem:[#allocation2 + $0x6c] sm:$0x1] %v2931_v54  ;;  %v2916_v61 = vsel %vm8251_vm7, %v2778_v49, %v2915_v53  ;;  %v2919_v2 = vsel %vm8259_vm8, %v2779_v55, %v2918_v25  ;;  %v2786_v56 = vor.u32 %v2784_v62, %v2783_v27  ;;  %v7850_v62 = vld [vmem:[%s11432_s3 + $0x44] ss:$0 sps:$4 sm:$0xff]  }
 0x33e   :  { %v2787_v40 = vrot.slane %v2783_v27, 4  ;;  %2917 = vst [vmem:[#allocation2 + $0x58] sm:$0xf] %v2916_v61  ;;  %2920 = vst [vmem:[#allocation2 + $0x5c] sm:$0x1] %v2919_v2  ;;  %v2934_v31 = vsel %vm8251_vm7, %v2802_v21, %v2933_v17  ;;  %v2937_v63 = vsel %vm8259_vm8, %v2803_v20, %v2936_v14  ;;  %v3959_v15 = vshrl.u32 %v9585_v43, 16  ;;  %v9678_v43 = vpop.permute.xlu1 %3857  ;;  %7567 = vmatprep.subr.msk.bf16.mxu1 %vm2223_vm9, %v7850_v62 }
 0x33f   :  { %v9665_v49 = vcombine.low %v2968_v35, %v9515_v46  ;;  %2935 = vst [vmem:[#allocation2 + $0x70] sm:$0xf] %v2934_v31  ;;  %2938 = vst [vmem:[#allocation2 + $0x74] sm:$0x1] %v2937_v63  ;;  %v2922_v53 = vsel %vm8251_vm7, %v2786_v56, %v2921_v47  ;;  %v11592_v55 = vcombine.low %v9566_v13, %v9566_v13  ;;  %v3598_v46 = vshrl.u32 %v9621_v38, 16 }
 0x340   :  { %v2925_v50 = vsel %vm8259_vm8, %v2787_v40, %v2924_v39  ;;  %v3945_v35 = vshrl.u32 %v9629_v19, 16  ;;  %2923 = vst [vmem:[#allocation2 + $0x60] sm:$0xf] %v2922_v53  ;;  %v7485_v27 = vpop.f32.mrb[24].mxu1  ;;  %v7503_v9 = vpop.f32.mrb[16].mxu0  ;;  %v11593_v54 = vshrl.u32 %v9576_v42, 16  ;;  %v9687_v21 = vor.u32 %v3963_v4, %v3959_v15 }
 0x341   :  { %3851 = vrot.lane.b32.xlu0 %v11592_v55, %s8033_s22  ;;  %2926 = vst [vmem:[#allocation2 + $0x64] sm:$0x1] %v2925_v50  ;;  %3777 = vrot.lane.b32.xlu1 %v9590_v37, %s8038_s18  ;;  %v3947_v20 = vshll.u32 %v9629_v19, 16  ;;  %v4527_v17 = vsel %vm2223_vm9, %v7850_v62, 0  ;;  %v2346_v3 = vmul.f32 %v7485_v27, %v9274_v1  ;;  %v2592_v61 = vmul.f32 %v7503_v9, %v9269_v41  ;;  %v2309_v2 = vpop.f32.mrb[25].mxu1  ;;  %v2555_v37 = vpop.f32.mrb[17].mxu0 }
 0x342   :  { %v3242_v25 = vor.u32 %v9634_v59, %v11593_v54  ;;  %v3602_v14 = vrot.slane %v3600_v11, 1  ;;  %v3586_v56 = vshll.u32 %v9638_v18, 16  ;;  %7514 = vmatpush3.bf16.msra.mxu1 %v4527_v17  ;;  %v2344_v42 = vmul.f32 %v9274_v1, %v2309_v2  ;;  %v7486_v4 = vpop.f32.mrb[26].mxu1  ;;  %v7504_v40 = vpop.f32.mrb[18].mxu0 }
 0x343   :  { %v2590_v59 = vmul.f32 %v9269_v41, %v2555_v37  ;;  %v3225_v47 = vshll.u32 %v9665_v49, 16  ;;  %v9700_v31 = vcombine.low %v9530_v24, %v9542_v36  ;;  %v2370_v63 = vadd.f32 %v9288_v5, %v2346_v3  ;;  %v2312_v62 = vpop.f32.mrb[27].mxu1  ;;  %v2558_v53 = vpop.f32.mrb[19].mxu0  ;;  %v8004_v24 = vld [vmem:[%s11430_s4 + $0x1] ss:$0 sm:$0xff] }
 0x344   :  { %v2616_v39 = vadd.f32 %v9283_v34, %v2592_v61  ;;  %v2347_v11 = vmul.f32 %v7486_v4, %v9274_v1  ;;  %v2593_v15 = vmul.f32 %v7504_v40, %v9269_v41  ;;  %v2368_v50 = vadd.f32 %v9288_v5, %v2344_v42  ;;  %v8005_v41 = vld [vmem:[%s11430_s4 + $0x4] ss:$0 sm:$0xff]  ;;  %v9722_v54 = vpop.permute.xlu0 %3299  ;;  %v8007_v61 = vld [vmem:[%s11431_s5 + $0x1] ss:$0 sm:$0xff] }
 0x345   :  { %4143 = vrot.lane.b32.xlu0 %v9594_v6, %s8034_s23  ;;  %v2614_v55 = vadd.f32 %v9283_v34, %v2590_v59  ;;  %3773 = vrot.lane.b32.xlu1 %v9603_v0, %s8038_s18  ;;  %v2345_v36 = vmul.f32 %v8004_v24, %v2312_v62  ;;  %v2591_v1 = vmul.f32 %v8005_v41, %v2558_v53  ;;  %v8006_v34 = vld [vmem:[%s11431_s5 + $0x4] ss:$0 sm:$0xff]  ;;  %v9724_v0 = vpop.permute.xlu1 %4049  ;;  %v3949_v17 = vrot.slane %v3947_v20, 1  ;;  %v9756_v62 = vld [vmem:[#allocation2 + $0x30] sm:$0xf] }
 0x346   :  { %v2632_v6 = vadd.f32 %v2616_v39, %v2370_v63  ;;  %v2371_v27 = vadd.f32 %v9288_v5, %v2347_v11  ;;  %v2617_v9 = vadd.f32 %v8006_v34, %v2593_v15  ;;  %v9731_v5 = vcombine.low %v9520_v60, %v9535_v51 }
 0x347   :  { %v2630_v3 = vadd.f32 %v2614_v55, %v2368_v50  ;;  %v2369_v2 = vadd.f32 %v8007_v61, %v2345_v36  ;;  %v2615_v37 = vadd.f32 %v8006_v34, %v2591_v1  ;;  %v3584_v4 = vshrl.u32 %v9638_v18, 16  ;;  %v3005_v32 = vld [vmem:[#allocation2 + $0x60] sm:$0xe] }
 0x348   :  { %v9733_v42 = vmax.f32 %v2632_v6, 0.0  ;;  %v2633_v59 = vadd.f32 %v2617_v9, %v2371_v27  ;;  %v3588_v20 = vrot.slane %v3586_v56, 1  ;;  %v3227_v39 = vrot.slane %v3225_v47, 1  ;;  %v9762_v38 = vpop.permute.xlu0 %3395  ;;  %v9929_v45 = vld [vmem:[#allocation2 + $0x64] sm:$0x1] }
 0x349   :  { %3407 = vrot.lane.b32.xlu0 %v9611_v8, %s8032_s19  ;;  %v9738_v40 = vmax.f32 %v2630_v3, 0.0  ;;  %v2631_v63 = vadd.f32 %v2615_v37, %v2369_v2  ;;  %3313 = vrot.lane.b32.xlu1 %v3242_v25, %s8035_s24  ;;  %v3968_v11 = vshll.u32 %v9700_v31, 16  ;;  %v3603_v15 = vor.u32 %v3602_v14, %v3598_v46 }
 0x34a   :  { %11594 = vst [vmem:[#allocation12_spill] sm:$0xff] %v9733_v42  ;;  %v7362_v60 = vpack.c.bf16 %v9733_v42, %v9733_v42  ;;  %v9744_v51 = vmax.f32 %v2633_v59, 0.0  ;;  %v3223_v8 = vshrl.u32 %v9665_v49, 16  ;;  %v3950_v25 = vor.u32 %v3949_v17, %v3945_v35  ;;  %v9764_v49 = vpop.permute.xlu1 %4145  ;;  %v2951_v17 = vld [vmem:[#allocation2 + $0x88] sm:$0xf] }
 0x34b   :  { %11595 = vst [vmem:[#allocation33_spill] sm:$0xff] %v9738_v40  ;;  %v7360_v18 = vpack.c.bf16 %v9738_v40, %v9738_v40  ;;  %v9751_v56 = vmax.f32 %v2631_v63, 0.0  ;;  %v3607_v47 = vshll.u32 %v9731_v5, 16  ;;  %11598 = vst [vmem:[#allocation35_spill] sm:$0xff] %v9764_v49  ;;  %v3589_v46 = vor.u32 %v3588_v20, %v3584_v4  ;;  %v2939_v63 = vld [vmem:[#allocation2 + $0x78] sm:$0xf] }
 0x34c   :  { %11596 = vst [vmem:[#allocation27_spill] sm:$0xff] %v9744_v51  ;;  %v2821_v53 = vshrl.u32 %v7362_v60, 16  ;;  %v7363_v50 = vpack.c.bf16 %v9744_v51, %v9744_v51  ;;  %v9768_v19 = vcombine.low %v9533_v58, %v9549_v33  ;;  %v3228_v55 = vor.u32 %v3227_v39, %v3223_v8  ;;  %v2942_v39 = vld [vmem:[#allocation2 + $0x7c] sm:$0x1]  ;;  %v9784_v8 = vpop.permute.xlu0 %3315 }
 0x34d   :  { %11597 = vst [vmem:[#allocation41_spill] sm:$0xff] %v9751_v56  ;;  %4139 = vrot.lane.b32.xlu0 %v9625_v28, %s8034_s23  ;;  %v2805_v35 = vshrl.u32 %v7360_v18, 16  ;;  %v7361_v14 = vpack.c.bf16 %v9751_v56, %v9751_v56  ;;  %4045 = vrot.lane.b32.xlu1 %v9687_v21, %s8036_s27  ;;  %v3970_v24 = vrot.slane %v3968_v11, 1  ;;  %v2824_v28 = vshll.u32 %v7362_v60, 16  ;;  %v2954_v21 = vld [vmem:[#allocation2 + $0x8c] sm:$0x1] }
 0x34e   :  { %v2823_v36 = vrot.slane %v2821_v53, 7  ;;  %v2829_v41 = vshrl.u32 %v7363_v50, 16  ;;  %v9776_v1 = vcombine.low %v9756_v62, %v9562_v16  ;;  %v2808_v27 = vshll.u32 %v7360_v18, 16  ;;  %11599 = vst [vmem:[#allocation22_spill] sm:$0xff] %v9784_v8  ;;  %v2960_v53 = vld [vmem:[#allocation2 + $0x94] sm:$0x1] }
 0x34f   :  { %v2807_v6 = vrot.slane %v2805_v35, 7  ;;  %v2813_v58 = vshrl.u32 %v7361_v14, 16  ;;  %v3609_v33 = vrot.slane %v3607_v47, 1  ;;  %v2832_v61 = vshll.u32 %v7363_v50, 16  ;;  %v2957_v47 = vld [vmem:[#allocation2 + $0x90] sm:$0xf] }
 0x350   :  { %v2826_v34 = vor.u32 %v2824_v28, %v2823_v36  ;;  %v2827_v9 = vrot.slane %v2823_v36, 4  ;;  %v2831_v3 = vrot.slane %v2829_v41, 7  ;;  %v2816_v4 = vshll.u32 %v7361_v14, 16  ;;  %v2945_v28 = vld [vmem:[#allocation2 + $0x80] sm:$0xf] }
 0x351   :  { %3679 = vrot.lane.b32.xlu0 %v3603_v15, %s8039_s20  ;;  %v2810_v2 = vor.u32 %v2808_v27, %v2807_v6  ;;  %v2811_v37 = vrot.slane %v2807_v6, 4  ;;  %v2815_v59 = vrot.slane %v2813_v58, 7  ;;  %4041 = vrot.lane.b32.xlu1 %v3950_v25, %s8036_s27  ;;  %v9786_v15 = vpop.permute.xlu1 %3873  ;;  %v2948_v41 = vld [vmem:[#allocation2 + $0x84] sm:$0x1]  ;;  %v3966_v6 = vshrl.u32 %v9700_v31, 16 }
 0x352   :  { %v2952_v16 = vsel %vm8251_vm7, %v2826_v34, %v2951_v17  ;;  %v2955_v20 = vsel %vm8259_vm8, %v2827_v9, %v2954_v21  ;;  %v2834_v11 = vor.u32 %v2832_v61, %v2831_v3  ;;  %v2835_v60 = vrot.slane %v2831_v3, 4  ;;  %11600 = vst [vmem:[#allocation40_spill] sm:$0xff] %v9786_v15  ;;  %v9807_v3 = vld [vmem:[#allocation2 + $0x68] sm:$0xf]  ;;  %v9811_v21 = vpop.permute.xlu0 %3411 }
 0x353   :  { %2953 = vst [vmem:[#allocation2 + $0x88] sm:$0xf] %v2952_v16  ;;  %2956 = vst [vmem:[#allocation2 + $0x8c] sm:$0x1] %v2955_v20  ;;  %v2940_v18 = vsel %vm8251_vm7, %v2810_v2, %v2939_v63  ;;  %v2943_v25 = vsel %vm8259_vm8, %v2811_v37, %v2942_v39  ;;  %v2818_v50 = vor.u32 %v2816_v4, %v2815_v59  ;;  %v2819_v35 = vrot.slane %v2815_v59, 4 }
 0x354   :  { %2941 = vst [vmem:[#allocation2 + $0x78] sm:$0xf] %v2940_v18  ;;  %2944 = vst [vmem:[#allocation2 + $0x7c] sm:$0x1] %v2943_v25  ;;  %v2958_v14 = vsel %vm8251_vm7, %v2834_v11, %v2957_v47  ;;  %v2961_v36 = vsel %vm8259_vm8, %v2835_v60, %v2960_v53  ;;  %v3605_v34 = vshrl.u32 %v9731_v5, 16  ;;  %v3971_v9 = vor.u32 %v3970_v24, %v3966_v6 }
 0x355   :  { %3675 = vrot.lane.b32.xlu0 %v3589_v46, %s8039_s20  ;;  %2959 = vst [vmem:[#allocation2 + $0x90] sm:$0xf] %v2958_v14  ;;  %2962 = vst [vmem:[#allocation2 + $0x94] sm:$0x1] %v2961_v36  ;;  %v2946_v27 = vsel %vm8251_vm7, %v2818_v50, %v2945_v28  ;;  %v2949_v58 = vsel %vm8259_vm8, %v2819_v35, %v2948_v41  ;;  %3309 = vrot.lane.b32.xlu1 %v3228_v55, %s8035_s24  ;;  %v3232_v17 = vshll.u32 %v9776_v1, 16  ;;  %v9813_v55 = vpop.permute.xlu1 %4065 }
 0x356   :  { %2947 = vst [vmem:[#allocation2 + $0x80] sm:$0xf] %v2946_v27  ;;  %2950 = vst [vmem:[#allocation2 + $0x84] sm:$0x1] %v2949_v58  ;;  %v7101_v31 = vcombine.low %v9566_v13, %v9578_v44  ;;  %v3610_v46 = vor.u32 %v3609_v33, %v3605_v34  ;;  %v3593_v61 = vshll.u32 %v9768_v19, 16  ;;  %v7043_v24 = vcombine.low %v9807_v3, %v9807_v3 }
 0x357   :  { %11601 = vst [vmem:[#allocation19_spill] sm:$0xff] %v9811_v21  ;;  %11602 = vst [vmem:[#allocation26_spill] sm:$0xff] %v9813_v55  ;;  %v9815_v5 = vld [vmem:[#allocation2 + $0x68] sm:$0xf]  ;;  %v3234_v2 = vrot.slane %v3232_v17, 1  ;;  %v3230_v37 = vshrl.u32 %v9776_v1, 16 }
 0x358   :  { %v3954_v13 = vshll.u32 %v7101_v31, 16  ;;  %v7090_v44 = vcombine.low %v9815_v5, %v9815_v5  ;;  %v3595_v33 = vrot.slane %v3593_v61, 1  ;;  %v9824_v59 = vld [vmem:[#allocation2 + $0x6c] sm:$0x1]  ;;  %v3006_v4 = vld [vmem:[#allocation2 + $0x68] sm:$0xe] }
 0x359   :  { %4047 = vrot.lane.b32.xlu0 %v3971_v9, %s8036_s27  ;;  %3681 = vrot.lane.b32.xlu1 %v3610_v46, %s8039_s20  ;;  %v3591_v16 = vshrl.u32 %v9768_v19, 16  ;;  %v3235_v39 = vor.u32 %v3234_v2, %v3230_v37  ;;  %v7028_v18 = vcombine.low %v3006_v4, %v9824_v59  ;;  %v3952_v25 = vshrl.u32 %v7101_v31, 16  ;;  %v9837_v53 = vld [vmem:[#allocation2 + $0x58] sm:$0xf]  ;;  %v9841_v35 = vld [vmem:[#allocation2 + $0x6c] sm:$0x1] }
 0x35a   :  { %v3956_v11 = vrot.slane %v3954_v13, 1  ;;  %v3053_v14 = vld [vmem:[#allocation2 + $0x68] sm:$0xe]  ;;  %v9844_v36 = vld [vmem:[#allocation2 + $0x70] sm:$0xf]  ;;  %v7041_v27 = vcombine.low %v9837_v53, %v9837_v53 }
 0x35b   :  { %v3596_v60 = vor.u32 %v3595_v33, %v3591_v16  ;;  %v3390_v50 = vrot.slane %v7028_v18, 1  ;;  %v3084_v28 = vld [vmem:[#allocation2 + $0x6c] sm:$0x1]  ;;  %v3100_v41 = vld [vmem:[#allocation2 + $0x68] sm:$0xe]  ;;  %v7075_v58 = vcombine.low %v3053_v14, %v9841_v35  ;;  %v7044_v9 = vcombine.low %v9844_v36, %v9844_v36 }
 0x35c   :  { %v3957_v47 = vor.u32 %v3956_v11, %v3952_v25  ;;  %v7122_v17 = vcombine.low %v3100_v41, %v3084_v28  ;;  %v2988_v31 = vld [vmem:[#allocation2 + $0x5c] sm:$0x1]  ;;  %v3004_v46 = vld [vmem:[#allocation2 + $0x58] sm:$0xe]  ;;  %v9860_v2 = vld [vmem:[#allocation2 + $0x70] sm:$0xf]  ;;  %v7106_v23 = vcombine.low %v9815_v5, %v3084_v28 }
 0x35d   :  { %3495 = vrot.lane.b32.xlu0 %v7043_v24, %s8037_s17  ;;  %3861 = vrot.lane.b32.xlu1 %v7090_v44, %s8033_s22  ;;  %v9830_v63 = vpop.permute.xlu1 %3845  ;;  %v3757_v24 = vrot.slane %v7075_v58, 1  ;;  %v7026_v33 = vcombine.low %v3004_v46, %v2988_v31  ;;  %v9864_v37 = vld [vmem:[#allocation2 + $0x5c] sm:$0x1]  ;;  %v3051_v4 = vld [vmem:[#allocation2 + $0x58] sm:$0xe] }
 0x35e   :  { %v9828_v20 = vpop.permute.xlu0 %3479  ;;  %v4124_v44 = vrot.slane %v7122_v17, 1  ;;  %v7073_v11 = vcombine.low %v3051_v4, %v9864_v37  ;;  %v9875_v25 = vld [vmem:[#allocation2 + $0x60] sm:$0xf]  ;;  %v9878_v14 = vld [vmem:[#allocation2 + $0x68] sm:$0xf]  ;;  %v3989_v29 = vshll.u32 %v7106_v23, 16 }
 0x35f   :  { %v3388_v18 = vrot.slane %v7026_v33, 1  ;;  %11603 = vst [vmem:[#allocation21_spill] sm:$0xff] %v9878_v14  ;;  %v9887_v17 = vld [vmem:[#allocation2 + $0x60] sm:$0xf]  ;;  %v7012_v33 = vcombine.low %v9878_v14, %v9824_v59  ;;  %v9894_v4 = vld [vmem:[#allocation2 + $0x64] sm:$0x1] }
 0x360   :  { %v9905_v59 = vld [vmem:[#allocation2 + $0x74] sm:$0x1]  ;;  %v10099_v14 = vld [vmem:[#allocation2 + $0x80] sm:$0xf] }
 0x361   :  { %3311 = vrot.lane.b32.xlu0 %v3235_v39, %s8035_s24  ;;  %3677 = vrot.lane.b32.xlu1 %v3596_v60, %s8039_s20  ;;  %v7091_v39 = vcombine.low %v9860_v2, %v9860_v2  ;;  %v3267_v42 = vshll.u32 %v7012_v33, 16 }
 0x362   :  { %v9835_v1 = vpop.permute.xlu0 %3475  ;;  %v9839_v19 = vpop.permute.xlu1 %3401 }
 0x363   :  { %v3269_v30 = vrot.slane %v3267_v42, 1 }
 0x365   :  { %4043 = vrot.lane.b32.xlu0 %v3957_v47, %s8036_s27  ;;  %3417 = vrot.lane.b32.xlu1 %v3390_v50, %s8032_s19  ;;  %v3038_v47 = vld [vmem:[#allocation2 + $0x74] sm:$0x1]  ;;  %v3054_v50 = vld [vmem:[#allocation2 + $0x70] sm:$0xe] }
 0x366   :  { %v9847_v6 = vpop.permute.xlu0 %3767  ;;  %v7076_v46 = vcombine.low %v3054_v50, %v3038_v47 }
 0x367   :  { %v9852_v34 = vpop.permute.xlu1 %3481 }
 0x368   :  { %v3758_v51 = vrot.slane %v7076_v46, 1  ;;  %v9915_v46 = vld [vmem:[#allocation2 + $0x64] sm:$0x1] }
 0x369   :  { %3491 = vrot.lane.b32.xlu0 %v7041_v27, %s8037_s17  ;;  %3497 = vrot.lane.b32.xlu1 %v7044_v9, %s8037_s17  ;;  %v3755_v27 = vrot.slane %v7073_v11, 1  ;;  %v7042_v9 = vcombine.low %v9875_v25, %v9875_v25 }
 0x36a   :  { %v9858_v61 = vpop.permute.xlu0 %3847 }
 0x36b   :  { %v9862_v13 = vpop.permute.xlu1 %4133 }
 0x36d   :  { %3783 = vrot.lane.b32.xlu0 %v3757_v24, %s8038_s18  ;;  %4149 = vrot.lane.b32.xlu1 %v4124_v44, %s8034_s23  ;;  %v9889_v24 = vld [vmem:[#allocation2 + $0x74] sm:$0x1]  ;;  %v3101_v44 = vld [vmem:[#allocation2 + $0x70] sm:$0xe] }
 0x36e   :  { %v9868_v16 = vpop.permute.xlu0 %3763  ;;  %v7123_v50 = vcombine.low %v3101_v44, %v9889_v24 }
 0x36f   :  { %v9873_v60 = vpop.permute.xlu1 %3397 }
 0x370   :  { %v4125_v44 = vrot.slane %v7123_v50, 1  ;;  %v7027_v50 = vcombine.low %v3005_v32, %v9915_v46 }
 0x371   :  { %3863 = vrot.lane.b32.xlu0 %v7091_v39, %s8033_s22  ;;  %3413 = vrot.lane.b32.xlu1 %v3388_v18, %s8032_s19  ;;  %v3052_v39 = vld [vmem:[#allocation2 + $0x60] sm:$0xe]  ;;  %v7089_v18 = vcombine.low %v9887_v17, %v9887_v17 }
 0x372   :  { %v9881_v41 = vpop.permute.xlu0 %3843  ;;  %v7074_v40 = vcombine.low %v3052_v39, %v9894_v4  ;;  %v3389_v32 = vrot.slane %v7027_v50, 1 }
 0x373   :  { %v9883_v58 = vpop.permute.xlu1 %3477 }
 0x374   :  { %v3756_v12 = vrot.slane %v7074_v40, 1  ;;  %v3991_v40 = vrot.slane %v3989_v29, 1  ;;  %v7057_v29 = vcombine.low %v9837_v53, %v9864_v37 }
 0x375   :  { %3779 = vrot.lane.b32.xlu0 %v3755_v27, %s8038_s18  ;;  %3493 = vrot.lane.b32.xlu1 %v7042_v9, %s8037_s17  ;;  %v3007_v27 = vld [vmem:[#allocation2 + $0x70] sm:$0xe]  ;;  %v9909_v9 = vld [vmem:[#allocation2 + $0x58] sm:$0xf] }
 0x376   :  { %v9897_v11 = vpop.permute.xlu0 %4135  ;;  %11604 = vst [vmem:[#allocation4_spill] sm:$0xff] %v9909_v9  ;;  %v7029_v48 = vcombine.low %v3007_v27, %v9905_v59  ;;  %v7010_v5 = vcombine.low %v9909_v9, %v2988_v31  ;;  %v7059_v27 = vcombine.low %v9807_v3, %v9841_v35  ;;  %v3099_v31 = vld [vmem:[#allocation2 + $0x60] sm:$0xe]  ;;  %v3614_v50 = vshll.u32 %v7057_v29, 16 }
 0x377   :  { %v9902_v56 = vpop.permute.xlu1 %3769  ;;  %v7121_v3 = vcombine.low %v3099_v31, %v9929_v45 }
 0x378   :  { %v3253_v57 = vshll.u32 %v7010_v5, 16  ;;  %v3628_v35 = vshll.u32 %v7059_v27, 16 }
 0x379   :  { %3859 = vrot.lane.b32.xlu0 %v7089_v18, %s8033_s22  ;;  %3785 = vrot.lane.b32.xlu1 %v3758_v51, %s8038_s18  ;;  %v3265_v51 = vshrl.u32 %v7012_v33, 16  ;;  %v3391_v18 = vrot.slane %v7029_v48, 1 }
 0x37a   :  { %v9912_v26 = vpop.permute.xlu0 %3403 }
 0x37b   :  { %v9917_v39 = vpop.permute.xlu1 %3765  ;;  %v3270_v42 = vor.u32 %v3269_v30, %v3265_v51  ;;  %v3255_v51 = vrot.slane %v3253_v57, 1  ;;  %v7058_v57 = vcombine.low %v9875_v25, %v9894_v4  ;;  %v3612_v25 = vshrl.u32 %v7057_v29, 16  ;;  %v9958_v4 = vld [vmem:[#allocation2 + $0x88] sm:$0xf] }
 0x37d   :  { %4151 = vrot.lane.b32.xlu0 %v4125_v44, %s8034_s23  ;;  %3781 = vrot.lane.b32.xlu1 %v3756_v12, %s8038_s18  ;;  %v7060_v44 = vcombine.low %v9844_v36, %v3038_v47  ;;  %v3987_v12 = vshrl.u32 %v7106_v23, 16  ;;  %v3251_v36 = vshrl.u32 %v7010_v5, 16  ;;  %v4123_v47 = vrot.slane %v7121_v3, 1 }
 0x37e   :  { %v9922_v28 = vpop.permute.xlu0 %3399 }
 0x37f   :  { %v9927_v52 = vpop.permute.xlu1 %3305  ;;  %v3992_v33 = vor.u32 %v3991_v40, %v3987_v12  ;;  %v3635_v10 = vshll.u32 %v7060_v44, 16  ;;  %v3256_v53 = vor.u32 %v3255_v51, %v3251_v36  ;;  %v9949_v40 = vld [vmem:[#allocation2 + $0x70] sm:$0xf]  ;;  %v3626_v12 = vshrl.u32 %v7059_v27, 16  ;;  %v8008_v27 = vld [vmem:[#allocation2 + $0x8] sm:$0xf] }
 0x380   :  { %11605 = vst [vmem:[#allocation7_spill] sm:$0xff] %v9949_v40  ;;  %v3633_v5 = vshrl.u32 %v7060_v44, 16  ;;  %v3621_v51 = vshll.u32 %v7058_v57, 16 }
 0x381   :  { %3419 = vrot.lane.b32.xlu0 %v3391_v18, %s8032_s19  ;;  %3321 = vrot.lane.b32.xlu1 %v3270_v42, %s8035_s24  ;;  %v3630_v18 = vrot.slane %v3628_v35, 1  ;;  %v7107_v42 = vcombine.low %v9860_v2, %v9889_v24  ;;  %v3637_v37 = vrot.slane %v3635_v10, 1  ;;  %v3616_v35 = vrot.slane %v3614_v50, 1 }
 0x382   :  { %v9934_v48 = vpop.permute.xlu0 %4131  ;;  %v7013_v2 = vcombine.low %v9949_v40, %v9905_v59  ;;  %v8010_v40 = vld [vmem:[#allocation2 + $0x10] sm:$0xf] }
 0x383   :  { %v9939_v30 = vpop.permute.xlu1 %4037  ;;  %v3631_v3 = vor.u32 %v3630_v18, %v3626_v12  ;;  %v3638_v10 = vor.u32 %v3637_v37, %v3633_v5  ;;  %v3623_v37 = vrot.slane %v3621_v51, 1  ;;  %v9968_v12 = vld [vmem:[#allocation2 + $0x60] sm:$0xf] }
 0x384   :  { %v3274_v50 = vshll.u32 %v7013_v2, 16  ;;  %11606 = vst [vmem:[#allocation32_spill] sm:$0xff] %v9968_v12  ;;  %v8009_v5 = vld [vmem:[#allocation2] sm:$0xf]  ;;  %v7011_v51 = vcombine.low %v9968_v12, %v9915_v46 }
 0x385   :  { %3415 = vrot.lane.b32.xlu0 %v3389_v32, %s8032_s19  ;;  %4053 = vrot.lane.b32.xlu1 %v3992_v33, %s8036_s27  ;;  %v3996_v33 = vshll.u32 %v7107_v42, 16 }
 0x386   :  { %v9943_v23 = vpop.permute.xlu0 %3671 }
 0x387   :  { %v3302_v31 = vpop.permute.xlu1 %3301  ;;  %v3998_v18 = vrot.slane %v3996_v33, 1 }
 0x388   :  { %v4168_v36 = vsel %vm1851_vm10, %v8008_v27, %v3302_v31  ;;  %v3994_v31 = vshrl.u32 %v7107_v42, 16  ;;  %v9982_v42 = vld [vmem:[#allocation2 + $0x78] sm:$0xf] }
 0x389   :  { %4147 = vrot.lane.b32.xlu0 %v4123_v47, %s8034_s23  ;;  %3317 = vrot.lane.b32.xlu1 %v3256_v53, %s8035_s24  ;;  %v3617_v47 = vor.u32 %v3616_v35, %v3612_v25  ;;  %v7094_v53 = vcombine.low %v9958_v4, %v9958_v4  ;;  %v4214_v29 = vsel %vm1900_vm11, %v4168_v36, %v9873_v60  ;;  %v3619_v35 = vshrl.u32 %v7058_v57, 16 }
 0x38a   :  { %v3668_v32 = vpop.permute.xlu0 %3667  ;;  %v3276_v25 = vrot.slane %v3274_v50, 1  ;;  %v4246_v60 = vsel %vm1933_vm12, %v4214_v29, %v9883_v58  ;;  %v3272_v57 = vshrl.u32 %v7013_v2, 16  ;;  %v3010_v50 = vld [vmem:[#allocation2 + $0x88] sm:$0xe]  ;;  %v7092_v2 = vcombine.low %v9982_v42, %v9982_v42 }
 0x38b   :  { %v9955_v24 = vpop.permute.xlu1 %3673  ;;  %v3624_v36 = vor.u32 %v3623_v37, %v3619_v35  ;;  %v7105_v37 = vcombine.low %v9887_v17, %v9929_v45 }
 0x38c   :  { %v3277_v58 = vor.u32 %v3276_v25, %v3272_v57 }
 0x38d   :  { %3687 = vrot.lane.b32.xlu0 %v3631_v3, %s8039_s20  ;;  %3689 = vrot.lane.b32.xlu1 %v3638_v10, %s8039_s20  ;;  %v4165_v3 = vsel %vm1851_vm10, %v8009_v5, %v9722_v54  ;;  %v3999_v10 = vor.u32 %v3998_v18, %v3994_v31  ;;  %v9988_v18 = vld [vmem:[#allocation2 + $0x8c] sm:$0x1]  ;;  %v10003_v5 = vld [vmem:[#allocation2 + $0x88] sm:$0xf] }
 0x38e   :  { %v9962_v44 = vpop.permute.xlu0 %4039  ;;  %v4212_v54 = vsel %vm1900_vm11, %v4165_v3, %v9762_v38  ;;  %v7032_v3 = vcombine.low %v3010_v50, %v9988_v18  ;;  %v7047_v17 = vcombine.low %v10003_v5, %v10003_v5 }
 0x38f   :  { %v9964_v59 = vpop.permute.xlu1 %3853  ;;  %v4244_v38 = vsel %vm1933_vm12, %v4212_v54, %v9835_v1  ;;  %v10022_v54 = vld [vmem:[#allocation2 + $0x7c] sm:$0x1] }
 0x390   :  { %v4276_v35 = vsel %vm1966_vm13, %v4244_v38, %v3668_v32  ;;  %v3394_v32 = vrot.slane %v7032_v3, 1  ;;  %v10040_v3 = vld [vmem:[#allocation2 + $0x7c] sm:$0x1] }
 0x391   :  { %3683 = vrot.lane.b32.xlu0 %v3617_v47, %s8039_s20  ;;  %3869 = vrot.lane.b32.xlu1 %v7094_v53, %s8033_s22  ;;  %v3260_v53 = vshll.u32 %v7011_v51, 16  ;;  %v4308_v25 = vsel %vm1999_vm14, %v4276_v35, %v9868_v16  ;;  %v3008_v35 = vld [vmem:[#allocation2 + $0x78] sm:$0xe] }
 0x392   :  { %v9976_v33 = vpop.permute.xlu0 %3307  ;;  %v4340_v57 = vsel %vm2032_vm15, %v4308_v25, %v9881_v41  ;;  %v3980_v41 = vshrl.u32 %v7105_v37, 16 }
 0x393   :  { %v3670_v27 = vpop.permute.xlu1 %3669 }
 0x394   :  { %v4278_v47 = vsel %vm1966_vm13, %v4246_v60, %v3670_v27  ;;  %v10019_v27 = vld [vmem:[#allocation2 + $0x90] sm:$0xf] }
 0x395   :  { %4055 = vrot.lane.b32.xlu0 %v3999_v10, %s8036_s27  ;;  %3685 = vrot.lane.b32.xlu1 %v3624_v36, %s8039_s20  ;;  %v4310_v29 = vsel %vm1999_vm14, %v4278_v47, %v9917_v39  ;;  %v3262_v39 = vrot.slane %v3260_v53, 1  ;;  %v3982_v10 = vshll.u32 %v7105_v37, 16  ;;  %v3258_v36 = vshrl.u32 %v7011_v51, 16  ;;  %v3057_v37 = vld [vmem:[#allocation2 + $0x88] sm:$0xe] }
 0x396   :  { %v9991_v46 = vpop.permute.xlu0 %3487  ;;  %v4342_v45 = vsel %vm2032_vm15, %v4310_v29, %v9830_v63  ;;  %v3102_v63 = vld [vmem:[#allocation2 + $0x78] sm:$0xe]  ;;  %v7048_v51 = vcombine.low %v10019_v27, %v10019_v27 }
 0x397   :  { %v9999_v31 = vpop.permute.xlu1 %3849  ;;  %v4374_v47 = vsel %vm2065_vm0, %v4342_v45, %v9939_v30  ;;  %v3263_v50 = vor.u32 %v3262_v39, %v3258_v36  ;;  %v7124_v29 = vcombine.low %v3102_v63, %v10022_v54 }
 0x398   :  { %v4406_v30 = vsel %vm2098_vm1, %v4374_v47, %v9862_v13  ;;  %v7030_v13 = vcombine.low %v3008_v35, %v10040_v3  ;;  %v10073_v35 = vld [vmem:[#allocation2 + $0x90] sm:$0xf] }
 0x399   :  { %3323 = vrot.lane.b32.xlu0 %v3277_v58, %s8035_s24  ;;  %3865 = vrot.lane.b32.xlu1 %v7092_v2, %s8033_s22  ;;  %v3984_v58 = vrot.slane %v3982_v10, 1  ;;  %v10045_v10 = vld [vmem:[#allocation2 + $0x78] sm:$0xf]  ;;  %v7095_v22 = vcombine.low %v10073_v35, %v10073_v35 }
 0x39a   :  { %v10011_v1 = vpop.permute.xlu0 %3303  ;;  %v7045_v63 = vcombine.low %v10045_v10, %v10045_v10 }
 0x39b   :  { %v10017_v60 = vpop.permute.xlu1 %3409  ;;  %v3985_v39 = vor.u32 %v3984_v58, %v3980_v41  ;;  %v10062_v58 = vld [vmem:[#allocation2 + $0x94] sm:$0x1] }
 0x39d   :  { %3503 = vrot.lane.b32.xlu0 %v7047_v17, %s8037_s17  ;;  %3425 = vrot.lane.b32.xlu1 %v3394_v32, %s8032_s19  ;;  %v3041_v32 = vld [vmem:[#allocation2 + $0x8c] sm:$0x1] }
 0x39e   :  { %v4036_v16 = vpop.permute.xlu0 %4035  ;;  %v7079_v47 = vcombine.low %v3057_v37, %v3041_v32  ;;  %v10079_v37 = vld [vmem:[#allocation2 + $0x84] sm:$0x1]  ;;  %v7063_v8 = vcombine.low %v10003_v5, %v3041_v32  ;;  %v8011_v32 = vld [vmem:[#allocation2 + $0x18] sm:$0xf] }
 0x39f   :  { %v4372_v53 = vsel %vm2065_vm0, %v4340_v57, %v4036_v16  ;;  %v10030_v38 = vpop.permute.xlu1 %3489  ;;  %v3392_v16 = vrot.slane %v7030_v13, 1 }
 0x3a0   :  { %v4404_v2 = vsel %vm2098_vm1, %v4372_v53, %v9934_v48  ;;  %v4126_v48 = vrot.slane %v7124_v29, 1  ;;  %v3058_v53 = vld [vmem:[#allocation2 + $0x90] sm:$0xe] }
 0x3a1   :  { %3319 = vrot.lane.b32.xlu0 %v3263_v50, %s8035_s24  ;;  %v7129_v45 = vcombine.low %v4404_v2, %v4406_v30  ;;  %3505 = vrot.lane.b32.xlu1 %v7048_v51, %s8037_s17  ;;  %v10059_v50 = vld [vmem:[#allocation2 + $0x80] sm:$0xf]  ;;  %v10064_v51 = vld [vmem:[#allocation2 + $0x88] sm:$0xf]  ;;  %v3761_v2 = vrot.slane %v7079_v47, 1 }
 0x3a2   :  { %v10043_v17 = vpop.permute.xlu0 %3483  ;;  %11607 = vst [vmem:[#allocation5_spill] sm:$0xff] %v10064_v51  ;;  %v7046_v41 = vcombine.low %v10059_v50, %v10059_v50  ;;  %v7016_v13 = vcombine.low %v10064_v51, %v9988_v18  ;;  %v10081_v47 = vld [vmem:[#allocation2 + $0x8c] sm:$0x1]  ;;  %v4171_v51 = vsel %vm1851_vm10, %v8010_v40, %v10011_v1 }
 0x3a3   :  { %v10047_v25 = vpop.permute.xlu1 %4141  ;;  %7515 = vmatprep.mubr.msk.bf16.mxu1 %vm2198_vm2, %v7129_v45  ;;  %v7080_v45 = vcombine.low %v3058_v53, %v10062_v58 }
 0x3a4   :  { %v3295_v15 = vshll.u32 %v7016_v13, 16 }
 0x3a5   :  { %4051 = vrot.lane.b32.xlu0 %v3985_v39, %s8036_s27  ;;  %4153 = vrot.lane.b32.xlu1 %v4126_v48, %s8034_s23  ;;  %v3039_v39 = vld [vmem:[#allocation2 + $0x7c] sm:$0x1]  ;;  %v3055_v48 = vld [vmem:[#allocation2 + $0x78] sm:$0xe]  ;;  %v3762_v55 = vrot.slane %v7080_v45, 1 }
 0x3a6   :  { %v10053_v36 = vpop.permute.xlu0 %3775  ;;  %v7077_v53 = vcombine.low %v3055_v48, %v3039_v39  ;;  %v10101_v45 = vld [vmem:[#allocation2 + $0x84] sm:$0x1]  ;;  %v3297_v1 = vrot.slane %v3295_v15, 1 }
 0x3a7   :  { %v10057_v57 = vpop.permute.xlu1 %4137 }
 0x3a8   :  { %v3759_v48 = vrot.slane %v7077_v53, 1  ;;  %v3293_v53 = vshrl.u32 %v7016_v13, 16 }
 0x3a9   :  { %3499 = vrot.lane.b32.xlu0 %v7045_v63, %s8037_s17  ;;  %3421 = vrot.lane.b32.xlu1 %v3392_v16, %s8032_s19  ;;  %v3056_v63 = vld [vmem:[#allocation2 + $0x80] sm:$0xe] }
 0x3aa   :  { %v10067_v29 = vpop.permute.xlu0 %3855  ;;  %v7078_v18 = vcombine.low %v3056_v63, %v10079_v37  ;;  %v7108_v63 = vcombine.low %v9982_v42, %v10022_v54 }
 0x3ab   :  { %v10069_v30 = vpop.permute.xlu1 %3405 }
 0x3ac   :  { %v3760_v40 = vrot.slane %v7078_v18, 1  ;;  %v3103_v18 = vld [vmem:[#allocation2 + $0x80] sm:$0xe] }
 0x3ad   :  { %3791 = vrot.lane.b32.xlu0 %v3761_v2, %s8038_s18  ;;  %3501 = vrot.lane.b32.xlu1 %v7046_v41, %s8037_s17  ;;  %v7110_v2 = vcombine.low %v9958_v4, %v10081_v47  ;;  %v4216_v4 = vsel %vm1900_vm11, %v4171_v51, %v9922_v28  ;;  %v7093_v28 = vcombine.low %v10099_v14, %v10099_v14  ;;  %v10121_v51 = vld [vmem:[#allocation2 + $0x84] sm:$0x1] }
 0x3ae   :  { %v10084_v16 = vpop.permute.xlu0 %3771  ;;  %v4248_v42 = vsel %vm1933_vm12, %v4216_v4, %v9828_v20  ;;  %v4174_v20 = vsel %vm1851_vm10, %v8011_v32, %v9927_v52  ;;  %v7125_v49 = vcombine.low %v3103_v18, %v10121_v51  ;;  %v7064_v52 = vcombine.low %v10019_v27, %v10062_v58  ;;  %v10139_v32 = vld [vmem:[#allocation2 + $0x94] sm:$0x1] }
 0x3af   :  { %v10088_v7 = vpop.permute.xlu1 %3485  ;;  %v4017_v21 = vshll.u32 %v7110_v2, 16  ;;  %v4280_v4 = vsel %vm1966_vm13, %v4248_v42, %v9943_v23  ;;  %v4218_v23 = vsel %vm1900_vm11, %v4174_v20, %v9839_v19  ;;  %v7111_v27 = vcombine.low %v10073_v35, %v10139_v32 }
 0x3b0   :  { %v4312_v18 = vsel %vm1999_vm14, %v4280_v4, %v9847_v6  ;;  %v4250_v19 = vsel %vm1933_vm12, %v4218_v23, %v9852_v34  ;;  %v3663_v20 = vshll.u32 %v7064_v52, 16  ;;  %v7062_v35 = vcombine.low %v10059_v50, %v10079_v37 }
 0x3b1   :  { %3871 = vrot.lane.b32.xlu0 %v7095_v22, %s8033_s22  ;;  %3793 = vrot.lane.b32.xlu1 %v3762_v55, %s8038_s18  ;;  %v3009_v22 = vld [vmem:[#allocation2 + $0x80] sm:$0xe]  ;;  %v10110_v55 = vld [vmem:[#allocation2 + $0x78] sm:$0xf]  ;;  %v4019_v13 = vrot.slane %v4017_v21, 1  ;;  %v4282_v6 = vsel %vm1966_vm13, %v4250_v19, %v9955_v24 }
 0x3b2   :  { %v7031_v15 = vcombine.low %v3009_v22, %v10101_v45  ;;  %v7014_v5 = vcombine.low %v10110_v55, %v10040_v3  ;;  %v4015_v22 = vshrl.u32 %v7110_v2, 16  ;;  %v7061_v3 = vcombine.low %v10045_v10, %v3039_v39 }
 0x3b3   :  { %v10097_v41 = vpop.permute.xlu0 %3851  ;;  %v10107_v12 = vpop.permute.xlu1 %3777  ;;  %v4127_v10 = vrot.slane %v7125_v49, 1  ;;  %v3654_v39 = vshrl.u32 %v7063_v8, 16  ;;  %v4344_v49 = vsel %vm2032_vm15, %v4312_v18, %v9858_v61  ;;  %v4314_v24 = vsel %vm1999_vm14, %v4282_v6, %v9902_v56 }
 0x3b4   :  { %v3393_v21 = vrot.slane %v7031_v15, 1  ;;  %v3281_v2 = vshll.u32 %v7014_v5, 16  ;;  %v4001_v15 = vshrl.u32 %v7108_v63, 16  ;;  %v3279_v4 = vshrl.u32 %v7014_v5, 16 }
 0x3b5   :  { %3787 = vrot.lane.b32.xlu0 %v3759_v48, %s8038_s18  ;;  %3789 = vrot.lane.b32.xlu1 %v3760_v40, %s8038_s18  ;;  %v4003_v48 = vshll.u32 %v7108_v63, 16  ;;  %v3298_v40 = vor.u32 %v3297_v1, %v3293_v53  ;;  %v4376_v61 = vsel %vm2065_vm0, %v4344_v49, %v9962_v44  ;;  %v4346_v37 = vsel %vm2032_vm15, %v4314_v24, %v9999_v31 }
 0x3b6   :  { %v3649_v5 = vshll.u32 %v7062_v35, 16  ;;  %v3640_v56 = vshrl.u32 %v7061_v3, 16  ;;  %v3647_v49 = vshrl.u32 %v7062_v35, 16 }
 0x3b7   :  { %v10116_v54 = vpop.permute.xlu0 %4143  ;;  %v10123_v9 = vpop.permute.xlu1 %3773  ;;  %v4005_v53 = vrot.slane %v4003_v48, 1 }
 0x3b8   :  { %11608 = vst [vmem:[#allocation6_spill] sm:$0xff] %v10116_v54  ;;  %v3656_v54 = vshll.u32 %v7063_v8, 16  ;;  %v3283_v8 = vrot.slane %v3281_v2, 1  ;;  %v3665_v2 = vrot.slane %v3663_v20, 1 }
 0x3b9   :  { %3867 = vrot.lane.b32.xlu0 %v7093_v28, %s8033_s22  ;;  %3329 = vrot.lane.b32.xlu1 %v3298_v40, %s8035_s24  ;;  %v4020_v28 = vor.u32 %v4019_v13, %v4015_v22  ;;  %v4006_v40 = vor.u32 %v4005_v53, %v4001_v15  ;;  %v3642_v13 = vshll.u32 %v7061_v3, 16  ;;  %v4024_v22 = vshll.u32 %v7111_v27, 16 }
 0x3ba   :  { %v3658_v48 = vrot.slane %v3656_v54, 1  ;;  %v10161_v54 = vld [vmem:[#allocation2 + $0x80] sm:$0xf]  ;;  %v4408_v15 = vsel %vm2098_vm1, %v4376_v61, %v9897_v11  ;;  %v3651_v11 = vrot.slane %v3649_v5, 1 }
 0x3bb   :  { %v10134_v1 = vpop.permute.xlu0 %3407  ;;  %v3314_v42 = vpop.permute.xlu1 %3313  ;;  %v3644_v53 = vrot.slane %v3642_v13, 1  ;;  %v7015_v50 = vcombine.low %v10161_v54, %v10101_v45  ;;  %v3661_v45 = vshrl.u32 %v7064_v52, 16  ;;  %v8012_v13 = vld [vmem:[#allocation2 + $0x38] sm:$0xf]  ;;  %v3104_v52 = vld [vmem:[#allocation2 + $0x88] sm:$0xe] }
 0x3bc   :  { %v3659_v34 = vor.u32 %v3658_v48, %v3654_v39  ;;  %v4186_v3 = vsel %vm1851_vm10, %v8012_v13, %v3314_v42 }
 0x3bd   :  { %3423 = vrot.lane.b32.xlu0 %v3393_v21, %s8032_s19  ;;  %4061 = vrot.lane.b32.xlu1 %v4020_v28, %s8036_s27  ;;  %v3284_v28 = vor.u32 %v3283_v8, %v3279_v4  ;;  %v3645_v48 = vor.u32 %v3644_v53, %v3640_v56  ;;  %v3288_v19 = vshll.u32 %v7015_v50, 16  ;;  %v3666_v6 = vor.u32 %v3665_v2, %v3661_v45  ;;  %v3106_v4 = vld [vmem:[#allocation2 + $0x98] sm:$0xe] }
 0x3be   :  { %v4226_v8 = vsel %vm1900_vm11, %v4186_v3, %v10017_v60  ;;  %v3652_v53 = vor.u32 %v3651_v11, %v3647_v49  ;;  %v3286_v35 = vshrl.u32 %v7015_v50, 16 }
 0x3bf   :  { %v10151_v58 = vpop.permute.xlu0 %4139  ;;  %v10155_v63 = vpop.permute.xlu1 %4045 }
 0x3c1   :  { %4155 = vrot.lane.b32.xlu0 %v4127_v10, %s8034_s23  ;;  %4057 = vrot.lane.b32.xlu1 %v4006_v40, %s8036_s27  ;;  %v4026_v10 = vrot.slane %v4024_v22, 1  ;;  %v7109_v40 = vcombine.low %v10099_v14, %v10121_v51  ;;  %v3290_v51 = vrot.slane %v3288_v19, 1  ;;  %v8013_v22 = vld [vmem:[#allocation2 + $0x20] sm:$0xf] }
 0x3c2   :  { %v4177_v24 = vsel %vm1851_vm10, %v8013_v22, %v9976_v33 }
 0x3c3   :  { %v10167_v21 = vpop.permute.xlu0 %3679  ;;  %v4042_v23 = vpop.permute.xlu1 %4041  ;;  %v4010_v42 = vshll.u32 %v7109_v40, 16  ;;  %v4220_v33 = vsel %vm1900_vm11, %v4177_v24, %v9912_v26  ;;  %v4008_v26 = vshrl.u32 %v7109_v40, 16 }
 0x3c4   :  { %v4378_v18 = vsel %vm2065_vm0, %v4346_v37, %v4042_v23  ;;  %v8014_v37 = vld [vmem:[#allocation2 + $0x28] sm:$0xf]  ;;  %v4258_v23 = vsel %vm1933_vm12, %v4226_v8, %v10030_v38  ;;  %v4252_v50 = vsel %vm1933_vm12, %v4220_v33, %v10043_v17  ;;  %v3105_v38 = vld [vmem:[#allocation2 + $0x90] sm:$0xe] }
 0x3c5   :  { %3695 = vrot.lane.b32.xlu0 %v3659_v34, %s8039_s20  ;;  %v4410_v44 = vsel %vm2098_vm1, %v4378_v18, %v10057_v57  ;;  %3325 = vrot.lane.b32.xlu1 %v3284_v28, %s8035_s24  ;;  %v4022_v57 = vshrl.u32 %v7111_v27, 16  ;;  %v7126_v27 = vcombine.low %v3104_v52, %v10081_v47  ;;  %v8015_v28 = vld [vmem:[#allocation2 + $0x9c] sm:$0x1]  ;;  %v3291_v47 = vor.u32 %v3290_v51, %v3286_v35  ;;  %v11610_v51 = vld [vmem:[#allocation35_spill] sm:$0xff] }
 0x3c6   :  { %v7130_v31 = vcombine.low %v4408_v15, %v4410_v44  ;;  %v7128_v2 = vcombine.low %v3106_v4, %v8015_v28  ;;  %v4012_v56 = vrot.slane %v4010_v42, 1  ;;  %v7127_v13 = vcombine.low %v3105_v38, %v10139_v32  ;;  %v11611_v38 = vld [vmem:[#allocation4_spill] sm:$0xff] }
 0x3c7   :  { %v3676_v39 = vpop.permute.xlu0 %3675  ;;  %v3310_v20 = vpop.permute.xlu1 %3309  ;;  %v4027_v14 = vor.u32 %v4026_v10, %v4022_v57  ;;  %v4128_v44 = vrot.slane %v7126_v27, 1 }
 0x3c8   :  { %7516 = vmatmul.mubr.msk.bf16.vlgmr.msra.gmra.mrb[28].mxu1 %vm2198_vm2, %v7130_v31  ;;  %v4180_v60 = vsel %vm1851_vm10, %v8014_v37, %v3310_v20  ;;  %v4284_v45 = vsel %vm1966_vm13, %v4252_v50, %v3676_v39  ;;  %v4013_v17 = vor.u32 %v4012_v56, %v4008_v26  ;;  %v4129_v11 = vrot.slane %v7127_v13, 1 }
 0x3c9   :  { %3691 = vrot.lane.b32.xlu0 %v3645_v48, %s8039_s20  ;;  %3697 = vrot.lane.b32.xlu1 %v3666_v6, %s8039_s20  ;;  %v4222_v10 = vsel %vm1900_vm11, %v4180_v60, %v10069_v30  ;;  %v4130_v48 = vrot.slane %v7128_v2, 1  ;;  %v4316_v3 = vsel %vm1999_vm14, %v4284_v45, %v10084_v16 }
 0x3ca   :  { %v4254_v30 = vsel %vm1933_vm12, %v4222_v10, %v10088_v7 }
 0x3cb   :  { %v10190_v34 = vpop.permute.xlu0 %4047  ;;  %v3682_v61 = vpop.permute.xlu1 %3681 }
 0x3cc   :  { %v4290_v5 = vsel %vm1966_vm13, %v4258_v23, %v3682_v61 }
 0x3cd   :  { %4063 = vrot.lane.b32.xlu0 %v4027_v14, %s8036_s27  ;;  %3693 = vrot.lane.b32.xlu1 %v3652_v53, %s8039_s20  ;;  %v4322_v31 = vsel %vm1999_vm14, %v4290_v5, %v10107_v12  ;;  %v11609_v14 = vld [vmem:[#allocation6_spill] sm:$0xff] }
 0x3ce   :  { %v4354_v12 = vsel %vm2032_vm15, %v4322_v31, %v9678_v43 }
 0x3cf   :  { %v10203_v18 = vpop.permute.xlu0 %3495  ;;  %v10207_v15 = vpop.permute.xlu1 %3861  ;;  %v4386_v57 = vsel %vm2065_vm0, %v4354_v12, %v9724_v0 }
 0x3d0   :  { %v4418_v42 = vsel %vm2098_vm1, %v4386_v57, %v11610_v51 }
 0x3d1   :  { %3327 = vrot.lane.b32.xlu0 %v3291_v47, %s8035_s24  ;;  %4157 = vrot.lane.b32.xlu1 %v4128_v44, %s8034_s23 }
 0x3d3   :  { %v3312_v19 = vpop.permute.xlu0 %3311  ;;  %v3678_v40 = vpop.permute.xlu1 %3677 }
 0x3d4   :  { %v4183_v39 = vsel %vm1851_vm10, %v9756_v62, %v3312_v19  ;;  %v4286_v6 = vsel %vm1966_vm13, %v4254_v30, %v3678_v40  ;;  %v8016_v19 = vld [vmem:[#allocation2 + $0x50] sm:$0xf]  ;;  %v11613_v40 = vld [vmem:[#allocation19_spill] sm:$0xff] }
 0x3d5   :  { %v4224_v20 = vsel %vm1900_vm11, %v4183_v39, %v10134_v1  ;;  %4059 = vrot.lane.b32.xlu0 %v4013_v17, %s8036_s27  ;;  %v4318_v62 = vsel %vm1999_vm14, %v4286_v6, %v10123_v9  ;;  %4161 = vrot.lane.b32.xlu1 %v4130_v48, %s8034_s23  ;;  %v4348_v1 = vsel %vm2032_vm15, %v4316_v3, %v10097_v41  ;;  %v11612_v17 = vld [vmem:[#allocation22_spill] sm:$0xff] }
 0x3d6   :  { %v4256_v16 = vsel %vm1933_vm12, %v4224_v20, %v9991_v46  ;;  %v4350_v43 = vsel %vm2032_vm15, %v4318_v62, %v9964_v59  ;;  %v4189_v13 = vsel %vm1851_vm10, %v8016_v19, %v11612_v17 }
 0x3d7   :  { %v4288_v7 = vsel %vm1966_vm13, %v4256_v16, %v10167_v21  ;;  %v4044_v32 = vpop.permute.xlu0 %4043  ;;  %v4382_v52 = vsel %vm2065_vm0, %v4350_v43, %v10155_v63  ;;  %v10247_v21 = vpop.permute.xlu1 %3417  ;;  %v4228_v12 = vsel %vm1900_vm11, %v4189_v13, %v11613_v40  ;;  %v5019_v13 = vld [vmem:[#allocation2 + $0x4] sm:$0x1]  ;;  %v10350_v40 = vld [vmem:[#allocation2 + $0x54] sm:$0x1] }
 0x3d8   :  { %v4320_v46 = vsel %vm1999_vm14, %v4288_v7, %v10053_v36  ;;  %v4380_v9 = vsel %vm2065_vm0, %v4348_v1, %v4044_v32  ;;  %v4414_v41 = vsel %vm2098_vm1, %v4382_v52, %v10047_v25 }
 0x3d9   :  { %v4412_v59 = vsel %vm2098_vm1, %v4380_v9, %v10151_v58  ;;  %4159 = vrot.lane.b32.xlu0 %v4129_v11, %s8034_s23  ;;  %v4352_v0 = vsel %vm2032_vm15, %v4320_v46, %v10067_v29 }
 0x3da   :  { %v7131_v49 = vcombine.low %v4412_v59, %v4414_v41  ;;  %v4384_v36 = vsel %vm2065_vm0, %v4352_v0, %v10190_v34 }
 0x3db   :  { %v3492_v8 = vpop.permute.xlu0 %3491  ;;  %v4416_v63 = vsel %vm2098_vm1, %v4384_v36, %v11609_v14  ;;  %v10262_v58 = vpop.permute.xlu1 %3497 }
 0x3dc   :  { %7519 = vmatprep.mubr.msk.bf16.mxu1 %vm2198_vm2, %v7131_v49  ;;  %v7132_v25 = vcombine.low %v4416_v63, %v4418_v42  ;;  %v4260_v6 = vsel %vm1933_vm12, %v4228_v12, %v3492_v8  ;;  %v11614_v63 = vld [vmem:[#allocation32_spill] sm:$0xff] }
 0x3de   :  { %7520 = vmatmul.mubr.msk.bf16.gmra.mrb[32].mxu1 %vm2198_vm2, %v7132_v25 }
 0x3df   :  { %v10266_v4 = vpop.permute.xlu0 %3783  ;;  %v4150_v29 = vpop.permute.xlu1 %4149 }
 0x3e3   :  { %v10268_v22 = vpop.permute.xlu0 %3863  ;;  %v3414_v34 = vpop.permute.xlu1 %3413 }
 0x3e7   :  { %v3780_v24 = vpop.permute.xlu0 %3779  ;;  %v3494_v61 = vpop.permute.xlu1 %3493 }
 0x3eb   :  { %v3860_v53 = vpop.permute.xlu0 %3859  ;;  %v10270_v27 = vpop.permute.xlu1 %3785 }
 0x3ef   :  { %v10272_v35 = vpop.permute.xlu0 %4151  ;;  %v3782_v37 = vpop.permute.xlu1 %3781 }
 0x3f3   :  { %v10274_v60 = vpop.permute.xlu0 %3419  ;;  %v3322_v23 = vpop.permute.xlu1 %3321 }
 0x3f7   :  { %v3416_v28 = vpop.permute.xlu0 %3415  ;;  %v4054_v2 = vpop.permute.xlu1 %4053 }
 0x3fb   :  { %v4148_v33 = vpop.permute.xlu0 %4147  ;;  %v3318_v5 = vpop.permute.xlu1 %3317 }
 0x3fc   :  { %v4192_v45 = vsel %vm1851_vm10, %v11611_v38, %v3318_v5 }
 0x3fd   :  { %v4230_v31 = vsel %vm1900_vm11, %v4192_v45, %v3414_v34  ;;  %v5106_v45 = vld [vmem:[#allocation2 + $0x48] sm:$0xf] }
 0x3fe   :  { %v4262_v3 = vsel %vm1933_vm12, %v4230_v31, %v3494_v61  ;;  %v5003_v31 = vld [vmem:[#allocation2] sm:$0xf] }
 0x3ff   :  { %v3688_v47 = vpop.permute.xlu0 %3687  ;;  %v3690_v56 = vpop.permute.xlu1 %3689 }
 0x403   :  { %v3684_v50 = vpop.permute.xlu0 %3683  ;;  %v10276_v44 = vpop.permute.xlu1 %3869 }
 0x404   :  { %v4292_v7 = vsel %vm1966_vm13, %v4260_v6, %v3684_v50 }
 0x405   :  { %v4324_v32 = vsel %vm1999_vm14, %v4292_v7, %v3780_v24  ;;  %v5130_v7 = vld [vmem:[#allocation2 + $0x9c] sm:$0x1] }
 0x406   :  { %v4356_v46 = vsel %vm2032_vm15, %v4324_v32, %v3860_v53  ;;  %v11615_v53 = vld [vmem:[#allocation21_spill] sm:$0xff] }
 0x407   :  { %v10280_v10 = vpop.permute.xlu0 %4055  ;;  %v3686_v26 = vpop.permute.xlu1 %3685 }
 0x408   :  { %v4294_v30 = vsel %vm1966_vm13, %v4262_v3, %v3686_v26  ;;  %v5122_v26 = vld [vmem:[#allocation2 + $0x4c] sm:$0x1]  ;;  %v5138_v3 = vld [vmem:[#allocation2 + $0x48] sm:$0xe] }
 0x409   :  { %v4326_v16 = vsel %vm1999_vm14, %v4294_v30, %v3782_v37  ;;  %v4198_v37 = vsel %vm1851_vm10, %v11615_v53, %v3322_v23  ;;  %v7282_v17 = vcombine.low %v5106_v45, %v5122_v26  ;;  %v5011_v30 = vld [vmem:[#allocation2 + $0x50] sm:$0xf] }
 0x40a   :  { %v4358_v43 = vsel %vm2032_vm15, %v4326_v16, %v10207_v15  ;;  %v4234_v5 = vsel %vm1900_vm11, %v4198_v37, %v10247_v21  ;;  %v7266_v21 = vcombine.low %v5106_v45, %v5106_v45  ;;  %v5035_v16 = vld [vmem:[#allocation2] sm:$0xe] }
 0x40b   :  { %v10283_v48 = vpop.permute.xlu0 %3323  ;;  %v10288_v39 = vpop.permute.xlu1 %3865  ;;  %v4390_v57 = vsel %vm2065_vm0, %v4358_v43, %v4054_v2  ;;  %v6013_v12 = vshrl.u32 %v7282_v17, 16  ;;  %v6015_v6 = vshll.u32 %v7282_v17, 16 }
 0x40c   :  { %v4422_v0 = vsel %vm2098_vm1, %v4390_v57, %v4150_v29  ;;  %5897 = vrot.lane.b32.xlu1 %v7266_v21, %s8033_s22  ;;  %v11617_v21 = vld [vmem:[#allocation7_spill] sm:$0xff] }
 0x40d   :  { %v4201_v17 = vsel %vm1851_vm10, %v11617_v21, %v10283_v48 }
 0x40e   :  { %v4236_v48 = vsel %vm1900_vm11, %v4201_v17, %v10274_v60 }
 0x40f   :  { %v10293_v20 = vpop.permute.xlu0 %3503  ;;  %v10297_v62 = vpop.permute.xlu1 %3425 }
 0x413   :  { %v3320_v1 = vpop.permute.xlu0 %3319  ;;  %v10303_v11 = vpop.permute.xlu1 %3505 }
 0x414   :  { %v4195_v51 = vsel %vm1851_vm10, %v11614_v63, %v3320_v1 }
 0x415   :  { %v4232_v25 = vsel %vm1900_vm11, %v4195_v51, %v3416_v28  ;;  %v7195_v51 = vcombine.low %v5035_v16, %v5019_v13 }
 0x416   :  { %v4264_v29 = vsel %vm1933_vm12, %v4232_v25, %v10203_v18  ;;  %v4266_v18 = vsel %vm1933_vm12, %v4234_v5, %v10262_v58  ;;  %v5114_v58 = vld [vmem:[#allocation2 + $0x98] sm:$0xf] }
 0x417   :  { %v4052_v9 = vpop.permute.xlu0 %4051  ;;  %v4154_v59 = vpop.permute.xlu1 %4153  ;;  %v4296_v2 = vsel %vm1966_vm13, %v4264_v29, %v3688_v47  ;;  %v4298_v23 = vsel %vm1966_vm13, %v4266_v18, %v3690_v56  ;;  %v7187_v56 = vcombine.low %v5011_v30, %v10350_v40  ;;  %v5419_v18 = vrot.slane %v7195_v51, 1 }
 0x418   :  { %v4388_v52 = vsel %vm2065_vm0, %v4356_v46, %v4052_v9  ;;  %v4328_v50 = vsel %vm1999_vm14, %v4296_v2, %v10266_v4  ;;  %v7179_v4 = vcombine.low %v5003_v31, %v5019_v13  ;;  %v11616_v31 = vld [vmem:[#allocation5_spill] sm:$0xff] }
 0x419   :  { %v4420_v41 = vsel %vm2098_vm1, %v4388_v52, %v4148_v33  ;;  %v4360_v19 = vsel %vm2032_vm15, %v4328_v50, %v10268_v22  ;;  %v4330_v22 = vsel %vm1999_vm14, %v4298_v23, %v10270_v27  ;;  %v6017_v52 = vrot.slane %v6015_v6, 1 }
 0x41a   :  { %v7133_v49 = vcombine.low %v4420_v41, %v4422_v0  ;;  %v4392_v1 = vsel %vm2065_vm0, %v4360_v19, %v10280_v10  ;;  %v5228_v32 = vshrl.u32 %v7179_v4, 16  ;;  %v5230_v57 = vshll.u32 %v7179_v4, 16 }
 0x41b   :  { %v10310_v36 = vpop.permute.xlu0 %3499  ;;  %v10312_v15 = vpop.permute.xlu1 %3421  ;;  %v4362_v46 = vsel %vm2032_vm15, %v4330_v22, %v10288_v39  ;;  %v7298_v41 = vcombine.low %v5138_v3, %v5122_v26  ;;  %v7290_v0 = vcombine.low %v5114_v58, %v5130_v7  ;;  %v5286_v25 = vshll.u32 %v7187_v56, 16 }
 0x41c   :  { %7523 = vmatprep.mubr.msk.bf16.mxu1 %vm2198_vm2, %v7133_v49  ;;  %v5232_v63 = vrot.slane %v5230_v57, 1  ;;  %v4424_v27 = vsel %vm2098_vm1, %v4392_v1, %v10272_v35  ;;  %v6018_v10 = vor.u32 %v6017_v52, %v6013_v12  ;;  %v5284_v45 = vshrl.u32 %v7187_v56, 16 }
 0x41d   :  { %v6162_v39 = vrot.slane %v7298_v41, 1  ;;  %v6071_v50 = vshll.u32 %v7290_v0, 16  ;;  %v5288_v26 = vrot.slane %v5286_v25, 1  ;;  %v7274_v3 = vcombine.low %v5114_v58, %v5114_v58 }
 0x41e   :  { %v5233_v2 = vor.u32 %v5232_v63, %v5228_v32  ;;  %6089 = vrot.lane.b32.xlu1 %v6018_v10, %s8036_s27  ;;  %v6069_v4 = vshrl.u32 %v7290_v0, 16  ;;  %v4268_v58 = vsel %vm1933_vm12, %v4236_v48, %v10310_v36 }
 0x41f   :  { %v10315_v8 = vpop.permute.xlu0 %3791  ;;  %v10317_v14 = vpop.permute.xlu1 %3501  ;;  %v6073_v30 = vrot.slane %v6071_v50, 1 }
 0x420   :  { %5339 = vrot.lane.b32.xlu0 %v5233_v2, %s8035_s24  ;;  %v10442_v2 = vld [vmem:[%s11431_s5 + $0x2] ss:$0 sm:$0xff] }
 0x422   :  { %6185 = vrot.lane.b32.xlu1 %v6162_v39, %s8034_s23 }
 0x423   :  { %v10321_v42 = vpop.permute.xlu0 %3871  ;;  %v10324_v34 = vpop.permute.xlu1 %3793 }
 0x424   :  { %5435 = vrot.lane.b32.xlu0 %v5419_v18, %s8032_s19 }
 0x426   :  { %5913 = vrot.lane.b32.xlu1 %v7274_v3, %s8033_s22 }
 0x427   :  { %v10328_v24 = vpop.permute.xlu0 %3787  ;;  %v10330_v61 = vpop.permute.xlu1 %3789 }
 0x42b   :  { %v10335_v33 = vpop.permute.xlu0 %3867  ;;  %v3330_v28 = vpop.permute.xlu1 %3329 }
 0x42c   :  { %v4210_v23 = vsel %vm1851_vm10, %v11616_v31, %v3330_v28 }
 0x42d   :  { %v4242_v28 = vsel %vm1900_vm11, %v4210_v23, %v10297_v62 }
 0x42f   :  { %v10343_v38 = vpop.permute.xlu0 %3423  ;;  %v10346_v47 = vpop.permute.xlu1 %4061 }
 0x433   :  { %v10356_v43 = vpop.permute.xlu0 %4155  ;;  %v4058_v9 = vpop.permute.xlu1 %4057 }
 0x434   :  { %v4394_v49 = vsel %vm2065_vm0, %v4362_v46, %v4058_v9 }
 0x435   :  { %v4426_v29 = vsel %vm2098_vm1, %v4394_v49, %v4154_v59  ;;  %v5043_v59 = vld [vmem:[#allocation2 + $0x50] sm:$0xe] }
 0x436   :  { %v7134_v53 = vcombine.low %v4424_v27, %v4426_v29  ;;  %v7203_v6 = vcombine.low %v5043_v59, %v10350_v40  ;;  %v4274_v40 = vsel %vm1933_vm12, %v4242_v28, %v10303_v11  ;;  %v11619_v27 = vld [vmem:[#allocation26_spill] sm:$0xff] }
 0x437   :  { %v3696_v37 = vpop.permute.xlu0 %3695  ;;  %v3326_v5 = vpop.permute.xlu1 %3325 }
 0x438   :  { %7524 = vmatmul.mubr.msk.bf16.gmra.mrb[36].mxu1 %vm2198_vm2, %v7134_v53  ;;  %v4204_v35 = vsel %vm1851_vm10, %v10110_v55, %v3326_v5  ;;  %v5289_v55 = vor.u32 %v5288_v26, %v5284_v45  ;;  %v5427_v60 = vrot.slane %v7203_v6, 1 }
 0x439   :  { %v4238_v12 = vsel %vm1900_vm11, %v4204_v35, %v10312_v15  ;;  %v6074_v15 = vor.u32 %v6073_v30, %v6069_v4 }
 0x43a   :  { %v4270_v56 = vsel %vm1933_vm12, %v4238_v12, %v10317_v14  ;;  %5355 = vrot.lane.b32.xlu0 %v5289_v55, %s8035_s24 }
 0x43b   :  { %v3692_v19 = vpop.permute.xlu0 %3691  ;;  %v3698_v13 = vpop.permute.xlu1 %3697  ;;  %6105 = vrot.lane.b32.xlu1 %v6074_v15, %s8036_s27 }
 0x43c   :  { %v4300_v22 = vsel %vm1966_vm13, %v4268_v58, %v3692_v19  ;;  %v4306_v1 = vsel %vm1966_vm13, %v4274_v40, %v3698_v13 }
 0x43d   :  { %v4332_v57 = vsel %vm1999_vm14, %v4300_v22, %v10328_v24  ;;  %v4338_v9 = vsel %vm1999_vm14, %v4306_v1, %v10324_v34  ;;  %v11618_v34 = vld [vmem:[#allocation40_spill] sm:$0xff] }
 0x43e   :  { %5451 = vrot.lane.b32.xlu0 %v5427_v60, %s8032_s19  ;;  %v4370_v49 = vsel %vm2032_vm15, %v4338_v9, %v11618_v34 }
 0x43f   :  { %v4064_v16 = vpop.permute.xlu0 %4063  ;;  %v3694_v7 = vpop.permute.xlu1 %3693  ;;  %v4402_v29 = vsel %vm2065_vm0, %v4370_v49, %v11619_v27  ;;  %v4925_v49 = vld [vmem:[#allocation2 + $0x20] sm:$0xf] }
 0x440   :  { %v4302_v62 = vsel %vm1966_vm13, %v4270_v56, %v3694_v7 }
 0x441   :  { %v4334_v36 = vsel %vm1999_vm14, %v4302_v62, %v10330_v61  ;;  %v4919_v62 = vld [vmem:[#allocation2 + $0x18] sm:$0xf] }
 0x442   :  { %v4366_v32 = vsel %vm2032_vm15, %v4334_v36, %v10276_v44  ;;  %v4922_v36 = vld [vmem:[#allocation2 + $0x1c] sm:$0x1] }
 0x443   :  { %v3328_v14 = vpop.permute.xlu0 %3327  ;;  %v4158_v46 = vpop.permute.xlu1 %4157  ;;  %v4398_v24 = vsel %vm2065_vm0, %v4366_v32, %v10346_v47 }
 0x444   :  { %v4207_v11 = vsel %vm1851_vm10, %v10161_v54, %v3328_v14  ;;  %v4364_v54 = vsel %vm2032_vm15, %v4332_v57, %v10335_v33  ;;  %v4430_v63 = vsel %vm2098_vm1, %v4398_v24, %v4158_v46  ;;  %v4910_v24 = vld [vmem:[#allocation2 + $0xc] sm:$0x1] }
 0x445   :  { %v4240_v52 = vsel %vm1900_vm11, %v4207_v11, %v10343_v38 }
 0x446   :  { %v4272_v44 = vsel %vm1933_vm12, %v4240_v52, %v10293_v20 }
 0x447   :  { %v4304_v61 = vsel %vm1966_vm13, %v4272_v44, %v3696_v37  ;;  %v4060_v41 = vpop.permute.xlu0 %4059  ;;  %v4162_v47 = vpop.permute.xlu1 %4161 }
 0x448   :  { %v4396_v0 = vsel %vm2065_vm0, %v4364_v54, %v4060_v41  ;;  %v4336_v38 = vsel %vm1999_vm14, %v4304_v61, %v10315_v8  ;;  %v4434_v53 = vsel %vm2098_vm1, %v4402_v29, %v4162_v47  ;;  %v8017_v41 = vld [vmem:[#allocation2 + $0x8] sm:$0xf] }
 0x449   :  { %v4428_v20 = vsel %vm2098_vm1, %v4396_v0, %v10356_v43  ;;  %v4368_v51 = vsel %vm2032_vm15, %v4336_v38, %v10321_v42  ;;  %v10437_v42 = vld [vmem:[%s11430_s4 + $0x2] ss:$0 sm:$0xff]  ;;  %v4928_v38 = vld [vmem:[#allocation2 + $0x24] sm:$0x1] }
 0x44a   :  { %v7135_v25 = vcombine.low %v4428_v20, %v4430_v63  ;;  %v4400_v33 = vsel %vm2065_vm0, %v4368_v51, %v4064_v16 }
 0x44b   :  { %v4160_v10 = vpop.permute.xlu0 %4159 }
 0x44c   :  { %v4432_v8 = vsel %vm2098_vm1, %v4400_v33, %v4160_v10  ;;  %7527 = vmatprep.mubr.msk.bf16.mxu1 %vm2198_vm2, %v7135_v25  ;;  %v4913_v25 = vld [vmem:[#allocation2 + $0x10] sm:$0xf]  ;;  %v4916_v33 = vld [vmem:[#allocation2 + $0x14] sm:$0x1] }
 0x44d   :  { %v7136_v37 = vcombine.low %v4432_v8, %v4434_v53 }
 0x44f   :  { %7528 = vmatmul.mubr.msk.bf16.gmra.mrb[40].mxu1 %vm2198_vm2, %v7136_v37 }
 0x49b   :  { %v7517_v43 = vpop.f32.mrb[28].mxu1 }
 0x49c   :  { %v4636_v5 = vmul.f32 %v7517_v43, %v10437_v42  ;;  %v4563_v39 = vpop.f32.mrb[29].mxu1 }
 0x49d   :  { %v4634_v50 = vmul.f32 %v10437_v42, %v4563_v39  ;;  %v7518_v18 = vpop.f32.mrb[30].mxu1 }
 0x49e   :  { %v4660_v45 = vadd.f32 %v10442_v2, %v4636_v5  ;;  %v4637_v26 = vmul.f32 %v7518_v18, %v10437_v42  ;;  %v4566_v35 = vpop.f32.mrb[31].mxu1 }
 0x49f   :  { %v4658_v59 = vadd.f32 %v10442_v2, %v4634_v50  ;;  %v4635_v31 = vmul.f32 %v10437_v42, %v4566_v35 }
 0x4a0   :  { %v4676_v23 = vmax.f32 %v4660_v45, 0.0  ;;  %v4661_v19 = vadd.f32 %v10442_v2, %v4637_v26 }
 0x4a1   :  { %v4674_v21 = vmax.f32 %v4658_v59, 0.0  ;;  %v4659_v17 = vadd.f32 %v10442_v2, %v4635_v31 }
 0x4a2   :  { %v7366_v13 = vpack.c.bf16 %v4676_v23, %v4676_v23  ;;  %v4677_v3 = vmax.f32 %v4661_v19, 0.0 }
 0x4a3   :  { %v7364_v4 = vpack.c.bf16 %v4674_v21, %v4674_v21  ;;  %v4675_v30 = vmax.f32 %v4659_v17, 0.0 }
 0x4a4   :  { %v4765_v12 = vshrl.u32 %v7366_v13, 16  ;;  %v7367_v55 = vpack.c.bf16 %v4677_v3, %v4677_v3  ;;  %v4768_v16 = vshll.u32 %v7366_v13, 16 }
 0x4a5   :  { %v4749_v6 = vshrl.u32 %v7364_v4, 16  ;;  %v7365_v28 = vpack.c.bf16 %v4675_v30, %v4675_v30  ;;  %v4752_v7 = vshll.u32 %v7364_v4, 16 }
 0x4a6   :  { %v4767_v48 = vrot.slane %v4765_v12, 7  ;;  %v4773_v58 = vshrl.u32 %v7367_v55, 16  ;;  %v4776_v1 = vshll.u32 %v7367_v55, 16 }
 0x4a7   :  { %v4751_v56 = vrot.slane %v4749_v6, 7  ;;  %v4757_v15 = vshrl.u32 %v7365_v28, 16  ;;  %v4760_v11 = vshll.u32 %v7365_v28, 16 }
 0x4a8   :  { %v4770_v22 = vor.u32 %v4768_v16, %v4767_v48  ;;  %v4771_v40 = vrot.slane %v4767_v48, 4  ;;  %v4775_v60 = vrot.slane %v4773_v58, 7 }
 0x4a9   :  { %v4754_v14 = vor.u32 %v4752_v7, %v4751_v56  ;;  %v4755_v32 = vrot.slane %v4751_v56, 4  ;;  %v4759_v57 = vrot.slane %v4757_v15, 7 }
 0x4aa   :  { %v4920_v9 = vsel %vm8251_vm7, %v4770_v22, %v4919_v62  ;;  %v4923_v44 = vsel %vm8259_vm8, %v4771_v40, %v4922_v36  ;;  %v4778_v61 = vor.u32 %v4776_v1, %v4775_v60  ;;  %v4779_v54 = vrot.slane %v4775_v60, 4 }
 0x4ab   :  { %4921 = vst [vmem:[#allocation2 + $0x18] sm:$0xf] %v4920_v9  ;;  %4924 = vst [vmem:[#allocation2 + $0x1c] sm:$0x1] %v4923_v44  ;;  %v4908_v0 = vsel %vm8251_vm7, %v4754_v14, %v8017_v41  ;;  %v4911_v34 = vsel %vm8259_vm8, %v4755_v32, %v4910_v24  ;;  %v4762_v63 = vor.u32 %v4760_v11, %v4759_v57  ;;  %v4763_v20 = vrot.slane %v4759_v57, 4 }
 0x4ac   :  { %4912 = vst [vmem:[#allocation2 + $0xc] sm:$0x1] %v4911_v34  ;;  %4909 = vst [vmem:[#allocation2 + $0x8] sm:$0xf] %v4908_v0  ;;  %v4926_v47 = vsel %vm8251_vm7, %v4778_v61, %v4925_v49  ;;  %v4929_v51 = vsel %vm8259_vm8, %v4779_v54, %v4928_v38  ;;  %v4943_v34 = vld [vmem:[#allocation2 + $0x38] sm:$0xf] }
 0x4ad   :  { %4927 = vst [vmem:[#allocation2 + $0x20] sm:$0xf] %v4926_v47  ;;  %4930 = vst [vmem:[#allocation2 + $0x24] sm:$0x1] %v4929_v51  ;;  %v4914_v27 = vsel %vm8251_vm7, %v4762_v63, %v4913_v25  ;;  %v4917_v29 = vsel %vm8259_vm8, %v4763_v20, %v4916_v33  ;;  %v4946_v25 = vld [vmem:[#allocation2 + $0x3c] sm:$0x1] }
 0x4ae   :  { %4915 = vst [vmem:[#allocation2 + $0x10] sm:$0xf] %v4914_v27  ;;  %4918 = vst [vmem:[#allocation2 + $0x14] sm:$0x1] %v4917_v29 }
 0x4b1   :  { %v7521_v10 = vpop.f32.mrb[32].mxu1 }
 0x4b2   :  { %v4640_v53 = vmul.f32 %v7521_v10, %v10437_v42  ;;  %v4579_v8 = vpop.f32.mrb[33].mxu1  ;;  %v10470_v5 = vld [vmem:[#allocation2 + $0x18] sm:$0xf]  ;;  %v10480_v59 = vld [vmem:[#allocation2 + $0x1c] sm:$0x1] }
 0x4b3   :  { %v4638_v37 = vmul.f32 %v10437_v42, %v4579_v8  ;;  %v7522_v43 = vpop.f32.mrb[34].mxu1  ;;  %v10472_v39 = vld [vmem:[#allocation2 + $0x18] sm:$0xf]  ;;  %v7260_v26 = vcombine.low %v10470_v5, %v10470_v5  ;;  %v10485_v17 = vld [vmem:[#allocation2 + $0x8] sm:$0xf] }
 0x4b4   :  { %v4664_v50 = vadd.f32 %v10442_v2, %v4640_v53  ;;  %v4641_v18 = vmul.f32 %v7522_v43, %v10437_v42  ;;  %v4582_v45 = vpop.f32.mrb[35].mxu1  ;;  %v7213_v35 = vcombine.low %v10472_v39, %v10472_v39  ;;  %v5038_v31 = vld [vmem:[#allocation2 + $0x18] sm:$0xe]  ;;  %v10487_v13 = vld [vmem:[#allocation2 + $0x1c] sm:$0x1]  ;;  %v7211_v6 = vcombine.low %v10485_v17, %v10485_v17 }
 0x4b5   :  { %v4662_v23 = vadd.f32 %v10442_v2, %v4638_v37  ;;  %v4639_v19 = vmul.f32 %v10437_v42, %v4582_v45  ;;  %v7198_v21 = vcombine.low %v5038_v31, %v10480_v59  ;;  %5885 = vrot.lane.b32.xlu1 %v7260_v26, %s8033_s22  ;;  %v5085_v30 = vld [vmem:[#allocation2 + $0x18] sm:$0xe]  ;;  %v10495_v28 = vld [vmem:[#allocation2 + $0x20] sm:$0xf]  ;;  %v10500_v15 = vld [vmem:[#allocation2 + $0x1c] sm:$0x1] }
 0x4b6   :  { %v4680_v3 = vmax.f32 %v4664_v50, 0.0  ;;  %v4665_v4 = vadd.f32 %v10442_v2, %v4641_v18  ;;  %5519 = vrot.lane.b32.xlu0 %v7213_v35, %s8037_s17  ;;  %v10497_v48 = vld [vmem:[#allocation2 + $0x20] sm:$0xf]  ;;  %v7245_v7 = vcombine.low %v5085_v30, %v10487_v13  ;;  %v5132_v22 = vld [vmem:[#allocation2 + $0x18] sm:$0xe]  ;;  %v7214_v36 = vcombine.low %v10495_v28, %v10495_v28 }
 0x4b7   :  { %v4678_v12 = vmax.f32 %v4662_v23, 0.0  ;;  %v4663_v55 = vadd.f32 %v10442_v2, %v4639_v19  ;;  %v5422_v56 = vrot.slane %v7198_v21, 1  ;;  %v7261_v14 = vcombine.low %v10497_v48, %v10497_v48  ;;  %v10509_v44 = vld [vmem:[#allocation2 + $0xc] sm:$0x1]  ;;  %v5083_v0 = vld [vmem:[#allocation2 + $0x8] sm:$0xe] }
 0x4b8   :  { %v7370_v16 = vpack.c.bf16 %v4680_v3, %v4680_v3  ;;  %v4681_v58 = vmax.f32 %v4665_v4, 0.0  ;;  %v7292_v9 = vcombine.low %v5132_v22, %v10500_v15  ;;  %v5789_v41 = vrot.slane %v7245_v7, 1  ;;  %v10514_v37 = vld [vmem:[#allocation2 + $0xc] sm:$0x1]  ;;  %v5036_v43 = vld [vmem:[#allocation2 + $0x8] sm:$0xe] }
 0x4b9   :  { %v7368_v40 = vpack.c.bf16 %v4678_v12, %v4678_v12  ;;  %v4679_v62 = vmax.f32 %v4663_v55, 0.0  ;;  %5441 = vrot.lane.b32.xlu1 %v5422_v56, %s8032_s19  ;;  %v7243_v8 = vcombine.low %v5083_v0, %v10509_v44  ;;  %v4931_v45 = vld [vmem:[#allocation2 + $0x28] sm:$0xf]  ;;  %v4934_v26 = vld [vmem:[#allocation2 + $0x2c] sm:$0x1] }
 0x4ba   :  { %v4797_v60 = vshrl.u32 %v7370_v16, 16  ;;  %v7371_v1 = vpack.c.bf16 %v4681_v58, %v4681_v58  ;;  %5515 = vrot.lane.b32.xlu0 %v7211_v6, %s8037_s17  ;;  %v4800_v32 = vshll.u32 %v7370_v16, 16  ;;  %v6156_v27 = vrot.slane %v7292_v9, 1  ;;  %v4949_v21 = vld [vmem:[#allocation2 + $0x40] sm:$0xf] }
 0x4bb   :  { %v4781_v57 = vshrl.u32 %v7368_v40, 16  ;;  %v7369_v11 = vpack.c.bf16 %v4679_v62, %v4679_v62  ;;  %v4784_v61 = vshll.u32 %v7368_v40, 16  ;;  %v4952_v3 = vld [vmem:[#allocation2 + $0x44] sm:$0x1]  ;;  %v4937_v6 = vld [vmem:[#allocation2 + $0x30] sm:$0xf]  ;;  %v7196_v58 = vcombine.low %v5036_v43, %v10514_v37 }
 0x4bc   :  { %v4799_v24 = vrot.slane %v4797_v60, 7  ;;  %v4805_v54 = vshrl.u32 %v7371_v1, 16  ;;  %v4808_v38 = vshll.u32 %v7371_v1, 16  ;;  %v4940_v16 = vld [vmem:[#allocation2 + $0x34] sm:$0x1]  ;;  %v5787_v62 = vrot.slane %v7243_v8, 1 }
 0x4bd   :  { %v4783_v49 = vrot.slane %v4781_v57, 7  ;;  %v4789_v63 = vshrl.u32 %v7369_v11, 16  ;;  %v4792_v20 = vshll.u32 %v7369_v11, 16  ;;  %5521 = vrot.lane.b32.xlu1 %v7214_v36, %s8037_s17  ;;  %v5006_v22 = vld [vmem:[#allocation2 + $0x18] sm:$0xf]  ;;  %v5420_v60 = vrot.slane %v7196_v58, 1 }
 0x4be   :  { %v4802_v47 = vor.u32 %v4800_v32, %v4799_v24  ;;  %v4803_v51 = vrot.slane %v4799_v24, 4  ;;  %v4807_v33 = vrot.slane %v4805_v54, 7  ;;  %5807 = vrot.lane.b32.xlu0 %v5789_v41, %s8038_s18  ;;  %v10535_v40 = vld [vmem:[#allocation2 + $0x10] sm:$0xf]  ;;  %v5117_v36 = vld [vmem:[#allocation2 + $0x24] sm:$0x1]  ;;  %v7182_v11 = vcombine.low %v5006_v22, %v10480_v59 }
 0x4bf   :  { %v4786_v29 = vor.u32 %v4784_v61, %v4783_v49  ;;  %v4787_v10 = vrot.slane %v4783_v49, 4  ;;  %v4791_v53 = vrot.slane %v4789_v63, 7  ;;  %v10537_v1 = vld [vmem:[#allocation2 + $0x10] sm:$0xf]  ;;  %v5070_v32 = vld [vmem:[#allocation2 + $0x24] sm:$0x1]  ;;  %v7259_v9 = vcombine.low %v10535_v40, %v10535_v40 }
 0x4c0   :  { %v4944_v50 = vsel %vm8251_vm7, %v4802_v47, %v4943_v34  ;;  %v4947_v18 = vsel %vm8259_vm8, %v4803_v51, %v4946_v25  ;;  %v4810_v35 = vor.u32 %v4808_v38, %v4807_v33  ;;  %v4811_v31 = vrot.slane %v4807_v33, 4  ;;  %v5086_v57 = vld [vmem:[#allocation2 + $0x20] sm:$0xe]  ;;  %v5023_v41 = vld [vmem:[#allocation2 + $0x24] sm:$0x1] }
 0x4c1   :  { %4945 = vst [vmem:[#allocation2 + $0x38] sm:$0xf] %v4944_v50  ;;  %4948 = vst [vmem:[#allocation2 + $0x3c] sm:$0x1] %v4947_v18  ;;  %v4932_v23 = vsel %vm8251_vm7, %v4786_v29, %v4931_v45  ;;  %v4935_v19 = vsel %vm8259_vm8, %v4787_v10, %v4934_v26  ;;  %v4794_v4 = vor.u32 %v4792_v20, %v4791_v53  ;;  %v4795_v30 = vrot.slane %v4791_v53, 4 }
 0x4c2   :  { %4933 = vst [vmem:[#allocation2 + $0x28] sm:$0xf] %v4932_v23  ;;  %4936 = vst [vmem:[#allocation2 + $0x2c] sm:$0x1] %v4935_v19  ;;  %v4950_v12 = vsel %vm8251_vm7, %v4810_v35, %v4949_v21  ;;  %v4953_v55 = vsel %vm8259_vm8, %v4811_v31, %v4952_v3  ;;  %5887 = vrot.lane.b32.xlu0 %v7261_v14, %s8033_s22  ;;  %6173 = vrot.lane.b32.xlu1 %v6156_v27, %s8034_s23  ;;  %v5133_v14 = vld [vmem:[#allocation2 + $0x20] sm:$0xe] }
 0x4c3   :  { %4954 = vst [vmem:[#allocation2 + $0x44] sm:$0x1] %v4953_v55  ;;  %4951 = vst [vmem:[#allocation2 + $0x40] sm:$0xf] %v4950_v12  ;;  %v4938_v56 = vsel %vm8251_vm7, %v4794_v4, %v4937_v6  ;;  %v4941_v7 = vsel %vm8259_vm8, %v4795_v30, %v4940_v16  ;;  %v7212_v24 = vcombine.low %v10537_v1, %v10537_v1  ;;  %v5039_v0 = vld [vmem:[#allocation2 + $0x20] sm:$0xe] }
 0x4c4   :  { %4939 = vst [vmem:[#allocation2 + $0x30] sm:$0xf] %v4938_v56  ;;  %4942 = vst [vmem:[#allocation2 + $0x34] sm:$0x1] %v4941_v7  ;;  %v7293_v61 = vcombine.low %v5133_v14, %v5117_v36  ;;  %v7246_v54 = vcombine.low %v5086_v57, %v5070_v32  ;;  %v5068_v34 = vld [vmem:[#allocation2 + $0x14] sm:$0x1]  ;;  %v7276_v38 = vcombine.low %v10470_v5, %v10500_v15 }
 0x4c5   :  { %v5084_v49 = vld [vmem:[#allocation2 + $0x10] sm:$0xe]  ;;  %v5004_v59 = vld [vmem:[#allocation2 + $0x8] sm:$0xf]  ;;  %v7199_v63 = vcombine.low %v5039_v0, %v5023_v41  ;;  %v10550_v20 = vld [vmem:[#allocation2 + $0x14] sm:$0x1]  ;;  %v7229_v29 = vcombine.low %v10472_v39, %v10487_v13  ;;  %v7227_v26 = vcombine.low %v10485_v17, %v10509_v44  ;;  %v7230_v39 = vcombine.low %v10495_v28, %v5070_v32 }
 0x4c6   :  { %5803 = vrot.lane.b32.xlu0 %v5787_v62, %s8038_s18  ;;  %5437 = vrot.lane.b32.xlu1 %v5420_v60, %s8032_s19  ;;  %v6157_v47 = vrot.slane %v7293_v61, 1  ;;  %v5790_v51 = vrot.slane %v7246_v54, 1  ;;  %v7244_v25 = vcombine.low %v5084_v49, %v5068_v34  ;;  %v5251_v33 = vshll.u32 %v7182_v11, 16  ;;  %v5037_v27 = vld [vmem:[#allocation2 + $0x10] sm:$0xe] }
 0x4c7   :  { %v7180_v10 = vcombine.low %v5004_v59, %v10514_v37  ;;  %v7197_v5 = vcombine.low %v5037_v27, %v10550_v20  ;;  %v5115_v15 = vld [vmem:[#allocation2 + $0x14] sm:$0x1]  ;;  %v5423_v53 = vrot.slane %v7199_v63, 1  ;;  %v5973_v50 = vshll.u32 %v7276_v38, 16  ;;  %v5131_v18 = vld [vmem:[#allocation2 + $0x10] sm:$0xe] }
 0x4c8   :  { %v5788_v8 = vrot.slane %v7244_v25, 1  ;;  %v5253_v43 = vrot.slane %v5251_v33, 1  ;;  %v5249_v45 = vshrl.u32 %v7182_v11, 16  ;;  %v7291_v37 = vcombine.low %v5131_v18, %v5115_v15  ;;  %v5007_v12 = vld [vmem:[#allocation2 + $0x20] sm:$0xf] }
 0x4c9   :  { %v5421_v13 = vrot.slane %v7197_v5, 1  ;;  %v5975_v31 = vrot.slane %v5973_v50, 1  ;;  %v5237_v23 = vshll.u32 %v7180_v10, 16  ;;  %v5612_v19 = vshll.u32 %v7229_v29, 16  ;;  %v5005_v57 = vld [vmem:[#allocation2 + $0x10] sm:$0xf] }
 0x4ca   :  { %5883 = vrot.lane.b32.xlu0 %v7259_v9, %s8033_s22  ;;  %5517 = vrot.lane.b32.xlu1 %v7212_v24, %s8037_s17  ;;  %v5254_v35 = vor.u32 %v5253_v43, %v5249_v45  ;;  %v5971_v21 = vshrl.u32 %v7276_v38, 16  ;;  %v7277_v3 = vcombine.low %v10497_v48, %v5117_v36  ;;  %v6155_v4 = vrot.slane %v7291_v37, 1  ;;  %v10571_v54 = vld [vmem:[#allocation2 + $0x38] sm:$0xf] }
 0x4cb   :  { %v5598_v30 = vshll.u32 %v7227_v26, 16  ;;  %v5239_v17 = vrot.slane %v5237_v23, 1  ;;  %v5614_v44 = vrot.slane %v5612_v19, 1  ;;  %v5619_v28 = vshll.u32 %v7230_v39, 16  ;;  %v10581_v33 = vld [vmem:[#allocation2 + $0x38] sm:$0xf] }
 0x4cc   :  { %v5976_v55 = vor.u32 %v5975_v31, %v5971_v21  ;;  %v5235_v6 = vshrl.u32 %v7180_v10, 16  ;;  %v5610_v16 = vshrl.u32 %v7229_v29, 16  ;;  %v7183_v58 = vcombine.low %v5007_v12, %v5023_v41  ;;  %v10585_v29 = vld [vmem:[#allocation2 + $0x3c] sm:$0x1]  ;;  %v5042_v10 = vld [vmem:[#allocation2 + $0x38] sm:$0xe] }
 0x4cd   :  { %v7228_v56 = vcombine.low %v10537_v1, %v5068_v34  ;;  %v5600_v7 = vrot.slane %v5598_v30, 1  ;;  %v5621_v48 = vrot.slane %v5619_v28, 1  ;;  %v5980_v60 = vshll.u32 %v7277_v3, 16  ;;  %v10602_v23 = vld [vmem:[#allocation2 + $0x28] sm:$0xf] }
 0x4ce   :  { %6175 = vrot.lane.b32.xlu0 %v6157_v47, %s8034_s23  ;;  %5809 = vrot.lane.b32.xlu1 %v5790_v51, %s8038_s18  ;;  %v5240_v22 = vor.u32 %v5239_v17, %v5235_v6  ;;  %v5615_v62 = vor.u32 %v5614_v44, %v5610_v16  ;;  %v5596_v36 = vshrl.u32 %v7227_v26, 16  ;;  %v5617_v14 = vshrl.u32 %v7230_v39, 16  ;;  %v10596_v26 = vld [vmem:[#allocation2 + $0x40] sm:$0xf]  ;;  %v5120_v39 = vld [vmem:[#allocation2 + $0x3c] sm:$0x1] }
 0x4cf   :  { %v5982_v9 = vrot.slane %v5980_v60, 1  ;;  %v5258_v24 = vshll.u32 %v7183_v58, 16  ;;  %v5605_v61 = vshll.u32 %v7228_v56, 16  ;;  %v5978_v1 = vshrl.u32 %v7277_v3, 16  ;;  %v5073_v21 = vld [vmem:[#allocation2 + $0x3c] sm:$0x1] }
 0x4d0   :  { %v5601_v32 = vor.u32 %v5600_v7, %v5596_v36  ;;  %v5622_v11 = vor.u32 %v5621_v48, %v5617_v14  ;;  %v7181_v41 = vcombine.low %v5005_v57, %v10550_v20  ;;  %v7264_v34 = vcombine.low %v10571_v54, %v10571_v54  ;;  %v10583_v20 = vld [vmem:[#allocation2 + $0x28] sm:$0xf]  ;;  %v5089_v3 = vld [vmem:[#allocation2 + $0x38] sm:$0xe]  ;;  %v5024_v28 = vld [vmem:[#allocation2 + $0x2c] sm:$0x1] }
 0x4d1   :  { %v5983_v0 = vor.u32 %v5982_v9, %v5978_v1  ;;  %v5260_v49 = vrot.slane %v5258_v24, 1  ;;  %v5607_v38 = vrot.slane %v5605_v61, 1  ;;  %v5256_v59 = vshrl.u32 %v7183_v58, 16  ;;  %v5134_v30 = vld [vmem:[#allocation2 + $0x28] sm:$0xe]  ;;  %v7985_v57 = vld [vmem:[%s11432_s3 + $0x50] sm:$0xff]  }
 0x4d2   :  { %5443 = vrot.lane.b32.xlu0 %v5423_v53, %s8032_s19  ;;  %5805 = vrot.lane.b32.xlu1 %v5788_v8, %s8038_s18  ;;  %v5603_v63 = vshrl.u32 %v7228_v56, 16  ;;  %v7275_v47 = vcombine.low %v10535_v40, %v5115_v15  ;;  %v5244_v27 = vshll.u32 %v7181_v41, 16  ;;  %v7217_v5 = vcombine.low %v10581_v33, %v10581_v33  ;;  %v5040_v6 = vld [vmem:[#allocation2 + $0x28] sm:$0xe]  ;;  %v5010_v60 = vld [vmem:[#allocation2 + $0x38] sm:$0xf] }
 0x4d3   :  { %v5261_v51 = vor.u32 %v5260_v49, %v5256_v59  ;;  %v7262_v40 = vcombine.low %v10583_v20, %v10583_v20  ;;  %v7202_v53 = vcombine.low %v5042_v10, %v10585_v29  ;;  %v5242_v43 = vshrl.u32 %v7181_v41, 16  ;;  %v7980_v7 = vld [vmem:[%s11432_s3 + $0x48] sm:$0xff]   ;;  %v5074_v9 = vld [vmem:[#allocation2 + $0x44] sm:$0x1]  ;;  %v5090_v24 = vld [vmem:[#allocation2 + $0x40] sm:$0xe] }
 0x4d4   :  { %v5608_v25 = vor.u32 %v5607_v38, %v5603_v63  ;;  %v5246_v15 = vrot.slane %v5244_v27, 1  ;;  %v5966_v8 = vshll.u32 %v7275_v47, 16  ;;  %v5964_v37 = vshrl.u32 %v7275_v47, 16  ;;  %v5087_v48 = vld [vmem:[#allocation2 + $0x28] sm:$0xe]  ;;  %7531 = vmatprep.subr.bf16.mxu0 %v7980_v7 }
 0x4d5   :  { %v5426_v18 = vrot.slane %v7202_v53, 1  ;;  %v7218_v31 = vcombine.low %v10596_v26, %v10596_v26  ;;  %v7215_v12 = vcombine.low %v10602_v23, %v10602_v23  ;;  %v7249_v17 = vcombine.low %v5089_v3, %v5073_v21  ;;  %7532 = vmatpush3.bf16.msra.mxu0 %v7980_v7  ;;  %v5121_v61 = vld [vmem:[#allocation2 + $0x44] sm:$0x1]  ;;  %v5137_v1 = vld [vmem:[#allocation2 + $0x40] sm:$0xe] }
 0x4d6   :  { %5345 = vrot.lane.b32.xlu1 %v5254_v35, %s8035_s24  ;;  %5439 = vrot.lane.b32.xlu0 %v5421_v13, %s8032_s19  ;;  %v5247_v50 = vor.u32 %v5246_v15, %v5242_v43  ;;  %v5968_v45 = vrot.slane %v5966_v8, 1  ;;  %v5136_v13 = vld [vmem:[#allocation2 + $0x38] sm:$0xe]  ;;  %v7200_v56 = vcombine.low %v5040_v6, %v5024_v28  ;;  %v10624_v41 = vcombine.low %v5010_v60, %v10585_v29  ;;  %v5072_v38 = vld [vmem:[#allocation2 + $0x34] sm:$0x1] }
 0x4d7   :  { %v7296_v19 = vcombine.low %v5136_v13, %v5120_v39  ;;  %v5793_v16 = vrot.slane %v7249_v17, 1  ;;  %7533 = vmatprep.subr.bf16.mxu0 %v7985_v57  ;;  %v7250_v49 = vcombine.low %v5090_v24, %v5074_v9  ;;  %v5088_v59 = vld [vmem:[#allocation2 + $0x30] sm:$0xe]  ;;  %v5025_v47 = vld [vmem:[#allocation2 + $0x34] sm:$0x1]  ;;  %v7987_v29 = vld [vmem:[%s11432_s3 + $0x58] sm:$0xff]   ;;  %v10637_v10 = vcombine.low %v10581_v33, %v5073_v21 }
 0x4d8   :  { %v5969_v35 = vor.u32 %v5968_v45, %v5964_v37  ;;  %v5424_v14 = vrot.slane %v7200_v56, 1  ;;  %v10626_v63 = vld [vmem:[#allocation2 + $0x30] sm:$0xf]  ;;  %v5008_v27 = vld [vmem:[#allocation2 + $0x28] sm:$0xf]  ;;  %v7990_v45 = vld [vmem:[%s11432_s3 + $0x60] sm:$0xff]   ;;  %v10657_v37 = vcombine.low %v10596_v26, %v5074_v9 }
 0x4d9   :  { %7534 = vmatpush3.bf16.msra.mxu0 %v7985_v57  ;;  %v10639_v15 = vld [vmem:[#allocation2 + $0x34] sm:$0x1]  ;;  %v5135_v53 = vld [vmem:[#allocation2 + $0x30] sm:$0xe]  ;;  %v5794_v8 = vrot.slane %v7250_v49, 1  ;;  %v5277_v26 = vshrl.u32 %v10624_v41, 16 }
 0x4da   :  { %6077 = vrot.lane.b32.xlu1 %v5976_v55, %s8036_s27  ;;  %6171 = vrot.lane.b32.xlu0 %v6155_v4, %s8034_s23  ;;  %v10604_v4 = vld [vmem:[#allocation2 + $0x2c] sm:$0x1]  ;;  %v6160_v55 = vrot.slane %v7296_v19, 1  ;;  %v10665_v19 = vpop.permute.xlu1 %5897  ;;  %v7993_v9 = vld [vmem:[%s11432_s3 + $0x68] ss:$0 sps:$4 sm:$0xff]  }
 0x4db   :  { %v7294_v44 = vcombine.low %v5134_v30, %v10604_v4  ;;  %7535 = vmatprep.subr.bf16.mxu0 %v7987_v29  ;;  %v10649_v33 = vcombine.low %v10583_v20, %v10604_v4  ;;  %v7295_v20 = vcombine.low %v5135_v53, %v10639_v15 }
 0x4dd   :  { %v6158_v58 = vrot.slane %v7294_v44, 1  ;;  %7536 = vmatpush3.bf16.msra.mxu0 %v7987_v29  ;;  %v5640_v44 = vshll.u32 %v10637_v10, 16  ;;  %v5987_v56 = vshll.u32 %v10649_v33, 16 }
 0x4de   :  { %5341 = vrot.lane.b32.xlu1 %v5240_v22, %s8035_s24  ;;  %5711 = vrot.lane.b32.xlu0 %v5615_v62, %s8039_s20  ;;  %v5105_v22 = vld [vmem:[#allocation2 + $0x40] sm:$0xf]  ;;  %v5071_v62 = vld [vmem:[#allocation2 + $0x2c] sm:$0x1] }
 0x4df   :  { %v7265_v36 = vcombine.low %v5105_v22, %v5105_v22  ;;  %v10654_v13 = vcombine.low %v10602_v23, %v5071_v62  ;;  %7537 = vmatprep.subr.bf16.mxu0 %v7990_v45 }
 0x4e1   :  { %7538 = vmatpush3.bf16.msra.mxu0 %v7990_v45  ;;  %v5626_v60 = vshll.u32 %v10654_v13, 16  ;;  %v5624_v57 = vshrl.u32 %v10654_v13, 16 }
 0x4e2   :  { %5707 = vrot.lane.b32.xlu0 %v5601_v32, %s8039_s20  ;;  %5713 = vrot.lane.b32.xlu1 %v5622_v11, %s8039_s20  ;;  %v7247_v32 = vcombine.low %v5087_v48, %v5071_v62  ;;  %v5056_v11 = vld [vmem:[#allocation2 + $0x30] sm:$0xf]  ;;  %v6159_v62 = vrot.slane %v7295_v20, 1 }
 0x4e3   :  { %7568 = vmatprep.subr.msk.bf16.mxu0 %vm2223_vm9, %v7993_v9 }
 0x4e6   :  { %6079 = vrot.lane.b32.xlu0 %v5983_v0, %s8036_s27  ;;  %5893 = vrot.lane.b32.xlu1 %v7264_v34, %s8033_s22  ;;  %v5791_v0 = vrot.slane %v7247_v32, 1  ;;  %v7216_v34 = vcombine.low %v5056_v11, %v5056_v11 }
 0x4ea   :  { %5347 = vrot.lane.b32.xlu0 %v5261_v51, %s8035_s24  ;;  %5709 = vrot.lane.b32.xlu1 %v5608_v25, %s8039_s20  ;;  %v5041_v51 = vld [vmem:[#allocation2 + $0x30] sm:$0xe]  ;;  %v10629_v25 = vcombine.low %v10571_v54, %v5120_v39  ;;  %v7263_v54 = vcombine.low %v10626_v63, %v10626_v63  ;;  %v10651_v39 = vcombine.low %v5008_v27, %v5024_v28  ;;  %v5628_v27 = vrot.slane %v5626_v60, 1 }
 0x4eb   :  { %v7201_v43 = vcombine.low %v5041_v51, %v5025_v47 }
 0x4ec   :  { %v6001_v21 = vshll.u32 %v10629_v25, 16  ;;  %v5999_v17 = vshrl.u32 %v10629_v25, 16  ;;  %v10699_v25 = vpop.permute.xlu0 %5339 }
 0x4ee   :  { %5527 = vrot.lane.b32.xlu0 %v7217_v5, %s8037_s17  ;;  %5889 = vrot.lane.b32.xlu1 %v7262_v40, %s8033_s22  ;;  %v7297_v5 = vcombine.low %v5137_v1, %v5121_v61  ;;  %v7248_v40 = vcombine.low %v5088_v59, %v5072_v38  ;;  %v6003_v48 = vrot.slane %v6001_v21, 1  ;;  %v6567_v59 = vsel %vm2223_vm9, %v7993_v9, 0  ;;  %v4955_v9 = vld [vmem:[#allocation2 + $0x58] sm:$0xf] }
 0x4ef   :  { %7540 = vmatpush3.bf16.msra.mxu0 %v6567_v59 }
 0x4f0   :  { %v6161_v23 = vrot.slane %v7297_v5, 1  ;;  %v5792_v3 = vrot.slane %v7248_v40, 1  ;;  %v5263_v40 = vshrl.u32 %v10651_v39, 16 }
 0x4f2   :  { %5343 = vrot.lane.b32.xlu0 %v5247_v50, %s8035_s24  ;;  %5449 = vrot.lane.b32.xlu1 %v5426_v18, %s8032_s19  ;;  %v5009_v50 = vld [vmem:[#allocation2 + $0x30] sm:$0xf]  ;;  %v5279_v18 = vshll.u32 %v10624_v41, 16  ;;  %v10691_v41 = vpop.permute.xlu1 %6089 }
 0x4f3   :  { %v10669_v4 = vcombine.low %v5009_v50, %v5025_v47  ;;  %v5647_v50 = vshll.u32 %v10657_v37, 16 }
 0x4f6   :  { %6075 = vrot.lane.b32.xlu0 %v5969_v35, %s8036_s27  ;;  %5529 = vrot.lane.b32.xlu1 %v7218_v31, %s8037_s17  ;;  %v10661_v35 = vcombine.low %v5105_v22, %v5121_v61  ;;  %v10663_v31 = vcombine.low %v5056_v11, %v5072_v38  ;;  %v5265_v11 = vshll.u32 %v10651_v39, 16  ;;  %v5989_v38 = vrot.slane %v5987_v56, 1 }
 0x4f7   :  { %v5629_v39 = vor.u32 %v5628_v27, %v5624_v57 }
 0x4f8   :  { %v6008_v29 = vshll.u32 %v10661_v35, 16  ;;  %v5267_v53 = vrot.slane %v5265_v11, 1 }
 0x4fa   :  { %5523 = vrot.lane.b32.xlu0 %v7215_v12, %s8037_s17  ;;  %6181 = vrot.lane.b32.xlu1 %v6160_v55, %s8034_s23  ;;  %v5425_v12 = vrot.slane %v7201_v43, 1  ;;  %v5281_v55 = vrot.slane %v5279_v18, 1  ;;  %v6004_v43 = vor.u32 %v6003_v48, %v5999_v17  ;;  %v4970_v48 = vld [vmem:[#allocation2 + $0x6c] sm:$0x1] }
 0x4fc   :  { %v5282_v1 = vor.u32 %v5281_v55, %v5277_v26  ;;  %v5268_v55 = vor.u32 %v5267_v53, %v5263_v40  ;;  %v6006_v40 = vshrl.u32 %v10661_v35, 16  ;;  %v7279_v35 = vcombine.low %v10626_v63, %v10639_v15 }
 0x4fe   :  { %5815 = vrot.lane.b32.xlu0 %v5793_v16, %s8038_s18  ;;  %6177 = vrot.lane.b32.xlu1 %v6158_v58, %s8034_s23  ;;  %v5638_v16 = vshrl.u32 %v10637_v10, 16  ;;  %v5985_v58 = vshrl.u32 %v10649_v33, 16  ;;  %v5994_v63 = vshll.u32 %v7279_v35, 16 }
 0x500   :  { %v5990_v13 = vor.u32 %v5989_v38, %v5985_v58  ;;  %v4976_v38 = vld [vmem:[#allocation2 + $0x74] sm:$0x1] }
 0x502   :  { %5895 = vrot.lane.b32.xlu0 %v7265_v36, %s8033_s22  ;;  %5445 = vrot.lane.b32.xlu1 %v5424_v14, %s8032_s19 }
 0x506   :  { %5811 = vrot.lane.b32.xlu0 %v5791_v0, %s8038_s18  ;;  %5525 = vrot.lane.b32.xlu1 %v7216_v34, %s8037_s17  ;;  %v5642_v0 = vrot.slane %v5640_v44, 1 }
 0x508   :  { %v5643_v33 = vor.u32 %v5642_v0, %v5638_v16  ;;  %v5649_v16 = vrot.slane %v5647_v50, 1  ;;  %v5633_v50 = vshll.u32 %v10663_v31, 16 }
 0x50a   :  { %5891 = vrot.lane.b32.xlu0 %v7263_v54, %s8033_s22  ;;  %5817 = vrot.lane.b32.xlu1 %v5794_v8, %s8038_s18 }
 0x50b   :  { %v7525_v30 = vpop.f32.mrb[36].mxu1 }
 0x50c   :  { %v4644_v28 = vmul.f32 %v7525_v30, %v10437_v42  ;;  %v4595_v6 = vpop.f32.mrb[37].mxu1 }
 0x50d   :  { %v4642_v7 = vmul.f32 %v10437_v42, %v4595_v6  ;;  %v7526_v22 = vpop.f32.mrb[38].mxu1  ;;  %v10708_v6 = vpop.permute.xlu0 %5435 }
 0x50e   :  { %6183 = vrot.lane.b32.xlu0 %v6161_v23, %s8034_s23  ;;  %5813 = vrot.lane.b32.xlu1 %v5792_v3, %s8038_s18  ;;  %v4668_v36 = vadd.f32 %v10442_v2, %v4644_v28  ;;  %v4645_v14 = vmul.f32 %v7526_v22, %v10437_v42  ;;  %v4598_v32 = vpop.f32.mrb[39].mxu1  ;;  %v10706_v23 = vpop.permute.xlu1 %6185  ;;  %v6010_v3 = vrot.slane %v6008_v29, 1 }
 0x50f   :  { %v4666_v24 = vadd.f32 %v10442_v2, %v4642_v7  ;;  %v4643_v61 = vmul.f32 %v10437_v42, %v4598_v32  ;;  %11622 = vst [vmem:[#allocation20_spill] sm:$0xff] %v10706_v23  ;;  %v4967_v7 = vld [vmem:[#allocation2 + $0x68] sm:$0xf] }
 0x510   :  { %v4684_v34 = vmax.f32 %v4668_v36, 0.0  ;;  %v4669_v49 = vadd.f32 %v10442_v2, %v4645_v14 }
 0x511   :  { %v4682_v47 = vmax.f32 %v4666_v24, 0.0  ;;  %v4667_v51 = vadd.f32 %v10442_v2, %v4643_v61  ;;  %v4958_v24 = vld [vmem:[#allocation2 + $0x5c] sm:$0x1] }
 0x512   :  { %5447 = vrot.lane.b32.xlu0 %v5425_v12, %s8032_s19  ;;  %5353 = vrot.lane.b32.xlu1 %v5282_v1, %s8035_s24  ;;  %v7374_v10 = vpack.c.bf16 %v4684_v34, %v4684_v34  ;;  %v4685_v5 = vmax.f32 %v4669_v49, 0.0  ;;  %v4973_v49 = vld [vmem:[#allocation2 + $0x70] sm:$0xf] }
 0x513   :  { %v7372_v54 = vpack.c.bf16 %v4682_v47, %v4682_v47  ;;  %v4683_v8 = vmax.f32 %v4667_v51, 0.0  ;;  %v10720_v51 = vpop.permute.xlu1 %5913 }
 0x514   :  { %v4829_v18 = vshrl.u32 %v7374_v10, 16  ;;  %v7375_v45 = vpack.c.bf16 %v4685_v5, %v4685_v5  ;;  %v4832_v30 = vshll.u32 %v7374_v10, 16  ;;  %11623 = vst [vmem:[#allocation3_spill] sm:$0xff] %v10720_v51  ;;  %v4961_v10 = vld [vmem:[#allocation2 + $0x60] sm:$0xf] }
 0x515   :  { %v4813_v20 = vshrl.u32 %v7372_v54, 16  ;;  %v7373_v21 = vpack.c.bf16 %v4683_v8, %v4683_v8  ;;  %v4816_v44 = vshll.u32 %v7372_v54, 16  ;;  %v4964_v5 = vld [vmem:[#allocation2 + $0x64] sm:$0x1]  ;;  %v10731_v8 = vpop.permute.xlu0 %5355 }
 0x516   :  { %6179 = vrot.lane.b32.xlu0 %v6159_v62, %s8034_s23  ;;  %6085 = vrot.lane.b32.xlu1 %v6004_v43, %s8036_s27  ;;  %v4831_v26 = vrot.slane %v4829_v18, 7  ;;  %v4837_v12 = vshrl.u32 %v7375_v45, 16  ;;  %v4840_v62 = vshll.u32 %v7375_v45, 16  ;;  %11624 = vst [vmem:[#allocation25_spill] sm:$0xff] %v10731_v8  ;;  %v5645_v43 = vshrl.u32 %v10657_v37, 16 }
 0x517   :  { %v4815_v17 = vrot.slane %v4813_v20, 7  ;;  %v4821_v28 = vshrl.u32 %v7373_v21, 16  ;;  %v4824_v32 = vshll.u32 %v7373_v21, 16  ;;  %v6011_v18 = vor.u32 %v6010_v3, %v6006_v40  ;;  %v10742_v20 = vpop.permute.xlu1 %6105 }
 0x518   :  { %v4834_v58 = vor.u32 %v4832_v30, %v4831_v26  ;;  %v4835_v56 = vrot.slane %v4831_v26, 4  ;;  %v4839_v22 = vrot.slane %v4837_v12, 7  ;;  %v5650_v45 = vor.u32 %v5649_v16, %v5645_v43  ;;  %11625 = vst [vmem:[#allocation17_spill] sm:$0xff] %v10742_v20 }
 0x519   :  { %v4818_v60 = vor.u32 %v4816_v44, %v4815_v17  ;;  %v4819_v36 = vrot.slane %v4815_v17, 4  ;;  %v4823_v14 = vrot.slane %v4821_v28, 7  ;;  %v5635_v21 = vrot.slane %v5633_v50, 1  ;;  %v10749_v15 = vpop.permute.xlu0 %5451 }
 0x51a   :  { %5719 = vrot.lane.b32.xlu0 %v5643_v33, %s8039_s20  ;;  %6081 = vrot.lane.b32.xlu1 %v5990_v13, %s8036_s27  ;;  %v4968_v57 = vsel %vm8251_vm7, %v4834_v58, %v4967_v7  ;;  %v4971_v11 = vsel %vm8259_vm8, %v4835_v56, %v4970_v48  ;;  %v4842_v61 = vor.u32 %v4840_v62, %v4839_v22  ;;  %v4843_v1 = vrot.slane %v4839_v22, 4  ;;  %v8018_v56 = vld [vmem:[%s11430_s4 + $0x2] ss:$0 sm:$0xff] }
 0x51b   :  { %4969 = vst [vmem:[#allocation2 + $0x68] sm:$0xf] %v4968_v57  ;;  %4972 = vst [vmem:[#allocation2 + $0x6c] sm:$0x1] %v4971_v11  ;;  %v4956_v0 = vsel %vm8251_vm7, %v4818_v60, %v4955_v9  ;;  %v4959_v34 = vsel %vm8259_vm8, %v4819_v36, %v4958_v24  ;;  %v4826_v59 = vor.u32 %v4824_v32, %v4823_v14  ;;  %v4827_v47 = vrot.slane %v4823_v14, 4 }
 0x51c   :  { %4960 = vst [vmem:[#allocation2 + $0x5c] sm:$0x1] %v4959_v34  ;;  %4957 = vst [vmem:[#allocation2 + $0x58] sm:$0xf] %v4956_v0  ;;  %v4974_v27 = vsel %vm8251_vm7, %v4842_v61, %v4973_v49  ;;  %v4977_v29 = vsel %vm8259_vm8, %v4843_v1, %v4976_v38  ;;  %v5272_v33 = vshll.u32 %v10669_v4, 16  ;;  %v5631_v60 = vshrl.u32 %v10663_v31, 16 }
 0x51d   :  { %4975 = vst [vmem:[#allocation2 + $0x70] sm:$0xf] %v4974_v27  ;;  %4978 = vst [vmem:[#allocation2 + $0x74] sm:$0x1] %v4977_v29  ;;  %v4962_v53 = vsel %vm8251_vm7, %v4826_v59, %v4961_v10  ;;  %v4965_v54 = vsel %vm8259_vm8, %v4827_v47, %v4964_v5  ;;  %v5996_v32 = vrot.slane %v5994_v63, 1  ;;  %v5992_v38 = vshrl.u32 %v7279_v35, 16 }
 0x51e   :  { %5715 = vrot.lane.b32.xlu0 %v5629_v39, %s8039_s20  ;;  %5349 = vrot.lane.b32.xlu1 %v5268_v55, %s8035_s24  ;;  %4963 = vst [vmem:[#allocation2 + $0x60] sm:$0xf] %v4962_v53  ;;  %4966 = vst [vmem:[#allocation2 + $0x64] sm:$0x1] %v4965_v54  ;;  %v5274_v44 = vrot.slane %v5272_v33, 1  ;;  %v5636_v1 = vor.u32 %v5635_v21, %v5631_v60 }
 0x51f   :  { %11626 = vst [vmem:[#allocation43_spill] sm:$0xff] %v10749_v15  ;;  %v5997_v40 = vor.u32 %v5996_v32, %v5992_v38  ;;  %v4982_v60 = vld [vmem:[#allocation2 + $0x7c] sm:$0x1] }
 0x522   :  { %6087 = vrot.lane.b32.xlu0 %v6011_v18, %s8036_s27  ;;  %5721 = vrot.lane.b32.xlu1 %v5650_v45, %s8039_s20  ;;  %v7529_v13 = vpop.f32.mrb[40].mxu1  ;;  %v10745_v26 = vld [vmem:[#allocation2 + $0x68] sm:$0xf]  ;;  %v10756_v28 = vld [vmem:[#allocation2 + $0x6c] sm:$0x1] }
 0x523   :  { %v4648_v37 = vmul.f32 %v7529_v13, %v10437_v42  ;;  %v4611_v39 = vpop.f32.mrb[41].mxu1  ;;  %v10747_v30 = vld [vmem:[#allocation2 + $0x68] sm:$0xf]  ;;  %v7268_v55 = vcombine.low %v10745_v26, %v10745_v26  ;;  %v10774_v59 = vld [vmem:[#allocation2 + $0x58] sm:$0xf] }
 0x524   :  { %v4646_v3 = vmul.f32 %v10437_v42, %v4611_v39  ;;  %v7530_v12 = vpop.f32.mrb[42].mxu1  ;;  %v7221_v17 = vcombine.low %v10747_v30, %v10747_v30  ;;  %v5046_v16 = vld [vmem:[#allocation2 + $0x68] sm:$0xe]  ;;  %v8019_v42 = vld [vmem:[%s11431_s5 + $0x2] ss:$0 sm:$0xff]  ;;  %v7219_v33 = vcombine.low %v10774_v59, %v10774_v59 }
 0x525   :  { %v4672_v58 = vadd.f32 %v10442_v2, %v4648_v37  ;;  %v4649_v7 = vmul.f32 %v8018_v56, %v7530_v12  ;;  %v4614_v22 = vpop.f32.mrb[43].mxu1  ;;  %v5270_v2 = vshrl.u32 %v10669_v4, 16  ;;  %v7206_v57 = vcombine.low %v5046_v16, %v10756_v28  ;;  %v10776_v31 = vld [vmem:[#allocation2 + $0x70] sm:$0xf]  ;;  %v10780_v27 = vld [vmem:[#allocation2 + $0x6c] sm:$0x1] }
 0x526   :  { %v4670_v62 = vadd.f32 %v8019_v42, %v4646_v3  ;;  %5901 = vrot.lane.b32.xlu1 %v7268_v55, %s8033_s22  ;;  %5535 = vrot.lane.b32.xlu0 %v7221_v17, %s8037_s17  ;;  %v4647_v48 = vmul.f32 %v8018_v56, %v4614_v22  ;;  %v5093_v29 = vld [vmem:[#allocation2 + $0x68] sm:$0xe]  ;;  %v10782_v54 = vld [vmem:[#allocation2 + $0x6c] sm:$0x1]  ;;  %v7222_v13 = vcombine.low %v10776_v31, %v10776_v31 }
 0x527   :  { %v4688_v36 = vmax.f32 %v4672_v58, 0.0  ;;  %v4673_v14 = vadd.f32 %v8019_v42, %v4649_v7  ;;  %v10772_v61 = vpop.permute.xlu1 %5885  ;;  %v5275_v0 = vor.u32 %v5274_v44, %v5270_v2  ;;  %v5430_v53 = vrot.slane %v7206_v57, 1  ;;  %v5140_v43 = vld [vmem:[#allocation2 + $0x68] sm:$0xe]  ;;  %v4994_v12 = vld [vmem:[#allocation2 + $0x8c] sm:$0x1] }
 0x528   :  { %v4686_v11 = vmax.f32 %v4670_v62, 0.0  ;;  %v4671_v9 = vadd.f32 %v8019_v42, %v4647_v48  ;;  %v10770_v24 = vpop.permute.xlu0 %5519  ;;  %v7253_v63 = vcombine.low %v5093_v29, %v10780_v27  ;;  %v4991_v3 = vld [vmem:[#allocation2 + $0x88] sm:$0xf]  ;;  %v7300_v16 = vcombine.low %v5140_v43, %v10782_v54  ;;  %v4979_v7 = vld [vmem:[#allocation2 + $0x78] sm:$0xf] }
 0x529   :  { %v7378_v34 = vpack.c.bf16 %v4688_v36, %v4688_v36  ;;  %v4689_v49 = vmax.f32 %v4673_v14, 0.0  ;;  %v4988_v43 = vld [vmem:[#allocation2 + $0x84] sm:$0x1]  ;;  %v10831_v46 = vld [vmem:[#allocation2 + $0x68] sm:$0xf] }
 0x52a   :  { %v7376_v4 = vpack.c.bf16 %v4686_v11, %v4686_v11  ;;  %v4687_v47 = vmax.f32 %v4671_v9, 0.0  ;;  %5717 = vrot.lane.b32.xlu1 %v5636_v1, %s8039_s20  ;;  %5351 = vrot.lane.b32.xlu0 %v5275_v0, %s8035_s24  ;;  %v10804_v0 = vld [vmem:[#allocation2 + $0x5c] sm:$0x1]  ;;  %11627 = vst [vmem:[#allocation23_spill] sm:$0xff] %v10831_v46 }
 0x52b   :  { %v4861_v10 = vshrl.u32 %v7378_v34, 16  ;;  %v7379_v5 = vpack.c.bf16 %v4689_v49, %v4689_v49  ;;  %v10786_v45 = vpop.permute.xlu1 %5441  ;;  %v4864_v37 = vshll.u32 %v7378_v34, 16  ;;  %v5044_v34 = vld [vmem:[#allocation2 + $0x58] sm:$0xe] }
 0x52c   :  { %v4845_v50 = vshrl.u32 %v7376_v4, 16  ;;  %v7377_v35 = vpack.c.bf16 %v4687_v47, %v4687_v47  ;;  %v10784_v18 = vpop.permute.xlu0 %5515  ;;  %v4848_v17 = vshll.u32 %v7376_v4, 16  ;;  %v4997_v4 = vld [vmem:[#allocation2 + $0x90] sm:$0xf]  ;;  %v5000_v47 = vld [vmem:[#allocation2 + $0x94] sm:$0x1] }
 0x52d   :  { %v4863_v21 = vrot.slane %v4861_v10, 7  ;;  %v4869_v39 = vshrl.u32 %v7379_v5, 16  ;;  %v4872_v42 = vshll.u32 %v7379_v5, 16 }
 0x52e   :  { %v4847_v55 = vrot.slane %v4845_v50, 7  ;;  %v4853_v44 = vshrl.u32 %v7377_v35, 16  ;;  %6083 = vrot.lane.b32.xlu0 %v5997_v40, %s8036_s27  ;;  %5457 = vrot.lane.b32.xlu1 %v5430_v53, %s8032_s19  ;;  %v4856_v36 = vshll.u32 %v7377_v35, 16  ;;  %v4985_v53 = vld [vmem:[#allocation2 + $0x80] sm:$0xf]  ;;  %v5797_v50 = vrot.slane %v7253_v63, 1 }
 0x52f   :  { %v4866_v58 = vor.u32 %v4864_v37, %v4863_v21  ;;  %v4867_v56 = vrot.slane %v4863_v21, 4  ;;  %v4871_v22 = vrot.slane %v4869_v39, 7  ;;  %v10798_v32 = vpop.permute.xlu1 %5521  ;;  %v6164_v37 = vrot.slane %v7300_v16, 1  ;;  %v10827_v63 = vld [vmem:[#allocation2 + $0x5c] sm:$0x1] }
 0x530   :  { %v4850_v62 = vor.u32 %v4848_v17, %v4847_v55  ;;  %v4851_v48 = vrot.slane %v4847_v55, 4  ;;  %v4855_v2 = vrot.slane %v4853_v44, 7  ;;  %v10796_v14 = vpop.permute.xlu0 %5807  ;;  %v7204_v39 = vcombine.low %v5044_v34, %v10804_v0  ;;  %v10858_v34 = vld [vmem:[#allocation2 + $0x58] sm:$0xf] }
 0x531   :  { %v4992_v57 = vsel %vm8251_vm7, %v4866_v58, %v4991_v3  ;;  %v4995_v11 = vsel %vm8259_vm8, %v4867_v56, %v4994_v12  ;;  %v4874_v9 = vor.u32 %v4872_v42, %v4871_v22  ;;  %v4875_v1 = vrot.slane %v4871_v22, 4  ;;  %v10825_v3 = vld [vmem:[#allocation2 + $0x70] sm:$0xf]  ;;  %v5091_v12 = vld [vmem:[#allocation2 + $0x58] sm:$0xe]  ;;  %11628 = vst [vmem:[#allocation51_spill] sm:$0xff] %v10858_v34 }
 0x532   :  { %4993 = vst [vmem:[#allocation2 + $0x88] sm:$0xf] %v4992_v57  ;;  %4996 = vst [vmem:[#allocation2 + $0x8c] sm:$0x1] %v4995_v11  ;;  %v4980_v49 = vsel %vm8251_vm7, %v4850_v62, %v4979_v7  ;;  %v4983_v38 = vsel %vm8259_vm8, %v4851_v48, %v4982_v60  ;;  %v4858_v29 = vor.u32 %v4856_v36, %v4855_v2  ;;  %v4859_v10 = vrot.slane %v4855_v2, 4 }
 0x533   :  { %5531 = vrot.lane.b32.xlu0 %v7219_v33, %s8037_s17  ;;  %5537 = vrot.lane.b32.xlu1 %v7222_v13, %s8037_s17  ;;  %4981 = vst [vmem:[#allocation2 + $0x78] sm:$0xf] %v4980_v49  ;;  %4984 = vst [vmem:[#allocation2 + $0x7c] sm:$0x1] %v4983_v38  ;;  %v4998_v5 = vsel %vm8251_vm7, %v4874_v9, %v4997_v4  ;;  %v5001_v40 = vsel %vm8259_vm8, %v4875_v1, %v5000_v47  ;;  %v5428_v44 = vrot.slane %v7204_v39, 1 }
 0x534   :  { %5002 = vst [vmem:[#allocation2 + $0x94] sm:$0x1] %v5001_v40  ;;  %4999 = vst [vmem:[#allocation2 + $0x90] sm:$0xf] %v4998_v5  ;;  %v4986_v35 = vsel %vm8251_vm7, %v4858_v29, %v4985_v53  ;;  %v4989_v33 = vsel %vm8259_vm8, %v4859_v10, %v4988_v43  ;;  %v10820_v13 = vpop.permute.xlu0 %5887  ;;  %v10822_v21 = vpop.permute.xlu1 %6173  ;;  %v7269_v17 = vcombine.low %v10825_v3, %v10825_v3  ;;  %v10840_v58 = vld [vmem:[#allocation2 + $0x60] sm:$0xf] }
 0x535   :  { %4987 = vst [vmem:[#allocation2 + $0x80] sm:$0xf] %v4986_v35  ;;  %4990 = vst [vmem:[#allocation2 + $0x84] sm:$0x1] %v4989_v33  ;;  %v7251_v16 = vcombine.low %v5091_v12, %v10827_v63  ;;  %v5078_v56 = vld [vmem:[#allocation2 + $0x74] sm:$0x1]  ;;  %v7190_v22 = vcombine.low %v10831_v46, %v10756_v28  ;;  %v7220_v60 = vcombine.low %v10840_v58, %v10840_v58 }
 0x536   :  { %v5094_v7 = vld [vmem:[#allocation2 + $0x70] sm:$0xe]  ;;  %v10852_v2 = vld [vmem:[#allocation2 + $0x60] sm:$0xf]  ;;  %v5125_v57 = vld [vmem:[#allocation2 + $0x74] sm:$0x1]  ;;  %v7284_v28 = vcombine.low %v10745_v26, %v10782_v54  ;;  %v7188_v26 = vcombine.low %v10858_v34, %v10804_v0  ;;  %v7237_v0 = vcombine.low %v10747_v30, %v10780_v27 }
 0x537   :  { %5823 = vrot.lane.b32.xlu0 %v5797_v50, %s8038_s18  ;;  %6189 = vrot.lane.b32.xlu1 %v6164_v37, %s8034_s23  ;;  %v5795_v48 = vrot.slane %v7251_v16, 1  ;;  %v7254_v36 = vcombine.low %v5094_v7, %v5078_v56  ;;  %v5141_v11 = vld [vmem:[#allocation2 + $0x70] sm:$0xe]  ;;  %v5076_v9 = vld [vmem:[#allocation2 + $0x64] sm:$0x1]  ;;  %v7267_v49 = vcombine.low %v10852_v2, %v10852_v2  ;;  %v5307_v53 = vshll.u32 %v7190_v22, 16 }
 0x538   :  { %v10833_v52 = vpop.permute.xlu0 %5803  ;;  %v10835_v55 = vpop.permute.xlu1 %5437  ;;  %v5092_v1 = vld [vmem:[#allocation2 + $0x60] sm:$0xe]  ;;  %v7301_v29 = vcombine.low %v5141_v11, %v5125_v57  ;;  %v5031_v5 = vld [vmem:[#allocation2 + $0x74] sm:$0x1]  ;;  %v5047_v40 = vld [vmem:[#allocation2 + $0x70] sm:$0xe]  ;;  %v7238_v16 = vcombine.low %v10776_v31, %v5078_v56  ;;  %v7235_v31 = vcombine.low %v10774_v59, %v10827_v63  ;;  %v7236_v59 = vcombine.low %v10840_v58, %v5076_v9 }
 0x539   :  { %v5798_v47 = vrot.slane %v7254_v36, 1  ;;  %v7252_v10 = vcombine.low %v5092_v1, %v5076_v9  ;;  %v7207_v54 = vcombine.low %v5047_v40, %v5031_v5  ;;  %v10870_v43 = vld [vmem:[#allocation2 + $0x64] sm:$0x1]  ;;  %v5309_v39 = vrot.slane %v5307_v53, 1 }
 0x53a   :  { %v6165_v33 = vrot.slane %v7301_v29, 1  ;;  %v6029_v12 = vshll.u32 %v7284_v28, 16  ;;  %v5293_v29 = vshll.u32 %v7188_v26, 16  ;;  %v6027_v30 = vshrl.u32 %v7284_v28, 16 }
 0x53b   :  { %5903 = vrot.lane.b32.xlu0 %v7269_v17, %s8033_s22  ;;  %5453 = vrot.lane.b32.xlu1 %v5428_v44, %s8032_s19  ;;  %v5796_v37 = vrot.slane %v7252_v10, 1  ;;  %v5045_v17 = vld [vmem:[#allocation2 + $0x60] sm:$0xe]  ;;  %v5305_v44 = vshrl.u32 %v7190_v22, 16  ;;  %v5431_v11 = vrot.slane %v7207_v54, 1  ;;  %v5668_v54 = vshll.u32 %v7237_v0, 16 }
 0x53c   :  { %v10846_v42 = vpop.permute.xlu0 %5883  ;;  %v10848_v62 = vpop.permute.xlu1 %5517  ;;  %v7205_v7 = vcombine.low %v5045_v17, %v10870_v43  ;;  %v5295_v53 = vrot.slane %v5293_v29, 1  ;;  %v7285_v28 = vcombine.low %v10825_v3, %v5125_v57  ;;  %v5654_v63 = vshll.u32 %v7235_v31, 16  ;;  %v11060_v15 = vld [vmem:[#allocation2 + $0x80] sm:$0xf] }
 0x53d   :  { %v5310_v1 = vor.u32 %v5309_v39, %v5305_v44  ;;  %v10901_v39 = vld [vmem:[#allocation2 + $0x70] sm:$0xf]  ;;  %v5143_v34 = vld [vmem:[#allocation2 + $0x80] sm:$0xe] }
 0x53e   :  { %v5429_v27 = vrot.slane %v7205_v7, 1  ;;  %11629 = vst [vmem:[#allocation10_spill] sm:$0xff] %v10901_v39  ;;  %v7191_v3 = vcombine.low %v10901_v39, %v5031_v5  ;;  %v5656_v57 = vrot.slane %v5654_v63, 1  ;;  %v8022_v39 = vld [vmem:[#allocation2 + $0x10] sm:$0xf] }
 0x53f   :  { %5819 = vrot.lane.b32.xlu0 %v5795_v48, %s8038_s18  ;;  %5533 = vrot.lane.b32.xlu1 %v7220_v60, %s8037_s17  ;;  %v10882_v48 = vld [vmem:[#allocation2 + $0x64] sm:$0x1] }
 0x540   :  { %v10862_v38 = vpop.permute.xlu0 %6175  ;;  %v10864_v4 = vpop.permute.xlu1 %5809 }
 0x543   :  { %5899 = vrot.lane.b32.xlu0 %v7267_v49, %s8033_s22  ;;  %5825 = vrot.lane.b32.xlu1 %v5798_v47, %s8038_s18  ;;  %v6031_v49 = vrot.slane %v6029_v12, 1  ;;  %v5139_v47 = vld [vmem:[#allocation2 + $0x60] sm:$0xe] }
 0x544   :  { %v10872_v50 = vpop.permute.xlu0 %5443  ;;  %v10874_v35 = vpop.permute.xlu1 %5805  ;;  %v7299_v56 = vcombine.low %v5139_v47, %v10882_v48 }
 0x545   :  { %v6032_v40 = vor.u32 %v6031_v49, %v6027_v30  ;;  %v5666_v49 = vshrl.u32 %v7237_v0, 16  ;;  %v10910_v30 = vld [vmem:[#allocation2 + $0x88] sm:$0xf] }
 0x546   :  { %v6163_v44 = vrot.slane %v7299_v56, 1  ;;  %v5661_v56 = vshll.u32 %v7236_v59, 16  ;;  %v7272_v5 = vcombine.low %v10910_v30, %v10910_v30 }
 0x547   :  { %6191 = vrot.lane.b32.xlu0 %v6165_v33, %s8034_s23  ;;  %5821 = vrot.lane.b32.xlu1 %v5796_v37, %s8038_s18  ;;  %v5675_v33 = vshll.u32 %v7238_v16, 16  ;;  %v5291_v37 = vshrl.u32 %v7188_v26, 16  ;;  %v5673_v26 = vshrl.u32 %v7238_v16, 16 }
 0x548   :  { %v10884_v60 = vpop.permute.xlu0 %5439  ;;  %v10886_v36 = vpop.permute.xlu1 %5345  ;;  %v5663_v63 = vrot.slane %v5661_v56, 1 }
 0x549   :  { %v5296_v7 = vor.u32 %v5295_v53, %v5291_v37  ;;  %v8020_v53 = vld [vmem:[#allocation2 + $0x8] sm:$0xf] }
 0x54b   :  { %5459 = vrot.lane.b32.xlu0 %v5431_v11, %s8032_s19  ;;  %5361 = vrot.lane.b32.xlu1 %v5310_v1, %s8035_s24  ;;  %v5670_v11 = vrot.slane %v5668_v54, 1  ;;  %v5677_v1 = vrot.slane %v5675_v33, 1 }
 0x54c   :  { %v10893_v22 = vpop.permute.xlu0 %6171  ;;  %v10895_v10 = vpop.permute.xlu1 %6077 }
 0x54d   :  { %v5671_v47 = vor.u32 %v5670_v11, %v5666_v49  ;;  %v5678_v29 = vor.u32 %v5677_v1, %v5673_v26  ;;  %v8021_v1 = vld [vmem:[#allocation2] sm:$0xf] }
 0x54e   :  { %v6205_v49 = vsel %vm1851_vm10, %v8021_v1, %v10699_v25  ;;  %v5312_v25 = vshrl.u32 %v7191_v3, 16 }
 0x54f   :  { %6093 = vrot.lane.b32.xlu1 %v6032_v40, %s8036_s27  ;;  %5455 = vrot.lane.b32.xlu0 %v5429_v27, %s8032_s19  ;;  %v6036_v27 = vshll.u32 %v7285_v28, 16  ;;  %v5652_v40 = vshrl.u32 %v7235_v31, 16  ;;  %v6034_v31 = vshrl.u32 %v7285_v28, 16  ;;  %v10937_v28 = vld [vmem:[#allocation2 + $0x8c] sm:$0x1] }
 0x550   :  { %v10903_v12 = vpop.permute.xlu0 %5711  ;;  %v5342_v17 = vpop.permute.xlu1 %5341 }
 0x551   :  { %v6208_v0 = vsel %vm1851_vm10, %v8020_v53, %v5342_v17  ;;  %v5657_v33 = vor.u32 %v5656_v57, %v5652_v40  ;;  %v6038_v37 = vrot.slane %v6036_v27, 1  ;;  %v5659_v17 = vshrl.u32 %v7236_v59, 16  ;;  %v10935_v40 = vld [vmem:[#allocation2 + $0x78] sm:$0xf]  ;;  %v5050_v59 = vld [vmem:[#allocation2 + $0x88] sm:$0xe] }
 0x552   :  { %v6254_v11 = vsel %vm1900_vm11, %v6208_v0, %v10835_v55  ;;  %v7283_v0 = vcombine.low %v10852_v2, %v10882_v48 }
 0x553   :  { %6187 = vrot.lane.b32.xlu0 %v6163_v44, %s8034_s23  ;;  %5357 = vrot.lane.b32.xlu1 %v5296_v7, %s8035_s24  ;;  %v5314_v44 = vshll.u32 %v7191_v3, 16  ;;  %v10921_v7 = vld [vmem:[#allocation2 + $0x60] sm:$0xf]  ;;  %v5664_v27 = vor.u32 %v5663_v63, %v5659_v17  ;;  %v6286_v55 = vsel %vm1933_vm12, %v6254_v11, %v10848_v62  ;;  %v10952_v63 = vld [vmem:[#allocation2 + $0x88] sm:$0xf] }
 0x554   :  { %v5708_v58 = vpop.permute.xlu0 %5707  ;;  %v10908_v9 = vpop.permute.xlu1 %5713  ;;  %11630 = vst [vmem:[#allocation11_spill] sm:$0xff] %v10921_v7  ;;  %v7189_v26 = vcombine.low %v10921_v7, %v10870_v43  ;;  %v6252_v43 = vsel %vm1900_vm11, %v6205_v49, %v10708_v6  ;;  %v7225_v48 = vcombine.low %v10952_v63, %v10952_v63 }
 0x555   :  { %v5316_v56 = vrot.slane %v5314_v44, 1  ;;  %v7210_v44 = vcombine.low %v5050_v59, %v10937_v28  ;;  %v6284_v3 = vsel %vm1933_vm12, %v6252_v43, %v10784_v18 }
 0x556   :  { %v5300_v11 = vshll.u32 %v7189_v26, 16  ;;  %v6316_v2 = vsel %vm1966_vm13, %v6284_v3, %v5708_v58 }
 0x557   :  { %5727 = vrot.lane.b32.xlu0 %v5671_v47, %s8039_s20  ;;  %5729 = vrot.lane.b32.xlu1 %v5678_v29, %s8039_s20  ;;  %v6039_v29 = vor.u32 %v6038_v37, %v6034_v31  ;;  %v7270_v37 = vcombine.low %v10935_v40, %v10935_v40  ;;  %v5434_v18 = vrot.slane %v7210_v44, 1  ;;  %v6348_v58 = vsel %vm1999_vm14, %v6316_v2, %v10833_v52  ;;  %v10988_v44 = vld [vmem:[#allocation2 + $0x7c] sm:$0x1] }
 0x558   :  { %v10917_v16 = vpop.permute.xlu0 %6079  ;;  %v10919_v54 = vpop.permute.xlu1 %5893  ;;  %v5302_v49 = vrot.slane %v5300_v11, 1  ;;  %v6380_v59 = vsel %vm2032_vm15, %v6348_v58, %v10846_v42  ;;  %v6020_v42 = vshrl.u32 %v7283_v0, 16 }
 0x55b   :  { %5723 = vrot.lane.b32.xlu0 %v5657_v33, %s8039_s20  ;;  %5909 = vrot.lane.b32.xlu1 %v7272_v5, %s8033_s22  ;;  %v5317_v33 = vor.u32 %v5316_v56, %v5312_v25 }
 0x55c   :  { %v10931_v57 = vpop.permute.xlu0 %5347  ;;  %v5710_v47 = vpop.permute.xlu1 %5709 }
 0x55d   :  { %v6318_v53 = vsel %vm1966_vm13, %v6286_v55, %v5710_v47  ;;  %v10970_v47 = vld [vmem:[#allocation2 + $0x90] sm:$0xf] }
 0x55e   :  { %v6350_v6 = vsel %vm1999_vm14, %v6318_v53, %v10874_v35  ;;  %v6022_v35 = vshll.u32 %v7283_v0, 16  ;;  %v7226_v55 = vcombine.low %v10970_v47, %v10970_v47  ;;  %v11006_v0 = vld [vmem:[#allocation2 + $0x88] sm:$0xf] }
 0x55f   :  { %6095 = vrot.lane.b32.xlu0 %v6039_v29, %s8036_s27  ;;  %5725 = vrot.lane.b32.xlu1 %v5664_v27, %s8039_s20  ;;  %v6382_v31 = vsel %vm2032_vm15, %v6350_v6, %v10772_v61  ;;  %v10974_v29 = vld [vmem:[#allocation2 + $0x7c] sm:$0x1]  ;;  %v5142_v27 = vld [vmem:[#allocation2 + $0x78] sm:$0xe]  ;;  %v5298_v61 = vshrl.u32 %v7189_v26, 16  ;;  %11631 = vst [vmem:[#allocation28_spill] sm:$0xff] %v11006_v0 }
 0x560   :  { %v10946_v5 = vpop.permute.xlu0 %5527  ;;  %v10948_v62 = vpop.permute.xlu1 %5889  ;;  %v6414_v56 = vsel %vm2065_vm0, %v6382_v31, %v10895_v10  ;;  %v6024_v43 = vrot.slane %v6022_v35, 1  ;;  %v5048_v26 = vld [vmem:[#allocation2 + $0x78] sm:$0xe] }
 0x561   :  { %v5303_v52 = vor.u32 %v5302_v49, %v5298_v61  ;;  %v6446_v11 = vsel %vm2098_vm1, %v6414_v56, %v10822_v21  ;;  %v5081_v49 = vld [vmem:[#allocation2 + $0x8c] sm:$0x1]  ;;  %v5097_v21 = vld [vmem:[#allocation2 + $0x88] sm:$0xe] }
 0x562   :  { %v7257_v56 = vcombine.low %v5097_v21, %v5081_v49  ;;  %v7241_v8 = vcombine.low %v10952_v63, %v5081_v49 }
 0x563   :  { %5363 = vrot.lane.b32.xlu0 %v5317_v33, %s8035_s24  ;;  %5905 = vrot.lane.b32.xlu1 %v7270_v37, %s8033_s22  ;;  %v7302_v33 = vcombine.low %v5142_v27, %v10974_v29 }
 0x564   :  { %v10966_v17 = vpop.permute.xlu0 %5343  ;;  %v10968_v1 = vpop.permute.xlu1 %5449 }
 0x565   :  { %v6166_v31 = vrot.slane %v7302_v33, 1 }
 0x567   :  { %5543 = vrot.lane.b32.xlu0 %v7225_v48, %s8037_s17  ;;  %5465 = vrot.lane.b32.xlu1 %v5434_v18, %s8032_s19  ;;  %v6025_v48 = vor.u32 %v6024_v43, %v6020_v42  ;;  %v7208_v18 = vcombine.low %v5048_v26, %v10988_v44  ;;  %v7194_v43 = vcombine.low %v11006_v0, %v10937_v28  ;;  %v5801_v26 = vrot.slane %v7257_v56, 1  ;;  %v5079_v42 = vld [vmem:[#allocation2 + $0x7c] sm:$0x1] }
 0x568   :  { %v6076_v53 = vpop.permute.xlu0 %6075  ;;  %v10984_v25 = vpop.permute.xlu1 %5529 }
 0x569   :  { %v6412_v37 = vsel %vm2065_vm0, %v6380_v59, %v6076_v53  ;;  %v5432_v61 = vrot.slane %v7208_v18, 1  ;;  %v11016_v59 = vld [vmem:[#allocation2 + $0x94] sm:$0x1]  ;;  %v5098_v53 = vld [vmem:[#allocation2 + $0x90] sm:$0xe]  ;;  %v5335_v51 = vshll.u32 %v7194_v43, 16 }
 0x56a   :  { %v6444_v10 = vsel %vm2098_vm1, %v6412_v37, %v10893_v22  ;;  %v11002_v22 = vld [vmem:[#allocation2 + $0x78] sm:$0xf]  ;;  %v5096_v18 = vld [vmem:[#allocation2 + $0x80] sm:$0xe] }
 0x56b   :  { %5359 = vrot.lane.b32.xlu0 %v5303_v52, %s8035_s24  ;;  %5545 = vrot.lane.b32.xlu1 %v7226_v55, %s8037_s17  ;;  %v7307_v3 = vcombine.low %v6444_v10, %v6446_v11  ;;  %v7223_v27 = vcombine.low %v11002_v22, %v11002_v22  ;;  %v11014_v55 = vld [vmem:[#allocation2 + $0x80] sm:$0xf]  ;;  %v11020_v52 = vld [vmem:[#allocation2 + $0x8c] sm:$0x1]  ;;  %v7258_v11 = vcombine.low %v5098_v53, %v11016_v59 }
 0x56c   :  { %v10996_v6 = vpop.permute.xlu0 %5523  ;;  %v10998_v2 = vpop.permute.xlu1 %6181  ;;  %v7224_v10 = vcombine.low %v11014_v55, %v11014_v55  ;;  %v7288_v28 = vcombine.low %v10910_v30, %v11020_v52  ;;  %v7286_v30 = vcombine.low %v10935_v40, %v10974_v29  ;;  %v5333_v40 = vshrl.u32 %v7194_v43, 16  ;;  %v8023_v29 = vld [vmem:[#allocation2 + $0x18] sm:$0xf] }
 0x56d   :  { %7541 = vmatprep.mubr.msk.bf16.mxu0 %vm2198_vm2, %v7307_v3  ;;  %v5095_v3 = vld [vmem:[#allocation2 + $0x78] sm:$0xe]  ;;  %v5802_v53 = vrot.slane %v7258_v11, 1 }
 0x56e   :  { %v7255_v21 = vcombine.low %v5095_v3, %v5079_v42  ;;  %v6043_v46 = vshll.u32 %v7286_v30, 16 }
 0x56f   :  { %6091 = vrot.lane.b32.xlu0 %v6025_v48, %s8036_s27  ;;  %6193 = vrot.lane.b32.xlu1 %v6166_v31, %s8034_s23  ;;  %v11031_v48 = vld [vmem:[#allocation2 + $0x90] sm:$0xf]  ;;  %v11033_v31 = vld [vmem:[#allocation2 + $0x84] sm:$0x1] }
 0x570   :  { %v11008_v35 = vpop.permute.xlu0 %5815  ;;  %v11010_v58 = vpop.permute.xlu1 %6177  ;;  %v7273_v56 = vcombine.low %v11031_v48, %v11031_v48  ;;  %v7256_v20 = vcombine.low %v5096_v18, %v11033_v31  ;;  %v5799_v3 = vrot.slane %v7255_v21, 1  ;;  %v7271_v21 = vcombine.low %v11060_v15, %v11060_v15 }
 0x572   :  { %v5800_v7 = vrot.slane %v7256_v20, 1 }
 0x573   :  { %5539 = vrot.lane.b32.xlu0 %v7223_v27, %s8037_s17  ;;  %5461 = vrot.lane.b32.xlu1 %v5432_v61, %s8032_s19 }
 0x574   :  { %v11024_v33 = vpop.permute.xlu0 %5895  ;;  %v11026_v37 = vpop.permute.xlu1 %5445 }
 0x577   :  { %5831 = vrot.lane.b32.xlu0 %v5801_v26, %s8038_s18  ;;  %5541 = vrot.lane.b32.xlu1 %v7224_v10, %s8037_s17  ;;  %v6211_v26 = vsel %vm1851_vm10, %v8022_v39, %v10966_v17  ;;  %v11052_v10 = vld [vmem:[#allocation2 + $0x78] sm:$0xf]  ;;  %v5337_v39 = vrot.slane %v5335_v51, 1  ;;  %v6057_v17 = vshll.u32 %v7288_v28, 16 }
 0x578   :  { %v11039_v27 = vpop.permute.xlu0 %5811  ;;  %v11041_v61 = vpop.permute.xlu1 %5525  ;;  %11632 = vst [vmem:[#allocation29_spill] sm:$0xff] %v11052_v10  ;;  %v6256_v11 = vsel %vm1900_vm11, %v6211_v26, %v10884_v60  ;;  %v6214_v60 = vsel %vm1851_vm10, %v8023_v29, %v10886_v36  ;;  %v7192_v51 = vcombine.low %v11052_v10, %v10988_v44  ;;  %v6055_v44 = vshrl.u32 %v7288_v28, 16 }
 0x579   :  { %v6288_v20 = vsel %vm1933_vm12, %v6256_v11, %v10770_v24  ;;  %v5338_v49 = vor.u32 %v5337_v39, %v5333_v40  ;;  %v6059_v43 = vrot.slane %v6057_v17, 1  ;;  %v11079_v24 = vld [vmem:[#allocation2 + $0x94] sm:$0x1]  ;;  %v5696_v11 = vshll.u32 %v7241_v8, 16 }
 0x57a   :  { %v6320_v36 = vsel %vm1966_vm13, %v6288_v20, %v10903_v12  ;;  %v6258_v29 = vsel %vm1900_vm11, %v6214_v60, %v10786_v45  ;;  %v7239_v39 = vcombine.low %v11002_v22, %v5079_v42  ;;  %v7242_v40 = vcombine.low %v10970_v47, %v11016_v59  ;;  %v11104_v22 = vld [vmem:[#allocation2 + $0x80] sm:$0xf] }
 0x57b   :  { %5911 = vrot.lane.b32.xlu0 %v7273_v56, %s8033_s22  ;;  %5833 = vrot.lane.b32.xlu1 %v5802_v53, %s8038_s18  ;;  %v5033_v56 = vld [vmem:[#allocation2 + $0x84] sm:$0x1]  ;;  %v5049_v53 = vld [vmem:[#allocation2 + $0x80] sm:$0xe]  ;;  %v6060_v23 = vor.u32 %v6059_v43, %v6055_v44  ;;  %v6352_v28 = vsel %vm1999_vm14, %v6320_v36, %v10796_v14  ;;  %v6290_v45 = vsel %vm1933_vm12, %v6258_v29, %v10798_v32  ;;  %v6041_v47 = vshrl.u32 %v7286_v30, 16 }
 0x57c   :  { %v11056_v0 = vpop.permute.xlu0 %5891  ;;  %v11058_v18 = vpop.permute.xlu1 %5817  ;;  %v5694_v59 = vshrl.u32 %v7241_v8, 16  ;;  %v6322_v60 = vsel %vm1966_vm13, %v6290_v45, %v10908_v9  ;;  %v5319_v30 = vshrl.u32 %v7192_v51, 16  ;;  %v11115_v43 = vcombine.low %v11104_v22, %v5033_v56 }
 0x57d   :  { %v6354_v9 = vsel %vm1999_vm14, %v6322_v60, %v10864_v4  ;;  %v8024_v60 = vld [vmem:[#allocation2 + $0x38] sm:$0xf] }
 0x57f   :  { %5827 = vrot.lane.b32.xlu0 %v5799_v3, %s8038_s18  ;;  %5829 = vrot.lane.b32.xlu1 %v5800_v7, %s8038_s18  ;;  %v7209_v7 = vcombine.low %v5049_v53, %v5033_v56  ;;  %v5127_v3 = vld [vmem:[#allocation2 + $0x84] sm:$0x1]  ;;  %v5321_v53 = vshll.u32 %v7192_v51, 16 }
 0x580   :  { %v11073_v26 = vpop.permute.xlu0 %6183  ;;  %v11075_v63 = vpop.permute.xlu1 %5813  ;;  %v7303_v17 = vcombine.low %v5143_v34, %v5127_v3  ;;  %v11100_v34 = vcombine.low %v11014_v55, %v11033_v31  ;;  %v6384_v31 = vsel %vm2032_vm15, %v6352_v28, %v10820_v13  ;;  %v6386_v13 = vsel %vm2032_vm15, %v6354_v9, %v10948_v62 }
 0x581   :  { %v5433_v20 = vrot.slane %v7209_v7, 1  ;;  %v5323_v42 = vrot.slane %v5321_v53, 1  ;;  %v6416_v36 = vsel %vm2065_vm0, %v6384_v31, %v10917_v16  ;;  %v5701_v62 = vshrl.u32 %v7242_v40, 16  ;;  %v5146_v31 = vld [vmem:[#allocation2 + $0x98] sm:$0xe] }
 0x582   :  { %v6167_v14 = vrot.slane %v7303_v17, 1  ;;  %v5689_v53 = vshll.u32 %v11100_v34, 16  ;;  %v6448_v4 = vsel %vm2098_vm1, %v6416_v36, %v10862_v38  ;;  %v7287_v28 = vcombine.low %v11060_v15, %v5127_v3  ;;  %v5144_v38 = vld [vmem:[#allocation2 + $0x88] sm:$0xe] }
 0x583   :  { %5907 = vrot.lane.b32.xlu0 %v7271_v21, %s8033_s22  ;;  %5369 = vrot.lane.b32.xlu1 %v5338_v49, %s8035_s24  ;;  %v6045_v21 = vrot.slane %v6043_v46, 1  ;;  %v11094_v49 = vcombine.low %v11031_v48, %v11079_v24  ;;  %v5698_v46 = vrot.slane %v5696_v11, 1  ;;  %v5682_v48 = vshll.u32 %v7239_v39, 16 }
 0x584   :  { %v11088_v10 = vpop.permute.xlu0 %5447  ;;  %v5354_v12 = vpop.permute.xlu1 %5353  ;;  %v5324_v44 = vor.u32 %v5323_v42, %v5319_v30  ;;  %v5687_v3 = vshrl.u32 %v11100_v34, 16  ;;  %v8027_v34 = vld [vmem:[#allocation2 + $0x9c] sm:$0x1] }
 0x585   :  { %v6046_v55 = vor.u32 %v6045_v21, %v6041_v47  ;;  %v5699_v8 = vor.u32 %v5698_v46, %v5694_v59  ;;  %v5684_v11 = vrot.slane %v5682_v48, 1  ;;  %v6064_v17 = vshll.u32 %v11094_v49, 16 }
 0x586   :  { %v5680_v21 = vshrl.u32 %v7239_v39, 16  ;;  %v5691_v39 = vrot.slane %v5689_v53, 1  ;;  %v5328_v48 = vshll.u32 %v11115_v43, 16  ;;  %v6062_v15 = vshrl.u32 %v11094_v49, 16 }
 0x587   :  { %5463 = vrot.lane.b32.xlu0 %v5433_v20, %s8032_s19  ;;  %6101 = vrot.lane.b32.xlu1 %v6060_v23, %s8036_s27  ;;  %v5703_v23 = vshll.u32 %v7242_v40, 16  ;;  %v6066_v42 = vrot.slane %v6064_v17, 1  ;;  %v7304_v40 = vcombine.low %v5144_v38, %v11020_v52  ;;  %v5326_v52 = vshrl.u32 %v11115_v43, 16 }
 0x588   :  { %v11108_v32 = vpop.permute.xlu0 %6179  ;;  %v11110_v7 = vpop.permute.xlu1 %6085  ;;  %v5685_v47 = vor.u32 %v5684_v11, %v5680_v21  ;;  %v5692_v9 = vor.u32 %v5691_v39, %v5687_v3  ;;  %v5330_v36 = vrot.slane %v5328_v48, 1  ;;  %v8028_v39 = vld [vmem:[#allocation2 + $0x30] sm:$0xf] }
 0x589   :  { %v5705_v29 = vrot.slane %v5703_v23, 1 }
 0x58a   :  { %v5331_v21 = vor.u32 %v5330_v36, %v5326_v52 }
 0x58b   :  { %6195 = vrot.lane.b32.xlu0 %v6167_v14, %s8034_s23  ;;  %6097 = vrot.lane.b32.xlu1 %v6046_v55, %s8036_s27  ;;  %v5706_v59 = vor.u32 %v5705_v29, %v5701_v62  ;;  %v6050_v55 = vshll.u32 %v7287_v28, 16  ;;  %v6168_v29 = vrot.slane %v7304_v40, 1  ;;  %v5145_v62 = vld [vmem:[#allocation2 + $0x90] sm:$0xe] }
 0x58c   :  { %v11125_v51 = vpop.permute.xlu0 %5719  ;;  %v6082_v56 = vpop.permute.xlu1 %6081 }
 0x58d   :  { %v6418_v20 = vsel %vm2065_vm0, %v6386_v13, %v6082_v56  ;;  %v8026_v13 = vld [vmem:[#allocation2 + $0x28] sm:$0xf] }
 0x58e   :  { %v6450_v16 = vsel %vm2098_vm1, %v6418_v20, %v11010_v58  ;;  %v6226_v58 = vsel %vm1851_vm10, %v8024_v60, %v5354_v12  ;;  %v6067_v12 = vor.u32 %v6066_v42, %v6062_v15 }
 0x58f   :  { %5735 = vrot.lane.b32.xlu0 %v5699_v8, %s8039_s20  ;;  %5365 = vrot.lane.b32.xlu1 %v5324_v44, %s8035_s24  ;;  %v7308_v45 = vcombine.low %v6448_v4, %v6450_v16  ;;  %v6266_v23 = vsel %vm1900_vm11, %v6226_v58, %v10968_v1  ;;  %v8025_v44 = vld [vmem:[#allocation2 + $0x20] sm:$0xf]  ;;  %v7306_v1 = vcombine.low %v5146_v31, %v8027_v34  ;;  %v6052_v4 = vrot.slane %v6050_v55, 1 }
 0x590   :  { %v5716_v46 = vpop.permute.xlu0 %5715  ;;  %v5350_v14 = vpop.permute.xlu1 %5349  ;;  %v6217_v11 = vsel %vm1851_vm10, %v8025_v44, %v10931_v57  ;;  %v6298_v56 = vsel %vm1933_vm12, %v6266_v23, %v10984_v25  ;;  %v11633_v23 = vld [vmem:[#allocation20_spill] sm:$0xff]  ;;  %v11634_v34 = vld [vmem:[#allocation23_spill] sm:$0xff] }
 0x591   :  { %7542 = vmatmul.mubr.msk.bf16.vlgmr.msra.gmra.mrb[20].mxu0 %vm2198_vm2, %v7308_v45  ;;  %v6220_v49 = vsel %vm1851_vm10, %v8026_v13, %v5350_v14  ;;  %v6260_v17 = vsel %vm1900_vm11, %v6217_v11, %v10872_v50  ;;  %v6048_v50 = vshrl.u32 %v7287_v28, 16  ;;  %v6170_v45 = vrot.slane %v7306_v1, 1 }
 0x592   :  { %v6292_v43 = vsel %vm1933_vm12, %v6260_v17, %v10996_v6  ;;  %v6262_v16 = vsel %vm1900_vm11, %v6220_v49, %v11026_v37  ;;  %v7305_v37 = vcombine.low %v5145_v62, %v11079_v24 }
 0x593   :  { %5731 = vrot.lane.b32.xlu0 %v5685_v47, %s8039_s20  ;;  %5737 = vrot.lane.b32.xlu1 %v5706_v59, %s8039_s20  ;;  %v6324_v25 = vsel %vm1966_vm13, %v6292_v43, %v5716_v46  ;;  %v6294_v59 = vsel %vm1933_vm12, %v6262_v16, %v11041_v61  ;;  %v6053_v42 = vor.u32 %v6052_v4, %v6048_v50 }
 0x594   :  { %v6088_v30 = vpop.permute.xlu0 %6087  ;;  %v5722_v8 = vpop.permute.xlu1 %5721  ;;  %v6356_v46 = vsel %vm1999_vm14, %v6324_v25, %v11039_v27  ;;  %v6169_v15 = vrot.slane %v7305_v37, 1 }
 0x595   :  { %v6330_v57 = vsel %vm1966_vm13, %v6298_v56, %v5722_v8 }
 0x596   :  { %v6362_v47 = vsel %vm1999_vm14, %v6330_v57, %v11058_v18 }
 0x597   :  { %6103 = vrot.lane.b32.xlu0 %v6067_v12, %s8036_s27  ;;  %5733 = vrot.lane.b32.xlu1 %v5692_v9, %s8039_s20  ;;  %v6394_v38 = vsel %vm2032_vm15, %v6362_v47, %v10665_v19  ;;  %v6388_v19 = vsel %vm2032_vm15, %v6356_v46, %v11056_v0  ;;  %v11635_v47 = vld [vmem:[#allocation51_spill] sm:$0xff] }
 0x598   :  { %v11158_v53 = vpop.permute.xlu0 %5535  ;;  %v11160_v20 = vpop.permute.xlu1 %5901  ;;  %v6426_v3 = vsel %vm2065_vm0, %v6394_v38, %v10691_v41 }
 0x599   :  { %v6458_v8 = vsel %vm2098_vm1, %v6426_v3, %v11633_v23 }
 0x59b   :  { %5367 = vrot.lane.b32.xlu0 %v5331_v21, %s8035_s24  ;;  %6197 = vrot.lane.b32.xlu1 %v6168_v29, %s8034_s23 }
 0x59c   :  { %v5352_v14 = vpop.permute.xlu0 %5351  ;;  %v5718_v6 = vpop.permute.xlu1 %5717 }
 0x59d   :  { %v6223_v48 = vsel %vm1851_vm10, %v8028_v39, %v5352_v14  ;;  %v6326_v28 = vsel %vm1966_vm13, %v6294_v59, %v5718_v6  ;;  %v8029_v39 = vld [vmem:[#allocation2 + $0x50] sm:$0xf] }
 0x59e   :  { %v6264_v18 = vsel %vm1900_vm11, %v6223_v48, %v11088_v10  ;;  %v6358_v61 = vsel %vm1999_vm14, %v6326_v28, %v11075_v63  ;;  %v11636_v48 = vld [vmem:[#allocation25_spill] sm:$0xff] }
 0x59f   :  { %6099 = vrot.lane.b32.xlu0 %v6053_v42, %s8036_s27  ;;  %6201 = vrot.lane.b32.xlu1 %v6170_v45, %s8034_s23  ;;  %v6296_v27 = vsel %vm1933_vm12, %v6264_v18, %v10946_v5  ;;  %v6390_v24 = vsel %vm2032_vm15, %v6358_v61, %v10919_v54  ;;  %v6229_v28 = vsel %vm1851_vm10, %v8029_v39, %v11636_v48  ;;  %v11637_v61 = vld [vmem:[#allocation43_spill] sm:$0xff] }
 0x5a0   :  { %v6328_v60 = vsel %vm1966_vm13, %v6296_v27, %v11125_v51  ;;  %v6084_v10 = vpop.permute.xlu0 %6083  ;;  %v6422_v63 = vsel %vm2065_vm0, %v6390_v24, %v11110_v7  ;;  %v5458_v58 = vpop.permute.xlu1 %5457  ;;  %v6268_v27 = vsel %vm1900_vm11, %v6229_v28, %v11637_v61 }
 0x5a1   :  { %v6360_v5 = vsel %vm1999_vm14, %v6328_v60, %v11008_v35  ;;  %v6420_v54 = vsel %vm2065_vm0, %v6388_v19, %v6084_v10  ;;  %v6454_v51 = vsel %vm2098_vm1, %v6422_v63, %v10998_v2 }
 0x5a2   :  { %v6452_v0 = vsel %vm2098_vm1, %v6420_v54, %v11108_v32  ;;  %v6392_v7 = vsel %vm2032_vm15, %v6360_v5, %v11024_v33  ;;  %v11638_v54 = vld [vmem:[#allocation11_spill] sm:$0xff] }
 0x5a3   :  { %6199 = vrot.lane.b32.xlu0 %v6169_v15, %s8034_s23  ;;  %v7309_v40 = vcombine.low %v6452_v0, %v6454_v51  ;;  %v6424_v55 = vsel %vm2065_vm0, %v6392_v7, %v6088_v30 }
 0x5a4   :  { %v6456_v35 = vsel %vm2098_vm1, %v6424_v55, %v11073_v26 }
 0x5a5   :  { %v5532_v41 = vpop.permute.xlu0 %5531  ;;  %v5538_v31 = vpop.permute.xlu1 %5537  ;;  %7545 = vmatprep.mubr.msk.bf16.mxu0 %vm2198_vm2, %v7309_v40  ;;  %v7310_v2 = vcombine.low %v6456_v35, %v6458_v8 }
 0x5a6   :  { %v6300_v19 = vsel %vm1933_vm12, %v6268_v27, %v5532_v41 }
 0x5a7   :  { %7546 = vmatmul.mubr.msk.bf16.gmra.mrb[24].mxu0 %vm2198_vm2, %v7310_v2 }
 0x5a9   :  { %v5824_v32 = vpop.permute.xlu0 %5823  ;;  %v6190_v12 = vpop.permute.xlu1 %6189 }
 0x5ad   :  { %v5904_v9 = vpop.permute.xlu0 %5903  ;;  %v5454_v33 = vpop.permute.xlu1 %5453 }
 0x5b1   :  { %v5820_v36 = vpop.permute.xlu0 %5819  ;;  %v5534_v44 = vpop.permute.xlu1 %5533 }
 0x5b5   :  { %v5900_v30 = vpop.permute.xlu0 %5899  ;;  %v5826_v11 = vpop.permute.xlu1 %5825 }
 0x5b9   :  { %v6192_v13 = vpop.permute.xlu0 %6191  ;;  %v5822_v49 = vpop.permute.xlu1 %5821 }
 0x5bd   :  { %v11215_v52 = vpop.permute.xlu0 %5459  ;;  %v5362_v26 = vpop.permute.xlu1 %5361 }
 0x5be   :  { %v6238_v1 = vsel %vm1851_vm10, %v11634_v34, %v5362_v26 }
 0x5bf   :  { %v6274_v56 = vsel %vm1900_vm11, %v6238_v1, %v5458_v58 }
 0x5c0   :  { %v6306_v29 = vsel %vm1933_vm12, %v6274_v56, %v5538_v31 }
 0x5c1   :  { %v5456_v17 = vpop.permute.xlu0 %5455  ;;  %v6094_v57 = vpop.permute.xlu1 %6093 }
 0x5c5   :  { %v6188_v21 = vpop.permute.xlu0 %6187  ;;  %v5358_v4 = vpop.permute.xlu1 %5357 }
 0x5c6   :  { %v6232_v14 = vsel %vm1851_vm10, %v11635_v47, %v5358_v4  ;;  %v11639_v47 = vld [vmem:[#allocation29_spill] sm:$0xff] }
 0x5c7   :  { %v6270_v42 = vsel %vm1900_vm11, %v6232_v14, %v5454_v33 }
 0x5c8   :  { %v6302_v38 = vsel %vm1933_vm12, %v6270_v42, %v5534_v44 }
 0x5c9   :  { %v5728_v43 = vpop.permute.xlu0 %5727  ;;  %v5730_v16 = vpop.permute.xlu1 %5729 }
 0x5ca   :  { %v6338_v62 = vsel %vm1966_vm13, %v6306_v29, %v5730_v16 }
 0x5cb   :  { %v6370_v25 = vsel %vm1999_vm14, %v6338_v62, %v5826_v11 }
 0x5cd   :  { %v5724_v50 = vpop.permute.xlu0 %5723  ;;  %v11223_v45 = vpop.permute.xlu1 %5909 }
 0x5ce   :  { %v6332_v63 = vsel %vm1966_vm13, %v6300_v19, %v5724_v50 }
 0x5cf   :  { %v6364_v5 = vsel %vm1999_vm14, %v6332_v63, %v5820_v36 }
 0x5d0   :  { %v6396_v41 = vsel %vm2032_vm15, %v6364_v5, %v5900_v30 }
 0x5d1   :  { %v6096_v59 = vpop.permute.xlu0 %6095  ;;  %v5726_v6 = vpop.permute.xlu1 %5725 }
 0x5d2   :  { %v6334_v18 = vsel %vm1966_vm13, %v6302_v38, %v5726_v6 }
 0x5d3   :  { %v6366_v10 = vsel %vm1999_vm14, %v6334_v18, %v5822_v49 }
 0x5d4   :  { %v6398_v58 = vsel %vm2032_vm15, %v6366_v10, %v11160_v20 }
 0x5d5   :  { %v5364_v37 = vpop.permute.xlu0 %5363  ;;  %v5906_v46 = vpop.permute.xlu1 %5905  ;;  %v6430_v40 = vsel %vm2065_vm0, %v6398_v58, %v6094_v57 }
 0x5d6   :  { %v6462_v2 = vsel %vm2098_vm1, %v6430_v40, %v6190_v12 }
 0x5d9   :  { %v11234_v24 = vpop.permute.xlu0 %5543  ;;  %v5466_v60 = vpop.permute.xlu1 %5465 }
 0x5dd   :  { %v5360_v15 = vpop.permute.xlu0 %5359  ;;  %v5546_v3 = vpop.permute.xlu1 %5545 }
 0x5de   :  { %v6235_v51 = vsel %vm1851_vm10, %v11638_v54, %v5360_v15 }
 0x5df   :  { %v6272_v0 = vsel %vm1900_vm11, %v6235_v51, %v5456_v17 }
 0x5e0   :  { %v6304_v7 = vsel %vm1933_vm12, %v6272_v0, %v11158_v53 }
 0x5e1   :  { %v6336_v55 = vsel %vm1966_vm13, %v6304_v7, %v5728_v43  ;;  %v6092_v31 = vpop.permute.xlu0 %6091  ;;  %v6194_v20 = vpop.permute.xlu1 %6193 }
 0x5e2   :  { %v6368_v35 = vsel %vm1999_vm14, %v6336_v55, %v5824_v32  ;;  %v6428_v23 = vsel %vm2065_vm0, %v6396_v41, %v6092_v31 }
 0x5e3   :  { %v6460_v8 = vsel %vm2098_vm1, %v6428_v23, %v6188_v21  ;;  %v6400_v33 = vsel %vm2032_vm15, %v6368_v35, %v5904_v9  ;;  %v6402_v9 = vsel %vm2032_vm15, %v6370_v25, %v5906_v46  ;;  %v11641_v25 = vld [vmem:[#allocation10_spill] sm:$0xff] }
 0x5e4   :  { %v7311_v36 = vcombine.low %v6460_v8, %v6462_v2  ;;  %v6432_v53 = vsel %vm2065_vm0, %v6400_v33, %v6096_v59  ;;  %v11640_v59 = vld [vmem:[#allocation28_spill] sm:$0xff]  ;;  %v6241_v46 = vsel %vm1851_vm10, %v11641_v25, %v5364_v37  ;;  %v11647_v25 = vld [vmem:[#allocation47_spill] sm:$0xff] }
 0x5e5   :  { %v5540_v44 = vpop.permute.xlu0 %5539  ;;  %v5462_v11 = vpop.permute.xlu1 %5461  ;;  %v6464_v49 = vsel %vm2098_vm1, %v6432_v53, %v6192_v13  ;;  %v6276_v38 = vsel %vm1900_vm11, %v6241_v46, %v11215_v52  ;;  %v11643_v53 = vld [vmem:[#allocation17_spill] sm:$0xff] }
 0x5e6   :  { %7549 = vmatprep.mubr.msk.bf16.mxu0 %vm2198_vm2, %v7311_v36  ;;  %v6308_v19 = vsel %vm1933_vm12, %v6276_v38, %v5540_v44 }
 0x5e9   :  { %v5832_v30 = vpop.permute.xlu0 %5831  ;;  %v5542_v26 = vpop.permute.xlu1 %5541 }
 0x5ed   :  { %v5912_v32 = vpop.permute.xlu0 %5911  ;;  %v5834_v34 = vpop.permute.xlu1 %5833 }
 0x5f1   :  { %v5828_v1 = vpop.permute.xlu0 %5827  ;;  %v5830_v56 = vpop.permute.xlu1 %5829 }
 0x5f5   :  { %v5908_v29 = vpop.permute.xlu0 %5907  ;;  %v5370_v17 = vpop.permute.xlu1 %5369 }
 0x5f6   :  { %v6250_v6 = vsel %vm1851_vm10, %v11640_v59, %v5370_v17 }
 0x5f7   :  { %v6282_v28 = vsel %vm1900_vm11, %v6250_v6, %v5466_v60  ;;  %v11646_v6 = vld [vmem:[#allocation14_spill] sm:$0xff] }
 0x5f8   :  { %v6314_v58 = vsel %vm1933_vm12, %v6282_v28, %v5546_v3 }
 0x5f9   :  { %v5464_v12 = vpop.permute.xlu0 %5463  ;;  %v6102_v57 = vpop.permute.xlu1 %6101 }
 0x5fd   :  { %v6196_v21 = vpop.permute.xlu0 %6195  ;;  %v6098_v4 = vpop.permute.xlu1 %6097 }
 0x5fe   :  { %v6434_v43 = vsel %vm2065_vm0, %v6402_v9, %v6098_v4 }
 0x5ff   :  { %v6466_v13 = vsel %vm2098_vm1, %v6434_v43, %v6194_v20  ;;  %v11642_v20 = vld [vmem:[#allocation3_spill] sm:$0xff] }
 0x600   :  { %v7312_v16 = vcombine.low %v6464_v49, %v6466_v13  ;;  %v11644_v13 = vld [vmem:[#allocation13_spill] sm:$0xff] }
 0x601   :  { %v5736_v62 = vpop.permute.xlu0 %5735  ;;  %v5366_v50 = vpop.permute.xlu1 %5365 }
 0x602   :  { %7550 = vmatmul.mubr.msk.bf16.gmra.mrb[28].mxu0 %vm2198_vm2, %v7312_v16  ;;  %v6244_v14 = vsel %vm1851_vm10, %v11639_v47, %v5366_v50  ;;  %v11645_v50 = vld [vmem:[#allocation24_spill] sm:$0xff] }
 0x603   :  { %v6278_v48 = vsel %vm1900_vm11, %v6244_v14, %v5462_v11 }
 0x604   :  { %v6310_v61 = vsel %vm1933_vm12, %v6278_v48, %v5542_v26 }
 0x605   :  { %v5732_v42 = vpop.permute.xlu0 %5731  ;;  %v5738_v39 = vpop.permute.xlu1 %5737 }
 0x606   :  { %v6340_v63 = vsel %vm1966_vm13, %v6308_v19, %v5732_v42  ;;  %v6346_v15 = vsel %vm1966_vm13, %v6314_v58, %v5738_v39 }
 0x607   :  { %v6372_v54 = vsel %vm1999_vm14, %v6340_v63, %v5828_v1  ;;  %v6378_v0 = vsel %vm1999_vm14, %v6346_v15, %v5834_v34  ;;  %v11313_v1 = vld [vmem:[%s11431_s5 + $0x3] ss:$0 sm:$0xff] }
 0x608   :  { %v6404_v41 = vsel %vm2032_vm15, %v6372_v54, %v5908_v29  ;;  %v6410_v35 = vsel %vm2032_vm15, %v6378_v0, %v11642_v20  ;;  %v11649_v54 = vld [vmem:[#allocation49_spill] sm:$0xff] }
 0x609   :  { %v6104_v18 = vpop.permute.xlu0 %6103  ;;  %v5734_v27 = vpop.permute.xlu1 %5733  ;;  %v6442_v44 = vsel %vm2065_vm0, %v6410_v35, %v11643_v53 }
 0x60a   :  { %v6342_v10 = vsel %vm1966_vm13, %v6310_v61, %v5734_v27 }
 0x60b   :  { %v6374_v37 = vsel %vm1999_vm14, %v6342_v10, %v5830_v56 }
 0x60c   :  { %v6406_v52 = vsel %vm2032_vm15, %v6374_v37, %v11223_v45 }
 0x60d   :  { %v5368_v60 = vpop.permute.xlu0 %5367  ;;  %v6198_v5 = vpop.permute.xlu1 %6197  ;;  %v6438_v40 = vsel %vm2065_vm0, %v6406_v52, %v6102_v57 }
 0x60e   :  { %v6247_v51 = vsel %vm1851_vm10, %v11104_v22, %v5368_v60  ;;  %v6470_v23 = vsel %vm2098_vm1, %v6438_v40, %v6198_v5  ;;  %v11648_v60 = vld [vmem:[#allocation42_spill] sm:$0xff] }
 0x60f   :  { %v6280_v7 = vsel %vm1900_vm11, %v6247_v51, %v5464_v12 }
 0x610   :  { %v6312_v3 = vsel %vm1933_vm12, %v6280_v7, %v11234_v24 }
 0x611   :  { %v6344_v55 = vsel %vm1966_vm13, %v6312_v3, %v5736_v62  ;;  %v6100_v45 = vpop.permute.xlu0 %6099  ;;  %v6202_v2 = vpop.permute.xlu1 %6201  ;;  %v11650_v3 = vld [vmem:[#allocation15_spill] sm:$0xff] }
 0x612   :  { %v6436_v31 = vsel %vm2065_vm0, %v6404_v41, %v6100_v45  ;;  %v6376_v22 = vsel %vm1999_vm14, %v6344_v55, %v5832_v30  ;;  %v6474_v49 = vsel %vm2098_vm1, %v6442_v44, %v6202_v2  ;;  %v11651_v41 = vld [vmem:[#allocation16_spill] sm:$0xff] }
 0x613   :  { %v6468_v8 = vsel %vm2098_vm1, %v6436_v31, %v6196_v21  ;;  %v6408_v24 = vsel %vm2032_vm15, %v6376_v22, %v5912_v32  ;;  %v11308_v32 = vld [vmem:[%s11430_s4 + $0x3] ss:$0 sm:$0xff] }
 0x614   :  { %v7313_v33 = vcombine.low %v6468_v8, %v6470_v23  ;;  %v6440_v36 = vsel %vm2065_vm0, %v6408_v24, %v6104_v18 }
 0x615   :  { %v6200_v11 = vpop.permute.xlu0 %6199 }
 0x616   :  { %v6472_v26 = vsel %vm2098_vm1, %v6440_v36, %v6200_v11  ;;  %7553 = vmatprep.mubr.msk.bf16.mxu0 %vm2198_vm2, %v7313_v33  ;;  %v11652_v11 = vld [vmem:[#allocation34_spill] sm:$0xff] }
 0x617   :  { %v7314_v30 = vcombine.low %v6472_v26, %v6474_v49 }
 0x619   :  { %7554 = vmatmul.mubr.msk.bf16.gmra.mrb[32].mxu0 %vm2198_vm2, %v7314_v30  ;;  %v11653_v30 = vld [vmem:[#allocation50_spill] sm:$0xff] }
 0x664   :  { %v7543_v34 = vpop.f32.mrb[20].mxu0 }
 0x665   :  { %v6676_v56 = vmul.f32 %v7543_v34, %v11308_v32  ;;  %v6603_v29 = vpop.f32.mrb[21].mxu0 }
 0x666   :  { %v6674_v17 = vmul.f32 %v11308_v32, %v6603_v29  ;;  %v7544_v12 = vpop.f32.mrb[22].mxu0 }
 0x667   :  { %v6700_v57 = vadd.f32 %v11313_v1, %v6676_v56  ;;  %v6677_v9 = vmul.f32 %v7544_v12, %v11308_v32  ;;  %v6606_v21 = vpop.f32.mrb[23].mxu0 }
 0x668   :  { %v6698_v4 = vadd.f32 %v11313_v1, %v6674_v17  ;;  %v6675_v43 = vmul.f32 %v11308_v32, %v6606_v21  ;;  %v11654_v17 = vld [vmem:[#allocation18_spill] sm:$0xff] }
 0x669   :  { %v6716_v16 = vadd.f32 %v6700_v57, %v11644_v13  ;;  %v6701_v62 = vadd.f32 %v11313_v1, %v6677_v9  ;;  %v11655_v9 = vld [vmem:[#allocation52_spill] sm:$0xff] }
 0x66a   :  { %v6714_v47 = vadd.f32 %v6698_v4, %v11645_v50  ;;  %v6699_v14 = vadd.f32 %v11313_v1, %v6675_v43 }
 0x66b   :  { %v6732_v59 = vmax.f32 %v6716_v16, 0.0  ;;  %v6717_v42 = vadd.f32 %v6701_v62, %v11646_v6 }
 0x66c   :  { %v6730_v39 = vmax.f32 %v6714_v47, 0.0  ;;  %v6715_v46 = vadd.f32 %v6699_v14, %v11647_v25  ;;  %v11656_v25 = vld [vmem:[#allocation12_spill] sm:$0xff] }
 0x66d   :  { %6748 = vst.msk [vmem:[%s11433_s6 + $0x10] sm:$0xff] %vm1851_vm10, %v6732_v59  ;;  %v6733_v48 = vmax.f32 %v6717_v42, 0.0 }
 0x66e   :  { %6746 = vst.msk [vmem:[%s11433_s6] sm:$0xff] %vm1851_vm10, %v6730_v39  ;;  %v6731_v28 = vmax.f32 %v6715_v46, 0.0 }
 0x66f   :  { %6749 = vst.msk [vmem:[%s11433_s6 + $0x18] sm:$0xff] %vm1851_vm10, %v6733_v48 }
 0x670   :  { %6747 = vst.msk [vmem:[%s11433_s6 + $0x8] sm:$0xff] %vm1851_vm10, %v6731_v28  ;;  %v11657_v28 = vld [vmem:[#allocation33_spill] sm:$0xff] }
 0x67a   :  { %v7547_v38 = vpop.f32.mrb[24].mxu0 }
 0x67b   :  { %v6680_v18 = vmul.f32 %v7547_v38, %v11308_v32  ;;  %v6619_v61 = vpop.f32.mrb[25].mxu0 }
 0x67c   :  { %v6678_v27 = vmul.f32 %v11308_v32, %v6619_v61  ;;  %v7548_v19 = vpop.f32.mrb[26].mxu0 }
 0x67d   :  { %v6704_v10 = vadd.f32 %v11313_v1, %v6680_v18  ;;  %v6681_v63 = vmul.f32 %v7548_v19, %v11308_v32  ;;  %v6622_v58 = vpop.f32.mrb[27].mxu0 }
 0x67e   :  { %v6702_v37 = vadd.f32 %v11313_v1, %v6678_v27  ;;  %v6679_v15 = vmul.f32 %v11308_v32, %v6622_v58  ;;  %v11658_v27 = vld [vmem:[#allocation27_spill] sm:$0xff] }
 0x67f   :  { %v6720_v52 = vadd.f32 %v6704_v10, %v11648_v60  ;;  %v6705_v5 = vadd.f32 %v11313_v1, %v6681_v63  ;;  %v11659_v63 = vld [vmem:[#allocation41_spill] sm:$0xff] }
 0x680   :  { %v6718_v51 = vadd.f32 %v6702_v37, %v11649_v54  ;;  %v6703_v0 = vadd.f32 %v11313_v1, %v6679_v15 }
 0x681   :  { %v6736_v7 = vmax.f32 %v6720_v52, 0.0  ;;  %v6721_v40 = vadd.f32 %v6705_v5, %v11650_v3 }
 0x682   :  { %v6734_v55 = vmax.f32 %v6718_v51, 0.0  ;;  %v6719_v45 = vadd.f32 %v6703_v0, %v11651_v41 }
 0x683   :  { %6752 = vst.msk [vmem:[%s11433_s6 + $0x30] sm:$0xff] %vm1851_vm10, %v6736_v7  ;;  %v6737_v31 = vmax.f32 %v6721_v40, 0.0 }
 0x684   :  { %6750 = vst.msk [vmem:[%s11433_s6 + $0x20] sm:$0xff] %vm1851_vm10, %v6734_v55  ;;  %v6735_v20 = vmax.f32 %v6719_v45, 0.0 }
 0x685   :  { %6753 = vst.msk [vmem:[%s11433_s6 + $0x38] sm:$0xff] %vm1851_vm10, %v6737_v31 }
 0x686   :  { %6751 = vst.msk [vmem:[%s11433_s6 + $0x28] sm:$0xff] %vm1851_vm10, %v6735_v20 }
 0x6d5   :  { %v7551_v35 = vpop.f32.mrb[28].mxu0 }
 0x6d6   :  { %v6684_v22 = vmul.f32 %v7551_v35, %v11308_v32  ;;  %v6635_v23 = vpop.f32.mrb[29].mxu0 }
 0x6d7   :  { %v6682_v8 = vmul.f32 %v11308_v32, %v6635_v23  ;;  %v7552_v2 = vpop.f32.mrb[30].mxu0 }
 0x6d8   :  { %v6708_v24 = vadd.f32 %v11313_v1, %v6684_v22  ;;  %v6685_v33 = vmul.f32 %v7552_v2, %v11308_v32  ;;  %v6638_v36 = vpop.f32.mrb[31].mxu0 }
 0x6d9   :  { %v6706_v53 = vadd.f32 %v11313_v1, %v6682_v8  ;;  %v6683_v44 = vmul.f32 %v11308_v32, %v6638_v36 }
 0x6da   :  { %v6724_v49 = vadd.f32 %v6708_v24, %v11652_v11  ;;  %v6709_v26 = vadd.f32 %v11313_v1, %v6685_v33 }
 0x6db   :  { %v6722_v34 = vadd.f32 %v6706_v53, %v11653_v30  ;;  %v6707_v56 = vadd.f32 %v11313_v1, %v6683_v44 }
 0x6dc   :  { %v6740_v29 = vmax.f32 %v6724_v49, 0.0  ;;  %v6725_v12 = vadd.f32 %v6709_v26, %v11654_v17 }
 0x6dd   :  { %v6738_v57 = vmax.f32 %v6722_v34, 0.0  ;;  %v6723_v21 = vadd.f32 %v6707_v56, %v11655_v9 }
 0x6de   :  { %6756 = vst.msk [vmem:[%s11433_s6 + $0x50] sm:$0xff] %vm1851_vm10, %v6740_v29  ;;  %v6741_v4 = vmax.f32 %v6725_v12, 0.0 }
 0x6df   :  { %6754 = vst.msk [vmem:[%s11433_s6 + $0x40] sm:$0xff] %vm1851_vm10, %v6738_v57  ;;  %v6739_v43 = vmax.f32 %v6723_v21, 0.0 }
 0x6e0   :  { %6757 = vst.msk [vmem:[%s11433_s6 + $0x58] sm:$0xff] %vm1851_vm10, %v6741_v4 }
 0x6e1   :  { %6755 = vst.msk [vmem:[%s11433_s6 + $0x48] sm:$0xff] %vm1851_vm10, %v6739_v43 }
 0x6ec   :  { %v7555_v13 = vpop.f32.mrb[32].mxu0 }
 0x6ed   :  { %v6688_v16 = vmul.f32 %v7555_v13, %v11308_v32  ;;  %v6651_v62 = vpop.f32.mrb[33].mxu0 }
 0x6ee   :  { %v6686_v50 = vmul.f32 %v11308_v32, %v6651_v62  ;;  %v7556_v47 = vpop.f32.mrb[34].mxu0 }
 0x6ef   :  { %v6712_v14 = vadd.f32 %v11313_v1, %v6688_v16  ;;  %v6689_v59 = vmul.f32 %v7556_v47, %v11308_v32  ;;  %v6654_v6 = vpop.f32.mrb[35].mxu0 }
 0x6f0   :  { %v6710_v42 = vadd.f32 %v11313_v1, %v6686_v50  ;;  %v6687_v39 = vmul.f32 %v11308_v32, %v6654_v6 }
 0x6f1   :  { %v6728_v46 = vadd.f32 %v6712_v14, %v11656_v25  ;;  %v6713_v48 = vadd.f32 %v11313_v1, %v6689_v59 }
 0x6f2   :  { %v6726_v38 = vadd.f32 %v6710_v42, %v11657_v28  ;;  %v6711_v18 = vadd.f32 %v11313_v1, %v6687_v39 }
 0x6f3   :  { %v6744_v61 = vmax.f32 %v6728_v46, 0.0  ;;  %v6729_v19 = vadd.f32 %v6713_v48, %v11658_v27 }
 0x6f4   :  { %v6742_v10 = vmax.f32 %v6726_v38, 0.0  ;;  %v6727_v58 = vadd.f32 %v6711_v18, %v11659_v63 }
 0x6f5   :  { %6760 = vst.msk [vmem:[%s11433_s6 + $0x70] sm:$0xff] %vm1851_vm10, %v6744_v61  ;;  %v6745_v32 = vmax.f32 %v6729_v19, 0.0 }
 0x6f6   :  { %6758 = vst.msk [vmem:[%s11433_s6 + $0x60] sm:$0xff] %vm1851_vm10, %v6742_v10  ;;  %v6743_v37 = vmax.f32 %v6727_v58, 0.0 }
 0x6f7   :  { %6761 = vst.msk [vmem:[%s11433_s6 + $0x78] sm:$0xff] %vm1851_vm10, %v6745_v32 }
 0x6f8   :  { %6759 = vst.msk [vmem:[%s11433_s6 + $0x68] sm:$0xff] %vm1851_vm10, %v6743_v37 }

</bundles_post_ra>
